<compile_context>
chip_gen: v7x
topology: tpu7x:2x2x1
jax: 0.10.0
libtpu: 0.0.40
codegen_flags: <defaults>
</compile_context>

<pallas_src>
import functools
import math

import jax
import jax.numpy as jnp
from jax.experimental import pallas as pl
from jax.experimental.pallas import tpu as pltpu

_BN_EPS = 1e-5
_VMEM_LIMIT = 32 * 1024 * 1024
_TK_CAP = 1536   # largest contraction (K) tile
_TN_CAP = 512    # largest output-channel (N) tile


def _round_up(x, m):
    return ((x + m - 1) // m) * m


def _largest_tile(size, cap):
    """Largest multiple-of-128 divisor of `size` (itself a multiple of 128) <= cap."""
    if size <= cap:
        return size
    best = 128
    d = 256
    while d <= cap:
        if size % d == 0:
            best = d
        d += 128
    return best


# ----------------------------- Pallas kernels -----------------------------

def _mm_bn_kernel(x_ref, w_ref, s_ref, b_ref, o_ref, acc_ref, *, relu):
    """Tiled: acc += x@w over the K grid axis; scale/bias(+ReLU) epilogue on last K."""
    @pl.when(pl.program_id(2) == 0)
    def _():
        acc_ref[...] = jnp.zeros_like(acc_ref)

    acc_ref[...] += jnp.dot(x_ref[...], w_ref[...],
                            preferred_element_type=jnp.float32)

    @pl.when(pl.program_id(2) == pl.num_programs(2) - 1)
    def _():
        y = acc_ref[...] * s_ref[...] + b_ref[...]
        if relu:
            y = jnp.maximum(y, 0.0)
        o_ref[...] = y.astype(o_ref.dtype)


def _mm_bn_res_kernel(x_ref, w_ref, s_ref, b_ref, r_ref, o_ref, acc_ref, *, relu):
    """Tiled: acc += x@w; scale/bias + residual (+ReLU) epilogue on the last K step."""
    @pl.when(pl.program_id(2) == 0)
    def _():
        acc_ref[...] = jnp.zeros_like(acc_ref)

    acc_ref[...] += jnp.dot(x_ref[...], w_ref[...],
                            preferred_element_type=jnp.float32)

    @pl.when(pl.program_id(2) == pl.num_programs(2) - 1)
    def _():
        y = acc_ref[...] * s_ref[...] + b_ref[...] + r_ref[...].astype(jnp.float32)
        if relu:
            y = jnp.maximum(y, 0.0)
        o_ref[...] = y.astype(o_ref.dtype)


def _maxpool_kernel(e_ref, a_ref, b_ref, d_ref, o_ref, *, ho, wo):
    """3x3/s2 max pool from the 4 parity slices (even/odd rows x even/odd cols).

    For output (ho_, wo_): rows {2ho_, 2ho_+1, 2ho_+2} and cols {2wo_, 2wo_+1, 2wo_+2}
    of the padded input == static slices of the parity tensors (all 9 taps in one pass).
    """
    ce = jnp.maximum(jnp.maximum(e_ref[:, pl.ds(0, wo), :],
                                 a_ref[:, pl.ds(0, wo), :]),
                     e_ref[:, pl.ds(1, wo), :])          # even rows, 3-col max
    co = jnp.maximum(jnp.maximum(b_ref[:, pl.ds(0, wo), :],
                                 d_ref[:, pl.ds(0, wo), :]),
                     b_ref[:, pl.ds(1, wo), :])          # odd rows, 3-col max
    o_ref[...] = jnp.maximum(jnp.maximum(ce[:ho], co[:ho]), ce[1:ho + 1])


def _avgpool_kernel(x_ref, o_ref, *, inv_hw):
    """Per-image global average pool: f32 sum over the spatial axis, scale by 1/(H*W)."""
    s = jnp.sum(x_ref[...].astype(jnp.float32), axis=0, keepdims=True) * inv_hw
    o_ref[...] = s.astype(o_ref.dtype)


# ----------------------------- Pallas wrappers -----------------------------

def fused_matmul_bn(x2d, wp, scale, bias, residual=None, relu=False):
    """(M,K)@(Kp,Np) with fused per-column scale/bias (+residual)(+ReLU), bf16 out.

    `wp` is already transposed/padded/bf16 (prepared once at param-load time);
    Kp/Np (multiples of 128) come from its shape, true N from `scale`.
    """
    M, K = x2d.shape
    Kp, Np = wp.shape
    N = scale.shape[0]

    tk = _largest_tile(Kp, _TK_CAP)
    tn = _largest_tile(Np, _TN_CAP)
    if M >= 256:
        tm = 256
    elif M >= 128:
        tm = 128
    else:
        tm = _round_up(M, 16)          # bf16 packs 2 rows / sublane -> multiple of 16
    Mp = _round_up(M, tm)

    xp = jnp.pad(x2d.astype(jnp.bfloat16), ((0, Mp - M), (0, Kp - K)))
    sp = jnp.pad(scale.astype(jnp.float32).reshape(1, N), ((0, 0), (0, Np - N)))
    bp = jnp.pad(bias.astype(jnp.float32).reshape(1, N), ((0, 0), (0, Np - N)))

    in_specs = [
        pl.BlockSpec((tm, tk), lambda i, j, k: (i, k)),
        pl.BlockSpec((tk, tn), lambda i, j, k: (k, j)),
        pl.BlockSpec((1, tn), lambda i, j, k: (0, j)),
        pl.BlockSpec((1, tn), lambda i, j, k: (0, j)),
    ]
    args = [xp, wp, sp, bp]
    if residual is None:
        kernel = functools.partial(_mm_bn_kernel, relu=relu)
    else:
        rp = jnp.pad(residual.astype(jnp.bfloat16), ((0, Mp - M), (0, Np - N)))
        in_specs.append(pl.BlockSpec((tm, tn), lambda i, j, k: (i, j)))
        args.append(rp)
        kernel = functools.partial(_mm_bn_res_kernel, relu=relu)

    out = pl.pallas_call(
        kernel,
        out_shape=jax.ShapeDtypeStruct((Mp, Np), jnp.bfloat16),
        grid_spec=pltpu.PrefetchScalarGridSpec(
            num_scalar_prefetch=0,
            grid=(Mp // tm, Np // tn, Kp // tk),
            in_specs=in_specs,
            out_specs=pl.BlockSpec((tm, tn), lambda i, j, k: (i, j)),
            scratch_shapes=[pltpu.VMEM((tm, tn), jnp.float32)],
        ),
        compiler_params=pltpu.CompilerParams(
            dimension_semantics=("parallel", "parallel", "arbitrary"),
            vmem_limit_bytes=_VMEM_LIMIT),
    )(*args)

    if Mp == M and Np == N:
        return out
    return out[:M, :N]


def _extract_patches(x, kh, kw, stride, pad):
    """im2col on NHWC input (zero padding).  Returns ((N*Ho*Wo, KH*KW*C), dims)."""
    n, h, w, c = x.shape
    xp = jnp.pad(x, ((0, 0), (pad, pad), (pad, pad), (0, 0)))
    ho = (h + 2 * pad - kh) // stride + 1
    wo = (w + 2 * pad - kw) // stride + 1
    cols = []
    for i in range(kh):
        for j in range(kw):
            cols.append(
                jax.lax.slice(
                    xp,
                    (0, i, j, 0),
                    (n, i + (ho - 1) * stride + 1, j + (wo - 1) * stride + 1, c),
                    (1, stride, stride, 1),
                )
            )
    patches = jnp.stack(cols, axis=3)                      # (N,Ho,Wo,KH*KW,C)
    return patches.reshape(n * ho * wo, kh * kw * c), (n, ho, wo)


def conv_bn(x, layer, *, kh, kw, stride, pad, relu, residual=None):
    """Conv2d (no bias) + folded BN (+residual)(+ReLU).  x: NHWC bf16; layer: prepared."""
    patches, (n, ho, wo) = _extract_patches(x, kh, kw, stride, pad)
    cout = layer["scale"].shape[0]
    r2d = None if residual is None else residual.reshape(n * ho * wo, cout)
    out2d = fused_matmul_bn(patches, layer["w"], layer["scale"], layer["bias"],
                            residual=r2d, relu=relu)
    return out2d.reshape(n, ho, wo, cout)


def maxpool_3x3_s2_p1(x):
    """MaxPool2d(kernel=3, stride=2, padding=1) on NHWC bf16 input, single Pallas pass."""
    n, h, w, c = x.shape
    ho = (h + 2 - 3) // 2 + 1
    wo = (w + 2 - 3) // 2 + 1
    hp = _round_up(h + 2, 2)
    wp_ = _round_up(w + 2, 2)
    neg = float(jnp.finfo(x.dtype).min)    # matches PyTorch's implicit -inf padding
    xp = jnp.pad(x, ((0, 0), (1, hp - h - 1), (1, wp_ - w - 1), (0, 0)),
                 constant_values=neg)
    hh, wh = hp // 2, wp_ // 2             # hh >= ho+1, wh >= wo+1 by construction

    # Even/odd parity slices: together they read the padded activation exactly once;
    # the kernel rebuilds all 9 window taps from static slices of these 4 tensors.
    e = xp[:, 0::2, 0::2, :]
    a = xp[:, 0::2, 1::2, :]
    b = xp[:, 1::2, 0::2, :]
    d = xp[:, 1::2, 1::2, :]

    par_spec = pl.BlockSpec((None, hh, wh, c), lambda i: (i, 0, 0, 0))
    out = pl.pallas_call(
        functools.partial(_maxpool_kernel, ho=ho, wo=wo),
        out_shape=jax.ShapeDtypeStruct((n, ho, wo, c), x.dtype),
        grid=(n,),
        in_specs=[par_spec] * 4,
        out_specs=pl.BlockSpec((None, ho, wo, c), lambda i: (i, 0, 0, 0)),
        compiler_params=pltpu.CompilerParams(
            dimension_semantics=("parallel",),
            vmem_limit_bytes=_VMEM_LIMIT),
    )(e, a, b, d)
    return out


def global_avgpool(x):
    """AdaptiveAvgPool2d((1,1)) on NHWC input -> (N, C) in f32."""
    n, h, w, c = x.shape
    hw = h * w
    hwp = _round_up(hw, 8)
    cp = _round_up(c, 128)
    x3 = jnp.pad(x.reshape(n, hw, c), ((0, 0), (0, hwp - hw), (0, cp - c)))
    out = pl.pallas_call(
        functools.partial(_avgpool_kernel, inv_hw=1.0 / hw),
        out_shape=jax.ShapeDtypeStruct((n, 1, cp), jnp.float32),
        grid=(n,),
        in_specs=[pl.BlockSpec((None, hwp, cp), lambda i: (i, 0, 0))],
        out_specs=pl.BlockSpec((None, 1, cp), lambda i: (i, 0, 0)),
        compiler_params=pltpu.CompilerParams(
            dimension_semantics=("parallel",),
            vmem_limit_bytes=_VMEM_LIMIT),
    )(x3)
    return out.reshape(n, cp)[:, :c]


# ----------------------------- parameters -----------------------------

def _init_conv(key, cout, cin, kh, kw):
    fan_in = cin * kh * kw
    return jax.random.normal(key, (cout, cin, kh, kw), jnp.float32) / math.sqrt(fan_in)


def _init_bn(key, c):
    k1, k2, k3 = jax.random.split(key, 3)
    return {
        "gamma": 1.0 + 0.1 * jax.random.normal(k1, (c,), jnp.float32),
        "beta": 0.1 * jax.random.normal(k2, (c,), jnp.float32),
        "mean": 0.1 * jax.random.normal(k3, (c,), jnp.float32),
        "var": jnp.ones((c,), jnp.float32),
    }


def init_resnet_params(key, layers, num_classes=3, img_in_channels=1):
    keys = iter(jax.random.split(key, 256))
    params = {
        "pre_conv": _init_conv(next(keys), 64, img_in_channels, 7, 7),
        "pre_bn": _init_bn(next(keys), 64),
        "stages": [],
    }
    in_c = 64
    stage_channels = [64, 128, 256, 512]
    stage_strides = [1, 2, 2, 2]
    for out_c, num_blocks, stride in zip(stage_channels, layers, stage_strides):
        blocks = []
        for b in range(num_blocks):
            bs = stride if b == 0 else 1
            blk = {
                "conv1": _init_conv(next(keys), out_c, in_c, 3, 3),
                "bn1": _init_bn(next(keys), out_c),
                "conv2": _init_conv(next(keys), out_c, out_c, 3, 3),
                "bn2": _init_bn(next(keys), out_c),
            }
            if bs != 1 or in_c != out_c:
                blk["ds_conv"] = _init_conv(next(keys), out_c, in_c, 1, 1)
                blk["ds_bn"] = _init_bn(next(keys), out_c)
            blocks.append(blk)
            in_c = out_c
        params["stages"].append(blocks)
    params["fc_w"] = jax.random.normal(next(keys), (num_classes, 512), jnp.float32) / math.sqrt(512)
    params["fc_b"] = 0.1 * jax.random.normal(next(keys), (num_classes,), jnp.float32)
    return params


def _fold_bn(bn):
    scale = bn["gamma"] / jnp.sqrt(bn["var"] + _BN_EPS)
    bias = bn["beta"] - bn["mean"] * scale
    return scale, bias


def _prep_conv_bn(w, bn):
    """One-time: fold BN, transpose weights to (KH*KW*Cin, Cout), pad to 128, cast bf16."""
    cout, cin, kh, kw = w.shape
    K = kh * kw * cin
    Kp = _round_up(K, 128)
    Np = _round_up(cout, 128)
    w2d = jnp.transpose(w, (2, 3, 1, 0)).reshape(K, cout)
    wp = jnp.pad(w2d, ((0, Kp - K), (0, Np - cout))).astype(jnp.bfloat16)
    scale, bias = _fold_bn(bn)
    return {"w": wp, "scale": scale, "bias": bias}


def prepare_params(params):
    """Hoist all weight prep out of the forward path (run once at load time)."""
    prep = {
        "pre": _prep_conv_bn(params["pre_conv"], params["pre_bn"]),
        "stages": [],
        "fc_w": params["fc_w"].T,          # (512, num_classes), pre-transposed
        "fc_b": params["fc_b"],
    }
    for blocks in params["stages"]:
        pblocks = []
        for blk in blocks:
            p = {
                "conv1": _prep_conv_bn(blk["conv1"], blk["bn1"]),
                "conv2": _prep_conv_bn(blk["conv2"], blk["bn2"]),
            }
            if "ds_conv" in blk:
                p["ds"] = _prep_conv_bn(blk["ds_conv"], blk["ds_bn"])
            pblocks.append(p)
        prep["stages"].append(pblocks)
    return prep


# ----------------------------- forward -----------------------------

def resnet_forward(params, x_nchw):
    """Mirrors ResNet.forward: pre -> layer1..4 (basic residual blocks) -> GAP -> fc."""
    x = jnp.transpose(x_nchw, (0, 2, 3, 1)).astype(jnp.bfloat16)   # NCHW -> NHWC bf16
    # pre: Conv7x7/s2/p3 (no bias) -> BN -> ReLU -> MaxPool3x3/s2/p1
    x = conv_bn(x, params["pre"], kh=7, kw=7, stride=2, pad=3, relu=True)
    x = maxpool_3x3_s2_p1(x)

    stage_strides = [1, 2, 2, 2]
    for stage_idx, blocks in enumerate(params["stages"]):
        for b_idx, blk in enumerate(blocks):
            bs = stage_strides[stage_idx] if b_idx == 0 else 1
            identity = x
            out = conv_bn(x, blk["conv1"], kh=3, kw=3, stride=bs, pad=1, relu=True)
            if "ds" in blk:
                identity = conv_bn(x, blk["ds"], kh=1, kw=1, stride=bs, pad=0,
                                   relu=False)
            # conv2 + BN + residual add + ReLU, fused in one tiled Pallas kernel
            x = conv_bn(out, blk["conv2"], kh=3, kw=3, stride=1, pad=1,
                        relu=True, residual=identity)

    pooled = global_avgpool(x)                                   # (N, 512) f32
    # FC head: tiny (N x 512 x num_classes) GEMM -- plain XLA dot avoids a
    # 128-wide padded Pallas tile with 3 useful output columns.
    logits = jnp.dot(pooled, params["fc_w"]) + params["fc_b"]
    return logits                                                # (N, num_classes)


# ----------------------------- main -----------------------------

if __name__ == "__main__":
    key = jax.random.PRNGKey(0)
    kp, kx = jax.random.split(key)

    # Small config: block counts are a constructor arg; default ResNet-34 would be [3,4,6,3].
    layers = [1, 1, 1, 1]
    num_classes = 3
    img_in_channels = 1

    raw_params = init_resnet_params(kp, layers, num_classes=num_classes,
                                    img_in_channels=img_in_channels)
    params = prepare_params(raw_params)    # one-time weight prep / BN fold

    # Input in PyTorch NCHW layout.
    x = jax.random.normal(kx, (2, img_in_channels, 32, 32), jnp.float32)

    fwd = jax.jit(resnet_forward)
    out = fwd(params, x)
    jax.block_until_ready(out)

    assert out.shape == (2, num_classes), out.shape
    assert bool(jnp.all(jnp.isfinite(out)))
    print("KERNEL_OK")
</pallas_src>

<mosaic_0001>
module attributes {stable_mosaic.version = 11 : i64} {
  func.func @_mm_bn_kernel(%arg0: i32, %arg1: i32, %arg2: i32, %arg3: memref<256x128xbf16, #tpu.memory_space<vmem>>, %arg4: memref<128x128xbf16, #tpu.memory_space<vmem>>, %arg5: memref<1x128xf32, #tpu.memory_space<vmem>>, %arg6: memref<1x128xf32, #tpu.memory_space<vmem>>, %arg7: memref<256x128xbf16, #tpu.memory_space<vmem>>, %arg8: memref<256x128xf32, #tpu.memory_space<vmem>>) attributes {dimension_semantics = [#tpu.dimension_semantics<parallel>, #tpu.dimension_semantics<parallel>, #tpu.dimension_semantics<arbitrary>], iteration_bounds = array<i64: 2, 1, 1>, scalar_prefetch = 0 : i64, scratch_operands = 1 : i64, tpu.core_type = #tpu.core_type<tc>, window_params = [{transform_indices = @transform_0, window_bounds = array<i64: 256, 128>}, {transform_indices = @transform_1, window_bounds = array<i64: 128, 128>}, {transform_indices = @transform_2, window_bounds = array<i64: 1, 128>}, {transform_indices = @transform_3, window_bounds = array<i64: 1, 128>}, {transform_indices = @transform_4, window_bounds = array<i64: 256, 128>}]} {
    %c0_i32 = arith.constant 0 : i32
    %0 = arith.cmpi eq, %arg2, %c0_i32 : i32
    %1 = arith.extui %0 : i1 to i32
    %c0_i32_0 = arith.constant 0 : i32
    %2 = arith.cmpi ne, %1, %c0_i32_0 : i32
    scf.if %2 {
      %cst_10 = arith.constant 0.000000e+00 : f32
      %12 = vector.broadcast %cst_10 : f32 to vector<256x128xf32>
      %c0_11 = arith.constant 0 : index
      %c0_12 = arith.constant 0 : index
      %13 = vector.load %arg8[%c0_11, %c0_12] : memref<256x128xf32, #tpu.memory_space<vmem>>, vector<256x128xf32>
      tpu.vector_store %arg8[%c0_11, %c0_12], %12 {strides = array<i32>} : memref<256x128xf32, #tpu.memory_space<vmem>>, vector<256x128xf32>,
    } else {
    }
    %c0 = arith.constant 0 : index
    %c0_1 = arith.constant 0 : index
    %3 = vector.load %arg8[%c0, %c0_1] : memref<256x128xf32, #tpu.memory_space<vmem>>, vector<256x128xf32>
    %c0_2 = arith.constant 0 : index
    %c0_3 = arith.constant 0 : index
    %4 = vector.load %arg3[%c0_2, %c0_3] : memref<256x128xbf16, #tpu.memory_space<vmem>>, vector<256x128xbf16>
    %c0_4 = arith.constant 0 : index
    %c0_5 = arith.constant 0 : index
    %5 = vector.load %arg4[%c0_4, %c0_5] : memref<128x128xbf16, #tpu.memory_space<vmem>>, vector<128x128xbf16>
    %cst = arith.constant dense<0.000000e+00> : vector<256x128xf32>
    %6 = tpu.matmul %4, %5, %cst {dimension_numbers = #tpu.dot_dimension_numbers<[1], [0], [0], [1], [0, 0, 1, 1], [], []>} : vector<256x128xbf16>, vector<128x128xbf16>, vector<256x128xf32> -> vector<256x128xf32>
    %7 = arith.addf %3, %6 : vector<256x128xf32>
    %c0_6 = arith.constant 0 : index
    %c0_7 = arith.constant 0 : index
    %8 = vector.load %arg8[%c0_6, %c0_7] : memref<256x128xf32, #tpu.memory_space<vmem>>, vector<256x128xf32>
    tpu.vector_store %arg8[%c0_6, %c0_7], %7 {strides = array<i32>} : memref<256x128xf32, #tpu.memory_space<vmem>>, vector<256x128xf32>,
    %c0_i32_8 = arith.constant 0 : i32
    %9 = arith.cmpi eq, %arg2, %c0_i32_8 : i32
    %10 = arith.extui %9 : i1 to i32
    %c0_i32_9 = arith.constant 0 : i32
    %11 = arith.cmpi ne, %10, %c0_i32_9 : i32
    scf.if %11 {
      %c0_10 = arith.constant 0 : index
      %c0_11 = arith.constant 0 : index
      %12 = vector.load %arg8[%c0_10, %c0_11] : memref<256x128xf32, #tpu.memory_space<vmem>>, vector<256x128xf32>
      %c0_12 = arith.constant 0 : index
      %c0_13 = arith.constant 0 : index
      %13 = vector.load %arg5[%c0_12, %c0_13] : memref<1x128xf32, #tpu.memory_space<vmem>>, vector<1x128xf32>
      %14 = vector.broadcast %13 : vector<1x128xf32> to vector<256x128xf32>
      %15 = arith.mulf %12, %14 : vector<256x128xf32>
      %c0_14 = arith.constant 0 : index
      %c0_15 = arith.constant 0 : index
      %16 = vector.load %arg6[%c0_14, %c0_15] : memref<1x128xf32, #tpu.memory_space<vmem>>, vector<1x128xf32>
      %17 = vector.broadcast %16 : vector<1x128xf32> to vector<256x128xf32>
      %18 = arith.addf %15, %17 : vector<256x128xf32>
      %cst_16 = arith.constant 0.000000e+00 : f32
      %19 = vector.broadcast %cst_16 : f32 to vector<256x128xf32>
      %20 = arith.maximumf %18, %19 : vector<256x128xf32>
      %21 = arith.truncf %20 : vector<256x128xf32> to vector<256x128xbf16>
      %c0_17 = arith.constant 0 : index
      %c0_18 = arith.constant 0 : index
      %22 = vector.load %arg7[%c0_17, %c0_18] : memref<256x128xbf16, #tpu.memory_space<vmem>>, vector<256x128xbf16>
      tpu.vector_store %arg7[%c0_17, %c0_18], %21 {strides = array<i32>} : memref<256x128xbf16, #tpu.memory_space<vmem>>, vector<256x128xbf16>,
    } else {
    }
    return
  }
  func.func @transform_0(%arg0: i32, %arg1: i32, %arg2: i32) -> (i32, i32) {
    %c0_i32 = arith.constant 0 : i32
    return %arg0, %arg2 : i32, i32
  }
  func.func @transform_1(%arg0: i32, %arg1: i32, %arg2: i32) -> (i32, i32) {
    %c0_i32 = arith.constant 0 : i32
    return %arg2, %arg1 : i32, i32
  }
  func.func @transform_2(%arg0: i32, %arg1: i32, %arg2: i32) -> (i32, i32) {
    %c0_i32 = arith.constant 0 : i32
    %c0_i32_0 = arith.constant 0 : i32
    return %c0_i32, %arg1 : i32, i32
  }
  func.func @transform_3(%arg0: i32, %arg1: i32, %arg2: i32) -> (i32, i32) {
    %c0_i32 = arith.constant 0 : i32
    %c0_i32_0 = arith.constant 0 : i32
    return %c0_i32, %arg1 : i32, i32
  }
  func.func @transform_4(%arg0: i32, %arg1: i32, %arg2: i32) -> (i32, i32) {
    %c0_i32 = arith.constant 0 : i32
    return %arg0, %arg1 : i32, i32
  }
}

module attributes {stable_mosaic.version = 11 : i64} {
  func.func @_maxpool_kernel(%arg0: i32, %arg1: memref<1x9x9x64xbf16, #tpu.memory_space<vmem>>, %arg2: memref<1x9x9x64xbf16, #tpu.memory_space<vmem>>, %arg3: memref<1x9x9x64xbf16, #tpu.memory_space<vmem>>, %arg4: memref<1x9x9x64xbf16, #tpu.memory_space<vmem>>, %arg5: memref<1x8x8x64xbf16, #tpu.memory_space<vmem>>) attributes {dimension_semantics = [#tpu.dimension_semantics<parallel>], iteration_bounds = array<i64: 2>, scalar_prefetch = 0 : i64, scratch_operands = 0 : i64, tpu.core_type = #tpu.core_type<tc>, window_params = [{transform_indices = @transform_0, window_bounds = array<i64: 1, 9, 9, 64>}, {transform_indices = @transform_1, window_bounds = array<i64: 1, 9, 9, 64>}, {transform_indices = @transform_2, window_bounds = array<i64: 1, 9, 9, 64>}, {transform_indices = @transform_3, window_bounds = array<i64: 1, 9, 9, 64>}, {transform_indices = @transform_4, window_bounds = array<i64: 1, 8, 8, 64>}]} {
    %c0 = arith.constant 0 : index
    %c0_0 = arith.constant 0 : index
    %c0_1 = arith.constant 0 : index
    %c0_2 = arith.constant 0 : index
    %0 = vector.load %arg1[%c0, %c0_0, %c0_1, %c0_2] : memref<1x9x9x64xbf16, #tpu.memory_space<vmem>>, vector<1x9x8x64xbf16>
    %1 = vector.shape_cast %0 : vector<1x9x8x64xbf16> to vector<9x8x64xbf16>
    %c0_3 = arith.constant 0 : index
    %c0_4 = arith.constant 0 : index
    %c0_5 = arith.constant 0 : index
    %c0_6 = arith.constant 0 : index
    %2 = vector.load %arg2[%c0_3, %c0_4, %c0_5, %c0_6] : memref<1x9x9x64xbf16, #tpu.memory_space<vmem>>, vector<1x9x8x64xbf16>
    %3 = vector.shape_cast %2 : vector<1x9x8x64xbf16> to vector<9x8x64xbf16>
    %4 = arith.maximumf %1, %3 : vector<9x8x64xbf16>
    %c0_7 = arith.constant 0 : index
    %c0_8 = arith.constant 0 : index
    %c1 = arith.constant 1 : index
    %c0_9 = arith.constant 0 : index
    %5 = vector.load %arg1[%c0_7, %c0_8, %c1, %c0_9] : memref<1x9x9x64xbf16, #tpu.memory_space<vmem>>, vector<1x9x8x64xbf16>
    %6 = vector.shape_cast %5 : vector<1x9x8x64xbf16> to vector<9x8x64xbf16>
    %7 = arith.maximumf %4, %6 : vector<9x8x64xbf16>
    %c0_10 = arith.constant 0 : index
    %c0_11 = arith.constant 0 : index
    %c0_12 = arith.constant 0 : index
    %c0_13 = arith.constant 0 : index
    %8 = vector.load %arg3[%c0_10, %c0_11, %c0_12, %c0_13] : memref<1x9x9x64xbf16, #tpu.memory_space<vmem>>, vector<1x9x8x64xbf16>
    %9 = vector.shape_cast %8 : vector<1x9x8x64xbf16> to vector<9x8x64xbf16>
    %c0_14 = arith.constant 0 : index
    %c0_15 = arith.constant 0 : index
    %c0_16 = arith.constant 0 : index
    %c0_17 = arith.constant 0 : index
    %10 = vector.load %arg4[%c0_14, %c0_15, %c0_16, %c0_17] : memref<1x9x9x64xbf16, #tpu.memory_space<vmem>>, vector<1x9x8x64xbf16>
    %11 = vector.shape_cast %10 : vector<1x9x8x64xbf16> to vector<9x8x64xbf16>
    %12 = arith.maximumf %9, %11 : vector<9x8x64xbf16>
    %c0_18 = arith.constant 0 : index
    %c0_19 = arith.constant 0 : index
    %c1_20 = arith.constant 1 : index
    %c0_21 = arith.constant 0 : index
    %13 = vector.load %arg3[%c0_18, %c0_19, %c1_20, %c0_21] : memref<1x9x9x64xbf16, #tpu.memory_space<vmem>>, vector<1x9x8x64xbf16>
    %14 = vector.shape_cast %13 : vector<1x9x8x64xbf16> to vector<9x8x64xbf16>
    %15 = arith.maximumf %12, %14 : vector<9x8x64xbf16>
    %16 = vector.extract_strided_slice %7 {offsets = [0, 0, 0], sizes = [8, 8, 64], strides = [1, 1, 1]} : vector<9x8x64xbf16> to vector<8x8x64xbf16>
    %17 = vector.extract_strided_slice %15 {offsets = [0, 0, 0], sizes = [8, 8, 64], strides = [1, 1, 1]} : vector<9x8x64xbf16> to vector<8x8x64xbf16>
    %18 = arith.maximumf %16, %17 : vector<8x8x64xbf16>
    %19 = vector.extract_strided_slice %7 {offsets = [1, 0, 0], sizes = [8, 8, 64], strides = [1, 1, 1]} : vector<9x8x64xbf16> to vector<8x8x64xbf16>
    %20 = arith.maximumf %18, %19 : vector<8x8x64xbf16>
    %c0_22 = arith.constant 0 : index
    %c0_23 = arith.constant 0 : index
    %c0_24 = arith.constant 0 : index
    %c0_25 = arith.constant 0 : index
    %21 = vector.load %arg5[%c0_22, %c0_23, %c0_24, %c0_25] : memref<1x8x8x64xbf16, #tpu.memory_space<vmem>>, vector<1x8x8x64xbf16>
    %22 = vector.shape_cast %21 : vector<1x8x8x64xbf16> to vector<8x8x64xbf16>
    %23 = vector.shape_cast %20 : vector<8x8x64xbf16> to vector<1x8x8x64xbf16>
    tpu.vector_store %arg5[%c0_22, %c0_23, %c0_24, %c0_25], %23 {strides = array<i32>} : memref<1x8x8x64xbf16, #tpu.memory_space<vmem>>, vector<1x8x8x64xbf16>,
    return
  }
  func.func @transform_0(%arg0: i32) -> (i32, i32, i32, i32) {
    %c0_i32 = arith.constant 0 : i32
    %c0_i32_0 = arith.constant 0 : i32
    %c0_i32_1 = arith.constant 0 : i32
    %c0_i32_2 = arith.constant 0 : i32
    return %arg0, %c0_i32, %c0_i32_0, %c0_i32_1 : i32, i32, i32, i32
  }
  func.func @transform_1(%arg0: i32) -> (i32, i32, i32, i32) {
    %c0_i32 = arith.constant 0 : i32
    %c0_i32_0 = arith.constant 0 : i32
    %c0_i32_1 = arith.constant 0 : i32
    %c0_i32_2 = arith.constant 0 : i32
    return %arg0, %c0_i32, %c0_i32_0, %c0_i32_1 : i32, i32, i32, i32
  }
  func.func @transform_2(%arg0: i32) -> (i32, i32, i32, i32) {
    %c0_i32 = arith.constant 0 : i32
    %c0_i32_0 = arith.constant 0 : i32
    %c0_i32_1 = arith.constant 0 : i32
    %c0_i32_2 = arith.constant 0 : i32
    return %arg0, %c0_i32, %c0_i32_0, %c0_i32_1 : i32, i32, i32, i32
  }
  func.func @transform_3(%arg0: i32) -> (i32, i32, i32, i32) {
    %c0_i32 = arith.constant 0 : i32
    %c0_i32_0 = arith.constant 0 : i32
    %c0_i32_1 = arith.constant 0 : i32
    %c0_i32_2 = arith.constant 0 : i32
    return %arg0, %c0_i32, %c0_i32_0, %c0_i32_1 : i32, i32, i32, i32
  }
  func.func @transform_4(%arg0: i32) -> (i32, i32, i32, i32) {
    %c0_i32 = arith.constant 0 : i32
    %c0_i32_0 = arith.constant 0 : i32
    %c0_i32_1 = arith.constant 0 : i32
    %c0_i32_2 = arith.constant 0 : i32
    return %arg0, %c0_i32, %c0_i32_0, %c0_i32_1 : i32, i32, i32, i32
  }
}

module attributes {stable_mosaic.version = 11 : i64} {
  func.func @_mm_bn_kernel(%arg0: i32, %arg1: i32, %arg2: i32, %arg3: memref<128x640xbf16, #tpu.memory_space<vmem>>, %arg4: memref<640x128xbf16, #tpu.memory_space<vmem>>, %arg5: memref<1x128xf32, #tpu.memory_space<vmem>>, %arg6: memref<1x128xf32, #tpu.memory_space<vmem>>, %arg7: memref<128x128xbf16, #tpu.memory_space<vmem>>, %arg8: memref<128x128xf32, #tpu.memory_space<vmem>>) attributes {dimension_semantics = [#tpu.dimension_semantics<parallel>, #tpu.dimension_semantics<parallel>, #tpu.dimension_semantics<arbitrary>], iteration_bounds = array<i64: 1, 1, 1>, scalar_prefetch = 0 : i64, scratch_operands = 1 : i64, tpu.core_type = #tpu.core_type<tc>, window_params = [{transform_indices = @transform_0, window_bounds = array<i64: 128, 640>}, {transform_indices = @transform_1, window_bounds = array<i64: 640, 128>}, {transform_indices = @transform_2, window_bounds = array<i64: 1, 128>}, {transform_indices = @transform_3, window_bounds = array<i64: 1, 128>}, {transform_indices = @transform_4, window_bounds = array<i64: 128, 128>}]} {
    %c0_i32 = arith.constant 0 : i32
    %0 = arith.cmpi eq, %arg2, %c0_i32 : i32
    %1 = arith.extui %0 : i1 to i32
    %c0_i32_0 = arith.constant 0 : i32
    %2 = arith.cmpi ne, %1, %c0_i32_0 : i32
    scf.if %2 {
      %cst_10 = arith.constant 0.000000e+00 : f32
      %12 = vector.broadcast %cst_10 : f32 to vector<128x128xf32>
      %c0_11 = arith.constant 0 : index
      %c0_12 = arith.constant 0 : index
      %13 = vector.load %arg8[%c0_11, %c0_12] : memref<128x128xf32, #tpu.memory_space<vmem>>, vector<128x128xf32>
      tpu.vector_store %arg8[%c0_11, %c0_12], %12 {strides = array<i32>} : memref<128x128xf32, #tpu.memory_space<vmem>>, vector<128x128xf32>,
    } else {
    }
    %c0 = arith.constant 0 : index
    %c0_1 = arith.constant 0 : index
    %3 = vector.load %arg8[%c0, %c0_1] : memref<128x128xf32, #tpu.memory_space<vmem>>, vector<128x128xf32>
    %c0_2 = arith.constant 0 : index
    %c0_3 = arith.constant 0 : index
    %4 = vector.load %arg3[%c0_2, %c0_3] : memref<128x640xbf16, #tpu.memory_space<vmem>>, vector<128x640xbf16>
    %c0_4 = arith.constant 0 : index
    %c0_5 = arith.constant 0 : index
    %5 = vector.load %arg4[%c0_4, %c0_5] : memref<640x128xbf16, #tpu.memory_space<vmem>>, vector<640x128xbf16>
    %cst = arith.constant dense<0.000000e+00> : vector<128x128xf32>
    %6 = tpu.matmul %4, %5, %cst {dimension_numbers = #tpu.dot_dimension_numbers<[1], [0], [0], [1], [0, 0, 1, 1], [], []>} : vector<128x640xbf16>, vector<640x128xbf16>, vector<128x128xf32> -> vector<128x128xf32>
    %7 = arith.addf %3, %6 : vector<128x128xf32>
    %c0_6 = arith.constant 0 : index
    %c0_7 = arith.constant 0 : index
    %8 = vector.load %arg8[%c0_6, %c0_7] : memref<128x128xf32, #tpu.memory_space<vmem>>, vector<128x128xf32>
    tpu.vector_store %arg8[%c0_6, %c0_7], %7 {strides = array<i32>} : memref<128x128xf32, #tpu.memory_space<vmem>>, vector<128x128xf32>,
    %c0_i32_8 = arith.constant 0 : i32
    %9 = arith.cmpi eq, %arg2, %c0_i32_8 : i32
    %10 = arith.extui %9 : i1 to i32
    %c0_i32_9 = arith.constant 0 : i32
    %11 = arith.cmpi ne, %10, %c0_i32_9 : i32
    scf.if %11 {
      %c0_10 = arith.constant 0 : index
      %c0_11 = arith.constant 0 : index
      %12 = vector.load %arg8[%c0_10, %c0_11] : memref<128x128xf32, #tpu.memory_space<vmem>>, vector<128x128xf32>
      %c0_12 = arith.constant 0 : index
      %c0_13 = arith.constant 0 : index
      %13 = vector.load %arg5[%c0_12, %c0_13] : memref<1x128xf32, #tpu.memory_space<vmem>>, vector<1x128xf32>
      %14 = vector.broadcast %13 : vector<1x128xf32> to vector<128x128xf32>
      %15 = arith.mulf %12, %14 : vector<128x128xf32>
      %c0_14 = arith.constant 0 : index
      %c0_15 = arith.constant 0 : index
      %16 = vector.load %arg6[%c0_14, %c0_15] : memref<1x128xf32, #tpu.memory_space<vmem>>, vector<1x128xf32>
      %17 = vector.broadcast %16 : vector<1x128xf32> to vector<128x128xf32>
      %18 = arith.addf %15, %17 : vector<128x128xf32>
      %cst_16 = arith.constant 0.000000e+00 : f32
      %19 = vector.broadcast %cst_16 : f32 to vector<128x128xf32>
      %20 = arith.maximumf %18, %19 : vector<128x128xf32>
      %21 = arith.truncf %20 : vector<128x128xf32> to vector<128x128xbf16>
      %c0_17 = arith.constant 0 : index
      %c0_18 = arith.constant 0 : index
      %22 = vector.load %arg7[%c0_17, %c0_18] : memref<128x128xbf16, #tpu.memory_space<vmem>>, vector<128x128xbf16>
      tpu.vector_store %arg7[%c0_17, %c0_18], %21 {strides = array<i32>} : memref<128x128xbf16, #tpu.memory_space<vmem>>, vector<128x128xbf16>,
    } else {
    }
    return
  }
  func.func @transform_0(%arg0: i32, %arg1: i32, %arg2: i32) -> (i32, i32) {
    %c0_i32 = arith.constant 0 : i32
    return %arg0, %arg2 : i32, i32
  }
  func.func @transform_1(%arg0: i32, %arg1: i32, %arg2: i32) -> (i32, i32) {
    %c0_i32 = arith.constant 0 : i32
    return %arg2, %arg1 : i32, i32
  }
  func.func @transform_2(%arg0: i32, %arg1: i32, %arg2: i32) -> (i32, i32) {
    %c0_i32 = arith.constant 0 : i32
    %c0_i32_0 = arith.constant 0 : i32
    return %c0_i32, %arg1 : i32, i32
  }
  func.func @transform_3(%arg0: i32, %arg1: i32, %arg2: i32) -> (i32, i32) {
    %c0_i32 = arith.constant 0 : i32
    %c0_i32_0 = arith.constant 0 : i32
    return %c0_i32, %arg1 : i32, i32
  }
  func.func @transform_4(%arg0: i32, %arg1: i32, %arg2: i32) -> (i32, i32) {
    %c0_i32 = arith.constant 0 : i32
    return %arg0, %arg1 : i32, i32
  }
}

module attributes {stable_mosaic.version = 11 : i64} {
  func.func @_mm_bn_res_kernel(%arg0: i32, %arg1: i32, %arg2: i32, %arg3: memref<128x640xbf16, #tpu.memory_space<vmem>>, %arg4: memref<640x128xbf16, #tpu.memory_space<vmem>>, %arg5: memref<1x128xf32, #tpu.memory_space<vmem>>, %arg6: memref<1x128xf32, #tpu.memory_space<vmem>>, %arg7: memref<128x128xbf16, #tpu.memory_space<vmem>>, %arg8: memref<128x128xbf16, #tpu.memory_space<vmem>>, %arg9: memref<128x128xf32, #tpu.memory_space<vmem>>) attributes {dimension_semantics = [#tpu.dimension_semantics<parallel>, #tpu.dimension_semantics<parallel>, #tpu.dimension_semantics<arbitrary>], iteration_bounds = array<i64: 1, 1, 1>, scalar_prefetch = 0 : i64, scratch_operands = 1 : i64, tpu.core_type = #tpu.core_type<tc>, window_params = [{transform_indices = @transform_0, window_bounds = array<i64: 128, 640>}, {transform_indices = @transform_1, window_bounds = array<i64: 640, 128>}, {transform_indices = @transform_2, window_bounds = array<i64: 1, 128>}, {transform_indices = @transform_3, window_bounds = array<i64: 1, 128>}, {transform_indices = @transform_4, window_bounds = array<i64: 128, 128>}, {transform_indices = @transform_5, window_bounds = array<i64: 128, 128>}]} {
    %c0_i32 = arith.constant 0 : i32
    %0 = arith.cmpi eq, %arg2, %c0_i32 : i32
    %1 = arith.extui %0 : i1 to i32
    %c0_i32_0 = arith.constant 0 : i32
    %2 = arith.cmpi ne, %1, %c0_i32_0 : i32
    scf.if %2 {
      %cst_10 = arith.constant 0.000000e+00 : f32
      %12 = vector.broadcast %cst_10 : f32 to vector<128x128xf32>
      %c0_11 = arith.constant 0 : index
      %c0_12 = arith.constant 0 : index
      %13 = vector.load %arg9[%c0_11, %c0_12] : memref<128x128xf32, #tpu.memory_space<vmem>>, vector<128x128xf32>
      tpu.vector_store %arg9[%c0_11, %c0_12], %12 {strides = array<i32>} : memref<128x128xf32, #tpu.memory_space<vmem>>, vector<128x128xf32>,
    } else {
    }
    %c0 = arith.constant 0 : index
    %c0_1 = arith.constant 0 : index
    %3 = vector.load %arg9[%c0, %c0_1] : memref<128x128xf32, #tpu.memory_space<vmem>>, vector<128x128xf32>
    %c0_2 = arith.constant 0 : index
    %c0_3 = arith.constant 0 : index
    %4 = vector.load %arg3[%c0_2, %c0_3] : memref<128x640xbf16, #tpu.memory_space<vmem>>, vector<128x640xbf16>
    %c0_4 = arith.constant 0 : index
    %c0_5 = arith.constant 0 : index
    %5 = vector.load %arg4[%c0_4, %c0_5] : memref<640x128xbf16, #tpu.memory_space<vmem>>, vector<640x128xbf16>
    %cst = arith.constant dense<0.000000e+00> : vector<128x128xf32>
    %6 = tpu.matmul %4, %5, %cst {dimension_numbers = #tpu.dot_dimension_numbers<[1], [0], [0], [1], [0, 0, 1, 1], [], []>} : vector<128x640xbf16>, vector<640x128xbf16>, vector<128x128xf32> -> vector<128x128xf32>
    %7 = arith.addf %3, %6 : vector<128x128xf32>
    %c0_6 = arith.constant 0 : index
    %c0_7 = arith.constant 0 : index
    %8 = vector.load %arg9[%c0_6, %c0_7] : memref<128x128xf32, #tpu.memory_space<vmem>>, vector<128x128xf32>
    tpu.vector_store %arg9[%c0_6, %c0_7], %7 {strides = array<i32>} : memref<128x128xf32, #tpu.memory_space<vmem>>, vector<128x128xf32>,
    %c0_i32_8 = arith.constant 0 : i32
    %9 = arith.cmpi eq, %arg2, %c0_i32_8 : i32
    %10 = arith.extui %9 : i1 to i32
    %c0_i32_9 = arith.constant 0 : i32
    %11 = arith.cmpi ne, %10, %c0_i32_9 : i32
    scf.if %11 {
      %c0_10 = arith.constant 0 : index
      %c0_11 = arith.constant 0 : index
      %12 = vector.load %arg9[%c0_10, %c0_11] : memref<128x128xf32, #tpu.memory_space<vmem>>, vector<128x128xf32>
      %c0_12 = arith.constant 0 : index
      %c0_13 = arith.constant 0 : index
      %13 = vector.load %arg5[%c0_12, %c0_13] : memref<1x128xf32, #tpu.memory_space<vmem>>, vector<1x128xf32>
      %14 = vector.broadcast %13 : vector<1x128xf32> to vector<128x128xf32>
      %15 = arith.mulf %12, %14 : vector<128x128xf32>
      %c0_14 = arith.constant 0 : index
      %c0_15 = arith.constant 0 : index
      %16 = vector.load %arg6[%c0_14, %c0_15] : memref<1x128xf32, #tpu.memory_space<vmem>>, vector<1x128xf32>
      %17 = vector.broadcast %16 : vector<1x128xf32> to vector<128x128xf32>
      %18 = arith.addf %15, %17 : vector<128x128xf32>
      %c0_16 = arith.constant 0 : index
      %c0_17 = arith.constant 0 : index
      %19 = vector.load %arg7[%c0_16, %c0_17] : memref<128x128xbf16, #tpu.memory_space<vmem>>, vector<128x128xbf16>
      %20 = arith.extf %19 : vector<128x128xbf16> to vector<128x128xf32>
      %21 = arith.addf %18, %20 : vector<128x128xf32>
      %cst_18 = arith.constant 0.000000e+00 : f32
      %22 = vector.broadcast %cst_18 : f32 to vector<128x128xf32>
      %23 = arith.maximumf %21, %22 : vector<128x128xf32>
      %24 = arith.truncf %23 : vector<128x128xf32> to vector<128x128xbf16>
      %c0_19 = arith.constant 0 : index
      %c0_20 = arith.constant 0 : index
      %25 = vector.load %arg8[%c0_19, %c0_20] : memref<128x128xbf16, #tpu.memory_space<vmem>>, vector<128x128xbf16>
      tpu.vector_store %arg8[%c0_19, %c0_20], %24 {strides = array<i32>} : memref<128x128xbf16, #tpu.memory_space<vmem>>, vector<128x128xbf16>,
    } else {
    }
    return
  }
  func.func @transform_0(%arg0: i32, %arg1: i32, %arg2: i32) -> (i32, i32) {
    %c0_i32 = arith.constant 0 : i32
    return %arg0, %arg2 : i32, i32
  }
  func.func @transform_1(%arg0: i32, %arg1: i32, %arg2: i32) -> (i32, i32) {
    %c0_i32 = arith.constant 0 : i32
    return %arg2, %arg1 : i32, i32
  }
  func.func @transform_2(%arg0: i32, %arg1: i32, %arg2: i32) -> (i32, i32) {
    %c0_i32 = arith.constant 0 : i32
    %c0_i32_0 = arith.constant 0 : i32
    return %c0_i32, %arg1 : i32, i32
  }
  func.func @transform_3(%arg0: i32, %arg1: i32, %arg2: i32) -> (i32, i32) {
    %c0_i32 = arith.constant 0 : i32
    %c0_i32_0 = arith.constant 0 : i32
    return %c0_i32, %arg1 : i32, i32
  }
  func.func @transform_4(%arg0: i32, %arg1: i32, %arg2: i32) -> (i32, i32) {
    %c0_i32 = arith.constant 0 : i32
    return %arg0, %arg1 : i32, i32
  }
  func.func @transform_5(%arg0: i32, %arg1: i32, %arg2: i32) -> (i32, i32) {
    %c0_i32 = arith.constant 0 : i32
    return %arg0, %arg1 : i32, i32
  }
}

module attributes {stable_mosaic.version = 11 : i64} {
  func.func @_mm_bn_kernel(%arg0: i32, %arg1: i32, %arg2: i32, %arg3: memref<32x640xbf16, #tpu.memory_space<vmem>>, %arg4: memref<640x128xbf16, #tpu.memory_space<vmem>>, %arg5: memref<1x128xf32, #tpu.memory_space<vmem>>, %arg6: memref<1x128xf32, #tpu.memory_space<vmem>>, %arg7: memref<32x128xbf16, #tpu.memory_space<vmem>>, %arg8: memref<32x128xf32, #tpu.memory_space<vmem>>) attributes {dimension_semantics = [#tpu.dimension_semantics<parallel>, #tpu.dimension_semantics<parallel>, #tpu.dimension_semantics<arbitrary>], iteration_bounds = array<i64: 1, 1, 1>, scalar_prefetch = 0 : i64, scratch_operands = 1 : i64, tpu.core_type = #tpu.core_type<tc>, window_params = [{transform_indices = @transform_0, window_bounds = array<i64: 32, 640>}, {transform_indices = @transform_1, window_bounds = array<i64: 640, 128>}, {transform_indices = @transform_2, window_bounds = array<i64: 1, 128>}, {transform_indices = @transform_3, window_bounds = array<i64: 1, 128>}, {transform_indices = @transform_4, window_bounds = array<i64: 32, 128>}]} {
    %c0_i32 = arith.constant 0 : i32
    %0 = arith.cmpi eq, %arg2, %c0_i32 : i32
    %1 = arith.extui %0 : i1 to i32
    %c0_i32_0 = arith.constant 0 : i32
    %2 = arith.cmpi ne, %1, %c0_i32_0 : i32
    scf.if %2 {
      %cst_10 = arith.constant 0.000000e+00 : f32
      %12 = vector.broadcast %cst_10 : f32 to vector<32x128xf32>
      %c0_11 = arith.constant 0 : index
      %c0_12 = arith.constant 0 : index
      %13 = vector.load %arg8[%c0_11, %c0_12] : memref<32x128xf32, #tpu.memory_space<vmem>>, vector<32x128xf32>
      tpu.vector_store %arg8[%c0_11, %c0_12], %12 {strides = array<i32>} : memref<32x128xf32, #tpu.memory_space<vmem>>, vector<32x128xf32>,
    } else {
    }
    %c0 = arith.constant 0 : index
    %c0_1 = arith.constant 0 : index
    %3 = vector.load %arg8[%c0, %c0_1] : memref<32x128xf32, #tpu.memory_space<vmem>>, vector<32x128xf32>
    %c0_2 = arith.constant 0 : index
    %c0_3 = arith.constant 0 : index
    %4 = vector.load %arg3[%c0_2, %c0_3] : memref<32x640xbf16, #tpu.memory_space<vmem>>, vector<32x640xbf16>
    %c0_4 = arith.constant 0 : index
    %c0_5 = arith.constant 0 : index
    %5 = vector.load %arg4[%c0_4, %c0_5] : memref<640x128xbf16, #tpu.memory_space<vmem>>, vector<640x128xbf16>
    %cst = arith.constant dense<0.000000e+00> : vector<32x128xf32>
    %6 = tpu.matmul %4, %5, %cst {dimension_numbers = #tpu.dot_dimension_numbers<[1], [0], [0], [1], [0, 0, 1, 1], [], []>} : vector<32x640xbf16>, vector<640x128xbf16>, vector<32x128xf32> -> vector<32x128xf32>
    %7 = arith.addf %3, %6 : vector<32x128xf32>
    %c0_6 = arith.constant 0 : index
    %c0_7 = arith.constant 0 : index
    %8 = vector.load %arg8[%c0_6, %c0_7] : memref<32x128xf32, #tpu.memory_space<vmem>>, vector<32x128xf32>
    tpu.vector_store %arg8[%c0_6, %c0_7], %7 {strides = array<i32>} : memref<32x128xf32, #tpu.memory_space<vmem>>, vector<32x128xf32>,
    %c0_i32_8 = arith.constant 0 : i32
    %9 = arith.cmpi eq, %arg2, %c0_i32_8 : i32
    %10 = arith.extui %9 : i1 to i32
    %c0_i32_9 = arith.constant 0 : i32
    %11 = arith.cmpi ne, %10, %c0_i32_9 : i32
    scf.if %11 {
      %c0_10 = arith.constant 0 : index
      %c0_11 = arith.constant 0 : index
      %12 = vector.load %arg8[%c0_10, %c0_11] : memref<32x128xf32, #tpu.memory_space<vmem>>, vector<32x128xf32>
      %c0_12 = arith.constant 0 : index
      %c0_13 = arith.constant 0 : index
      %13 = vector.load %arg5[%c0_12, %c0_13] : memref<1x128xf32, #tpu.memory_space<vmem>>, vector<1x128xf32>
      %14 = vector.broadcast %13 : vector<1x128xf32> to vector<32x128xf32>
      %15 = arith.mulf %12, %14 : vector<32x128xf32>
      %c0_14 = arith.constant 0 : index
      %c0_15 = arith.constant 0 : index
      %16 = vector.load %arg6[%c0_14, %c0_15] : memref<1x128xf32, #tpu.memory_space<vmem>>, vector<1x128xf32>
      %17 = vector.broadcast %16 : vector<1x128xf32> to vector<32x128xf32>
      %18 = arith.addf %15, %17 : vector<32x128xf32>
      %cst_16 = arith.constant 0.000000e+00 : f32
      %19 = vector.broadcast %cst_16 : f32 to vector<32x128xf32>
      %20 = arith.maximumf %18, %19 : vector<32x128xf32>
      %21 = arith.truncf %20 : vector<32x128xf32> to vector<32x128xbf16>
      %c0_17 = arith.constant 0 : index
      %c0_18 = arith.constant 0 : index
      %22 = vector.load %arg7[%c0_17, %c0_18] : memref<32x128xbf16, #tpu.memory_space<vmem>>, vector<32x128xbf16>
      tpu.vector_store %arg7[%c0_17, %c0_18], %21 {strides = array<i32>} : memref<32x128xbf16, #tpu.memory_space<vmem>>, vector<32x128xbf16>,
    } else {
    }
    return
  }
  func.func @transform_0(%arg0: i32, %arg1: i32, %arg2: i32) -> (i32, i32) {
    %c0_i32 = arith.constant 0 : i32
    return %arg0, %arg2 : i32, i32
  }
  func.func @transform_1(%arg0: i32, %arg1: i32, %arg2: i32) -> (i32, i32) {
    %c0_i32 = arith.constant 0 : i32
    return %arg2, %arg1 : i32, i32
  }
  func.func @transform_2(%arg0: i32, %arg1: i32, %arg2: i32) -> (i32, i32) {
    %c0_i32 = arith.constant 0 : i32
    %c0_i32_0 = arith.constant 0 : i32
    return %c0_i32, %arg1 : i32, i32
  }
  func.func @transform_3(%arg0: i32, %arg1: i32, %arg2: i32) -> (i32, i32) {
    %c0_i32 = arith.constant 0 : i32
    %c0_i32_0 = arith.constant 0 : i32
    return %c0_i32, %arg1 : i32, i32
  }
  func.func @transform_4(%arg0: i32, %arg1: i32, %arg2: i32) -> (i32, i32) {
    %c0_i32 = arith.constant 0 : i32
    return %arg0, %arg1 : i32, i32
  }
}

module attributes {stable_mosaic.version = 11 : i64} {
  func.func @_mm_bn_res_kernel(%arg0: i32, %arg1: i32, %arg2: i32, %arg3: memref<32x1152xbf16, #tpu.memory_space<vmem>>, %arg4: memref<1152x128xbf16, #tpu.memory_space<vmem>>, %arg5: memref<1x128xf32, #tpu.memory_space<vmem>>, %arg6: memref<1x128xf32, #tpu.memory_space<vmem>>, %arg7: memref<32x128xbf16, #tpu.memory_space<vmem>>, %arg8: memref<32x128xbf16, #tpu.memory_space<vmem>>, %arg9: memref<32x128xf32, #tpu.memory_space<vmem>>) attributes {dimension_semantics = [#tpu.dimension_semantics<parallel>, #tpu.dimension_semantics<parallel>, #tpu.dimension_semantics<arbitrary>], iteration_bounds = array<i64: 1, 1, 1>, scalar_prefetch = 0 : i64, scratch_operands = 1 : i64, tpu.core_type = #tpu.core_type<tc>, window_params = [{transform_indices = @transform_0, window_bounds = array<i64: 32, 1152>}, {transform_indices = @transform_1, window_bounds = array<i64: 1152, 128>}, {transform_indices = @transform_2, window_bounds = array<i64: 1, 128>}, {transform_indices = @transform_3, window_bounds = array<i64: 1, 128>}, {transform_indices = @transform_4, window_bounds = array<i64: 32, 128>}, {transform_indices = @transform_5, window_bounds = array<i64: 32, 128>}]} {
    %c0_i32 = arith.constant 0 : i32
    %0 = arith.cmpi eq, %arg2, %c0_i32 : i32
    %1 = arith.extui %0 : i1 to i32
    %c0_i32_0 = arith.constant 0 : i32
    %2 = arith.cmpi ne, %1, %c0_i32_0 : i32
    scf.if %2 {
      %cst_10 = arith.constant 0.000000e+00 : f32
      %12 = vector.broadcast %cst_10 : f32 to vector<32x128xf32>
      %c0_11 = arith.constant 0 : index
      %c0_12 = arith.constant 0 : index
      %13 = vector.load %arg9[%c0_11, %c0_12] : memref<32x128xf32, #tpu.memory_space<vmem>>, vector<32x128xf32>
      tpu.vector_store %arg9[%c0_11, %c0_12], %12 {strides = array<i32>} : memref<32x128xf32, #tpu.memory_space<vmem>>, vector<32x128xf32>,
    } else {
    }
    %c0 = arith.constant 0 : index
    %c0_1 = arith.constant 0 : index
    %3 = vector.load %arg9[%c0, %c0_1] : memref<32x128xf32, #tpu.memory_space<vmem>>, vector<32x128xf32>
    %c0_2 = arith.constant 0 : index
    %c0_3 = arith.constant 0 : index
    %4 = vector.load %arg3[%c0_2, %c0_3] : memref<32x1152xbf16, #tpu.memory_space<vmem>>, vector<32x1152xbf16>
    %c0_4 = arith.constant 0 : index
    %c0_5 = arith.constant 0 : index
    %5 = vector.load %arg4[%c0_4, %c0_5] : memref<1152x128xbf16, #tpu.memory_space<vmem>>, vector<1152x128xbf16>
    %cst = arith.constant dense<0.000000e+00> : vector<32x128xf32>
    %6 = tpu.matmul %4, %5, %cst {dimension_numbers = #tpu.dot_dimension_numbers<[1], [0], [0], [1], [0, 0, 1, 1], [], []>} : vector<32x1152xbf16>, vector<1152x128xbf16>, vector<32x128xf32> -> vector<32x128xf32>
    %7 = arith.addf %3, %6 : vector<32x128xf32>
    %c0_6 = arith.constant 0 : index
    %c0_7 = arith.constant 0 : index
    %8 = vector.load %arg9[%c0_6, %c0_7] : memref<32x128xf32, #tpu.memory_space<vmem>>, vector<32x128xf32>
    tpu.vector_store %arg9[%c0_6, %c0_7], %7 {strides = array<i32>} : memref<32x128xf32, #tpu.memory_space<vmem>>, vector<32x128xf32>,
    %c0_i32_8 = arith.constant 0 : i32
    %9 = arith.cmpi eq, %arg2, %c0_i32_8 : i32
    %10 = arith.extui %9 : i1 to i32
    %c0_i32_9 = arith.constant 0 : i32
    %11 = arith.cmpi ne, %10, %c0_i32_9 : i32
    scf.if %11 {
      %c0_10 = arith.constant 0 : index
      %c0_11 = arith.constant 0 : index
      %12 = vector.load %arg9[%c0_10, %c0_11] : memref<32x128xf32, #tpu.memory_space<vmem>>, vector<32x128xf32>
      %c0_12 = arith.constant 0 : index
      %c0_13 = arith.constant 0 : index
      %13 = vector.load %arg5[%c0_12, %c0_13] : memref<1x128xf32, #tpu.memory_space<vmem>>, vector<1x128xf32>
      %14 = vector.broadcast %13 : vector<1x128xf32> to vector<32x128xf32>
      %15 = arith.mulf %12, %14 : vector<32x128xf32>
      %c0_14 = arith.constant 0 : index
      %c0_15 = arith.constant 0 : index
      %16 = vector.load %arg6[%c0_14, %c0_15] : memref<1x128xf32, #tpu.memory_space<vmem>>, vector<1x128xf32>
      %17 = vector.broadcast %16 : vector<1x128xf32> to vector<32x128xf32>
      %18 = arith.addf %15, %17 : vector<32x128xf32>
      %c0_16 = arith.constant 0 : index
      %c0_17 = arith.constant 0 : index
      %19 = vector.load %arg7[%c0_16, %c0_17] : memref<32x128xbf16, #tpu.memory_space<vmem>>, vector<32x128xbf16>
      %20 = arith.extf %19 : vector<32x128xbf16> to vector<32x128xf32>
      %21 = arith.addf %18, %20 : vector<32x128xf32>
      %cst_18 = arith.constant 0.000000e+00 : f32
      %22 = vector.broadcast %cst_18 : f32 to vector<32x128xf32>
      %23 = arith.maximumf %21, %22 : vector<32x128xf32>
      %24 = arith.truncf %23 : vector<32x128xf32> to vector<32x128xbf16>
      %c0_19 = arith.constant 0 : index
      %c0_20 = arith.constant 0 : index
      %25 = vector.load %arg8[%c0_19, %c0_20] : memref<32x128xbf16, #tpu.memory_space<vmem>>, vector<32x128xbf16>
      tpu.vector_store %arg8[%c0_19, %c0_20], %24 {strides = array<i32>} : memref<32x128xbf16, #tpu.memory_space<vmem>>, vector<32x128xbf16>,
    } else {
    }
    return
  }
  func.func @transform_0(%arg0: i32, %arg1: i32, %arg2: i32) -> (i32, i32) {
    %c0_i32 = arith.constant 0 : i32
    return %arg0, %arg2 : i32, i32
  }
  func.func @transform_1(%arg0: i32, %arg1: i32, %arg2: i32) -> (i32, i32) {
    %c0_i32 = arith.constant 0 : i32
    return %arg2, %arg1 : i32, i32
  }
  func.func @transform_2(%arg0: i32, %arg1: i32, %arg2: i32) -> (i32, i32) {
    %c0_i32 = arith.constant 0 : i32
    %c0_i32_0 = arith.constant 0 : i32
    return %c0_i32, %arg1 : i32, i32
  }
  func.func @transform_3(%arg0: i32, %arg1: i32, %arg2: i32) -> (i32, i32) {
    %c0_i32 = arith.constant 0 : i32
    %c0_i32_0 = arith.constant 0 : i32
    return %c0_i32, %arg1 : i32, i32
  }
  func.func @transform_4(%arg0: i32, %arg1: i32, %arg2: i32) -> (i32, i32) {
    %c0_i32 = arith.constant 0 : i32
    return %arg0, %arg1 : i32, i32
  }
  func.func @transform_5(%arg0: i32, %arg1: i32, %arg2: i32) -> (i32, i32) {
    %c0_i32 = arith.constant 0 : i32
    return %arg0, %arg1 : i32, i32
  }
}

module attributes {stable_mosaic.version = 11 : i64} {
  func.func @_mm_bn_kernel(%arg0: i32, %arg1: i32, %arg2: i32, %arg3: memref<32x128xbf16, #tpu.memory_space<vmem>>, %arg4: memref<128x128xbf16, #tpu.memory_space<vmem>>, %arg5: memref<1x128xf32, #tpu.memory_space<vmem>>, %arg6: memref<1x128xf32, #tpu.memory_space<vmem>>, %arg7: memref<32x128xbf16, #tpu.memory_space<vmem>>, %arg8: memref<32x128xf32, #tpu.memory_space<vmem>>) attributes {dimension_semantics = [#tpu.dimension_semantics<parallel>, #tpu.dimension_semantics<parallel>, #tpu.dimension_semantics<arbitrary>], iteration_bounds = array<i64: 1, 1, 1>, scalar_prefetch = 0 : i64, scratch_operands = 1 : i64, tpu.core_type = #tpu.core_type<tc>, window_params = [{transform_indices = @transform_0, window_bounds = array<i64: 32, 128>}, {transform_indices = @transform_1, window_bounds = array<i64: 128, 128>}, {transform_indices = @transform_2, window_bounds = array<i64: 1, 128>}, {transform_indices = @transform_3, window_bounds = array<i64: 1, 128>}, {transform_indices = @transform_4, window_bounds = array<i64: 32, 128>}]} {
    %c0_i32 = arith.constant 0 : i32
    %0 = arith.cmpi eq, %arg2, %c0_i32 : i32
    %1 = arith.extui %0 : i1 to i32
    %c0_i32_0 = arith.constant 0 : i32
    %2 = arith.cmpi ne, %1, %c0_i32_0 : i32
    scf.if %2 {
      %cst_10 = arith.constant 0.000000e+00 : f32
      %12 = vector.broadcast %cst_10 : f32 to vector<32x128xf32>
      %c0_11 = arith.constant 0 : index
      %c0_12 = arith.constant 0 : index
      %13 = vector.load %arg8[%c0_11, %c0_12] : memref<32x128xf32, #tpu.memory_space<vmem>>, vector<32x128xf32>
      tpu.vector_store %arg8[%c0_11, %c0_12], %12 {strides = array<i32>} : memref<32x128xf32, #tpu.memory_space<vmem>>, vector<32x128xf32>,
    } else {
    }
    %c0 = arith.constant 0 : index
    %c0_1 = arith.constant 0 : index
    %3 = vector.load %arg8[%c0, %c0_1] : memref<32x128xf32, #tpu.memory_space<vmem>>, vector<32x128xf32>
    %c0_2 = arith.constant 0 : index
    %c0_3 = arith.constant 0 : index
    %4 = vector.load %arg3[%c0_2, %c0_3] : memref<32x128xbf16, #tpu.memory_space<vmem>>, vector<32x128xbf16>
    %c0_4 = arith.constant 0 : index
    %c0_5 = arith.constant 0 : index
    %5 = vector.load %arg4[%c0_4, %c0_5] : memref<128x128xbf16, #tpu.memory_space<vmem>>, vector<128x128xbf16>
    %cst = arith.constant dense<0.000000e+00> : vector<32x128xf32>
    %6 = tpu.matmul %4, %5, %cst {dimension_numbers = #tpu.dot_dimension_numbers<[1], [0], [0], [1], [0, 0, 1, 1], [], []>} : vector<32x128xbf16>, vector<128x128xbf16>, vector<32x128xf32> -> vector<32x128xf32>
    %7 = arith.addf %3, %6 : vector<32x128xf32>
    %c0_6 = arith.constant 0 : index
    %c0_7 = arith.constant 0 : index
    %8 = vector.load %arg8[%c0_6, %c0_7] : memref<32x128xf32, #tpu.memory_space<vmem>>, vector<32x128xf32>
    tpu.vector_store %arg8[%c0_6, %c0_7], %7 {strides = array<i32>} : memref<32x128xf32, #tpu.memory_space<vmem>>, vector<32x128xf32>,
    %c0_i32_8 = arith.constant 0 : i32
    %9 = arith.cmpi eq, %arg2, %c0_i32_8 : i32
    %10 = arith.extui %9 : i1 to i32
    %c0_i32_9 = arith.constant 0 : i32
    %11 = arith.cmpi ne, %10, %c0_i32_9 : i32
    scf.if %11 {
      %c0_10 = arith.constant 0 : index
      %c0_11 = arith.constant 0 : index
      %12 = vector.load %arg8[%c0_10, %c0_11] : memref<32x128xf32, #tpu.memory_space<vmem>>, vector<32x128xf32>
      %c0_12 = arith.constant 0 : index
      %c0_13 = arith.constant 0 : index
      %13 = vector.load %arg5[%c0_12, %c0_13] : memref<1x128xf32, #tpu.memory_space<vmem>>, vector<1x128xf32>
      %14 = vector.broadcast %13 : vector<1x128xf32> to vector<32x128xf32>
      %15 = arith.mulf %12, %14 : vector<32x128xf32>
      %c0_14 = arith.constant 0 : index
      %c0_15 = arith.constant 0 : index
      %16 = vector.load %arg6[%c0_14, %c0_15] : memref<1x128xf32, #tpu.memory_space<vmem>>, vector<1x128xf32>
      %17 = vector.broadcast %16 : vector<1x128xf32> to vector<32x128xf32>
      %18 = arith.addf %15, %17 : vector<32x128xf32>
      %19 = arith.truncf %18 : vector<32x128xf32> to vector<32x128xbf16>
      %c0_16 = arith.constant 0 : index
      %c0_17 = arith.constant 0 : index
      %20 = vector.load %arg7[%c0_16, %c0_17] : memref<32x128xbf16, #tpu.memory_space<vmem>>, vector<32x128xbf16>
      tpu.vector_store %arg7[%c0_16, %c0_17], %19 {strides = array<i32>} : memref<32x128xbf16, #tpu.memory_space<vmem>>, vector<32x128xbf16>,
    } else {
    }
    return
  }
  func.func @transform_0(%arg0: i32, %arg1: i32, %arg2: i32) -> (i32, i32) {
    %c0_i32 = arith.constant 0 : i32
    return %arg0, %arg2 : i32, i32
  }
  func.func @transform_1(%arg0: i32, %arg1: i32, %arg2: i32) -> (i32, i32) {
    %c0_i32 = arith.constant 0 : i32
    return %arg2, %arg1 : i32, i32
  }
  func.func @transform_2(%arg0: i32, %arg1: i32, %arg2: i32) -> (i32, i32) {
    %c0_i32 = arith.constant 0 : i32
    %c0_i32_0 = arith.constant 0 : i32
    return %c0_i32, %arg1 : i32, i32
  }
  func.func @transform_3(%arg0: i32, %arg1: i32, %arg2: i32) -> (i32, i32) {
    %c0_i32 = arith.constant 0 : i32
    %c0_i32_0 = arith.constant 0 : i32
    return %c0_i32, %arg1 : i32, i32
  }
  func.func @transform_4(%arg0: i32, %arg1: i32, %arg2: i32) -> (i32, i32) {
    %c0_i32 = arith.constant 0 : i32
    return %arg0, %arg1 : i32, i32
  }
}

module attributes {stable_mosaic.version = 11 : i64} {
  func.func @_mm_bn_kernel(%arg0: i32, %arg1: i32, %arg2: i32, %arg3: memref<16x1152xbf16, #tpu.memory_space<vmem>>, %arg4: memref<1152x256xbf16, #tpu.memory_space<vmem>>, %arg5: memref<1x256xf32, #tpu.memory_space<vmem>>, %arg6: memref<1x256xf32, #tpu.memory_space<vmem>>, %arg7: memref<16x256xbf16, #tpu.memory_space<vmem>>, %arg8: memref<16x256xf32, #tpu.memory_space<vmem>>) attributes {dimension_semantics = [#tpu.dimension_semantics<parallel>, #tpu.dimension_semantics<parallel>, #tpu.dimension_semantics<arbitrary>], iteration_bounds = array<i64: 1, 1, 1>, scalar_prefetch = 0 : i64, scratch_operands = 1 : i64, tpu.core_type = #tpu.core_type<tc>, window_params = [{transform_indices = @transform_0, window_bounds = array<i64: 16, 1152>}, {transform_indices = @transform_1, window_bounds = array<i64: 1152, 256>}, {transform_indices = @transform_2, window_bounds = array<i64: 1, 256>}, {transform_indices = @transform_3, window_bounds = array<i64: 1, 256>}, {transform_indices = @transform_4, window_bounds = array<i64: 16, 256>}]} {
    %c0_i32 = arith.constant 0 : i32
    %0 = arith.cmpi eq, %arg2, %c0_i32 : i32
    %1 = arith.extui %0 : i1 to i32
    %c0_i32_0 = arith.constant 0 : i32
    %2 = arith.cmpi ne, %1, %c0_i32_0 : i32
    scf.if %2 {
      %cst_10 = arith.constant 0.000000e+00 : f32
      %12 = vector.broadcast %cst_10 : f32 to vector<16x256xf32>
      %c0_11 = arith.constant 0 : index
      %c0_12 = arith.constant 0 : index
      %13 = vector.load %arg8[%c0_11, %c0_12] : memref<16x256xf32, #tpu.memory_space<vmem>>, vector<16x256xf32>
      tpu.vector_store %arg8[%c0_11, %c0_12], %12 {strides = array<i32>} : memref<16x256xf32, #tpu.memory_space<vmem>>, vector<16x256xf32>,
    } else {
    }
    %c0 = arith.constant 0 : index
    %c0_1 = arith.constant 0 : index
    %3 = vector.load %arg8[%c0, %c0_1] : memref<16x256xf32, #tpu.memory_space<vmem>>, vector<16x256xf32>
    %c0_2 = arith.constant 0 : index
    %c0_3 = arith.constant 0 : index
    %4 = vector.load %arg3[%c0_2, %c0_3] : memref<16x1152xbf16, #tpu.memory_space<vmem>>, vector<16x1152xbf16>
    %c0_4 = arith.constant 0 : index
    %c0_5 = arith.constant 0 : index
    %5 = vector.load %arg4[%c0_4, %c0_5] : memref<1152x256xbf16, #tpu.memory_space<vmem>>, vector<1152x256xbf16>
    %cst = arith.constant dense<0.000000e+00> : vector<16x256xf32>
    %6 = tpu.matmul %4, %5, %cst {dimension_numbers = #tpu.dot_dimension_numbers<[1], [0], [0], [1], [0, 0, 1, 1], [], []>} : vector<16x1152xbf16>, vector<1152x256xbf16>, vector<16x256xf32> -> vector<16x256xf32>
    %7 = arith.addf %3, %6 : vector<16x256xf32>
    %c0_6 = arith.constant 0 : index
    %c0_7 = arith.constant 0 : index
    %8 = vector.load %arg8[%c0_6, %c0_7] : memref<16x256xf32, #tpu.memory_space<vmem>>, vector<16x256xf32>
    tpu.vector_store %arg8[%c0_6, %c0_7], %7 {strides = array<i32>} : memref<16x256xf32, #tpu.memory_space<vmem>>, vector<16x256xf32>,
    %c0_i32_8 = arith.constant 0 : i32
    %9 = arith.cmpi eq, %arg2, %c0_i32_8 : i32
    %10 = arith.extui %9 : i1 to i32
    %c0_i32_9 = arith.constant 0 : i32
    %11 = arith.cmpi ne, %10, %c0_i32_9 : i32
    scf.if %11 {
      %c0_10 = arith.constant 0 : index
      %c0_11 = arith.constant 0 : index
      %12 = vector.load %arg8[%c0_10, %c0_11] : memref<16x256xf32, #tpu.memory_space<vmem>>, vector<16x256xf32>
      %c0_12 = arith.constant 0 : index
      %c0_13 = arith.constant 0 : index
      %13 = vector.load %arg5[%c0_12, %c0_13] : memref<1x256xf32, #tpu.memory_space<vmem>>, vector<1x256xf32>
      %14 = vector.broadcast %13 : vector<1x256xf32> to vector<16x256xf32>
      %15 = arith.mulf %12, %14 : vector<16x256xf32>
      %c0_14 = arith.constant 0 : index
      %c0_15 = arith.constant 0 : index
      %16 = vector.load %arg6[%c0_14, %c0_15] : memref<1x256xf32, #tpu.memory_space<vmem>>, vector<1x256xf32>
      %17 = vector.broadcast %16 : vector<1x256xf32> to vector<16x256xf32>
      %18 = arith.addf %15, %17 : vector<16x256xf32>
      %cst_16 = arith.constant 0.000000e+00 : f32
      %19 = vector.broadcast %cst_16 : f32 to vector<16x256xf32>
      %20 = arith.maximumf %18, %19 : vector<16x256xf32>
      %21 = arith.truncf %20 : vector<16x256xf32> to vector<16x256xbf16>
      %c0_17 = arith.constant 0 : index
      %c0_18 = arith.constant 0 : index
      %22 = vector.load %arg7[%c0_17, %c0_18] : memref<16x256xbf16, #tpu.memory_space<vmem>>, vector<16x256xbf16>
      tpu.vector_store %arg7[%c0_17, %c0_18], %21 {strides = array<i32>} : memref<16x256xbf16, #tpu.memory_space<vmem>>, vector<16x256xbf16>,
    } else {
    }
    return
  }
  func.func @transform_0(%arg0: i32, %arg1: i32, %arg2: i32) -> (i32, i32) {
    %c0_i32 = arith.constant 0 : i32
    return %arg0, %arg2 : i32, i32
  }
  func.func @transform_1(%arg0: i32, %arg1: i32, %arg2: i32) -> (i32, i32) {
    %c0_i32 = arith.constant 0 : i32
    return %arg2, %arg1 : i32, i32
  }
  func.func @transform_2(%arg0: i32, %arg1: i32, %arg2: i32) -> (i32, i32) {
    %c0_i32 = arith.constant 0 : i32
    %c0_i32_0 = arith.constant 0 : i32
    return %c0_i32, %arg1 : i32, i32
  }
  func.func @transform_3(%arg0: i32, %arg1: i32, %arg2: i32) -> (i32, i32) {
    %c0_i32 = arith.constant 0 : i32
    %c0_i32_0 = arith.constant 0 : i32
    return %c0_i32, %arg1 : i32, i32
  }
  func.func @transform_4(%arg0: i32, %arg1: i32, %arg2: i32) -> (i32, i32) {
    %c0_i32 = arith.constant 0 : i32
    return %arg0, %arg1 : i32, i32
  }
}

module attributes {stable_mosaic.version = 11 : i64} {
  func.func @_mm_bn_kernel(%arg0: i32, %arg1: i32, %arg2: i32, %arg3: memref<16x128xbf16, #tpu.memory_space<vmem>>, %arg4: memref<128x256xbf16, #tpu.memory_space<vmem>>, %arg5: memref<1x256xf32, #tpu.memory_space<vmem>>, %arg6: memref<1x256xf32, #tpu.memory_space<vmem>>, %arg7: memref<16x256xbf16, #tpu.memory_space<vmem>>, %arg8: memref<16x256xf32, #tpu.memory_space<vmem>>) attributes {dimension_semantics = [#tpu.dimension_semantics<parallel>, #tpu.dimension_semantics<parallel>, #tpu.dimension_semantics<arbitrary>], iteration_bounds = array<i64: 1, 1, 1>, scalar_prefetch = 0 : i64, scratch_operands = 1 : i64, tpu.core_type = #tpu.core_type<tc>, window_params = [{transform_indices = @transform_0, window_bounds = array<i64: 16, 128>}, {transform_indices = @transform_1, window_bounds = array<i64: 128, 256>}, {transform_indices = @transform_2, window_bounds = array<i64: 1, 256>}, {transform_indices = @transform_3, window_bounds = array<i64: 1, 256>}, {transform_indices = @transform_4, window_bounds = array<i64: 16, 256>}]} {
    %c0_i32 = arith.constant 0 : i32
    %0 = arith.cmpi eq, %arg2, %c0_i32 : i32
    %1 = arith.extui %0 : i1 to i32
    %c0_i32_0 = arith.constant 0 : i32
    %2 = arith.cmpi ne, %1, %c0_i32_0 : i32
    scf.if %2 {
      %cst_10 = arith.constant 0.000000e+00 : f32
      %12 = vector.broadcast %cst_10 : f32 to vector<16x256xf32>
      %c0_11 = arith.constant 0 : index
      %c0_12 = arith.constant 0 : index
      %13 = vector.load %arg8[%c0_11, %c0_12] : memref<16x256xf32, #tpu.memory_space<vmem>>, vector<16x256xf32>
      tpu.vector_store %arg8[%c0_11, %c0_12], %12 {strides = array<i32>} : memref<16x256xf32, #tpu.memory_space<vmem>>, vector<16x256xf32>,
    } else {
    }
    %c0 = arith.constant 0 : index
    %c0_1 = arith.constant 0 : index
    %3 = vector.load %arg8[%c0, %c0_1] : memref<16x256xf32, #tpu.memory_space<vmem>>, vector<16x256xf32>
    %c0_2 = arith.constant 0 : index
    %c0_3 = arith.constant 0 : index
    %4 = vector.load %arg3[%c0_2, %c0_3] : memref<16x128xbf16, #tpu.memory_space<vmem>>, vector<16x128xbf16>
    %c0_4 = arith.constant 0 : index
    %c0_5 = arith.constant 0 : index
    %5 = vector.load %arg4[%c0_4, %c0_5] : memref<128x256xbf16, #tpu.memory_space<vmem>>, vector<128x256xbf16>
    %cst = arith.constant dense<0.000000e+00> : vector<16x256xf32>
    %6 = tpu.matmul %4, %5, %cst {dimension_numbers = #tpu.dot_dimension_numbers<[1], [0], [0], [1], [0, 0, 1, 1], [], []>} : vector<16x128xbf16>, vector<128x256xbf16>, vector<16x256xf32> -> vector<16x256xf32>
    %7 = arith.addf %3, %6 : vector<16x256xf32>
    %c0_6 = arith.constant 0 : index
    %c0_7 = arith.constant 0 : index
    %8 = vector.load %arg8[%c0_6, %c0_7] : memref<16x256xf32, #tpu.memory_space<vmem>>, vector<16x256xf32>
    tpu.vector_store %arg8[%c0_6, %c0_7], %7 {strides = array<i32>} : memref<16x256xf32, #tpu.memory_space<vmem>>, vector<16x256xf32>,
    %c0_i32_8 = arith.constant 0 : i32
    %9 = arith.cmpi eq, %arg2, %c0_i32_8 : i32
    %10 = arith.extui %9 : i1 to i32
    %c0_i32_9 = arith.constant 0 : i32
    %11 = arith.cmpi ne, %10, %c0_i32_9 : i32
    scf.if %11 {
      %c0_10 = arith.constant 0 : index
      %c0_11 = arith.constant 0 : index
      %12 = vector.load %arg8[%c0_10, %c0_11] : memref<16x256xf32, #tpu.memory_space<vmem>>, vector<16x256xf32>
      %c0_12 = arith.constant 0 : index
      %c0_13 = arith.constant 0 : index
      %13 = vector.load %arg5[%c0_12, %c0_13] : memref<1x256xf32, #tpu.memory_space<vmem>>, vector<1x256xf32>
      %14 = vector.broadcast %13 : vector<1x256xf32> to vector<16x256xf32>
      %15 = arith.mulf %12, %14 : vector<16x256xf32>
      %c0_14 = arith.constant 0 : index
      %c0_15 = arith.constant 0 : index
      %16 = vector.load %arg6[%c0_14, %c0_15] : memref<1x256xf32, #tpu.memory_space<vmem>>, vector<1x256xf32>
      %17 = vector.broadcast %16 : vector<1x256xf32> to vector<16x256xf32>
      %18 = arith.addf %15, %17 : vector<16x256xf32>
      %19 = arith.truncf %18 : vector<16x256xf32> to vector<16x256xbf16>
      %c0_16 = arith.constant 0 : index
      %c0_17 = arith.constant 0 : index
      %20 = vector.load %arg7[%c0_16, %c0_17] : memref<16x256xbf16, #tpu.memory_space<vmem>>, vector<16x256xbf16>
      tpu.vector_store %arg7[%c0_16, %c0_17], %19 {strides = array<i32>} : memref<16x256xbf16, #tpu.memory_space<vmem>>, vector<16x256xbf16>,
    } else {
    }
    return
  }
  func.func @transform_0(%arg0: i32, %arg1: i32, %arg2: i32) -> (i32, i32) {
    %c0_i32 = arith.constant 0 : i32
    return %arg0, %arg2 : i32, i32
  }
  func.func @transform_1(%arg0: i32, %arg1: i32, %arg2: i32) -> (i32, i32) {
    %c0_i32 = arith.constant 0 : i32
    return %arg2, %arg1 : i32, i32
  }
  func.func @transform_2(%arg0: i32, %arg1: i32, %arg2: i32) -> (i32, i32) {
    %c0_i32 = arith.constant 0 : i32
    %c0_i32_0 = arith.constant 0 : i32
    return %c0_i32, %arg1 : i32, i32
  }
  func.func @transform_3(%arg0: i32, %arg1: i32, %arg2: i32) -> (i32, i32) {
    %c0_i32 = arith.constant 0 : i32
    %c0_i32_0 = arith.constant 0 : i32
    return %c0_i32, %arg1 : i32, i32
  }
  func.func @transform_4(%arg0: i32, %arg1: i32, %arg2: i32) -> (i32, i32) {
    %c0_i32 = arith.constant 0 : i32
    return %arg0, %arg1 : i32, i32
  }
}

module attributes {stable_mosaic.version = 11 : i64} {
  func.func @_mm_bn_res_kernel(%arg0: i32, %arg1: i32, %arg2: i32, %arg3: memref<16x1152xbf16, #tpu.memory_space<vmem>>, %arg4: memref<1152x256xbf16, #tpu.memory_space<vmem>>, %arg5: memref<1x256xf32, #tpu.memory_space<vmem>>, %arg6: memref<1x256xf32, #tpu.memory_space<vmem>>, %arg7: memref<16x256xbf16, #tpu.memory_space<vmem>>, %arg8: memref<16x256xbf16, #tpu.memory_space<vmem>>, %arg9: memref<16x256xf32, #tpu.memory_space<vmem>>) attributes {dimension_semantics = [#tpu.dimension_semantics<parallel>, #tpu.dimension_semantics<parallel>, #tpu.dimension_semantics<arbitrary>], iteration_bounds = array<i64: 1, 1, 2>, scalar_prefetch = 0 : i64, scratch_operands = 1 : i64, tpu.core_type = #tpu.core_type<tc>, window_params = [{transform_indices = @transform_0, window_bounds = array<i64: 16, 1152>}, {transform_indices = @transform_1, window_bounds = array<i64: 1152, 256>}, {transform_indices = @transform_2, window_bounds = array<i64: 1, 256>}, {transform_indices = @transform_3, window_bounds = array<i64: 1, 256>}, {transform_indices = @transform_4, window_bounds = array<i64: 16, 256>}, {transform_indices = @transform_5, window_bounds = array<i64: 16, 256>}]} {
    %c0_i32 = arith.constant 0 : i32
    %0 = arith.cmpi eq, %arg2, %c0_i32 : i32
    %1 = arith.extui %0 : i1 to i32
    %c0_i32_0 = arith.constant 0 : i32
    %2 = arith.cmpi ne, %1, %c0_i32_0 : i32
    scf.if %2 {
      %cst_9 = arith.constant 0.000000e+00 : f32
      %12 = vector.broadcast %cst_9 : f32 to vector<16x256xf32>
      %c0_10 = arith.constant 0 : index
      %c0_11 = arith.constant 0 : index
      %13 = vector.load %arg9[%c0_10, %c0_11] : memref<16x256xf32, #tpu.memory_space<vmem>>, vector<16x256xf32>
      tpu.vector_store %arg9[%c0_10, %c0_11], %12 {strides = array<i32>} : memref<16x256xf32, #tpu.memory_space<vmem>>, vector<16x256xf32>,
    } else {
    }
    %c0 = arith.constant 0 : index
    %c0_1 = arith.constant 0 : index
    %3 = vector.load %arg9[%c0, %c0_1] : memref<16x256xf32, #tpu.memory_space<vmem>>, vector<16x256xf32>
    %c0_2 = arith.constant 0 : index
    %c0_3 = arith.constant 0 : index
    %4 = vector.load %arg3[%c0_2, %c0_3] : memref<16x1152xbf16, #tpu.memory_space<vmem>>, vector<16x1152xbf16>
    %c0_4 = arith.constant 0 : index
    %c0_5 = arith.constant 0 : index
    %5 = vector.load %arg4[%c0_4, %c0_5] : memref<1152x256xbf16, #tpu.memory_space<vmem>>, vector<1152x256xbf16>
    %cst = arith.constant dense<0.000000e+00> : vector<16x256xf32>
    %6 = tpu.matmul %4, %5, %cst {dimension_numbers = #tpu.dot_dimension_numbers<[1], [0], [0], [1], [0, 0, 1, 1], [], []>} : vector<16x1152xbf16>, vector<1152x256xbf16>, vector<16x256xf32> -> vector<16x256xf32>
    %7 = arith.addf %3, %6 : vector<16x256xf32>
    %c0_6 = arith.constant 0 : index
    %c0_7 = arith.constant 0 : index
    %8 = vector.load %arg9[%c0_6, %c0_7] : memref<16x256xf32, #tpu.memory_space<vmem>>, vector<16x256xf32>
    tpu.vector_store %arg9[%c0_6, %c0_7], %7 {strides = array<i32>} : memref<16x256xf32, #tpu.memory_space<vmem>>, vector<16x256xf32>,
    %c1_i32 = arith.constant 1 : i32
    %9 = arith.cmpi eq, %arg2, %c1_i32 : i32
    %10 = arith.extui %9 : i1 to i32
    %c0_i32_8 = arith.constant 0 : i32
    %11 = arith.cmpi ne, %10, %c0_i32_8 : i32
    scf.if %11 {
      %c0_9 = arith.constant 0 : index
      %c0_10 = arith.constant 0 : index
      %12 = vector.load %arg9[%c0_9, %c0_10] : memref<16x256xf32, #tpu.memory_space<vmem>>, vector<16x256xf32>
      %c0_11 = arith.constant 0 : index
      %c0_12 = arith.constant 0 : index
      %13 = vector.load %arg5[%c0_11, %c0_12] : memref<1x256xf32, #tpu.memory_space<vmem>>, vector<1x256xf32>
      %14 = vector.broadcast %13 : vector<1x256xf32> to vector<16x256xf32>
      %15 = arith.mulf %12, %14 : vector<16x256xf32>
      %c0_13 = arith.constant 0 : index
      %c0_14 = arith.constant 0 : index
      %16 = vector.load %arg6[%c0_13, %c0_14] : memref<1x256xf32, #tpu.memory_space<vmem>>, vector<1x256xf32>
      %17 = vector.broadcast %16 : vector<1x256xf32> to vector<16x256xf32>
      %18 = arith.addf %15, %17 : vector<16x256xf32>
      %c0_15 = arith.constant 0 : index
      %c0_16 = arith.constant 0 : index
      %19 = vector.load %arg7[%c0_15, %c0_16] : memref<16x256xbf16, #tpu.memory_space<vmem>>, vector<16x256xbf16>
      %20 = arith.extf %19 : vector<16x256xbf16> to vector<16x256xf32>
      %21 = arith.addf %18, %20 : vector<16x256xf32>
      %cst_17 = arith.constant 0.000000e+00 : f32
      %22 = vector.broadcast %cst_17 : f32 to vector<16x256xf32>
      %23 = arith.maximumf %21, %22 : vector<16x256xf32>
      %24 = arith.truncf %23 : vector<16x256xf32> to vector<16x256xbf16>
      %c0_18 = arith.constant 0 : index
      %c0_19 = arith.constant 0 : index
      %25 = vector.load %arg8[%c0_18, %c0_19] : memref<16x256xbf16, #tpu.memory_space<vmem>>, vector<16x256xbf16>
      tpu.vector_store %arg8[%c0_18, %c0_19], %24 {strides = array<i32>} : memref<16x256xbf16, #tpu.memory_space<vmem>>, vector<16x256xbf16>,
    } else {
    }
    return
  }
  func.func @transform_0(%arg0: i32, %arg1: i32, %arg2: i32) -> (i32, i32) {
    %c0_i32 = arith.constant 0 : i32
    return %arg0, %arg2 : i32, i32
  }
  func.func @transform_1(%arg0: i32, %arg1: i32, %arg2: i32) -> (i32, i32) {
    %c0_i32 = arith.constant 0 : i32
    return %arg2, %arg1 : i32, i32
  }
  func.func @transform_2(%arg0: i32, %arg1: i32, %arg2: i32) -> (i32, i32) {
    %c0_i32 = arith.constant 0 : i32
    %c0_i32_0 = arith.constant 0 : i32
    return %c0_i32, %arg1 : i32, i32
  }
  func.func @transform_3(%arg0: i32, %arg1: i32, %arg2: i32) -> (i32, i32) {
    %c0_i32 = arith.constant 0 : i32
    %c0_i32_0 = arith.constant 0 : i32
    return %c0_i32, %arg1 : i32, i32
  }
  func.func @transform_4(%arg0: i32, %arg1: i32, %arg2: i32) -> (i32, i32) {
    %c0_i32 = arith.constant 0 : i32
    return %arg0, %arg1 : i32, i32
  }
  func.func @transform_5(%arg0: i32, %arg1: i32, %arg2: i32) -> (i32, i32) {
    %c0_i32 = arith.constant 0 : i32
    return %arg0, %arg1 : i32, i32
  }
}

module attributes {stable_mosaic.version = 11 : i64} {
  func.func @_mm_bn_kernel(%arg0: i32, %arg1: i32, %arg2: i32, %arg3: memref<16x1152xbf16, #tpu.memory_space<vmem>>, %arg4: memref<1152x512xbf16, #tpu.memory_space<vmem>>, %arg5: memref<1x512xf32, #tpu.memory_space<vmem>>, %arg6: memref<1x512xf32, #tpu.memory_space<vmem>>, %arg7: memref<16x512xbf16, #tpu.memory_space<vmem>>, %arg8: memref<16x512xf32, #tpu.memory_space<vmem>>) attributes {dimension_semantics = [#tpu.dimension_semantics<parallel>, #tpu.dimension_semantics<parallel>, #tpu.dimension_semantics<arbitrary>], iteration_bounds = array<i64: 1, 1, 2>, scalar_prefetch = 0 : i64, scratch_operands = 1 : i64, tpu.core_type = #tpu.core_type<tc>, window_params = [{transform_indices = @transform_0, window_bounds = array<i64: 16, 1152>}, {transform_indices = @transform_1, window_bounds = array<i64: 1152, 512>}, {transform_indices = @transform_2, window_bounds = array<i64: 1, 512>}, {transform_indices = @transform_3, window_bounds = array<i64: 1, 512>}, {transform_indices = @transform_4, window_bounds = array<i64: 16, 512>}]} {
    %c0_i32 = arith.constant 0 : i32
    %0 = arith.cmpi eq, %arg2, %c0_i32 : i32
    %1 = arith.extui %0 : i1 to i32
    %c0_i32_0 = arith.constant 0 : i32
    %2 = arith.cmpi ne, %1, %c0_i32_0 : i32
    scf.if %2 {
      %cst_9 = arith.constant 0.000000e+00 : f32
      %12 = vector.broadcast %cst_9 : f32 to vector<16x512xf32>
      %c0_10 = arith.constant 0 : index
      %c0_11 = arith.constant 0 : index
      %13 = vector.load %arg8[%c0_10, %c0_11] : memref<16x512xf32, #tpu.memory_space<vmem>>, vector<16x512xf32>
      tpu.vector_store %arg8[%c0_10, %c0_11], %12 {strides = array<i32>} : memref<16x512xf32, #tpu.memory_space<vmem>>, vector<16x512xf32>,
    } else {
    }
    %c0 = arith.constant 0 : index
    %c0_1 = arith.constant 0 : index
    %3 = vector.load %arg8[%c0, %c0_1] : memref<16x512xf32, #tpu.memory_space<vmem>>, vector<16x512xf32>
    %c0_2 = arith.constant 0 : index
    %c0_3 = arith.constant 0 : index
    %4 = vector.load %arg3[%c0_2, %c0_3] : memref<16x1152xbf16, #tpu.memory_space<vmem>>, vector<16x1152xbf16>
    %c0_4 = arith.constant 0 : index
    %c0_5 = arith.constant 0 : index
    %5 = vector.load %arg4[%c0_4, %c0_5] : memref<1152x512xbf16, #tpu.memory_space<vmem>>, vector<1152x512xbf16>
    %cst = arith.constant dense<0.000000e+00> : vector<16x512xf32>
    %6 = tpu.matmul %4, %5, %cst {dimension_numbers = #tpu.dot_dimension_numbers<[1], [0], [0], [1], [0, 0, 1, 1], [], []>} : vector<16x1152xbf16>, vector<1152x512xbf16>, vector<16x512xf32> -> vector<16x512xf32>
    %7 = arith.addf %3, %6 : vector<16x512xf32>
    %c0_6 = arith.constant 0 : index
    %c0_7 = arith.constant 0 : index
    %8 = vector.load %arg8[%c0_6, %c0_7] : memref<16x512xf32, #tpu.memory_space<vmem>>, vector<16x512xf32>
    tpu.vector_store %arg8[%c0_6, %c0_7], %7 {strides = array<i32>} : memref<16x512xf32, #tpu.memory_space<vmem>>, vector<16x512xf32>,
    %c1_i32 = arith.constant 1 : i32
    %9 = arith.cmpi eq, %arg2, %c1_i32 : i32
    %10 = arith.extui %9 : i1 to i32
    %c0_i32_8 = arith.constant 0 : i32
    %11 = arith.cmpi ne, %10, %c0_i32_8 : i32
    scf.if %11 {
      %c0_9 = arith.constant 0 : index
      %c0_10 = arith.constant 0 : index
      %12 = vector.load %arg8[%c0_9, %c0_10] : memref<16x512xf32, #tpu.memory_space<vmem>>, vector<16x512xf32>
      %c0_11 = arith.constant 0 : index
      %c0_12 = arith.constant 0 : index
      %13 = vector.load %arg5[%c0_11, %c0_12] : memref<1x512xf32, #tpu.memory_space<vmem>>, vector<1x512xf32>
      %14 = vector.broadcast %13 : vector<1x512xf32> to vector<16x512xf32>
      %15 = arith.mulf %12, %14 : vector<16x512xf32>
      %c0_13 = arith.constant 0 : index
      %c0_14 = arith.constant 0 : index
      %16 = vector.load %arg6[%c0_13, %c0_14] : memref<1x512xf32, #tpu.memory_space<vmem>>, vector<1x512xf32>
      %17 = vector.broadcast %16 : vector<1x512xf32> to vector<16x512xf32>
      %18 = arith.addf %15, %17 : vector<16x512xf32>
      %cst_15 = arith.constant 0.000000e+00 : f32
      %19 = vector.broadcast %cst_15 : f32 to vector<16x512xf32>
      %20 = arith.maximumf %18, %19 : vector<16x512xf32>
      %21 = arith.truncf %20 : vector<16x512xf32> to vector<16x512xbf16>
      %c0_16 = arith.constant 0 : index
      %c0_17 = arith.constant 0 : index
      %22 = vector.load %arg7[%c0_16, %c0_17] : memref<16x512xbf16, #tpu.memory_space<vmem>>, vector<16x512xbf16>
      tpu.vector_store %arg7[%c0_16, %c0_17], %21 {strides = array<i32>} : memref<16x512xbf16, #tpu.memory_space<vmem>>, vector<16x512xbf16>,
    } else {
    }
    return
  }
  func.func @transform_0(%arg0: i32, %arg1: i32, %arg2: i32) -> (i32, i32) {
    %c0_i32 = arith.constant 0 : i32
    return %arg0, %arg2 : i32, i32
  }
  func.func @transform_1(%arg0: i32, %arg1: i32, %arg2: i32) -> (i32, i32) {
    %c0_i32 = arith.constant 0 : i32
    return %arg2, %arg1 : i32, i32
  }
  func.func @transform_2(%arg0: i32, %arg1: i32, %arg2: i32) -> (i32, i32) {
    %c0_i32 = arith.constant 0 : i32
    %c0_i32_0 = arith.constant 0 : i32
    return %c0_i32, %arg1 : i32, i32
  }
  func.func @transform_3(%arg0: i32, %arg1: i32, %arg2: i32) -> (i32, i32) {
    %c0_i32 = arith.constant 0 : i32
    %c0_i32_0 = arith.constant 0 : i32
    return %c0_i32, %arg1 : i32, i32
  }
  func.func @transform_4(%arg0: i32, %arg1: i32, %arg2: i32) -> (i32, i32) {
    %c0_i32 = arith.constant 0 : i32
    return %arg0, %arg1 : i32, i32
  }
}

module attributes {stable_mosaic.version = 11 : i64} {
  func.func @_mm_bn_kernel(%arg0: i32, %arg1: i32, %arg2: i32, %arg3: memref<16x256xbf16, #tpu.memory_space<vmem>>, %arg4: memref<256x512xbf16, #tpu.memory_space<vmem>>, %arg5: memref<1x512xf32, #tpu.memory_space<vmem>>, %arg6: memref<1x512xf32, #tpu.memory_space<vmem>>, %arg7: memref<16x512xbf16, #tpu.memory_space<vmem>>, %arg8: memref<16x512xf32, #tpu.memory_space<vmem>>) attributes {dimension_semantics = [#tpu.dimension_semantics<parallel>, #tpu.dimension_semantics<parallel>, #tpu.dimension_semantics<arbitrary>], iteration_bounds = array<i64: 1, 1, 1>, scalar_prefetch = 0 : i64, scratch_operands = 1 : i64, tpu.core_type = #tpu.core_type<tc>, window_params = [{transform_indices = @transform_0, window_bounds = array<i64: 16, 256>}, {transform_indices = @transform_1, window_bounds = array<i64: 256, 512>}, {transform_indices = @transform_2, window_bounds = array<i64: 1, 512>}, {transform_indices = @transform_3, window_bounds = array<i64: 1, 512>}, {transform_indices = @transform_4, window_bounds = array<i64: 16, 512>}]} {
    %c0_i32 = arith.constant 0 : i32
    %0 = arith.cmpi eq, %arg2, %c0_i32 : i32
    %1 = arith.extui %0 : i1 to i32
    %c0_i32_0 = arith.constant 0 : i32
    %2 = arith.cmpi ne, %1, %c0_i32_0 : i32
    scf.if %2 {
      %cst_10 = arith.constant 0.000000e+00 : f32
      %12 = vector.broadcast %cst_10 : f32 to vector<16x512xf32>
      %c0_11 = arith.constant 0 : index
      %c0_12 = arith.constant 0 : index
      %13 = vector.load %arg8[%c0_11, %c0_12] : memref<16x512xf32, #tpu.memory_space<vmem>>, vector<16x512xf32>
      tpu.vector_store %arg8[%c0_11, %c0_12], %12 {strides = array<i32>} : memref<16x512xf32, #tpu.memory_space<vmem>>, vector<16x512xf32>,
    } else {
    }
    %c0 = arith.constant 0 : index
    %c0_1 = arith.constant 0 : index
    %3 = vector.load %arg8[%c0, %c0_1] : memref<16x512xf32, #tpu.memory_space<vmem>>, vector<16x512xf32>
    %c0_2 = arith.constant 0 : index
    %c0_3 = arith.constant 0 : index
    %4 = vector.load %arg3[%c0_2, %c0_3] : memref<16x256xbf16, #tpu.memory_space<vmem>>, vector<16x256xbf16>
    %c0_4 = arith.constant 0 : index
    %c0_5 = arith.constant 0 : index
    %5 = vector.load %arg4[%c0_4, %c0_5] : memref<256x512xbf16, #tpu.memory_space<vmem>>, vector<256x512xbf16>
    %cst = arith.constant dense<0.000000e+00> : vector<16x512xf32>
    %6 = tpu.matmul %4, %5, %cst {dimension_numbers = #tpu.dot_dimension_numbers<[1], [0], [0], [1], [0, 0, 1, 1], [], []>} : vector<16x256xbf16>, vector<256x512xbf16>, vector<16x512xf32> -> vector<16x512xf32>
    %7 = arith.addf %3, %6 : vector<16x512xf32>
    %c0_6 = arith.constant 0 : index
    %c0_7 = arith.constant 0 : index
    %8 = vector.load %arg8[%c0_6, %c0_7] : memref<16x512xf32, #tpu.memory_space<vmem>>, vector<16x512xf32>
    tpu.vector_store %arg8[%c0_6, %c0_7], %7 {strides = array<i32>} : memref<16x512xf32, #tpu.memory_space<vmem>>, vector<16x512xf32>,
    %c0_i32_8 = arith.constant 0 : i32
    %9 = arith.cmpi eq, %arg2, %c0_i32_8 : i32
    %10 = arith.extui %9 : i1 to i32
    %c0_i32_9 = arith.constant 0 : i32
    %11 = arith.cmpi ne, %10, %c0_i32_9 : i32
    scf.if %11 {
      %c0_10 = arith.constant 0 : index
      %c0_11 = arith.constant 0 : index
      %12 = vector.load %arg8[%c0_10, %c0_11] : memref<16x512xf32, #tpu.memory_space<vmem>>, vector<16x512xf32>
      %c0_12 = arith.constant 0 : index
      %c0_13 = arith.constant 0 : index
      %13 = vector.load %arg5[%c0_12, %c0_13] : memref<1x512xf32, #tpu.memory_space<vmem>>, vector<1x512xf32>
      %14 = vector.broadcast %13 : vector<1x512xf32> to vector<16x512xf32>
      %15 = arith.mulf %12, %14 : vector<16x512xf32>
      %c0_14 = arith.constant 0 : index
      %c0_15 = arith.constant 0 : index
      %16 = vector.load %arg6[%c0_14, %c0_15] : memref<1x512xf32, #tpu.memory_space<vmem>>, vector<1x512xf32>
      %17 = vector.broadcast %16 : vector<1x512xf32> to vector<16x512xf32>
      %18 = arith.addf %15, %17 : vector<16x512xf32>
      %19 = arith.truncf %18 : vector<16x512xf32> to vector<16x512xbf16>
      %c0_16 = arith.constant 0 : index
      %c0_17 = arith.constant 0 : index
      %20 = vector.load %arg7[%c0_16, %c0_17] : memref<16x512xbf16, #tpu.memory_space<vmem>>, vector<16x512xbf16>
      tpu.vector_store %arg7[%c0_16, %c0_17], %19 {strides = array<i32>} : memref<16x512xbf16, #tpu.memory_space<vmem>>, vector<16x512xbf16>,
    } else {
    }
    return
  }
  func.func @transform_0(%arg0: i32, %arg1: i32, %arg2: i32) -> (i32, i32) {
    %c0_i32 = arith.constant 0 : i32
    return %arg0, %arg2 : i32, i32
  }
  func.func @transform_1(%arg0: i32, %arg1: i32, %arg2: i32) -> (i32, i32) {
    %c0_i32 = arith.constant 0 : i32
    return %arg2, %arg1 : i32, i32
  }
  func.func @transform_2(%arg0: i32, %arg1: i32, %arg2: i32) -> (i32, i32) {
    %c0_i32 = arith.constant 0 : i32
    %c0_i32_0 = arith.constant 0 : i32
    return %c0_i32, %arg1 : i32, i32
  }
  func.func @transform_3(%arg0: i32, %arg1: i32, %arg2: i32) -> (i32, i32) {
    %c0_i32 = arith.constant 0 : i32
    %c0_i32_0 = arith.constant 0 : i32
    return %c0_i32, %arg1 : i32, i32
  }
  func.func @transform_4(%arg0: i32, %arg1: i32, %arg2: i32) -> (i32, i32) {
    %c0_i32 = arith.constant 0 : i32
    return %arg0, %arg1 : i32, i32
  }
}

module attributes {stable_mosaic.version = 11 : i64} {
  func.func @_mm_bn_res_kernel(%arg0: i32, %arg1: i32, %arg2: i32, %arg3: memref<16x1536xbf16, #tpu.memory_space<vmem>>, %arg4: memref<1536x512xbf16, #tpu.memory_space<vmem>>, %arg5: memref<1x512xf32, #tpu.memory_space<vmem>>, %arg6: memref<1x512xf32, #tpu.memory_space<vmem>>, %arg7: memref<16x512xbf16, #tpu.memory_space<vmem>>, %arg8: memref<16x512xbf16, #tpu.memory_space<vmem>>, %arg9: memref<16x512xf32, #tpu.memory_space<vmem>>) attributes {dimension_semantics = [#tpu.dimension_semantics<parallel>, #tpu.dimension_semantics<parallel>, #tpu.dimension_semantics<arbitrary>], iteration_bounds = array<i64: 1, 1, 3>, scalar_prefetch = 0 : i64, scratch_operands = 1 : i64, tpu.core_type = #tpu.core_type<tc>, window_params = [{transform_indices = @transform_0, window_bounds = array<i64: 16, 1536>}, {transform_indices = @transform_1, window_bounds = array<i64: 1536, 512>}, {transform_indices = @transform_2, window_bounds = array<i64: 1, 512>}, {transform_indices = @transform_3, window_bounds = array<i64: 1, 512>}, {transform_indices = @transform_4, window_bounds = array<i64: 16, 512>}, {transform_indices = @transform_5, window_bounds = array<i64: 16, 512>}]} {
    %c0_i32 = arith.constant 0 : i32
    %0 = arith.cmpi eq, %arg2, %c0_i32 : i32
    %1 = arith.extui %0 : i1 to i32
    %c0_i32_0 = arith.constant 0 : i32
    %2 = arith.cmpi ne, %1, %c0_i32_0 : i32
    scf.if %2 {
      %cst_9 = arith.constant 0.000000e+00 : f32
      %12 = vector.broadcast %cst_9 : f32 to vector<16x512xf32>
      %c0_10 = arith.constant 0 : index
      %c0_11 = arith.constant 0 : index
      %13 = vector.load %arg9[%c0_10, %c0_11] : memref<16x512xf32, #tpu.memory_space<vmem>>, vector<16x512xf32>
      tpu.vector_store %arg9[%c0_10, %c0_11], %12 {strides = array<i32>} : memref<16x512xf32, #tpu.memory_space<vmem>>, vector<16x512xf32>,
    } else {
    }
    %c0 = arith.constant 0 : index
    %c0_1 = arith.constant 0 : index
    %3 = vector.load %arg9[%c0, %c0_1] : memref<16x512xf32, #tpu.memory_space<vmem>>, vector<16x512xf32>
    %c0_2 = arith.constant 0 : index
    %c0_3 = arith.constant 0 : index
    %4 = vector.load %arg3[%c0_2, %c0_3] : memref<16x1536xbf16, #tpu.memory_space<vmem>>, vector<16x1536xbf16>
    %c0_4 = arith.constant 0 : index
    %c0_5 = arith.constant 0 : index
    %5 = vector.load %arg4[%c0_4, %c0_5] : memref<1536x512xbf16, #tpu.memory_space<vmem>>, vector<1536x512xbf16>
    %cst = arith.constant dense<0.000000e+00> : vector<16x512xf32>
    %6 = tpu.matmul %4, %5, %cst {dimension_numbers = #tpu.dot_dimension_numbers<[1], [0], [0], [1], [0, 0, 1, 1], [], []>} : vector<16x1536xbf16>, vector<1536x512xbf16>, vector<16x512xf32> -> vector<16x512xf32>
    %7 = arith.addf %3, %6 : vector<16x512xf32>
    %c0_6 = arith.constant 0 : index
    %c0_7 = arith.constant 0 : index
    %8 = vector.load %arg9[%c0_6, %c0_7] : memref<16x512xf32, #tpu.memory_space<vmem>>, vector<16x512xf32>
    tpu.vector_store %arg9[%c0_6, %c0_7], %7 {strides = array<i32>} : memref<16x512xf32, #tpu.memory_space<vmem>>, vector<16x512xf32>,
    %c2_i32 = arith.constant 2 : i32
    %9 = arith.cmpi eq, %arg2, %c2_i32 : i32
    %10 = arith.extui %9 : i1 to i32
    %c0_i32_8 = arith.constant 0 : i32
    %11 = arith.cmpi ne, %10, %c0_i32_8 : i32
    scf.if %11 {
      %c0_9 = arith.constant 0 : index
      %c0_10 = arith.constant 0 : index
      %12 = vector.load %arg9[%c0_9, %c0_10] : memref<16x512xf32, #tpu.memory_space<vmem>>, vector<16x512xf32>
      %c0_11 = arith.constant 0 : index
      %c0_12 = arith.constant 0 : index
      %13 = vector.load %arg5[%c0_11, %c0_12] : memref<1x512xf32, #tpu.memory_space<vmem>>, vector<1x512xf32>
      %14 = vector.broadcast %13 : vector<1x512xf32> to vector<16x512xf32>
      %15 = arith.mulf %12, %14 : vector<16x512xf32>
      %c0_13 = arith.constant 0 : index
      %c0_14 = arith.constant 0 : index
      %16 = vector.load %arg6[%c0_13, %c0_14] : memref<1x512xf32, #tpu.memory_space<vmem>>, vector<1x512xf32>
      %17 = vector.broadcast %16 : vector<1x512xf32> to vector<16x512xf32>
      %18 = arith.addf %15, %17 : vector<16x512xf32>
      %c0_15 = arith.constant 0 : index
      %c0_16 = arith.constant 0 : index
      %19 = vector.load %arg7[%c0_15, %c0_16] : memref<16x512xbf16, #tpu.memory_space<vmem>>, vector<16x512xbf16>
      %20 = arith.extf %19 : vector<16x512xbf16> to vector<16x512xf32>
      %21 = arith.addf %18, %20 : vector<16x512xf32>
      %cst_17 = arith.constant 0.000000e+00 : f32
      %22 = vector.broadcast %cst_17 : f32 to vector<16x512xf32>
      %23 = arith.maximumf %21, %22 : vector<16x512xf32>
      %24 = arith.truncf %23 : vector<16x512xf32> to vector<16x512xbf16>
      %c0_18 = arith.constant 0 : index
      %c0_19 = arith.constant 0 : index
      %25 = vector.load %arg8[%c0_18, %c0_19] : memref<16x512xbf16, #tpu.memory_space<vmem>>, vector<16x512xbf16>
      tpu.vector_store %arg8[%c0_18, %c0_19], %24 {strides = array<i32>} : memref<16x512xbf16, #tpu.memory_space<vmem>>, vector<16x512xbf16>,
    } else {
    }
    return
  }
  func.func @transform_0(%arg0: i32, %arg1: i32, %arg2: i32) -> (i32, i32) {
    %c0_i32 = arith.constant 0 : i32
    return %arg0, %arg2 : i32, i32
  }
  func.func @transform_1(%arg0: i32, %arg1: i32, %arg2: i32) -> (i32, i32) {
    %c0_i32 = arith.constant 0 : i32
    return %arg2, %arg1 : i32, i32
  }
  func.func @transform_2(%arg0: i32, %arg1: i32, %arg2: i32) -> (i32, i32) {
    %c0_i32 = arith.constant 0 : i32
    %c0_i32_0 = arith.constant 0 : i32
    return %c0_i32, %arg1 : i32, i32
  }
  func.func @transform_3(%arg0: i32, %arg1: i32, %arg2: i32) -> (i32, i32) {
    %c0_i32 = arith.constant 0 : i32
    %c0_i32_0 = arith.constant 0 : i32
    return %c0_i32, %arg1 : i32, i32
  }
  func.func @transform_4(%arg0: i32, %arg1: i32, %arg2: i32) -> (i32, i32) {
    %c0_i32 = arith.constant 0 : i32
    return %arg0, %arg1 : i32, i32
  }
  func.func @transform_5(%arg0: i32, %arg1: i32, %arg2: i32) -> (i32, i32) {
    %c0_i32 = arith.constant 0 : i32
    return %arg0, %arg1 : i32, i32
  }
}

module attributes {stable_mosaic.version = 11 : i64} {
  func.func @_avgpool_kernel(%arg0: i32, %arg1: memref<1x8x512xbf16, #tpu.memory_space<vmem>>, %arg2: memref<1x1x512xf32, #tpu.memory_space<vmem>>) attributes {dimension_semantics = [#tpu.dimension_semantics<parallel>], iteration_bounds = array<i64: 2>, scalar_prefetch = 0 : i64, scratch_operands = 0 : i64, tpu.core_type = #tpu.core_type<tc>, window_params = [{transform_indices = @transform_0, window_bounds = array<i64: 1, 8, 512>}, {transform_indices = @transform_1, window_bounds = array<i64: 1, 1, 512>}]} {
    %c0 = arith.constant 0 : index
    %c0_0 = arith.constant 0 : index
    %c0_1 = arith.constant 0 : index
    %0 = vector.load %arg1[%c0, %c0_0, %c0_1] : memref<1x8x512xbf16, #tpu.memory_space<vmem>>, vector<1x8x512xbf16>
    %1 = vector.shape_cast %0 : vector<1x8x512xbf16> to vector<8x512xbf16>
    %2 = arith.extf %1 : vector<8x512xbf16> to vector<8x512xf32>
    %cst = arith.constant dense<0.000000e+00> : vector<512xf32>
    %3 = vector.multi_reduction <add>, %2, %cst [0] : vector<8x512xf32> to vector<512xf32>
    %4 = vector.shape_cast %3 : vector<512xf32> to vector<1x512xf32>
    %cst_2 = arith.constant 1.000000e+00 : f32
    %5 = vector.broadcast %cst_2 : f32 to vector<1x512xf32>
    %6 = arith.mulf %4, %5 : vector<1x512xf32>
    %c0_3 = arith.constant 0 : index
    %c0_4 = arith.constant 0 : index
    %c0_5 = arith.constant 0 : index
    %7 = vector.load %arg2[%c0_3, %c0_4, %c0_5] : memref<1x1x512xf32, #tpu.memory_space<vmem>>, vector<1x1x512xf32>
    %8 = vector.shape_cast %7 : vector<1x1x512xf32> to vector<1x512xf32>
    %9 = vector.shape_cast %6 : vector<1x512xf32> to vector<1x1x512xf32>
    tpu.vector_store %arg2[%c0_3, %c0_4, %c0_5], %9 {strides = array<i32>} : memref<1x1x512xf32, #tpu.memory_space<vmem>>, vector<1x1x512xf32>,
    return
  }
  func.func @transform_0(%arg0: i32) -> (i32, i32, i32) {
    %c0_i32 = arith.constant 0 : i32
    %c0_i32_0 = arith.constant 0 : i32
    %c0_i32_1 = arith.constant 0 : i32
    return %arg0, %c0_i32, %c0_i32_0 : i32, i32, i32
  }
  func.func @transform_1(%arg0: i32) -> (i32, i32, i32) {
    %c0_i32 = arith.constant 0 : i32
    %c0_i32_0 = arith.constant 0 : i32
    %c0_i32_1 = arith.constant 0 : i32
    return %arg0, %c0_i32, %c0_i32_0 : i32, i32, i32
  }
}

</mosaic_0001>

<bundles_post_ra>
// kernel: resnet_forward.15
= control target key start
LH: loop header
LB: loop body
LE: loop exit
PB: predicated region body
PF: predicated region fallthrough
CT: control target
= control target key end

     0   :  { %s773_s15 = smov 0   ;;  %s981_s0 = inlined_call_operand.vmem [shape: bf16[2,9,9,64], index: 0, kind: input, shape index: {}]   ;;  %s982_s1 = inlined_call_operand.vmem [shape: bf16[2,9,9,64], index: 1, kind: input, shape index: {}]   ;;  %s983_s2 = inlined_call_operand.vmem [shape: bf16[2,9,9,64], index: 2, kind: input, shape index: {}]   ;;  %s984_s3 = inlined_call_operand.vmem [shape: bf16[2,9,9,64], index: 3, kind: input, shape index: {}]   ;;  %s985_s4 = inlined_call_operand.vmem [shape: bf16[2,8,8,64], index: 4, kind: output, shape index: {}]  }
   0x1 LB: > { %s717_s16 = sadd.s32 4294967295, %s746_s15   ;;  %p721_p0 = scmp.ge.s32.totalorder %s746_s15, 1  ;;  %s746_s15 = sphi %s773_s15, %s14_s15  }
   0x2   : > { %p192_p1 = scmp.lt.s32.totalorder %s746_s15, 3 }
   0x4   : > { %p193_p2 = pnand %p721_p0, %p192_p1 }
   0x5   : > { %p233_p3 = scmp.lt.s32.totalorder (!%p193_p2), %s717_s16, 1  ;;  %vm294_vm0 = vsmask.f32 (!%p193_p2), 3328  ;;  %vm295_vm1 = vsmask.f32 (!%p193_p2), 7440  ;;  %vm617_vm3 = vcmask (!%p193_p2), 519168  }
   0x6   : > { %196 = sbr.rel (%p193_p2) target bundleno = 78 (0x4e), region = 36  ;;  %vm836_vm2 = vmor (!%p193_p2), %vm294_vm0, %vm295_vm1 }
   0xd   : > { %s989_s16 = smov (!%p233_p3, %s717_s16), 1 }
   0xe   : > { %s731_s17 = smul.u32 72, %s989_s16  ;;  %s730_s30 = sshll.u32 %s989_s16, 5 }
   0xf   : > { %s881_s7 = scalar_lea.vmem %s985_s4, %s730_s30 }
  0x10   : > { %s787_s20 = scalar_lea.vmem %s981_s0, %s731_s17  ;;  %s792_s23 = scalar_lea.vmem %s982_s1, %s731_s17 }
  0x11   : > { %s797_s26 = scalar_lea.vmem %s983_s2, %s731_s17  ;;  %v800_v0 = vld [vmem:[%s787_s20] sm:$0xf]  ;;  %v803_v1 = vld [vmem:[%s787_s20 + $0x8] sm:$0xf]  ;;  %s808_s29 = scalar_lea.vmem %s984_s3, %s731_s17  ;;  %v285_v3 = vld [vmem:[%s787_s20 + $0x4] sm:$0x1] }
  0x12   : > { %v267_v2 = vld [vmem:[%s792_s23] sm:$0xf]  ;;  %v286_v4 = vld [vmem:[%s787_s20 + $0xc] sm:$0x1]  ;;  %v298_v5 = vshrl.u32 %v800_v0, 16  ;;  %v301_v6 = vshll.u32 %v800_v0, 16 }
  0x13   : > { %v307_v7 = vshll.u32 %v285_v3, 16  ;;  %v816_v8 = vld [vmem:[%s797_s26] sm:$0xf]  ;;  %v819_v9 = vld [vmem:[%s792_s23 + $0x8] sm:$0xf]  ;;  %v312_v10 = vshrl.u32 %v803_v1, 16  ;;  %v276_v18 = vmax.bf16 %v267_v2, %v800_v0 }
  0x14   : > { %v315_v11 = vshll.u32 %v803_v1, 16  ;;  %v321_v12 = vshll.u32 %v286_v4, 16  ;;  %v474_v13 = vshrl.u32 %v816_v8, 16  ;;  %v300_v14 = vrot.slane %v298_v5, 4  ;;  %v449_v16 = vld [vmem:[%s808_s29] sm:$0xf] }
  0x15   : > { %v303_v15 = vrot.slane %v301_v6, 5  ;;  %v465_v17 = vld [vmem:[%s797_s26 + $0x4] sm:$0x1]  ;;  %v309_v19 = vrot.slane %v307_v7, 5  ;;  %v314_v20 = vrot.slane %v312_v10, 4  ;;  %v477_v25 = vshll.u32 %v816_v8, 16 }
  0x16   : > { %v317_v21 = vrot.slane %v315_v11, 5  ;;  %v828_v22 = vld [vmem:[%s787_s20 + $0x10] sm:$0xf]  ;;  %v476_v24 = vrot.slane %v474_v13, 4  ;;  %v483_v26 = vshll.u32 %v465_v17, 16  ;;  %v277_v28 = vmax.bf16 %v819_v9, %v803_v1 }
  0x17   : > { %v304_v23 = vor.u32 %v303_v15, %v300_v14  ;;  %v287_v27 = vld [vmem:[%s787_s20 + $0x14] sm:$0x1]  ;;  %v326_v31 = vshrl.u32 %v828_v22, 16  ;;  %v329_v32 = vshll.u32 %v828_v22, 16  ;;  %v843_v33 = vld [vmem:[%s797_s26 + $0x8] sm:$0xf]  ;;  %v457_v40 = vmax.bf16 %v449_v16, %v816_v8 }
  0x18   : > { %v318_v30 = vor.u32 %v317_v21, %v314_v20  ;;  %v323_v35 = vrot.slane %v321_v12, 5  ;;  %v479_v36 = vrot.slane %v477_v25, 5  ;;  %v269_v37 = vld [vmem:[%s792_s23 + $0x10] sm:$0xf]  ;;  %v335_v38 = vshll.u32 %v287_v27, 16 }
  0x19   : > { %v305_v34 = vrot.slane %v304_v23, 4  ;;  %v328_v41 = vrot.slane %v326_v31, 4  ;;  %v331_v42 = vrot.slane %v329_v32, 5  ;;  %v466_v43 = vld [vmem:[%s797_s26 + $0xc] sm:$0x1]  ;;  %v485_v46 = vrot.slane %v483_v26, 5 }
  0x1a   : > { %v319_v39 = vrot.slane %v318_v30, 4  ;;  %v480_v45 = vor.u32 %v479_v36, %v476_v24  ;;  %v488_v47 = vshrl.u32 %v843_v33, 16  ;;  %v852_v48 = vld [vmem:[%s787_s20 + $0x18] sm:$0xf]  ;;  %v278_v49 = vmax.bf16 %v269_v37, %v828_v22  ;;  %v450_v52 = vld [vmem:[%s808_s29 + $0x8] sm:$0xf] }
  0x1b   : > { %v310_v44 = vsel %vm836_vm2, %v305_v34, %v309_v19  ;;  %v332_v50 = vor.u32 %v331_v42, %v328_v41  ;;  %v337_v51 = vrot.slane %v335_v38, 5  ;;  %v491_v53 = vshll.u32 %v843_v33, 16  ;;  %v288_v54 = vld [vmem:[%s787_s20 + $0x1c] sm:$0x1]  ;;  %v861_v62 = vld [vmem:[%s792_s23 + $0x18] sm:$0xf] }
  0x1c   : > { %v324_v55 = vsel %vm836_vm2, %v319_v39, %v323_v35  ;;  %v481_v56 = vrot.slane %v480_v45, 4  ;;  %v490_v57 = vrot.slane %v488_v47, 4  ;;  %v497_v58 = vshll.u32 %v466_v43, 16  ;;  %v443_v4 = vld [vmem:[%s797_s26 + $0x10] sm:$0xf] }
  0x1d   : > { %v432_v59 = vmax.bf16 %v310_v44, %v276_v18  ;;  %v333_v60 = vrot.slane %v332_v50, 4  ;;  %v493_v61 = vrot.slane %v491_v53, 5  ;;  %v340_v63 = vshrl.u32 %v852_v48, 16  ;;  %v467_v9 = vld [vmem:[%s797_s26 + $0x14] sm:$0x1] }
  0x1e   : > { %v486_v0 = vsel %vm836_vm2, %v481_v56, %v485_v46  ;;  %v458_v1 = vmax.bf16 %v450_v52, %v843_v33  ;;  %v343_v2 = vshll.u32 %v852_v48, 16  ;;  %v349_v3 = vshll.u32 %v288_v54, 16  ;;  %v872_v10 = vld [vmem:[%s787_s20 + $0x20] sm:$0xf]  ;;  %v289_v22 = vld [vmem:[%s787_s20 + $0x24] sm:$0x1] }
  0x1f   : > { %v593_v5 = vmax.bf16 %v486_v0, %v457_v40  ;;  %v494_v6 = vor.u32 %v493_v61, %v490_v57  ;;  %v499_v7 = vrot.slane %v497_v58, 5  ;;  %v342_v8 = vrot.slane %v340_v63, 4  ;;  %v451_v26 = vld [vmem:[%s808_s29 + $0x10] sm:$0xf]  ;;  %v444_v30 = vld [vmem:[%s797_s26 + $0x18] sm:$0xf] }
  0x20   : > { %v433_v11 = vmax.bf16 %v324_v55, %v277_v28  ;;  %v338_v12 = vsel %vm836_vm2, %v333_v60, %v337_v51  ;;  %v279_v13 = vmax.bf16 %v861_v62, %v852_v48  ;;  %v345_v14 = vrot.slane %v343_v2, 5  ;;  %v452_v35 = vld [vmem:[%s808_s29 + $0x18] sm:$0xf]  ;;  %v468_v40 = vld [vmem:[%s797_s26 + $0x1c] sm:$0x1] }
  0x21   : > { %v601_v15 = vmax.bf16 %v593_v5, %v432_v59  ;;  %v495_v16 = vrot.slane %v494_v6, 4  ;;  %v502_v17 = vshrl.u32 %v443_v4, 16  ;;  %v505_v18 = vshll.u32 %v443_v4, 16  ;;  %v895_v45 = vld [vmem:[%s787_s20 + $0x28] sm:$0xf] }
  0x22   : > { %v346_v19 = vor.u32 %v345_v14, %v342_v8  ;;  %v351_v20 = vrot.slane %v349_v3, 5  ;;  %v511_v21 = vshll.u32 %v467_v9, 16  ;;  %v354_v23 = vshrl.u32 %v872_v10, 16  ;;  %v290_v54 = vld [vmem:[%s787_s20 + $0x2c] sm:$0x1] }
  0x23   : > { %v609_v24 = vmax.bf16 %v601_v15, %v433_v11  ;;  %v500_v25 = vsel %vm836_vm2, %v495_v16, %v499_v7  ;;  %v504_v27 = vrot.slane %v502_v17, 4  ;;  %v507_v28 = vrot.slane %v505_v18, 5  ;;  %v271_v56 = vld [vmem:[%s792_s23 + $0x20] sm:$0xf]  ;;  %v272_v0 = vld [vmem:[%s792_s23 + $0x28] sm:$0xf] }
  0x24   : > { %v434_v31 = vmax.bf16 %v338_v12, %v278_v49  ;;  %v594_v32 = vmax.bf16 %v500_v25, %v458_v1  ;;  %v347_v33 = vrot.slane %v346_v19, 4  ;;  %v513_v34 = vrot.slane %v511_v21, 5  ;;  %v445_v60 = vld [vmem:[%s797_s26 + $0x20] sm:$0xf]  ;;  %v469_v2 = vld [vmem:[%s797_s26 + $0x24] sm:$0x1] }
  0x25   : > { %618 = vst.msk [vmem:[%s881_s7] sm:$0xf] %vm617_vm3, %v609_v24  ;;  %v508_v36 = vor.u32 %v507_v28, %v504_v27  ;;  %v356_v37 = vrot.slane %v354_v23, 4  ;;  %v357_v38 = vshll.u32 %v872_v10, 16  ;;  %v363_v39 = vshll.u32 %v289_v22, 16 }
  0x26   : > { %v602_v41 = vmax.bf16 %v594_v32, %v433_v11  ;;  %v459_v42 = vmax.bf16 %v451_v26, %v443_v4  ;;  %v516_v43 = vshrl.u32 %v444_v30, 16  ;;  %v519_v44 = vshll.u32 %v444_v30, 16  ;;  %v453_v15 = vld [vmem:[%s808_s29 + $0x20] sm:$0xf]  ;;  %v914_v18 = vld [vmem:[%s787_s20 + $0x30] sm:$0xf] }
  0x27   : > { %v352_v46 = vsel %vm836_vm2, %v347_v33, %v351_v20  ;;  %v509_v47 = vrot.slane %v508_v36, 4  ;;  %v359_v48 = vrot.slane %v357_v38, 5  ;;  %v460_v49 = vmax.bf16 %v452_v35, %v444_v30  ;;  %v291_v22 = vld [vmem:[%s787_s20 + $0x34] sm:$0x1]  ;;  %v922_v26 = vld [vmem:[%s797_s26 + $0x28] sm:$0xf] }
  0x28   : > { %v610_v50 = vmax.bf16 %v602_v41, %v434_v31  ;;  %v518_v51 = vrot.slane %v516_v43, 4  ;;  %v521_v52 = vrot.slane %v519_v44, 5  ;;  %v525_v53 = vshll.u32 %v468_v40, 16  ;;  %v470_v36 = vld [vmem:[%s797_s26 + $0x2c] sm:$0x1] }
  0x29   : > { %v514_v55 = vsel %vm836_vm2, %v509_v47, %v513_v34  ;;  %v360_v57 = vor.u32 %v359_v48, %v356_v37  ;;  %v365_v58 = vrot.slane %v363_v39, 5  ;;  %v368_v59 = vshrl.u32 %v895_v45, 16  ;;  %v931_v41 = vld [vmem:[%s787_s20 + $0x38] sm:$0xf] }
  0x2a   : > { %619 = vst.msk [vmem:[%s881_s7 + $0x4] sm:$0xf] %vm617_vm3, %v610_v50  ;;  %v595_v61 = vmax.bf16 %v514_v55, %v459_v42  ;;  %v522_v62 = vor.u32 %v521_v52, %v518_v51  ;;  %v527_v63 = vrot.slane %v525_v53, 5  ;;  %v371_v1 = vshll.u32 %v895_v45, 16  ;;  %v447_v53 = vld [vmem:[%s797_s26 + $0x30] sm:$0xf] }
  0x2b   : > { %v435_v3 = vmax.bf16 %v352_v46, %v279_v13  ;;  %v361_v4 = vrot.slane %v360_v57, 4  ;;  %v370_v5 = vrot.slane %v368_v59, 4  ;;  %v377_v6 = vshll.u32 %v290_v54, 16 }
  0x2c   : > { %v603_v7 = vmax.bf16 %v595_v61, %v434_v31  ;;  %v523_v8 = vrot.slane %v522_v62, 4  ;;  %v373_v9 = vrot.slane %v371_v1, 5  ;;  %v530_v11 = vshrl.u32 %v445_v60, 16 }
  0x2d   : > { %v280_v12 = vmax.bf16 %v271_v56, %v872_v10  ;;  %v281_v14 = vmax.bf16 %v272_v0, %v895_v45  ;;  %v533_v16 = vshll.u32 %v445_v60, 16  ;;  %v539_v17 = vshll.u32 %v469_v2, 16  ;;  %v273_v56 = vld [vmem:[%s792_s23 + $0x30] sm:$0xf]  ;;  %v471_v0 = vld [vmem:[%s797_s26 + $0x34] sm:$0x1] }
  0x2e   : > { %v611_v13 = vmax.bf16 %v603_v7, %v435_v3  ;;  %v366_v19 = vsel %vm836_vm2, %v361_v4, %v365_v58  ;;  %v528_v20 = vsel %vm836_vm2, %v523_v8, %v527_v63  ;;  %v374_v21 = vor.u32 %v373_v9, %v370_v5  ;;  %v454_v58 = vld [vmem:[%s808_s29 + $0x28] sm:$0xf]  ;;  %v266_v5 = vld [vmem:[%s787_s20 + $0x40] sm:$0xf] }
  0x2f   : > { %v596_v23 = vmax.bf16 %v528_v20, %v460_v49  ;;  %v379_v10 = vrot.slane %v377_v6, 5  ;;  %v532_v24 = vrot.slane %v530_v11, 4  ;;  %v535_v25 = vrot.slane %v533_v16, 5  ;;  %v292_v49 = vld [vmem:[%s787_s20 + $0x3c] sm:$0x1] }
  0x30   : > { %620 = vst.msk [vmem:[%s881_s7 + $0x8] sm:$0xf] %vm617_vm3, %v611_v13  ;;  %v375_v27 = vrot.slane %v374_v21, 4  ;;  %v461_v28 = vmax.bf16 %v453_v15, %v445_v60  ;;  %v382_v30 = vshrl.u32 %v914_v18, 16  ;;  %v385_v31 = vshll.u32 %v914_v18, 16 }
  0x31   : > { %v436_v32 = vmax.bf16 %v366_v19, %v280_v12  ;;  %v604_v33 = vmax.bf16 %v596_v23, %v435_v3  ;;  %v536_v34 = vor.u32 %v535_v25, %v532_v24  ;;  %v541_v35 = vrot.slane %v539_v17, 5  ;;  %v293_v11 = vld [vmem:[%s787_s20 + $0x44] sm:$0x1]  ;;  %v274_v15 = vld [vmem:[%s792_s23 + $0x38] sm:$0xf] }
  0x32   : > { %v384_v37 = vrot.slane %v382_v30, 4  ;;  %v387_v38 = vrot.slane %v385_v31, 5  ;;  %v391_v39 = vshll.u32 %v291_v22, 16  ;;  %v544_v40 = vshrl.u32 %v922_v26, 16  ;;  %v455_v20 = vld [vmem:[%s808_s29 + $0x30] sm:$0xf] }
  0x33   : > { %v612_v42 = vmax.bf16 %v604_v33, %v436_v32  ;;  %v380_v43 = vsel %vm836_vm2, %v375_v27, %v379_v10  ;;  %v537_v44 = vrot.slane %v536_v34, 4  ;;  %v547_v47 = vshll.u32 %v922_v26, 16  ;;  %v448_v25 = vld [vmem:[%s797_s26 + $0x38] sm:$0xf]  ;;  %v472_v31 = vld [vmem:[%s797_s26 + $0x3c] sm:$0x1] }
  0x34   : > { %v388_v45 = vor.u32 %v387_v38, %v384_v37  ;;  %v546_v46 = vrot.slane %v544_v40, 4  ;;  %v553_v48 = vshll.u32 %v470_v36, 16  ;;  %v396_v51 = vshrl.u32 %v931_v41, 16 }
  0x35   : > { %621 = vst.msk [vmem:[%s881_s7 + $0xc] sm:$0xf] %vm617_vm3, %v612_v42  ;;  %v542_v50 = vsel %vm836_vm2, %v537_v44, %v541_v35  ;;  %v399_v52 = vshll.u32 %v931_v41, 16  ;;  %v437_v54 = vmax.bf16 %v380_v43, %v281_v14  ;;  %v393_v57 = vrot.slane %v391_v39, 5 }
  0x36   : > { %v597_v55 = vmax.bf16 %v542_v50, %v461_v28  ;;  %v549_v59 = vrot.slane %v547_v47, 5  ;;  %v389_v60 = vrot.slane %v388_v45, 4  ;;  %v398_v61 = vrot.slane %v396_v51, 4  ;;  %v275_v47 = vld [vmem:[%s792_s23 + $0x40] sm:$0xf] }
  0x37   : > { %v401_v62 = vrot.slane %v399_v52, 5  ;;  %v405_v63 = vshll.u32 %v292_v49, 16  ;;  %v555_v3 = vrot.slane %v553_v48, 5  ;;  %v558_v4 = vshrl.u32 %v447_v53, 16  ;;  %v456_v48 = vld [vmem:[%s808_s29 + $0x38] sm:$0xf] }
  0x38   : > { %v605_v1 = vmax.bf16 %v597_v55, %v436_v32  ;;  %v550_v2 = vor.u32 %v549_v59, %v546_v46  ;;  %v282_v6 = vmax.bf16 %v273_v56, %v914_v18  ;;  %v462_v7 = vmax.bf16 %v454_v58, %v922_v26 }
  0x39   : > { %v402_v8 = vor.u32 %v401_v62, %v398_v61  ;;  %v561_v9 = vshll.u32 %v447_v53, 16  ;;  %v560_v16 = vrot.slane %v558_v4, 4  ;;  %v567_v17 = vshll.u32 %v471_v0, 16 }
  0x3a   : > { %v613_v12 = vmax.bf16 %v605_v1, %v437_v54  ;;  %v551_v14 = vrot.slane %v550_v2, 4  ;;  %v394_v13 = vsel %vm836_vm2, %v389_v60, %v393_v57  ;;  %v407_v19 = vrot.slane %v405_v63, 5 }
  0x3b   : > { %v563_v21 = vrot.slane %v561_v9, 5  ;;  %v410_v22 = vshrl.u32 %v266_v5, 16  ;;  %v403_v23 = vrot.slane %v402_v8, 4  ;;  %v413_v10 = vshll.u32 %v266_v5, 16 }
  0x3c   : > { %622 = vst.msk [vmem:[%s881_s7 + $0x10] sm:$0xf] %vm617_vm3, %v613_v12  ;;  %v556_v18 = vsel %vm836_vm2, %v551_v14, %v555_v3  ;;  %v419_v24 = vshll.u32 %v293_v11, 16  ;;  %v569_v28 = vrot.slane %v567_v17, 5  ;;  %v438_v32 = vmax.bf16 %v394_v13, %v282_v6 }
  0x3d   : > { %v598_v26 = vmax.bf16 %v556_v18, %v462_v7  ;;  %v564_v27 = vor.u32 %v563_v21, %v560_v16  ;;  %v412_v30 = vrot.slane %v410_v22, 4  ;;  %v283_v33 = vmax.bf16 %v274_v15, %v931_v41 }
  0x3e   : > { %v463_v34 = vmax.bf16 %v455_v20, %v447_v53  ;;  %v415_v35 = vrot.slane %v413_v10, 5  ;;  %v572_v38 = vshrl.u32 %v448_v25, 16  ;;  %v575_v39 = vshll.u32 %v448_v25, 16 }
  0x3f   : > { %v606_v36 = vmax.bf16 %v598_v26, %v437_v54  ;;  %v565_v37 = vrot.slane %v564_v27, 4  ;;  %v408_v40 = vsel %vm836_vm2, %v403_v23, %v407_v19  ;;  %v421_v43 = vrot.slane %v419_v24, 5 }
  0x40   : > { %v416_v42 = vor.u32 %v415_v35, %v412_v30  ;;  %v581_v44 = vshll.u32 %v472_v31, 16  ;;  %v574_v41 = vrot.slane %v572_v38, 4  ;;  %v577_v49 = vrot.slane %v575_v39, 5 }
  0x41   : > { %v614_v45 = vmax.bf16 %v606_v36, %v438_v32  ;;  %v570_v46 = vsel %vm836_vm2, %v565_v37, %v569_v28  ;;  %v439_v54 = vmax.bf16 %v408_v40, %v283_v33  ;;  %v284_v56 = vmax.bf16 %v275_v47, %v266_v5 }
  0x42   : > { %v599_v50 = vmax.bf16 %v570_v46, %v463_v34  ;;  %v417_v51 = vrot.slane %v416_v42, 4  ;;  %v578_v52 = vor.u32 %v577_v49, %v574_v41  ;;  %v583_v53 = vrot.slane %v581_v44, 5 }
  0x43   : > { %623 = vst.msk [vmem:[%s881_s7 + $0x14] sm:$0xf] %vm617_vm3, %v614_v45  ;;  %v464_v57 = vmax.bf16 %v456_v48, %v448_v25 }
  0x44   : > { %v607_v55 = vmax.bf16 %v599_v50, %v438_v32  ;;  %v422_v58 = vsel %vm836_vm2, %v417_v51, %v421_v43  ;;  %v579_v59 = vrot.slane %v578_v52, 4 }
  0x45   : > { %v440_v62 = vmax.bf16 %v422_v58, %v284_v56 }
  0x46   : > { %v615_v60 = vmax.bf16 %v607_v55, %v439_v54  ;;  %v584_v61 = vsel %vm836_vm2, %v579_v59, %v583_v53 }
  0x47   : > { %v600_v63 = vmax.bf16 %v584_v61, %v464_v57 }
  0x48   : > { %624 = vst.msk [vmem:[%s881_s7 + $0x18] sm:$0xf] %vm617_vm3, %v615_v60 }
  0x49   : > { %v608_v0 = vmax.bf16 %v600_v63, %v439_v54 }
  0x4b   : > { %v616_v1 = vmax.bf16 %v608_v0, %v440_v62 }
  0x4d   : > { %625 = vst.msk [vmem:[%s881_s7 + $0x1c] sm:$0xf] %vm617_vm3, %v616_v1 }
  0x4e PF: > { %s14_s15 = sadd.s32 1, %s746_s15  }
  0x4f   : > { %p11_p4 = scmp.ge.s32.totalorder %s14_s15, 4  }
  0x51   :  { %13 = sbr.rel (!%p11_p4) target bundleno = 1 (0x1), region = 75 }

// kernel: resnet_forward.14
= control target key start
LH: loop header
LB: loop body
LE: loop exit
PB: predicated region body
PF: predicated region fallthrough
CT: control target
= control target key end

     0   :  { %9 = vsyncpa [#allocation4], 0  ;;  %s1639_s15 = smov 0   ;;  %s1641_s16 = smov 0   ;;  %s1831_s0 = inlined_call_operand.vmem [shape: bf16[512,128], index: 0, kind: input, shape index: {}]   ;;  %s1832_s1 = inlined_call_operand.hbm [shape: bf16[128,128], index: 1, kind: input, shape index: {}]   ;;  %s1833_s2 = inlined_call_operand.vmem [shape: f32[1,128], index: 2, kind: input, shape index: {}]   ;;  %s1834_s3 = inlined_call_operand.vmem [shape: f32[1,128], index: 3, kind: input, shape index: {}]   ;;  %s1835_s4 = inlined_call_operand.vmem [shape: bf16[512,128], index: 4, kind: output, shape index: {}]  }
   0x1   :  { %s1643_s17 = smov 0  }
   0x2 LB: > { %s1206_s18 = sadd.s32 4294967295, %s1609_s17   ;;  %s34_s19 = sadd.s32 1, %s1605_s16  ;;  %s1609_s17 = sphi %s1643_s17, %s15_s17   ;;  %s1605_s16 = sphi %s1641_s16, %s1845_s16   ;;  %s1601_s15 = sphi %s1639_s15, %s1844_s15  }
   0x3   : > { %p36_p0 = scmp.ge.s32.totalorder %s34_s19, 2  ;;  %p1208_p1 = scmp.ge.s32.totalorder %s1609_s17, 1 }
   0x4   : > { %p175_p2 = scmp.lt.s32.totalorder %s1609_s17, 3  ;;  %p1664_p4 = scmp.eq.s32.totalorder %s1206_s18, 0 }
   0x5   : > { %s1847_s19 = smov (%p36_p0, %s34_s19), 0  ;;  %s1611_s22 = smov [#allocation3]  }
   0x6   : > { %p1660_p3 = pnand %p1208_p1, %p175_p2  ;;  %s191_s23 = sshll.u32 %s1611_s22, 4  ;;  %s192_s23 = int_to_ptr.vmem [resolvable:$true] %s191_s23 }
   0x7   : > { %s1840_s21 = scalar_select %p1664_p4, 1, 0 }
   0x8   : > { %s1839_s20 = scalar_select %p1660_p3, 1, 0 }
   0x9   : > { %p1498_p5 = pneg %p1660_p3  ;;  %s1555_s27 = scalar_lea.hbm %s1832_s1, 1024 }
   0xa   : > { %p1556_p7 = scmp.ne.s32.totalorder %s1832_s1, %s1555_s27  ;;  %p1562_p11 = scmp.lt.u32.totalorder %s1555_s27, %s1832_s1 }
   0xb   : > { %p1672_p6 = pnand %p1664_p4, %p1498_p5 }
   0xd   : > { %p1557_p8 = pneg %p1672_p6 }
   0xf   : > { %p1558_p9 = pnand %p1557_p8, %p1556_p7 }
  0x11   : > { %p1559_p10 = pneg %p1558_p9 }
  0x13   : > { %p1564_p12 = pnand %p1562_p11, %p1559_p10 }
  0x15   : > { %1567 = shalt.err (!%p1564_p12)
}
  0x16   : > { %s1568_s6 = scalar_lea.vmem %s192_s23, 1024  ;;  %p1576_p2 = scmp.lt.s32.totalorder %s192_s23, %s192_s23 }
  0x17   : > { %p1569_p13 = scmp.ne.s32.totalorder %s192_s23, %s1568_s6  ;;  %p1577_p5 = scmp.lt.s32.totalorder %s1568_s6, %s1568_s6 }
  0x19   : > { %p1571_p0 = pnand %p1569_p13, %p1557_p8  ;;  %p1578_p4 = por %p1577_p5, %p1576_p2 }
  0x1b   : > { %p1572_p1 = pneg %p1571_p0 }
  0x1d   : > { %p1579_p3 = pnand %p1578_p4, %p1572_p1 }
  0x1f   : > { %1582 = shalt.err (!%p1579_p3)
}
  0x20   : > { %s1612_s7 = smov 64   ;;  %s1613_s8 = smov 4  }
  0x21   : > { %1501 = dma.hbm_to_vmem [thread:$0]  (!%p1672_p6), %s1832_s1, 1024, %s192_s23, [#allocation4], %s1612_s7, %s1612_s7, %s1613_s8  }
  0x22   : > { %p1842_p7 = scmp.ne.s32.totalorder %s1839_s20, 0 }
  0x23   : > { %p1843_p9 = scmp.ne.s32.totalorder (!%p1842_p7), %s1840_s21, 0 }
  0x24   : > { %231 = sbr.rel (%p1842_p7) target bundleno = 326 (0x146), region = 36 }
  0x2b   : > { %1596 = dma.done.wait (%p1843_p9), [#allocation4], 1024  }
  0x2c   : > { %1598 = vsyncadd (%p1843_p9), [#allocation4], 4294966272  ;;  %s1215_s11 = sshll.u32 %s1601_s15, 5  ;;  %v1531_v0 = vld [vmem:[#allocation3] sm:$0xff]   ;;  %v1532_v1 = vld [vmem:[#allocation3 + $0x8] sm:$0xff]  }
  0x2d   : > { %p270_p3 = scmp.lt.s32.totalorder %s1215_s11, 63  ;;  %1430 = vmatprep.subr.bf16.mxu0 %v1531_v0  ;;  %1478 = vmatprep.subr.bf16.mxu1 %v1531_v0  ;;  %v1533_v2 = vld [vmem:[#allocation3 + $0x10] sm:$0xff]   ;;  %v1534_v3 = vld [vmem:[#allocation3 + $0x18] sm:$0xff]   ;;  %v1535_v6 = vld [vmem:[#allocation3 + $0x20] sm:$0xff]  }
  0x2e   : > { %1431 = vmatpush3.bf16.msra.mxu0 %v1531_v0  ;;  %1486 = vmatpush3.bf16.msra.mxu1 %v1531_v0  ;;  %v1536_v7 = vld [vmem:[#allocation3 + $0x28] sm:$0xff]   ;;  %v1537_v8 = vld [vmem:[#allocation3 + $0x30] sm:$0xff]   ;;  %v1538_v9 = vld [vmem:[#allocation3 + $0x38] sm:$0xff]  }
  0x2f   : > { %s1849_s11 = smov (!%p270_p3, %s1215_s11), 63  ;;  %1432 = vmatprep.subr.bf16.mxu0 %v1532_v1  ;;  %1479 = vmatprep.subr.bf16.mxu1 %v1532_v1  ;;  %v1728_v24 = vld [vmem:[%s1833_s2] ss:$0 sm:$0xff] }
  0x30   : > { %s1216_s12 = sshll.u32 %s1849_s11, 2  ;;  %v1733_v26 = vld [vmem:[%s1834_s3] ss:$0 sm:$0xff] }
  0x31   : > { %s1707_s15 = scalar_lea.vmem %s1831_s0, %s1216_s12  ;;  %s1756_s25 = scalar_lea.vmem %s1835_s4, %s1216_s12 }
  0x32   : > { %1433 = vmatpush3.bf16.msra.mxu0 %v1532_v1  ;;  %1487 = vmatpush3.bf16.msra.mxu1 %v1532_v1  ;;  %v1539_v4 = vld [vmem:[%s1707_s15] sm:$0xff]   ;;  %v1541_v10 = vld [vmem:[%s1707_s15 + $0x8] sm:$0xff]   ;;  %v1543_v12 = vld [vmem:[%s1707_s15 + $0x10] sm:$0xff]  }
  0x33   : > { %1434 = vmatprep.subr.bf16.mxu0 %v1533_v2  ;;  %1480 = vmatprep.subr.bf16.mxu1 %v1533_v2  ;;  %v1540_v5 = vld [vmem:[%s1707_s15 + $0x40] sm:$0xff]   ;;  %v1542_v11 = vld [vmem:[%s1707_s15 + $0x48] sm:$0xff]   ;;  %v1544_v13 = vld [vmem:[%s1707_s15 + $0x50] sm:$0xff]  }
  0x34   : > { %1446 = vmatprep.mubr.bf16.mxu0 %v1539_v4  ;;  %1462 = vmatprep.mubr.bf16.mxu1 %v1540_v5  ;;  %v1545_v14 = vld [vmem:[%s1707_s15 + $0x18] sm:$0xff]   ;;  %v1547_v16 = vld [vmem:[%s1707_s15 + $0x20] sm:$0xff]   ;;  %v1549_v18 = vld [vmem:[%s1707_s15 + $0x28] sm:$0xff]  }
  0x35   : > { %v1546_v15 = vld [vmem:[%s1707_s15 + $0x58] sm:$0xff]   ;;  %v1548_v17 = vld [vmem:[%s1707_s15 + $0x60] sm:$0xff]   ;;  %v1550_v19 = vld [vmem:[%s1707_s15 + $0x68] sm:$0xff]  }
  0x36   : > { %1435 = vmatpush3.bf16.msra.mxu0 %v1533_v2  ;;  %1488 = vmatpush3.bf16.msra.mxu1 %v1533_v2  ;;  %v1551_v20 = vld [vmem:[%s1707_s15 + $0x30] sm:$0xff]   ;;  %v1553_v22 = vld [vmem:[%s1707_s15 + $0x38] sm:$0xff]  }
  0x37   : > { %1436 = vmatprep.subr.bf16.mxu0 %v1534_v3  ;;  %1481 = vmatprep.subr.bf16.mxu1 %v1534_v3  ;;  %v1552_v21 = vld [vmem:[%s1707_s15 + $0x70] sm:$0xff]   ;;  %v1554_v23 = vld [vmem:[%s1707_s15 + $0x78] sm:$0xff]  }
  0x3a   : > { %1437 = vmatpush3.bf16.msra.mxu0 %v1534_v3  ;;  %1489 = vmatpush3.bf16.msra.mxu1 %v1534_v3 }
  0x3b   : > { %1438 = vmatprep.subr.bf16.mxu0 %v1535_v6  ;;  %1482 = vmatprep.subr.bf16.mxu1 %v1535_v6 }
  0x3e   : > { %1439 = vmatpush3.bf16.msra.mxu0 %v1535_v6  ;;  %1490 = vmatpush3.bf16.msra.mxu1 %v1535_v6 }
  0x3f   : > { %1440 = vmatprep.subr.bf16.mxu0 %v1536_v7  ;;  %1483 = vmatprep.subr.bf16.mxu1 %v1536_v7 }
  0x42   : > { %1441 = vmatpush3.bf16.msra.mxu0 %v1536_v7  ;;  %1491 = vmatpush3.bf16.msra.mxu1 %v1536_v7 }
  0x43   : > { %1442 = vmatprep.subr.bf16.mxu0 %v1537_v8  ;;  %1484 = vmatprep.subr.bf16.mxu1 %v1537_v8 }
  0x46   : > { %1443 = vmatpush3.bf16.msra.mxu0 %v1537_v8  ;;  %1492 = vmatpush3.bf16.msra.mxu1 %v1537_v8 }
  0x47   : > { %1444 = vmatprep.subr.bf16.mxu0 %v1538_v9  ;;  %1485 = vmatprep.subr.bf16.mxu1 %v1538_v9 }
  0x4a   : > { %1445 = vmatpush3.bf16.msra.mxu0 %v1538_v9  ;;  %1493 = vmatpush3.bf16.msra.mxu1 %v1538_v9 }
  0x4d   : > { %1447 = vmatmul.mubr.bf16.vlgmr.msra.gmra.mrb[0].mxu0 %v1541_v10  ;;  %1463 = vmatmul.mubr.bf16.vlgmr.msra.gmra.mrb[0].mxu1 %v1542_v11 }
  0x4e   : > { %1450 = vmatprep.mubr.bf16.mxu0 %v1543_v12  ;;  %1466 = vmatprep.mubr.bf16.mxu1 %v1544_v13 }
  0x55   : > { %1451 = vmatmul.mubr.bf16.gmra.mrb[4].mxu0 %v1545_v14  ;;  %1467 = vmatmul.mubr.bf16.gmra.mrb[4].mxu1 %v1546_v15 }
  0x56   : > { %1454 = vmatprep.mubr.bf16.mxu0 %v1547_v16  ;;  %1470 = vmatprep.mubr.bf16.mxu1 %v1548_v17 }
  0x5d   : > { %1455 = vmatmul.mubr.bf16.gmra.mrb[8].mxu0 %v1549_v18  ;;  %1471 = vmatmul.mubr.bf16.gmra.mrb[8].mxu1 %v1550_v19 }
  0x5e   : > { %1458 = vmatprep.mubr.bf16.mxu0 %v1551_v20  ;;  %1474 = vmatprep.mubr.bf16.mxu1 %v1552_v21 }
  0x65   : > { %1459 = vmatmul.mubr.bf16.gmra.mrb[12].mxu0 %v1553_v22  ;;  %1475 = vmatmul.mubr.bf16.gmra.mrb[12].mxu1 %v1554_v23 }
 0x120   : > { %v1448_v25 = vpop.f32.mrb[0].mxu0  ;;  %v1464_v27 = vpop.f32.mrb[0].mxu1 }
 0x121   : > { %v824_v28 = vmul.f32 %v1448_v25, %v1728_v24  ;;  %v840_v29 = vmul.f32 %v1464_v27, %v1728_v24  ;;  %v589_v30 = vpop.f32.mrb[1].mxu0  ;;  %v653_v31 = vpop.f32.mrb[1].mxu1 }
 0x122   : > { %v822_v32 = vmul.f32 %v1728_v24, %v589_v30  ;;  %v838_v33 = vmul.f32 %v1728_v24, %v653_v31  ;;  %v1449_v34 = vpop.f32.mrb[2].mxu0  ;;  %v1465_v35 = vpop.f32.mrb[2].mxu1 }
 0x123   : > { %v863_v36 = vadd.f32 %v1733_v26, %v824_v28  ;;  %v879_v37 = vadd.f32 %v1733_v26, %v840_v29  ;;  %v825_v38 = vmul.f32 %v1449_v34, %v1728_v24  ;;  %v841_v39 = vmul.f32 %v1465_v35, %v1728_v24  ;;  %v592_v40 = vpop.f32.mrb[3].mxu0  ;;  %v656_v41 = vpop.f32.mrb[3].mxu1 }
 0x124   : > { %v861_v42 = vadd.f32 %v1733_v26, %v822_v32  ;;  %v877_v43 = vadd.f32 %v1733_v26, %v838_v33  ;;  %v823_v44 = vmul.f32 %v1728_v24, %v592_v40  ;;  %v839_v45 = vmul.f32 %v1728_v24, %v656_v41 }
 0x125   : > { %v864_v46 = vadd.f32 %v1733_v26, %v825_v38  ;;  %v880_v47 = vadd.f32 %v1733_v26, %v841_v39  ;;  %v895_v50 = vmax.f32 %v863_v36, 0.0  ;;  %v911_v51 = vmax.f32 %v879_v37, 0.0 }
 0x126   : > { %v862_v48 = vadd.f32 %v1733_v26, %v823_v44  ;;  %v878_v49 = vadd.f32 %v1733_v26, %v839_v45  ;;  %v893_v54 = vmax.f32 %v861_v42, 0.0  ;;  %v909_v55 = vmax.f32 %v877_v43, 0.0 }
 0x127   : > { %v896_v52 = vmax.f32 %v864_v46, 0.0  ;;  %v912_v53 = vmax.f32 %v880_v47, 0.0 }
 0x128   : > { %v894_v56 = vmax.f32 %v862_v48, 0.0  ;;  %v910_v57 = vmax.f32 %v878_v49, 0.0  ;;  %v1452_v58 = vpop.f32.mrb[4].mxu0  ;;  %v1468_v59 = vpop.f32.mrb[4].mxu1 }
 0x129   : > { %v1319_v60 = vpack.c.bf16 %v896_v52, %v895_v50  ;;  %v1359_v61 = vpack.c.bf16 %v912_v53, %v911_v51  ;;  %v828_v62 = vmul.f32 %v1452_v58, %v1728_v24  ;;  %v844_v63 = vmul.f32 %v1468_v59, %v1728_v24  ;;  %v605_v0 = vpop.f32.mrb[5].mxu0  ;;  %v669_v1 = vpop.f32.mrb[5].mxu1 }
 0x12a   : > { %v1314_v2 = vpack.c.bf16 %v894_v56, %v893_v54  ;;  %v1354_v3 = vpack.c.bf16 %v910_v57, %v909_v55  ;;  %v826_v4 = vmul.f32 %v1728_v24, %v605_v0  ;;  %v842_v5 = vmul.f32 %v1728_v24, %v669_v1  ;;  %v1453_v6 = vpop.f32.mrb[6].mxu0  ;;  %v1469_v7 = vpop.f32.mrb[6].mxu1 }
 0x12b   : > { %1391 = vst [vmem:[%s1756_s25 + $0x8] sm:$0xff] %v1319_v60   ;;  %1399 = vst [vmem:[%s1756_s25 + $0x48] sm:$0xff] %v1359_v61   ;;  %v867_v8 = vadd.f32 %v1733_v26, %v828_v62  ;;  %v883_v9 = vadd.f32 %v1733_v26, %v844_v63  ;;  %v829_v10 = vmul.f32 %v1453_v6, %v1728_v24  ;;  %v608_v12 = vpop.f32.mrb[7].mxu0  ;;  %v672_v13 = vpop.f32.mrb[7].mxu1 }
 0x12c   : > { %v845_v11 = vmul.f32 %v1469_v7, %v1728_v24  ;;  %1315 = vst [vmem:[%s1756_s25] sm:$0xff] %v1314_v2   ;;  %1398 = vst [vmem:[%s1756_s25 + $0x40] sm:$0xff] %v1354_v3   ;;  %v865_v14 = vadd.f32 %v1733_v26, %v826_v4  ;;  %v881_v15 = vadd.f32 %v1733_v26, %v842_v5 }
 0x12d   : > { %v827_v16 = vmul.f32 %v1728_v24, %v608_v12  ;;  %v843_v17 = vmul.f32 %v1728_v24, %v672_v13  ;;  %v868_v18 = vadd.f32 %v1733_v26, %v829_v10  ;;  %v899_v22 = vmax.f32 %v867_v8, 0.0 }
 0x12e   : > { %v884_v19 = vadd.f32 %v1733_v26, %v845_v11  ;;  %v915_v23 = vmax.f32 %v883_v9, 0.0  ;;  %v897_v28 = vmax.f32 %v865_v14, 0.0  ;;  %v913_v29 = vmax.f32 %v881_v15, 0.0 }
 0x12f   : > { %v866_v20 = vadd.f32 %v1733_v26, %v827_v16  ;;  %v882_v21 = vadd.f32 %v1733_v26, %v843_v17  ;;  %v900_v25 = vmax.f32 %v868_v18, 0.0 }
 0x130   : > { %v916_v27 = vmax.f32 %v884_v19, 0.0  ;;  %v1456_v32 = vpop.f32.mrb[8].mxu0  ;;  %v1472_v33 = vpop.f32.mrb[8].mxu1 }
 0x131   : > { %v898_v30 = vmax.f32 %v866_v20, 0.0  ;;  %v914_v31 = vmax.f32 %v882_v21, 0.0  ;;  %v1329_v34 = vpack.c.bf16 %v900_v25, %v899_v22  ;;  %v832_v36 = vmul.f32 %v1456_v32, %v1728_v24  ;;  %v621_v38 = vpop.f32.mrb[9].mxu0  ;;  %v685_v39 = vpop.f32.mrb[9].mxu1 }
 0x132   : > { %v1369_v35 = vpack.c.bf16 %v916_v27, %v915_v23  ;;  %v848_v37 = vmul.f32 %v1472_v33, %v1728_v24  ;;  %v830_v42 = vmul.f32 %v1728_v24, %v621_v38  ;;  %v846_v43 = vmul.f32 %v1728_v24, %v685_v39  ;;  %v1457_v44 = vpop.f32.mrb[10].mxu0  ;;  %v1473_v45 = vpop.f32.mrb[10].mxu1 }
 0x133   : > { %v1324_v40 = vpack.c.bf16 %v898_v30, %v897_v28  ;;  %v1364_v41 = vpack.c.bf16 %v914_v31, %v913_v29  ;;  %1393 = vst [vmem:[%s1756_s25 + $0x18] sm:$0xff] %v1329_v34   ;;  %v871_v46 = vadd.f32 %v1733_v26, %v832_v36  ;;  %v833_v48 = vmul.f32 %v1457_v44, %v1728_v24  ;;  %v624_v50 = vpop.f32.mrb[11].mxu0  ;;  %v688_v51 = vpop.f32.mrb[11].mxu1 }
 0x134   : > { %1401 = vst [vmem:[%s1756_s25 + $0x58] sm:$0xff] %v1369_v35   ;;  %v887_v47 = vadd.f32 %v1733_v26, %v848_v37  ;;  %v849_v49 = vmul.f32 %v1473_v45, %v1728_v24  ;;  %v869_v52 = vadd.f32 %v1733_v26, %v830_v42  ;;  %v885_v53 = vadd.f32 %v1733_v26, %v846_v43 }
 0x135   : > { %1392 = vst [vmem:[%s1756_s25 + $0x10] sm:$0xff] %v1324_v40   ;;  %1400 = vst [vmem:[%s1756_s25 + $0x50] sm:$0xff] %v1364_v41   ;;  %v831_v54 = vmul.f32 %v1728_v24, %v624_v50  ;;  %v847_v55 = vmul.f32 %v1728_v24, %v688_v51  ;;  %v872_v56 = vadd.f32 %v1733_v26, %v833_v48  ;;  %v903_v60 = vmax.f32 %v871_v46, 0.0 }
 0x136   : > { %v888_v57 = vadd.f32 %v1733_v26, %v849_v49  ;;  %v919_v61 = vmax.f32 %v887_v47, 0.0  ;;  %v901_v0 = vmax.f32 %v869_v52, 0.0  ;;  %v917_v1 = vmax.f32 %v885_v53, 0.0 }
 0x137   : > { %v870_v58 = vadd.f32 %v1733_v26, %v831_v54  ;;  %v886_v59 = vadd.f32 %v1733_v26, %v847_v55  ;;  %v904_v62 = vmax.f32 %v872_v56, 0.0 }
 0x138   : > { %v920_v63 = vmax.f32 %v888_v57, 0.0  ;;  %v1460_v4 = vpop.f32.mrb[12].mxu0  ;;  %v1476_v5 = vpop.f32.mrb[12].mxu1 }
 0x139   : > { %v902_v2 = vmax.f32 %v870_v58, 0.0  ;;  %v918_v3 = vmax.f32 %v886_v59, 0.0  ;;  %v1339_v6 = vpack.c.bf16 %v904_v62, %v903_v60  ;;  %v836_v8 = vmul.f32 %v1460_v4, %v1728_v24  ;;  %v637_v10 = vpop.f32.mrb[13].mxu0  ;;  %v701_v11 = vpop.f32.mrb[13].mxu1 }
 0x13a   : > { %v1379_v7 = vpack.c.bf16 %v920_v63, %v919_v61  ;;  %v852_v9 = vmul.f32 %v1476_v5, %v1728_v24  ;;  %v834_v14 = vmul.f32 %v1728_v24, %v637_v10  ;;  %v850_v15 = vmul.f32 %v1728_v24, %v701_v11  ;;  %v1461_v16 = vpop.f32.mrb[14].mxu0  ;;  %v1477_v17 = vpop.f32.mrb[14].mxu1 }
 0x13b   : > { %v1334_v12 = vpack.c.bf16 %v902_v2, %v901_v0  ;;  %v1374_v13 = vpack.c.bf16 %v918_v3, %v917_v1  ;;  %1395 = vst [vmem:[%s1756_s25 + $0x28] sm:$0xff] %v1339_v6   ;;  %v875_v18 = vadd.f32 %v1733_v26, %v836_v8  ;;  %v837_v20 = vmul.f32 %v1461_v16, %v1728_v24  ;;  %v640_v22 = vpop.f32.mrb[15].mxu0  ;;  %v704_v23 = vpop.f32.mrb[15].mxu1 }
 0x13c   : > { %1403 = vst [vmem:[%s1756_s25 + $0x68] sm:$0xff] %v1379_v7   ;;  %v891_v19 = vadd.f32 %v1733_v26, %v852_v9  ;;  %v853_v21 = vmul.f32 %v1477_v17, %v1728_v24  ;;  %v873_v25 = vadd.f32 %v1733_v26, %v834_v14  ;;  %v889_v27 = vadd.f32 %v1733_v26, %v850_v15 }
 0x13d   : > { %1394 = vst [vmem:[%s1756_s25 + $0x20] sm:$0xff] %v1334_v12   ;;  %1402 = vst [vmem:[%s1756_s25 + $0x60] sm:$0xff] %v1374_v13   ;;  %v835_v28 = vmul.f32 %v1728_v24, %v640_v22  ;;  %v851_v29 = vmul.f32 %v1728_v24, %v704_v23  ;;  %v876_v30 = vadd.f32 %v1733_v26, %v837_v20  ;;  %v907_v34 = vmax.f32 %v875_v18, 0.0 }
 0x13e   : > { %v892_v31 = vadd.f32 %v1733_v26, %v853_v21  ;;  %v923_v35 = vmax.f32 %v891_v19, 0.0  ;;  %v905_v38 = vmax.f32 %v873_v25, 0.0  ;;  %v921_v39 = vmax.f32 %v889_v27, 0.0 }
 0x13f   : > { %v874_v32 = vadd.f32 %v1733_v26, %v835_v28  ;;  %v890_v33 = vadd.f32 %v1733_v26, %v851_v29  ;;  %v908_v36 = vmax.f32 %v876_v30, 0.0 }
 0x140   : > { %v924_v37 = vmax.f32 %v892_v31, 0.0 }
 0x141   : > { %v906_v40 = vmax.f32 %v874_v32, 0.0  ;;  %v922_v24 = vmax.f32 %v890_v33, 0.0  ;;  %v1349_v41 = vpack.c.bf16 %v908_v36, %v907_v34 }
 0x142   : > { %v1389_v42 = vpack.c.bf16 %v924_v37, %v923_v35 }
 0x143   : > { %v1344_v43 = vpack.c.bf16 %v906_v40, %v905_v38  ;;  %v1384_v44 = vpack.c.bf16 %v922_v24, %v921_v39  ;;  %1397 = vst [vmem:[%s1756_s25 + $0x38] sm:$0xff] %v1349_v41  }
 0x144   : > { %1405 = vst [vmem:[%s1756_s25 + $0x78] sm:$0xff] %v1389_v42  }
 0x145   : > { %1396 = vst [vmem:[%s1756_s25 + $0x30] sm:$0xff] %v1344_v43   ;;  %1404 = vst [vmem:[%s1756_s25 + $0x70] sm:$0xff] %v1384_v44  }
 0x146 PF: > { %s15_s17 = sadd.s32 1, %s1609_s17   ;;  %s1844_s15 = smov %s1605_s16 }
 0x147   : > { %p12_p4 = scmp.ge.s32.totalorder %s15_s17, 4   ;;  %s1845_s16 = smov %s1847_s19 }
 0x149   :  { %14 = sbr.rel (!%p12_p4) target bundleno = 2 (0x2), region = 86 }
 0x150   :  { %1113 = vsyncpa [#allocation4], 1 }
 0x151   :  { %1115 = vsyncpa [#allocation4 + $0x1], 1 }

// kernel: resnet_forward.16
= control target key start
LH: loop header
LB: loop body
LE: loop exit
PB: predicated region body
PF: predicated region fallthrough
CT: control target
= control target key end

     0   :  { %s1934_s1 = inlined_call_operand.vmem [shape: bf16[640,128], index: 1, kind: input, shape index: {}]   ;;  %s1935_s0 = inlined_call_operand.vmem [shape: bf16[128,640], index: 0, kind: input, shape index: {}]   ;;  %s1936_s2 = inlined_call_operand.vmem [shape: f32[1,128], index: 2, kind: input, shape index: {}]   ;;  %s1937_s3 = inlined_call_operand.vmem [shape: f32[1,128], index: 3, kind: input, shape index: {}]   ;;  %s1938_s4 = inlined_call_operand.vmem [shape: bf16[128,128], index: 4, kind: output, shape index: {}]  }
   0x1   :  { %v1471_v0 = vld [vmem:[%s1934_s1 + $0x40] sm:$0xff]   ;;  %v1475_v4 = vld [vmem:[%s1934_s1 + $0x48] sm:$0xff]   ;;  %v1479_v8 = vld [vmem:[%s1934_s1 + $0x50] sm:$0xff]  }
   0x2   :  { %v1472_v1 = vld [vmem:[%s1934_s1 + $0xc0] sm:$0xff]   ;;  %1279 = vmatprep.subr.bf16.mxu0 %v1471_v0  ;;  %v1476_v5 = vld [vmem:[%s1934_s1 + $0xc8] sm:$0xff]   ;;  %v1480_v9 = vld [vmem:[%s1934_s1 + $0xd0] sm:$0xff]  }
   0x3   :  { %v1473_v2 = vld [vmem:[%s1934_s1] sm:$0xff]   ;;  %1343 = vmatprep.subr.bf16.mxu1 %v1472_v1  ;;  %v1477_v6 = vld [vmem:[%s1934_s1 + $0x8] sm:$0xff]   ;;  %v1481_v10 = vld [vmem:[%s1934_s1 + $0x10] sm:$0xff]  }
   0x4   :  { %v1474_v3 = vld [vmem:[%s1934_s1 + $0x80] sm:$0xff]   ;;  %1280 = vmatpush3.bf16.msra.mxu0 %v1473_v2  ;;  %v1478_v7 = vld [vmem:[%s1934_s1 + $0x88] sm:$0xff]   ;;  %v1482_v11 = vld [vmem:[%s1934_s1 + $0x90] sm:$0xff]  }
   0x5   :  { %1344 = vmatpush3.bf16.msra.mxu1 %v1474_v3  ;;  %1281 = vmatprep.subr.bf16.mxu0 %v1475_v4  ;;  %v1483_v12 = vld [vmem:[%s1934_s1 + $0x58] sm:$0xff]   ;;  %v1487_v16 = vld [vmem:[%s1934_s1 + $0x60] sm:$0xff]   ;;  %v1491_v20 = vld [vmem:[%s1934_s1 + $0x68] sm:$0xff]  }
   0x6   :  { %1345 = vmatprep.subr.bf16.mxu1 %v1476_v5  ;;  %v1484_v13 = vld [vmem:[%s1934_s1 + $0xd8] sm:$0xff]   ;;  %v1488_v17 = vld [vmem:[%s1934_s1 + $0xe0] sm:$0xff]   ;;  %v1492_v21 = vld [vmem:[%s1934_s1 + $0xe8] sm:$0xff]  }
   0x7   :  { %v1485_v14 = vld [vmem:[%s1934_s1 + $0x18] sm:$0xff]   ;;  %v1489_v18 = vld [vmem:[%s1934_s1 + $0x20] sm:$0xff]   ;;  %v1493_v22 = vld [vmem:[%s1934_s1 + $0x28] sm:$0xff]  }
   0x8   :  { %1282 = vmatpush3.bf16.msra.mxu0 %v1477_v6  ;;  %v1486_v15 = vld [vmem:[%s1934_s1 + $0x98] sm:$0xff]   ;;  %v1490_v19 = vld [vmem:[%s1934_s1 + $0xa0] sm:$0xff]   ;;  %v1494_v23 = vld [vmem:[%s1934_s1 + $0xa8] sm:$0xff]  }
   0x9   :  { %1346 = vmatpush3.bf16.msra.mxu1 %v1478_v7  ;;  %1283 = vmatprep.subr.bf16.mxu0 %v1479_v8  ;;  %v1495_v24 = vld [vmem:[%s1934_s1 + $0x70] sm:$0xff]   ;;  %v1499_v28 = vld [vmem:[%s1934_s1 + $0x78] sm:$0xff]   ;;  %v1508_v35 = vld [vmem:[%s1935_s0 + $0xc] ss:$20 sps:$4 sm:$0xff]  }
   0xa   :  { %1347 = vmatprep.subr.bf16.mxu1 %v1480_v9  ;;  %v1496_v25 = vld [vmem:[%s1934_s1 + $0xf0] sm:$0xff]   ;;  %v1500_v29 = vld [vmem:[%s1934_s1 + $0xf8] sm:$0xff]   ;;  %v1509_v36 = vld [vmem:[%s1934_s1 + $0x100] sm:$0xff]   ;;  %759 = vmatprep.mubr.bf16.mxu1 %v1508_v35 }
   0xb   :  { %v1497_v26 = vld [vmem:[%s1934_s1 + $0x30] sm:$0xff]   ;;  %v1501_v30 = vld [vmem:[%s1934_s1 + $0x38] sm:$0xff]   ;;  %v1510_v37 = vld [vmem:[%s1935_s0 + $0x2c] ss:$20 sps:$4 sm:$0xff]  }
   0xc   :  { %1284 = vmatpush3.bf16.msra.mxu0 %v1481_v10  ;;  %v1498_v27 = vld [vmem:[%s1934_s1 + $0xb0] sm:$0xff]   ;;  %v1502_v31 = vld [vmem:[%s1934_s1 + $0xb8] sm:$0xff]   ;;  %v1516_v39 = vld [vmem:[%s1934_s1 + $0x108] sm:$0xff]  }
   0xd   :  { %1348 = vmatpush3.bf16.msra.mxu1 %v1482_v11  ;;  %1285 = vmatprep.subr.bf16.mxu0 %v1483_v12  ;;  %v1503_v32 = vld [vmem:[%s1935_s0] ss:$20 sps:$4 sm:$0xff]   ;;  %v1505_v33 = vld [vmem:[%s1935_s0 + $0x4] ss:$20 sps:$4 sm:$0xff]   ;;  %v1506_v34 = vld [vmem:[%s1935_s0 + $0x8] ss:$20 sps:$4 sm:$0xff]  }
   0xe   :  { %1349 = vmatprep.subr.bf16.mxu1 %v1484_v13  ;;  %662 = vmatprep.mubr.bf16.mxu0 %v1505_v33  ;;  %v1512_v38 = vld [vmem:[%s1935_s0 + $0x34] ss:$20 sps:$4 sm:$0xff]   ;;  %v1515_v41 = vld [vmem:[%s1935_s0 + $0x30] ss:$20 sps:$4 sm:$0xff]   ;;  %v1530_v45 = vld [vmem:[%s1934_s1 + $0x118] sm:$0xff]  }
   0xf   :  { %v1514_v40 = vld [vmem:[%s1935_s0 + $0x28] ss:$20 sps:$4 sm:$0xff]   ;;  %v1523_v44 = vld [vmem:[%s1934_s1 + $0x110] sm:$0xff]   ;;  %v1522_v47 = vld [vmem:[%s1935_s0 + $0x58] ss:$20 sps:$4 sm:$0xff]  }
  0x10   :  { %1286 = vmatpush3.bf16.msra.mxu0 %v1485_v14  ;;  %v1517_v42 = vld [vmem:[%s1935_s0 + $0x54] ss:$20 sps:$4 sm:$0xff]   ;;  %v1519_v43 = vld [vmem:[%s1935_s0 + $0x5c] ss:$20 sps:$4 sm:$0xff]   ;;  %v1526_v49 = vld [vmem:[%s1935_s0 + $0x84] ss:$20 sps:$4 sm:$0xff]  }
  0x11   :  { %1350 = vmatpush3.bf16.msra.mxu1 %v1486_v15  ;;  %1287 = vmatprep.subr.bf16.mxu0 %v1487_v16  ;;  %v1521_v46 = vld [vmem:[%s1935_s0 + $0x50] ss:$20 sps:$4 sm:$0xff]   ;;  %v1544_v51 = vld [vmem:[%s1934_s1 + $0x128] sm:$0xff]   ;;  %v1529_v53 = vld [vmem:[%s1935_s0 + $0x80] ss:$20 sps:$4 sm:$0xff]  }
  0x12   :  { %1351 = vmatprep.subr.bf16.mxu1 %v1488_v17  ;;  %v1524_v48 = vld [vmem:[%s1935_s0 + $0x7c] ss:$20 sps:$4 sm:$0xff]   ;;  %v1537_v50 = vld [vmem:[%s1934_s1 + $0x120] sm:$0xff]   ;;  %v1528_v52 = vld [vmem:[%s1935_s0 + $0x78] ss:$20 sps:$4 sm:$0xff]  }
  0x13   :  { %v1531_v54 = vld [vmem:[%s1935_s0 + $0xa4] ss:$20 sps:$4 sm:$0xff]   ;;  %v1551_v55 = vld [vmem:[%s1934_s1 + $0x130] sm:$0xff]   ;;  %v1533_v56 = vld [vmem:[%s1935_s0 + $0xac] ss:$20 sps:$4 sm:$0xff]  }
  0x14   :  { %1288 = vmatpush3.bf16.msra.mxu0 %v1489_v18  ;;  %v1558_v57 = vld [vmem:[%s1934_s1 + $0x138] sm:$0xff]   ;;  %v1535_v58 = vld [vmem:[%s1935_s0 + $0xa0] ss:$20 sps:$4 sm:$0xff]   ;;  %v1543_v63 = vld [vmem:[%s1935_s0 + $0xd0] ss:$20 sps:$4 sm:$0xff]  }
  0x15   :  { %1352 = vmatpush3.bf16.msra.mxu1 %v1490_v19  ;;  %1289 = vmatprep.subr.bf16.mxu0 %v1491_v20  ;;  %v1536_v59 = vld [vmem:[%s1935_s0 + $0xa8] ss:$20 sps:$4 sm:$0xff]   ;;  %v1538_v60 = vld [vmem:[%s1935_s0 + $0xcc] ss:$20 sps:$4 sm:$0xff]   ;;  %v1549_v2 = vld [vmem:[%s1935_s0 + $0xf0] ss:$20 sps:$4 sm:$0xff]  }
  0x16   :  { %1353 = vmatprep.subr.bf16.mxu1 %v1492_v21  ;;  %v1540_v61 = vld [vmem:[%s1935_s0 + $0xd4] ss:$20 sps:$4 sm:$0xff]   ;;  %v1547_v1 = vld [vmem:[%s1935_s0 + $0xfc] ss:$20 sps:$4 sm:$0xff]   ;;  %v1550_v3 = vld [vmem:[%s1935_s0 + $0xf8] ss:$20 sps:$4 sm:$0xff]  }
  0x17   :  { %v1542_v62 = vld [vmem:[%s1935_s0 + $0xc8] ss:$20 sps:$4 sm:$0xff]   ;;  %v1554_v5 = vld [vmem:[%s1935_s0 + $0x124] ss:$20 sps:$4 sm:$0xff]   ;;  %v1557_v7 = vld [vmem:[%s1935_s0 + $0x120] ss:$20 sps:$4 sm:$0xff]  }
  0x18   :  { %1290 = vmatpush3.bf16.msra.mxu0 %v1493_v22  ;;  %v1545_v0 = vld [vmem:[%s1935_s0 + $0xf4] ss:$20 sps:$4 sm:$0xff]   ;;  %v1552_v4 = vld [vmem:[%s1935_s0 + $0x11c] ss:$20 sps:$4 sm:$0xff]   ;;  %v1556_v6 = vld [vmem:[%s1935_s0 + $0x118] ss:$20 sps:$4 sm:$0xff]  }
  0x19   :  { %1354 = vmatpush3.bf16.msra.mxu1 %v1494_v23  ;;  %1291 = vmatprep.subr.bf16.mxu0 %v1495_v24  ;;  %v1559_v8 = vld [vmem:[%s1935_s0 + $0x10] ss:$20 sps:$4 sm:$0xff]   ;;  %v1561_v10 = vld [vmem:[%s1935_s0 + $0x38] ss:$20 sps:$4 sm:$0xff]   ;;  %v1563_v12 = vld [vmem:[%s1935_s0 + $0x60] ss:$20 sps:$4 sm:$0xff]  }
  0x1a   :  { %1355 = vmatprep.subr.bf16.mxu1 %v1496_v25  ;;  %v1560_v9 = vld [vmem:[%s1935_s0 + $0xb0] ss:$20 sps:$4 sm:$0xff]   ;;  %v1562_v11 = vld [vmem:[%s1935_s0 + $0xd8] ss:$20 sps:$4 sm:$0xff]   ;;  %v1564_v13 = vld [vmem:[%s1935_s0 + $0x100] ss:$20 sps:$4 sm:$0xff]  }
  0x1b   :  { %v1565_v14 = vld [vmem:[%s1935_s0 + $0x88] ss:$20 sps:$4 sm:$0xff]  }
  0x1c   :  { %1292 = vmatpush3.bf16.msra.mxu0 %v1497_v26  ;;  %v1566_v15 = vld [vmem:[%s1935_s0 + $0x128] ss:$20 sps:$4 sm:$0xff]  }
  0x1d   :  { %1356 = vmatpush3.bf16.msra.mxu1 %v1498_v27  ;;  %1293 = vmatprep.subr.bf16.mxu0 %v1499_v28 }
  0x1e   :  { %1357 = vmatprep.subr.bf16.mxu1 %v1500_v29 }
  0x20   :  { %1294 = vmatpush3.bf16.msra.mxu0 %v1501_v30 }
  0x21   :  { %1358 = vmatpush3.bf16.msra.mxu1 %v1502_v31  ;;  %1423 = vmatprep.subr.bf16.mxu0 %v1509_v36 }
  0x22   :  { %1455 = vmatprep.subr.bf16.mxu1 %v1509_v36 }
  0x23   :  { %663 = vmatmul.mubr.bf16.vlgmr.msra.gmra.mrb[0].mxu0 %v1503_v32 }
  0x24   :  { %760 = vmatmul.mubr.bf16.vlgmr.msra.gmra.mrb[0].mxu1 %v1506_v34  ;;  %1424 = vmatpush3.bf16.msra.mxu0 %v1509_v36 }
  0x25   :  { %1463 = vmatpush3.bf16.msra.mxu1 %v1509_v36  ;;  %670 = vmatprep.mubr.bf16.mxu0 %v1510_v37 }
  0x26   :  { %767 = vmatprep.mubr.bf16.mxu1 %v1512_v38  ;;  %1425 = vmatprep.subr.bf16.mxu0 %v1516_v39 }
  0x27   :  { %1456 = vmatprep.subr.bf16.mxu1 %v1516_v39 }
  0x28   :  { %1426 = vmatpush3.bf16.msra.mxu0 %v1516_v39 }
  0x29   :  { %1464 = vmatpush3.bf16.msra.mxu1 %v1516_v39  ;;  %1427 = vmatprep.subr.bf16.mxu0 %v1523_v44 }
  0x2a   :  { %1457 = vmatprep.subr.bf16.mxu1 %v1523_v44 }
  0x2b   :  { %671 = vmatmul.mubr.bf16.gmra.mrb[4].mxu0 %v1514_v40 }
  0x2c   :  { %768 = vmatmul.mubr.bf16.gmra.mrb[4].mxu1 %v1515_v41  ;;  %678 = vmatprep.mubr.bf16.mxu0 %v1517_v42 }
  0x2d   :  { %775 = vmatprep.mubr.bf16.mxu1 %v1519_v43  ;;  %1428 = vmatpush3.bf16.msra.mxu0 %v1523_v44 }
  0x2e   :  { %1465 = vmatpush3.bf16.msra.mxu1 %v1523_v44  ;;  %1429 = vmatprep.subr.bf16.mxu0 %v1530_v45 }
  0x2f   :  { %1458 = vmatprep.subr.bf16.mxu1 %v1530_v45 }
  0x31   :  { %1430 = vmatpush3.bf16.msra.mxu0 %v1530_v45 }
  0x32   :  { %1466 = vmatpush3.bf16.msra.mxu1 %v1530_v45  ;;  %1431 = vmatprep.subr.bf16.mxu0 %v1537_v50 }
  0x33   :  { %679 = vmatmul.mubr.bf16.gmra.mrb[8].mxu0 %v1521_v46  ;;  %1459 = vmatprep.subr.bf16.mxu1 %v1537_v50 }
  0x34   :  { %776 = vmatmul.mubr.bf16.gmra.mrb[8].mxu1 %v1522_v47  ;;  %686 = vmatprep.mubr.bf16.mxu0 %v1524_v48 }
  0x35   :  { %783 = vmatprep.mubr.bf16.mxu1 %v1526_v49  ;;  %1432 = vmatpush3.bf16.msra.mxu0 %v1537_v50 }
  0x36   :  { %1467 = vmatpush3.bf16.msra.mxu1 %v1537_v50  ;;  %1433 = vmatprep.subr.bf16.mxu0 %v1544_v51 }
  0x37   :  { %1460 = vmatprep.subr.bf16.mxu1 %v1544_v51 }
  0x39   :  { %1434 = vmatpush3.bf16.msra.mxu0 %v1544_v51 }
  0x3a   :  { %1468 = vmatpush3.bf16.msra.mxu1 %v1544_v51  ;;  %1435 = vmatprep.subr.bf16.mxu0 %v1551_v55 }
  0x3b   :  { %687 = vmatmul.mubr.bf16.gmra.mrb[12].mxu0 %v1528_v52  ;;  %1461 = vmatprep.subr.bf16.mxu1 %v1551_v55 }
  0x3c   :  { %784 = vmatmul.mubr.bf16.gmra.mrb[12].mxu1 %v1529_v53  ;;  %694 = vmatprep.mubr.bf16.mxu0 %v1531_v54 }
  0x3d   :  { %791 = vmatprep.mubr.bf16.mxu1 %v1533_v56  ;;  %1436 = vmatpush3.bf16.msra.mxu0 %v1551_v55 }
  0x3e   :  { %1469 = vmatpush3.bf16.msra.mxu1 %v1551_v55  ;;  %1437 = vmatprep.subr.bf16.mxu0 %v1558_v57 }
  0x3f   :  { %1462 = vmatprep.subr.bf16.mxu1 %v1558_v57 }
  0x41   :  { %1438 = vmatpush3.bf16.msra.mxu0 %v1558_v57 }
  0x42   :  { %1470 = vmatpush3.bf16.msra.mxu1 %v1558_v57 }
  0x43   :  { %695 = vmatmul.mubr.bf16.gmra.mrb[16].mxu0 %v1535_v58 }
  0x44   :  { %792 = vmatmul.mubr.bf16.gmra.mrb[16].mxu1 %v1536_v59  ;;  %702 = vmatprep.mubr.bf16.mxu0 %v1538_v60 }
  0x45   :  { %799 = vmatprep.mubr.bf16.mxu1 %v1540_v61 }
  0x4b   :  { %703 = vmatmul.mubr.bf16.gmra.mrb[20].mxu0 %v1542_v62 }
  0x4c   :  { %800 = vmatmul.mubr.bf16.gmra.mrb[20].mxu1 %v1543_v63  ;;  %710 = vmatprep.mubr.bf16.mxu0 %v1545_v0 }
  0x4d   :  { %807 = vmatprep.mubr.bf16.mxu1 %v1547_v1 }
  0x53   :  { %711 = vmatmul.mubr.bf16.gmra.mrb[24].mxu0 %v1549_v2 }
  0x54   :  { %808 = vmatmul.mubr.bf16.gmra.mrb[24].mxu1 %v1550_v3  ;;  %718 = vmatprep.mubr.bf16.mxu0 %v1552_v4 }
  0x55   :  { %815 = vmatprep.mubr.bf16.mxu1 %v1554_v5 }
  0x5b   :  { %719 = vmatmul.mubr.bf16.gmra.mrb[28].mxu0 %v1556_v6 }
  0x5c   :  { %816 = vmatmul.mubr.bf16.gmra.mrb[28].mxu1 %v1557_v7  ;;  %1439 = vmatprep.mubr.bf16.mxu0 %v1559_v8 }
  0x5d   :  { %1447 = vmatprep.mubr.bf16.mxu1 %v1560_v9 }
  0x63   :  { %1440 = vmatmul.mubr.bf16.vlgmr.msra.gmra.mrb[32].mxu0 %v1561_v10 }
  0x64   :  { %1448 = vmatmul.mubr.bf16.vlgmr.msra.gmra.mrb[32].mxu1 %v1562_v11  ;;  %1443 = vmatprep.mubr.bf16.mxu0 %v1563_v12 }
  0x65   :  { %1451 = vmatprep.mubr.bf16.mxu1 %v1564_v13 }
  0x6b   :  { %1444 = vmatmul.mubr.bf16.gmra.mrb[36].mxu0 %v1565_v14 }
  0x6c   :  { %1452 = vmatmul.mubr.bf16.gmra.mrb[36].mxu1 %v1566_v15 }
  0xf6   :  { %v1295_v16 = vpop.f32.mrb[0].mxu0 }
  0xf7   :  { %v1359_v17 = vpop.f32.mrb[0].mxu1  ;;  %v1296_v18 = vpop.f32.mrb[1].mxu0 }
  0xf8   :  { %v1297_v19 = vadd.f32 %v1296_v18, %v1295_v16  ;;  %v1360_v20 = vpop.f32.mrb[1].mxu1  ;;  %v1298_v21 = vpop.f32.mrb[2].mxu0 }
  0xf9   :  { %v1361_v22 = vadd.f32 %v1360_v20, %v1359_v17  ;;  %v1362_v23 = vpop.f32.mrb[2].mxu1  ;;  %v1299_v24 = vpop.f32.mrb[3].mxu0 }
  0xfa   :  { %v1300_v25 = vadd.f32 %v1299_v24, %v1298_v21  ;;  %v1363_v26 = vpop.f32.mrb[3].mxu1 }
  0xfb   :  { %v1364_v27 = vadd.f32 %v1363_v26, %v1362_v23  ;;  %v1832_v28 = vadd.f32 %v1361_v22, %v1297_v19 }
  0xfd   :  { %v1834_v29 = vadd.f32 %v1364_v27, %v1300_v25 }
  0xfe   :  { %v1301_v30 = vpop.f32.mrb[4].mxu0 }
  0xff   :  { %v1365_v31 = vpop.f32.mrb[4].mxu1  ;;  %v1302_v32 = vpop.f32.mrb[5].mxu0 }
 0x100   :  { %v1303_v33 = vadd.f32 %v1302_v32, %v1301_v30  ;;  %v1366_v34 = vpop.f32.mrb[5].mxu1  ;;  %v1304_v35 = vpop.f32.mrb[6].mxu0 }
 0x101   :  { %v1367_v36 = vadd.f32 %v1366_v34, %v1365_v31  ;;  %v1368_v37 = vpop.f32.mrb[6].mxu1  ;;  %v1305_v38 = vpop.f32.mrb[7].mxu0 }
 0x102   :  { %v1306_v39 = vadd.f32 %v1305_v38, %v1304_v35  ;;  %v1369_v40 = vpop.f32.mrb[7].mxu1 }
 0x103   :  { %v1370_v41 = vadd.f32 %v1369_v40, %v1368_v37  ;;  %v1836_v42 = vadd.f32 %v1367_v36, %v1303_v33 }
 0x105   :  { %v1838_v43 = vadd.f32 %v1370_v41, %v1306_v39 }
 0x106   :  { %v1307_v44 = vpop.f32.mrb[8].mxu0 }
 0x107   :  { %v1371_v45 = vpop.f32.mrb[8].mxu1  ;;  %v1308_v46 = vpop.f32.mrb[9].mxu0 }
 0x108   :  { %v1309_v47 = vadd.f32 %v1308_v46, %v1307_v44  ;;  %v1372_v48 = vpop.f32.mrb[9].mxu1  ;;  %v1310_v49 = vpop.f32.mrb[10].mxu0 }
 0x109   :  { %v1373_v50 = vadd.f32 %v1372_v48, %v1371_v45  ;;  %v1374_v51 = vpop.f32.mrb[10].mxu1  ;;  %v1311_v52 = vpop.f32.mrb[11].mxu0 }
 0x10a   :  { %v1312_v53 = vadd.f32 %v1311_v52, %v1310_v49  ;;  %v1375_v54 = vpop.f32.mrb[11].mxu1 }
 0x10b   :  { %v1376_v55 = vadd.f32 %v1375_v54, %v1374_v51  ;;  %v1840_v56 = vadd.f32 %v1373_v50, %v1309_v47 }
 0x10d   :  { %v1842_v57 = vadd.f32 %v1376_v55, %v1312_v53 }
 0x10e   :  { %v1313_v58 = vpop.f32.mrb[12].mxu0 }
 0x10f   :  { %v1377_v59 = vpop.f32.mrb[12].mxu1  ;;  %v1314_v60 = vpop.f32.mrb[13].mxu0 }
 0x110   :  { %v1315_v61 = vadd.f32 %v1314_v60, %v1313_v58  ;;  %v1378_v62 = vpop.f32.mrb[13].mxu1  ;;  %v1316_v63 = vpop.f32.mrb[14].mxu0 }
 0x111   :  { %v1379_v0 = vadd.f32 %v1378_v62, %v1377_v59  ;;  %v1380_v1 = vpop.f32.mrb[14].mxu1  ;;  %v1317_v2 = vpop.f32.mrb[15].mxu0 }
 0x112   :  { %v1318_v3 = vadd.f32 %v1317_v2, %v1316_v63  ;;  %v1381_v4 = vpop.f32.mrb[15].mxu1 }
 0x113   :  { %v1382_v5 = vadd.f32 %v1381_v4, %v1380_v1  ;;  %v1844_v6 = vadd.f32 %v1379_v0, %v1315_v61 }
 0x115   :  { %v1846_v7 = vadd.f32 %v1382_v5, %v1318_v3 }
 0x116   :  { %v1319_v8 = vpop.f32.mrb[16].mxu0 }
 0x117   :  { %v1383_v9 = vpop.f32.mrb[16].mxu1  ;;  %v1320_v10 = vpop.f32.mrb[17].mxu0 }
 0x118   :  { %v1321_v11 = vadd.f32 %v1320_v10, %v1319_v8  ;;  %v1384_v12 = vpop.f32.mrb[17].mxu1  ;;  %v1322_v13 = vpop.f32.mrb[18].mxu0 }
 0x119   :  { %v1385_v14 = vadd.f32 %v1384_v12, %v1383_v9  ;;  %v1386_v15 = vpop.f32.mrb[18].mxu1  ;;  %v1323_v16 = vpop.f32.mrb[19].mxu0  ;;  %v1859_v9 = vld [vmem:[%s1936_s2] ss:$0 sm:$0xff] }
 0x11a   :  { %v1324_v17 = vadd.f32 %v1323_v16, %v1322_v13  ;;  %v1387_v18 = vpop.f32.mrb[19].mxu1  ;;  %v1865_v13 = vld [vmem:[%s1937_s3] ss:$0 sm:$0xff] }
 0x11b   :  { %v1388_v19 = vadd.f32 %v1387_v18, %v1386_v15  ;;  %v794_v20 = vadd.f32 %v1385_v14, %v1321_v11 }
 0x11d   :  { %v1848_v21 = vadd.f32 %v1388_v19, %v1324_v17 }
 0x11e   :  { %v1325_v22 = vpop.f32.mrb[20].mxu0 }
 0x11f   :  { %v1389_v23 = vpop.f32.mrb[20].mxu1  ;;  %v1326_v24 = vpop.f32.mrb[21].mxu0 }
 0x120   :  { %v1327_v25 = vadd.f32 %v1326_v24, %v1325_v22  ;;  %v1390_v26 = vpop.f32.mrb[21].mxu1  ;;  %v1328_v27 = vpop.f32.mrb[22].mxu0 }
 0x121   :  { %v1391_v30 = vadd.f32 %v1390_v26, %v1389_v23  ;;  %v1392_v31 = vpop.f32.mrb[22].mxu1  ;;  %v1329_v32 = vpop.f32.mrb[23].mxu0 }
 0x122   :  { %v1330_v33 = vadd.f32 %v1329_v32, %v1328_v27  ;;  %v1393_v34 = vpop.f32.mrb[23].mxu1 }
 0x123   :  { %v1394_v35 = vadd.f32 %v1393_v34, %v1392_v31  ;;  %v802_v36 = vadd.f32 %v1391_v30, %v1327_v25 }
 0x125   :  { %v805_v37 = vadd.f32 %v1394_v35, %v1330_v33 }
 0x126   :  { %v1331_v38 = vpop.f32.mrb[24].mxu0 }
 0x127   :  { %v1395_v39 = vpop.f32.mrb[24].mxu1  ;;  %v1332_v40 = vpop.f32.mrb[25].mxu0 }
 0x128   :  { %v1333_v41 = vadd.f32 %v1332_v40, %v1331_v38  ;;  %v1396_v44 = vpop.f32.mrb[25].mxu1  ;;  %v1334_v45 = vpop.f32.mrb[26].mxu0 }
 0x129   :  { %v1397_v46 = vadd.f32 %v1396_v44, %v1395_v39  ;;  %v1398_v47 = vpop.f32.mrb[26].mxu1  ;;  %v1335_v48 = vpop.f32.mrb[27].mxu0 }
 0x12a   :  { %v1336_v49 = vadd.f32 %v1335_v48, %v1334_v45  ;;  %v1399_v50 = vpop.f32.mrb[27].mxu1 }
 0x12b   :  { %v1400_v51 = vadd.f32 %v1399_v50, %v1398_v47  ;;  %v1850_v52 = vadd.f32 %v1397_v46, %v1333_v41 }
 0x12d   :  { %v1852_v53 = vadd.f32 %v1400_v51, %v1336_v49 }
 0x12e   :  { %v1337_v54 = vpop.f32.mrb[28].mxu0 }
 0x12f   :  { %v1401_v55 = vpop.f32.mrb[28].mxu1  ;;  %v1338_v58 = vpop.f32.mrb[29].mxu0 }
 0x130   :  { %v1339_v59 = vadd.f32 %v1338_v58, %v1337_v54  ;;  %v1402_v60 = vpop.f32.mrb[29].mxu1  ;;  %v1340_v61 = vpop.f32.mrb[30].mxu0 }
 0x131   :  { %v1403_v62 = vadd.f32 %v1402_v60, %v1401_v55  ;;  %v1404_v63 = vpop.f32.mrb[30].mxu1  ;;  %v1341_v0 = vpop.f32.mrb[31].mxu0 }
 0x132   :  { %v1342_v1 = vadd.f32 %v1341_v0, %v1340_v61  ;;  %v1405_v2 = vpop.f32.mrb[31].mxu1 }
 0x133   :  { %v1406_v3 = vadd.f32 %v1405_v2, %v1404_v63  ;;  %v818_v4 = vadd.f32 %v1403_v62, %v1339_v59 }
 0x135   :  { %v1854_v5 = vadd.f32 %v1406_v3, %v1342_v1 }
 0x136   :  { %v1441_v8 = vpop.f32.mrb[32].mxu0 }
 0x137   :  { %v867_v10 = vadd.f32 %v1441_v8, %v1836_v42  ;;  %v1449_v11 = vpop.f32.mrb[32].mxu1  ;;  %v858_v12 = vpop.f32.mrb[33].mxu0 }
 0x138   :  { %v899_v14 = vadd.f32 %v1449_v11, %v802_v36  ;;  %v859_v15 = vadd.f32 %v858_v12, %v1832_v28  ;;  %v890_v16 = vpop.f32.mrb[33].mxu1  ;;  %v1442_v17 = vpop.f32.mrb[34].mxu0 }
 0x139   :  { %v981_v18 = vmul.f32 %v1859_v9, %v867_v10  ;;  %v891_v19 = vadd.f32 %v890_v16, %v794_v20  ;;  %v870_v22 = vadd.f32 %v1442_v17, %v1838_v43  ;;  %v1450_v23 = vpop.f32.mrb[34].mxu1  ;;  %v861_v24 = vpop.f32.mrb[35].mxu0 }
 0x13a   :  { %v989_v42 = vmul.f32 %v1859_v9, %v899_v14  ;;  %v979_v25 = vmul.f32 %v1859_v9, %v859_v15  ;;  %v902_v26 = vadd.f32 %v1450_v23, %v805_v37  ;;  %v862_v27 = vadd.f32 %v861_v24, %v1834_v29  ;;  %v893_v30 = vpop.f32.mrb[35].mxu1 }
 0x13b   :  { %v1004_v31 = vadd.f32 %v1865_v13, %v981_v18  ;;  %v987_v28 = vmul.f32 %v1859_v9, %v891_v19  ;;  %v982_v32 = vmul.f32 %v1859_v9, %v870_v22  ;;  %v894_v20 = vadd.f32 %v893_v30, %v1848_v21 }
 0x13c   :  { %v1012_v43 = vadd.f32 %v1865_v13, %v989_v42  ;;  %v1002_v33 = vadd.f32 %v1865_v13, %v979_v25  ;;  %v990_v34 = vmul.f32 %v1859_v9, %v902_v26  ;;  %v980_v35 = vmul.f32 %v1859_v9, %v862_v27 }
 0x13d   :  { %v1020_v36 = vmax.f32 %v1004_v31, 0.0  ;;  %v1010_v29 = vadd.f32 %v1865_v13, %v987_v28  ;;  %v1005_v37 = vadd.f32 %v1865_v13, %v982_v32  ;;  %v988_v38 = vmul.f32 %v1859_v9, %v894_v20 }
 0x13e   :  { %v1028_v39 = vmax.f32 %v1012_v43, 0.0  ;;  %v1018_v40 = vmax.f32 %v1002_v33, 0.0  ;;  %v1013_v41 = vadd.f32 %v1865_v13, %v990_v34  ;;  %v1003_v21 = vadd.f32 %v1865_v13, %v980_v35  ;;  %v1445_v44 = vpop.f32.mrb[36].mxu0 }
 0x13f   :  { %v1026_v45 = vmax.f32 %v1010_v29, 0.0  ;;  %v1021_v46 = vmax.f32 %v1005_v37, 0.0  ;;  %v1011_v47 = vadd.f32 %v1865_v13, %v988_v38  ;;  %v883_v48 = vadd.f32 %v1445_v44, %v1844_v6  ;;  %v1453_v49 = vpop.f32.mrb[36].mxu1  ;;  %v874_v50 = vpop.f32.mrb[37].mxu0 }
 0x140   :  { %v1029_v51 = vmax.f32 %v1013_v41, 0.0  ;;  %v1019_v54 = vmax.f32 %v1003_v21, 0.0  ;;  %v915_v55 = vadd.f32 %v1453_v49, %v818_v4  ;;  %v875_v58 = vadd.f32 %v874_v50, %v1840_v56  ;;  %v906_v59 = vpop.f32.mrb[37].mxu1  ;;  %v1446_v60 = vpop.f32.mrb[38].mxu0 }
 0x141   :  { %v1240_v61 = vpack.c.bf16 %v1021_v46, %v1020_v36  ;;  %v1027_v62 = vmax.f32 %v1011_v47, 0.0  ;;  %v985_v63 = vmul.f32 %v1859_v9, %v883_v48  ;;  %v907_v0 = vadd.f32 %v906_v59, %v1850_v52  ;;  %v1454_v1 = vpop.f32.mrb[38].mxu1  ;;  %v877_v2 = vpop.f32.mrb[39].mxu0 }
 0x142   :  { %v1260_v3 = vpack.c.bf16 %v1029_v51, %v1028_v39  ;;  %v1235_v8 = vpack.c.bf16 %v1019_v54, %v1018_v40  ;;  %v993_v6 = vmul.f32 %v1859_v9, %v915_v55  ;;  %v983_v10 = vmul.f32 %v1859_v9, %v875_v58  ;;  %v909_v11 = vpop.f32.mrb[39].mxu1 }
 0x143   :  { %1272 = vst [vmem:[%s1938_s4 + $0x8] sm:$0xff] %v1240_v61   ;;  %v1255_v56 = vpack.c.bf16 %v1027_v62, %v1026_v45  ;;  %v991_v4 = vmul.f32 %v1859_v9, %v907_v0  ;;  %v886_v12 = vadd.f32 %v1446_v60, %v1846_v7  ;;  %v918_v52 = vadd.f32 %v1454_v1, %v1854_v5 }
 0x144   :  { %1276 = vst [vmem:[%s1938_s4 + $0x28] sm:$0xff] %v1260_v3   ;;  %1236 = vst [vmem:[%s1938_s4] sm:$0xff] %v1235_v8   ;;  %v878_v14 = vadd.f32 %v877_v2, %v1842_v57  ;;  %v1008_v15 = vadd.f32 %v1865_v13, %v985_v63  ;;  %v910_v16 = vadd.f32 %v909_v11, %v1852_v53 }
 0x145   :  { %1275 = vst [vmem:[%s1938_s4 + $0x20] sm:$0xff] %v1255_v56   ;;  %v986_v7 = vmul.f32 %v1859_v9, %v886_v12  ;;  %v1016_v17 = vadd.f32 %v1865_v13, %v993_v6  ;;  %v1006_v18 = vadd.f32 %v1865_v13, %v983_v10  ;;  %v994_v19 = vmul.f32 %v1859_v9, %v918_v52 }
 0x146   :  { %v984_v5 = vmul.f32 %v1859_v9, %v878_v14  ;;  %v1014_v57 = vadd.f32 %v1865_v13, %v991_v4  ;;  %v992_v23 = vmul.f32 %v1859_v9, %v910_v16  ;;  %v1024_v25 = vmax.f32 %v1008_v15, 0.0 }
 0x147   :  { %v1009_v22 = vadd.f32 %v1865_v13, %v986_v7  ;;  %v1017_v24 = vadd.f32 %v1865_v13, %v994_v19  ;;  %v1032_v27 = vmax.f32 %v1016_v17, 0.0  ;;  %v1022_v30 = vmax.f32 %v1006_v18, 0.0 }
 0x148   :  { %v1007_v42 = vadd.f32 %v1865_v13, %v984_v5  ;;  %v1015_v26 = vadd.f32 %v1865_v13, %v992_v23  ;;  %v1030_v32 = vmax.f32 %v1014_v57, 0.0 }
 0x149   :  { %v1025_v53 = vmax.f32 %v1009_v22, 0.0  ;;  %v1033_v31 = vmax.f32 %v1017_v24, 0.0 }
 0x14a   :  { %v1023_v28 = vmax.f32 %v1007_v42, 0.0  ;;  %v1031_v43 = vmax.f32 %v1015_v26, 0.0 }
 0x14b   :  { %v1250_v20 = vpack.c.bf16 %v1025_v53, %v1024_v25  ;;  %v1270_v33 = vpack.c.bf16 %v1033_v31, %v1032_v27 }
 0x14c   :  { %v1245_v34 = vpack.c.bf16 %v1023_v28, %v1022_v30  ;;  %v1265_v9 = vpack.c.bf16 %v1031_v43, %v1030_v32 }
 0x14d   :  { %1274 = vst [vmem:[%s1938_s4 + $0x18] sm:$0xff] %v1250_v20   ;;  %1278 = vst [vmem:[%s1938_s4 + $0x38] sm:$0xff] %v1270_v33  }
 0x14e   :  { %1273 = vst [vmem:[%s1938_s4 + $0x10] sm:$0xff] %v1245_v34   ;;  %1277 = vst [vmem:[%s1938_s4 + $0x30] sm:$0xff] %v1265_v9  }

// kernel: resnet_forward.17
= control target key start
LH: loop header
LB: loop body
LE: loop exit
PB: predicated region body
PF: predicated region fallthrough
CT: control target
= control target key end

     0   :  { %s2102_s1 = inlined_call_operand.vmem [shape: bf16[640,128], index: 1, kind: input, shape index: {}]   ;;  %s2103_s0 = inlined_call_operand.vmem [shape: bf16[128,640], index: 0, kind: input, shape index: {}]   ;;  %s2104_s4 = inlined_call_operand.vmem [shape: bf16[128,128], index: 4, kind: input, shape index: {}]   ;;  %s2105_s2 = inlined_call_operand.vmem [shape: f32[1,128], index: 2, kind: input, shape index: {}]   ;;  %s2106_s3 = inlined_call_operand.vmem [shape: f32[1,128], index: 3, kind: input, shape index: {}]   ;;  %s2107_s5 = inlined_call_operand.vmem [shape: bf16[128,128], index: 5, kind: output, shape index: {}]  }
   0x1   :  { %v1561_v0 = vld [vmem:[%s2102_s1 + $0x40] sm:$0xff]   ;;  %v1565_v4 = vld [vmem:[%s2102_s1 + $0x48] sm:$0xff]   ;;  %v1569_v8 = vld [vmem:[%s2102_s1 + $0x50] sm:$0xff]  }
   0x2   :  { %v1562_v1 = vld [vmem:[%s2102_s1 + $0xc0] sm:$0xff]   ;;  %1369 = vmatprep.subr.bf16.mxu0 %v1561_v0  ;;  %v1566_v5 = vld [vmem:[%s2102_s1 + $0xc8] sm:$0xff]   ;;  %v1570_v9 = vld [vmem:[%s2102_s1 + $0xd0] sm:$0xff]  }
   0x3   :  { %v1563_v2 = vld [vmem:[%s2102_s1] sm:$0xff]   ;;  %1433 = vmatprep.subr.bf16.mxu1 %v1562_v1  ;;  %v1567_v6 = vld [vmem:[%s2102_s1 + $0x8] sm:$0xff]   ;;  %v1571_v10 = vld [vmem:[%s2102_s1 + $0x10] sm:$0xff]  }
   0x4   :  { %v1564_v3 = vld [vmem:[%s2102_s1 + $0x80] sm:$0xff]   ;;  %1370 = vmatpush3.bf16.msra.mxu0 %v1563_v2  ;;  %v1568_v7 = vld [vmem:[%s2102_s1 + $0x88] sm:$0xff]   ;;  %v1572_v11 = vld [vmem:[%s2102_s1 + $0x90] sm:$0xff]  }
   0x5   :  { %1434 = vmatpush3.bf16.msra.mxu1 %v1564_v3  ;;  %1371 = vmatprep.subr.bf16.mxu0 %v1565_v4  ;;  %v1573_v12 = vld [vmem:[%s2102_s1 + $0x58] sm:$0xff]   ;;  %v1577_v16 = vld [vmem:[%s2102_s1 + $0x60] sm:$0xff]   ;;  %v1581_v20 = vld [vmem:[%s2102_s1 + $0x68] sm:$0xff]  }
   0x6   :  { %1435 = vmatprep.subr.bf16.mxu1 %v1566_v5  ;;  %v1574_v13 = vld [vmem:[%s2102_s1 + $0xd8] sm:$0xff]   ;;  %v1578_v17 = vld [vmem:[%s2102_s1 + $0xe0] sm:$0xff]   ;;  %v1582_v21 = vld [vmem:[%s2102_s1 + $0xe8] sm:$0xff]  }
   0x7   :  { %v1575_v14 = vld [vmem:[%s2102_s1 + $0x18] sm:$0xff]   ;;  %v1579_v18 = vld [vmem:[%s2102_s1 + $0x20] sm:$0xff]   ;;  %v1583_v22 = vld [vmem:[%s2102_s1 + $0x28] sm:$0xff]  }
   0x8   :  { %1372 = vmatpush3.bf16.msra.mxu0 %v1567_v6  ;;  %v1576_v15 = vld [vmem:[%s2102_s1 + $0x98] sm:$0xff]   ;;  %v1580_v19 = vld [vmem:[%s2102_s1 + $0xa0] sm:$0xff]   ;;  %v1584_v23 = vld [vmem:[%s2102_s1 + $0xa8] sm:$0xff]  }
   0x9   :  { %1436 = vmatpush3.bf16.msra.mxu1 %v1568_v7  ;;  %1373 = vmatprep.subr.bf16.mxu0 %v1569_v8  ;;  %v1585_v24 = vld [vmem:[%s2102_s1 + $0x70] sm:$0xff]   ;;  %v1589_v28 = vld [vmem:[%s2102_s1 + $0x78] sm:$0xff]   ;;  %v1598_v35 = vld [vmem:[%s2103_s0 + $0xc] ss:$20 sps:$4 sm:$0xff]  }
   0xa   :  { %1437 = vmatprep.subr.bf16.mxu1 %v1570_v9  ;;  %v1586_v25 = vld [vmem:[%s2102_s1 + $0xf0] sm:$0xff]   ;;  %v1590_v29 = vld [vmem:[%s2102_s1 + $0xf8] sm:$0xff]   ;;  %v1599_v36 = vld [vmem:[%s2102_s1 + $0x100] sm:$0xff]   ;;  %762 = vmatprep.mubr.bf16.mxu1 %v1598_v35 }
   0xb   :  { %v1587_v26 = vld [vmem:[%s2102_s1 + $0x30] sm:$0xff]   ;;  %v1591_v30 = vld [vmem:[%s2102_s1 + $0x38] sm:$0xff]   ;;  %v1600_v37 = vld [vmem:[%s2103_s0 + $0x2c] ss:$20 sps:$4 sm:$0xff]  }
   0xc   :  { %1374 = vmatpush3.bf16.msra.mxu0 %v1571_v10  ;;  %v1588_v27 = vld [vmem:[%s2102_s1 + $0xb0] sm:$0xff]   ;;  %v1592_v31 = vld [vmem:[%s2102_s1 + $0xb8] sm:$0xff]   ;;  %v1606_v39 = vld [vmem:[%s2102_s1 + $0x108] sm:$0xff]  }
   0xd   :  { %1438 = vmatpush3.bf16.msra.mxu1 %v1572_v11  ;;  %1375 = vmatprep.subr.bf16.mxu0 %v1573_v12  ;;  %v1593_v32 = vld [vmem:[%s2103_s0] ss:$20 sps:$4 sm:$0xff]   ;;  %v1595_v33 = vld [vmem:[%s2103_s0 + $0x4] ss:$20 sps:$4 sm:$0xff]   ;;  %v1596_v34 = vld [vmem:[%s2103_s0 + $0x8] ss:$20 sps:$4 sm:$0xff]  }
   0xe   :  { %1439 = vmatprep.subr.bf16.mxu1 %v1574_v13  ;;  %665 = vmatprep.mubr.bf16.mxu0 %v1595_v33  ;;  %v1602_v38 = vld [vmem:[%s2103_s0 + $0x34] ss:$20 sps:$4 sm:$0xff]   ;;  %v1605_v41 = vld [vmem:[%s2103_s0 + $0x30] ss:$20 sps:$4 sm:$0xff]   ;;  %v1620_v45 = vld [vmem:[%s2102_s1 + $0x118] sm:$0xff]  }
   0xf   :  { %v1604_v40 = vld [vmem:[%s2103_s0 + $0x28] ss:$20 sps:$4 sm:$0xff]   ;;  %v1613_v44 = vld [vmem:[%s2102_s1 + $0x110] sm:$0xff]   ;;  %v1612_v47 = vld [vmem:[%s2103_s0 + $0x58] ss:$20 sps:$4 sm:$0xff]  }
  0x10   :  { %1376 = vmatpush3.bf16.msra.mxu0 %v1575_v14  ;;  %v1607_v42 = vld [vmem:[%s2103_s0 + $0x54] ss:$20 sps:$4 sm:$0xff]   ;;  %v1609_v43 = vld [vmem:[%s2103_s0 + $0x5c] ss:$20 sps:$4 sm:$0xff]   ;;  %v1616_v49 = vld [vmem:[%s2103_s0 + $0x84] ss:$20 sps:$4 sm:$0xff]  }
  0x11   :  { %1440 = vmatpush3.bf16.msra.mxu1 %v1576_v15  ;;  %1377 = vmatprep.subr.bf16.mxu0 %v1577_v16  ;;  %v1611_v46 = vld [vmem:[%s2103_s0 + $0x50] ss:$20 sps:$4 sm:$0xff]   ;;  %v1634_v51 = vld [vmem:[%s2102_s1 + $0x128] sm:$0xff]   ;;  %v1619_v53 = vld [vmem:[%s2103_s0 + $0x80] ss:$20 sps:$4 sm:$0xff]  }
  0x12   :  { %1441 = vmatprep.subr.bf16.mxu1 %v1578_v17  ;;  %v1614_v48 = vld [vmem:[%s2103_s0 + $0x7c] ss:$20 sps:$4 sm:$0xff]   ;;  %v1627_v50 = vld [vmem:[%s2102_s1 + $0x120] sm:$0xff]   ;;  %v1618_v52 = vld [vmem:[%s2103_s0 + $0x78] ss:$20 sps:$4 sm:$0xff]  }
  0x13   :  { %v1621_v54 = vld [vmem:[%s2103_s0 + $0xa4] ss:$20 sps:$4 sm:$0xff]   ;;  %v1641_v55 = vld [vmem:[%s2102_s1 + $0x130] sm:$0xff]   ;;  %v1623_v56 = vld [vmem:[%s2103_s0 + $0xac] ss:$20 sps:$4 sm:$0xff]  }
  0x14   :  { %1378 = vmatpush3.bf16.msra.mxu0 %v1579_v18  ;;  %v1648_v57 = vld [vmem:[%s2102_s1 + $0x138] sm:$0xff]   ;;  %v1625_v58 = vld [vmem:[%s2103_s0 + $0xa0] ss:$20 sps:$4 sm:$0xff]   ;;  %v1633_v63 = vld [vmem:[%s2103_s0 + $0xd0] ss:$20 sps:$4 sm:$0xff]  }
  0x15   :  { %1442 = vmatpush3.bf16.msra.mxu1 %v1580_v19  ;;  %1379 = vmatprep.subr.bf16.mxu0 %v1581_v20  ;;  %v1626_v59 = vld [vmem:[%s2103_s0 + $0xa8] ss:$20 sps:$4 sm:$0xff]   ;;  %v1628_v60 = vld [vmem:[%s2103_s0 + $0xcc] ss:$20 sps:$4 sm:$0xff]   ;;  %v1639_v2 = vld [vmem:[%s2103_s0 + $0xf0] ss:$20 sps:$4 sm:$0xff]  }
  0x16   :  { %1443 = vmatprep.subr.bf16.mxu1 %v1582_v21  ;;  %v1630_v61 = vld [vmem:[%s2103_s0 + $0xd4] ss:$20 sps:$4 sm:$0xff]   ;;  %v1637_v1 = vld [vmem:[%s2103_s0 + $0xfc] ss:$20 sps:$4 sm:$0xff]   ;;  %v1640_v3 = vld [vmem:[%s2103_s0 + $0xf8] ss:$20 sps:$4 sm:$0xff]  }
  0x17   :  { %v1632_v62 = vld [vmem:[%s2103_s0 + $0xc8] ss:$20 sps:$4 sm:$0xff]   ;;  %v1644_v5 = vld [vmem:[%s2103_s0 + $0x124] ss:$20 sps:$4 sm:$0xff]   ;;  %v1647_v7 = vld [vmem:[%s2103_s0 + $0x120] ss:$20 sps:$4 sm:$0xff]  }
  0x18   :  { %1380 = vmatpush3.bf16.msra.mxu0 %v1583_v22  ;;  %v1635_v0 = vld [vmem:[%s2103_s0 + $0xf4] ss:$20 sps:$4 sm:$0xff]   ;;  %v1642_v4 = vld [vmem:[%s2103_s0 + $0x11c] ss:$20 sps:$4 sm:$0xff]   ;;  %v1646_v6 = vld [vmem:[%s2103_s0 + $0x118] ss:$20 sps:$4 sm:$0xff]  }
  0x19   :  { %1444 = vmatpush3.bf16.msra.mxu1 %v1584_v23  ;;  %1381 = vmatprep.subr.bf16.mxu0 %v1585_v24  ;;  %v1649_v8 = vld [vmem:[%s2103_s0 + $0x10] ss:$20 sps:$4 sm:$0xff]   ;;  %v1651_v10 = vld [vmem:[%s2103_s0 + $0x38] ss:$20 sps:$4 sm:$0xff]   ;;  %v1653_v12 = vld [vmem:[%s2103_s0 + $0x60] ss:$20 sps:$4 sm:$0xff]  }
  0x1a   :  { %1445 = vmatprep.subr.bf16.mxu1 %v1586_v25  ;;  %v1650_v9 = vld [vmem:[%s2103_s0 + $0xb0] ss:$20 sps:$4 sm:$0xff]   ;;  %v1652_v11 = vld [vmem:[%s2103_s0 + $0xd8] ss:$20 sps:$4 sm:$0xff]   ;;  %v1654_v13 = vld [vmem:[%s2103_s0 + $0x100] ss:$20 sps:$4 sm:$0xff]  }
  0x1b   :  { %v1655_v14 = vld [vmem:[%s2103_s0 + $0x88] ss:$20 sps:$4 sm:$0xff]  }
  0x1c   :  { %1382 = vmatpush3.bf16.msra.mxu0 %v1587_v26  ;;  %v1656_v15 = vld [vmem:[%s2103_s0 + $0x128] ss:$20 sps:$4 sm:$0xff]  }
  0x1d   :  { %1446 = vmatpush3.bf16.msra.mxu1 %v1588_v27  ;;  %1383 = vmatprep.subr.bf16.mxu0 %v1589_v28 }
  0x1e   :  { %1447 = vmatprep.subr.bf16.mxu1 %v1590_v29 }
  0x20   :  { %1384 = vmatpush3.bf16.msra.mxu0 %v1591_v30 }
  0x21   :  { %1448 = vmatpush3.bf16.msra.mxu1 %v1592_v31  ;;  %1513 = vmatprep.subr.bf16.mxu0 %v1599_v36 }
  0x22   :  { %1545 = vmatprep.subr.bf16.mxu1 %v1599_v36 }
  0x23   :  { %666 = vmatmul.mubr.bf16.vlgmr.msra.gmra.mrb[0].mxu0 %v1593_v32 }
  0x24   :  { %763 = vmatmul.mubr.bf16.vlgmr.msra.gmra.mrb[0].mxu1 %v1596_v34  ;;  %1514 = vmatpush3.bf16.msra.mxu0 %v1599_v36 }
  0x25   :  { %1553 = vmatpush3.bf16.msra.mxu1 %v1599_v36  ;;  %673 = vmatprep.mubr.bf16.mxu0 %v1600_v37 }
  0x26   :  { %770 = vmatprep.mubr.bf16.mxu1 %v1602_v38  ;;  %1515 = vmatprep.subr.bf16.mxu0 %v1606_v39 }
  0x27   :  { %1546 = vmatprep.subr.bf16.mxu1 %v1606_v39 }
  0x28   :  { %1516 = vmatpush3.bf16.msra.mxu0 %v1606_v39 }
  0x29   :  { %1554 = vmatpush3.bf16.msra.mxu1 %v1606_v39  ;;  %1517 = vmatprep.subr.bf16.mxu0 %v1613_v44 }
  0x2a   :  { %1547 = vmatprep.subr.bf16.mxu1 %v1613_v44 }
  0x2b   :  { %674 = vmatmul.mubr.bf16.gmra.mrb[4].mxu0 %v1604_v40 }
  0x2c   :  { %771 = vmatmul.mubr.bf16.gmra.mrb[4].mxu1 %v1605_v41  ;;  %681 = vmatprep.mubr.bf16.mxu0 %v1607_v42 }
  0x2d   :  { %778 = vmatprep.mubr.bf16.mxu1 %v1609_v43  ;;  %1518 = vmatpush3.bf16.msra.mxu0 %v1613_v44 }
  0x2e   :  { %1555 = vmatpush3.bf16.msra.mxu1 %v1613_v44  ;;  %1519 = vmatprep.subr.bf16.mxu0 %v1620_v45 }
  0x2f   :  { %1548 = vmatprep.subr.bf16.mxu1 %v1620_v45 }
  0x31   :  { %1520 = vmatpush3.bf16.msra.mxu0 %v1620_v45 }
  0x32   :  { %1556 = vmatpush3.bf16.msra.mxu1 %v1620_v45  ;;  %1521 = vmatprep.subr.bf16.mxu0 %v1627_v50 }
  0x33   :  { %682 = vmatmul.mubr.bf16.gmra.mrb[8].mxu0 %v1611_v46  ;;  %1549 = vmatprep.subr.bf16.mxu1 %v1627_v50 }
  0x34   :  { %779 = vmatmul.mubr.bf16.gmra.mrb[8].mxu1 %v1612_v47  ;;  %689 = vmatprep.mubr.bf16.mxu0 %v1614_v48 }
  0x35   :  { %786 = vmatprep.mubr.bf16.mxu1 %v1616_v49  ;;  %1522 = vmatpush3.bf16.msra.mxu0 %v1627_v50 }
  0x36   :  { %1557 = vmatpush3.bf16.msra.mxu1 %v1627_v50  ;;  %1523 = vmatprep.subr.bf16.mxu0 %v1634_v51 }
  0x37   :  { %1550 = vmatprep.subr.bf16.mxu1 %v1634_v51 }
  0x39   :  { %1524 = vmatpush3.bf16.msra.mxu0 %v1634_v51 }
  0x3a   :  { %1558 = vmatpush3.bf16.msra.mxu1 %v1634_v51  ;;  %1525 = vmatprep.subr.bf16.mxu0 %v1641_v55 }
  0x3b   :  { %690 = vmatmul.mubr.bf16.gmra.mrb[12].mxu0 %v1618_v52  ;;  %1551 = vmatprep.subr.bf16.mxu1 %v1641_v55 }
  0x3c   :  { %787 = vmatmul.mubr.bf16.gmra.mrb[12].mxu1 %v1619_v53  ;;  %697 = vmatprep.mubr.bf16.mxu0 %v1621_v54 }
  0x3d   :  { %794 = vmatprep.mubr.bf16.mxu1 %v1623_v56  ;;  %1526 = vmatpush3.bf16.msra.mxu0 %v1641_v55 }
  0x3e   :  { %1559 = vmatpush3.bf16.msra.mxu1 %v1641_v55  ;;  %1527 = vmatprep.subr.bf16.mxu0 %v1648_v57 }
  0x3f   :  { %1552 = vmatprep.subr.bf16.mxu1 %v1648_v57 }
  0x41   :  { %1528 = vmatpush3.bf16.msra.mxu0 %v1648_v57 }
  0x42   :  { %1560 = vmatpush3.bf16.msra.mxu1 %v1648_v57 }
  0x43   :  { %698 = vmatmul.mubr.bf16.gmra.mrb[16].mxu0 %v1625_v58 }
  0x44   :  { %795 = vmatmul.mubr.bf16.gmra.mrb[16].mxu1 %v1626_v59  ;;  %705 = vmatprep.mubr.bf16.mxu0 %v1628_v60 }
  0x45   :  { %802 = vmatprep.mubr.bf16.mxu1 %v1630_v61 }
  0x4b   :  { %706 = vmatmul.mubr.bf16.gmra.mrb[20].mxu0 %v1632_v62 }
  0x4c   :  { %803 = vmatmul.mubr.bf16.gmra.mrb[20].mxu1 %v1633_v63  ;;  %713 = vmatprep.mubr.bf16.mxu0 %v1635_v0 }
  0x4d   :  { %810 = vmatprep.mubr.bf16.mxu1 %v1637_v1 }
  0x53   :  { %714 = vmatmul.mubr.bf16.gmra.mrb[24].mxu0 %v1639_v2 }
  0x54   :  { %811 = vmatmul.mubr.bf16.gmra.mrb[24].mxu1 %v1640_v3  ;;  %721 = vmatprep.mubr.bf16.mxu0 %v1642_v4 }
  0x55   :  { %818 = vmatprep.mubr.bf16.mxu1 %v1644_v5 }
  0x5b   :  { %722 = vmatmul.mubr.bf16.gmra.mrb[28].mxu0 %v1646_v6 }
  0x5c   :  { %819 = vmatmul.mubr.bf16.gmra.mrb[28].mxu1 %v1647_v7  ;;  %1529 = vmatprep.mubr.bf16.mxu0 %v1649_v8 }
  0x5d   :  { %1537 = vmatprep.mubr.bf16.mxu1 %v1650_v9 }
  0x63   :  { %1530 = vmatmul.mubr.bf16.vlgmr.msra.gmra.mrb[32].mxu0 %v1651_v10 }
  0x64   :  { %1538 = vmatmul.mubr.bf16.vlgmr.msra.gmra.mrb[32].mxu1 %v1652_v11  ;;  %1533 = vmatprep.mubr.bf16.mxu0 %v1653_v12 }
  0x65   :  { %1541 = vmatprep.mubr.bf16.mxu1 %v1654_v13 }
  0x6b   :  { %1534 = vmatmul.mubr.bf16.gmra.mrb[36].mxu0 %v1655_v14 }
  0x6c   :  { %1542 = vmatmul.mubr.bf16.gmra.mrb[36].mxu1 %v1656_v15 }
  0xf6   :  { %v1385_v16 = vpop.f32.mrb[0].mxu0 }
  0xf7   :  { %v1449_v17 = vpop.f32.mrb[0].mxu1  ;;  %v1386_v18 = vpop.f32.mrb[1].mxu0 }
  0xf8   :  { %v1387_v19 = vadd.f32 %v1386_v18, %v1385_v16  ;;  %v1450_v20 = vpop.f32.mrb[1].mxu1  ;;  %v1388_v21 = vpop.f32.mrb[2].mxu0 }
  0xf9   :  { %v1451_v22 = vadd.f32 %v1450_v20, %v1449_v17  ;;  %v1452_v23 = vpop.f32.mrb[2].mxu1  ;;  %v1389_v24 = vpop.f32.mrb[3].mxu0 }
  0xfa   :  { %v1390_v25 = vadd.f32 %v1389_v24, %v1388_v21  ;;  %v1453_v26 = vpop.f32.mrb[3].mxu1 }
  0xfb   :  { %v1454_v27 = vadd.f32 %v1453_v26, %v1452_v23  ;;  %v1927_v28 = vadd.f32 %v1451_v22, %v1387_v19 }
  0xfd   :  { %v1929_v29 = vadd.f32 %v1454_v27, %v1390_v25 }
  0xfe   :  { %v1391_v30 = vpop.f32.mrb[4].mxu0 }
  0xff   :  { %v1455_v31 = vpop.f32.mrb[4].mxu1  ;;  %v1392_v32 = vpop.f32.mrb[5].mxu0 }
 0x100   :  { %v1393_v33 = vadd.f32 %v1392_v32, %v1391_v30  ;;  %v1456_v34 = vpop.f32.mrb[5].mxu1  ;;  %v1394_v35 = vpop.f32.mrb[6].mxu0 }
 0x101   :  { %v1457_v36 = vadd.f32 %v1456_v34, %v1455_v31  ;;  %v1458_v37 = vpop.f32.mrb[6].mxu1  ;;  %v1395_v38 = vpop.f32.mrb[7].mxu0 }
 0x102   :  { %v1396_v39 = vadd.f32 %v1395_v38, %v1394_v35  ;;  %v1459_v40 = vpop.f32.mrb[7].mxu1 }
 0x103   :  { %v1460_v41 = vadd.f32 %v1459_v40, %v1458_v37  ;;  %v1931_v42 = vadd.f32 %v1457_v36, %v1393_v33 }
 0x105   :  { %v1933_v43 = vadd.f32 %v1460_v41, %v1396_v39 }
 0x106   :  { %v1397_v44 = vpop.f32.mrb[8].mxu0 }
 0x107   :  { %v1461_v45 = vpop.f32.mrb[8].mxu1  ;;  %v1398_v46 = vpop.f32.mrb[9].mxu0 }
 0x108   :  { %v1399_v47 = vadd.f32 %v1398_v46, %v1397_v44  ;;  %v1462_v48 = vpop.f32.mrb[9].mxu1  ;;  %v1400_v49 = vpop.f32.mrb[10].mxu0 }
 0x109   :  { %v1463_v50 = vadd.f32 %v1462_v48, %v1461_v45  ;;  %v1464_v51 = vpop.f32.mrb[10].mxu1  ;;  %v1401_v52 = vpop.f32.mrb[11].mxu0 }
 0x10a   :  { %v1402_v53 = vadd.f32 %v1401_v52, %v1400_v49  ;;  %v1465_v54 = vpop.f32.mrb[11].mxu1 }
 0x10b   :  { %v1466_v55 = vadd.f32 %v1465_v54, %v1464_v51  ;;  %v1935_v56 = vadd.f32 %v1463_v50, %v1399_v47 }
 0x10d   :  { %v1937_v57 = vadd.f32 %v1466_v55, %v1402_v53 }
 0x10e   :  { %v1403_v58 = vpop.f32.mrb[12].mxu0 }
 0x10f   :  { %v1467_v59 = vpop.f32.mrb[12].mxu1  ;;  %v1404_v60 = vpop.f32.mrb[13].mxu0 }
 0x110   :  { %v1405_v61 = vadd.f32 %v1404_v60, %v1403_v58  ;;  %v1468_v62 = vpop.f32.mrb[13].mxu1  ;;  %v1406_v63 = vpop.f32.mrb[14].mxu0 }
 0x111   :  { %v1469_v0 = vadd.f32 %v1468_v62, %v1467_v59  ;;  %v1470_v1 = vpop.f32.mrb[14].mxu1  ;;  %v1407_v2 = vpop.f32.mrb[15].mxu0 }
 0x112   :  { %v1408_v3 = vadd.f32 %v1407_v2, %v1406_v63  ;;  %v1471_v4 = vpop.f32.mrb[15].mxu1 }
 0x113   :  { %v1472_v5 = vadd.f32 %v1471_v4, %v1470_v1  ;;  %v1939_v6 = vadd.f32 %v1469_v0, %v1405_v61  ;;  %v1961_v4 = vld [vmem:[%s2104_s4 + $0x28] sm:$0xff]  }
 0x115   :  { %v1941_v7 = vadd.f32 %v1472_v5, %v1408_v3  ;;  %v1956_v3 = vld [vmem:[%s2104_s4 + $0x8] sm:$0xff]  }
 0x116   :  { %v1409_v8 = vpop.f32.mrb[16].mxu0 }
 0x117   :  { %v1473_v9 = vpop.f32.mrb[16].mxu1  ;;  %v1410_v10 = vpop.f32.mrb[17].mxu0 }
 0x118   :  { %v1411_v11 = vadd.f32 %v1410_v10, %v1409_v8  ;;  %v1474_v12 = vpop.f32.mrb[17].mxu1  ;;  %v1412_v13 = vpop.f32.mrb[18].mxu0  ;;  %v1966_v8 = vld [vmem:[%s2104_s4] sm:$0xff]  }
 0x119   :  { %v1475_v14 = vadd.f32 %v1474_v12, %v1473_v9  ;;  %v1476_v15 = vpop.f32.mrb[18].mxu1  ;;  %v1413_v16 = vpop.f32.mrb[19].mxu0  ;;  %v1971_v9 = vld [vmem:[%s2104_s4 + $0x20] sm:$0xff]   ;;  %v1289_v12 = vunpack.c.l.bf16 %v1956_v3 }
 0x11a   :  { %v1414_v17 = vadd.f32 %v1413_v16, %v1412_v13  ;;  %v1477_v18 = vpop.f32.mrb[19].mxu1  ;;  %v1305_v13 = vunpack.c.l.bf16 %v1961_v4 }
 0x11b   :  { %v1478_v19 = vadd.f32 %v1477_v18, %v1476_v15  ;;  %v1943_v20 = vadd.f32 %v1475_v14, %v1411_v11  ;;  %v1978_v11 = vld [vmem:[%s2104_s4 + $0x18] sm:$0xff]   ;;  %v1990_v15 = vld [vmem:[%s2104_s4 + $0x10] sm:$0xff]   ;;  %v1997_v18 = vld [vmem:[%s2105_s2] ss:$0 sm:$0xff] }
 0x11c   :  { %v1985_v14 = vld [vmem:[%s2104_s4 + $0x38] sm:$0xff]  }
 0x11d   :  { %v1945_v21 = vadd.f32 %v1478_v19, %v1414_v17  ;;  %v1285_v19 = vunpack.c.l.bf16 %v1966_v8 }
 0x11e   :  { %v1415_v22 = vpop.f32.mrb[20].mxu0 }
 0x11f   :  { %v1479_v23 = vpop.f32.mrb[20].mxu1  ;;  %v1416_v24 = vpop.f32.mrb[21].mxu0 }
 0x120   :  { %v1417_v25 = vadd.f32 %v1416_v24, %v1415_v22  ;;  %v1480_v26 = vpop.f32.mrb[21].mxu1  ;;  %v1418_v27 = vpop.f32.mrb[22].mxu0  ;;  %v1301_v22 = vunpack.c.l.bf16 %v1971_v9  ;;  %v1306_v24 = vunpack.c.h.bf16 %v1961_v4 }
 0x121   :  { %v1481_v30 = vadd.f32 %v1480_v26, %v1479_v23  ;;  %v1482_v31 = vpop.f32.mrb[22].mxu1  ;;  %v1419_v32 = vpop.f32.mrb[23].mxu0  ;;  %v1290_v23 = vunpack.c.h.bf16 %v1956_v3 }
 0x122   :  { %v1420_v33 = vadd.f32 %v1419_v32, %v1418_v27  ;;  %v1483_v34 = vpop.f32.mrb[23].mxu1  ;;  %v1302_v32 = vunpack.c.h.bf16 %v1971_v9 }
 0x123   :  { %v1484_v35 = vadd.f32 %v1483_v34, %v1482_v31  ;;  %v805_v36 = vadd.f32 %v1481_v30, %v1417_v25  ;;  %v2006_v25 = vld [vmem:[%s2104_s4 + $0x30] sm:$0xff]   ;;  %v1286_v31 = vunpack.c.h.bf16 %v1966_v8  ;;  %v2015_v34 = vld [vmem:[%s2106_s3] ss:$0 sm:$0xff] }
 0x125   :  { %v1947_v37 = vadd.f32 %v1484_v35, %v1420_v33  ;;  %v1297_v33 = vunpack.c.l.bf16 %v1978_v11 }
 0x126   :  { %v1421_v38 = vpop.f32.mrb[24].mxu0 }
 0x127   :  { %v1485_v39 = vpop.f32.mrb[24].mxu1  ;;  %v1422_v40 = vpop.f32.mrb[25].mxu0 }
 0x128   :  { %v1423_v41 = vadd.f32 %v1422_v40, %v1421_v38  ;;  %v1486_v44 = vpop.f32.mrb[25].mxu1  ;;  %v1424_v45 = vpop.f32.mrb[26].mxu0 }
 0x129   :  { %v1487_v46 = vadd.f32 %v1486_v44, %v1485_v39  ;;  %v1488_v47 = vpop.f32.mrb[26].mxu1  ;;  %v1425_v48 = vpop.f32.mrb[27].mxu0 }
 0x12a   :  { %v1426_v49 = vadd.f32 %v1425_v48, %v1424_v45  ;;  %v1489_v50 = vpop.f32.mrb[27].mxu1 }
 0x12b   :  { %v1490_v51 = vadd.f32 %v1489_v50, %v1488_v47  ;;  %v1949_v52 = vadd.f32 %v1487_v46, %v1423_v41  ;;  %v1293_v41 = vunpack.c.l.bf16 %v1990_v15 }
 0x12d   :  { %v1951_v53 = vadd.f32 %v1490_v51, %v1426_v49  ;;  %v1309_v49 = vunpack.c.l.bf16 %v2006_v25 }
 0x12e   :  { %v1427_v54 = vpop.f32.mrb[28].mxu0 }
 0x12f   :  { %v1491_v55 = vpop.f32.mrb[28].mxu1  ;;  %v1428_v58 = vpop.f32.mrb[29].mxu0 }
 0x130   :  { %v1429_v59 = vadd.f32 %v1428_v58, %v1427_v54  ;;  %v1492_v60 = vpop.f32.mrb[29].mxu1  ;;  %v1430_v61 = vpop.f32.mrb[30].mxu0 }
 0x131   :  { %v1493_v62 = vadd.f32 %v1492_v60, %v1491_v55  ;;  %v1494_v63 = vpop.f32.mrb[30].mxu1  ;;  %v1431_v0 = vpop.f32.mrb[31].mxu0 }
 0x132   :  { %v1432_v1 = vadd.f32 %v1431_v0, %v1430_v61  ;;  %v1495_v2 = vpop.f32.mrb[31].mxu1 }
 0x133   :  { %v1496_v5 = vadd.f32 %v1495_v2, %v1494_v63  ;;  %v1973_v10 = vadd.f32 %v1493_v62, %v1429_v59 }
 0x135   :  { %v1992_v16 = vadd.f32 %v1496_v5, %v1432_v1 }
 0x136   :  { %v1531_v17 = vpop.f32.mrb[32].mxu0 }
 0x137   :  { %v870_v26 = vadd.f32 %v1531_v17, %v1931_v42  ;;  %v1539_v27 = vpop.f32.mrb[32].mxu1  ;;  %v861_v30 = vpop.f32.mrb[33].mxu0  ;;  %v1313_v42 = vunpack.c.l.bf16 %v1985_v14 }
 0x138   :  { %v902_v35 = vadd.f32 %v1539_v27, %v805_v36  ;;  %v862_v38 = vadd.f32 %v861_v30, %v1927_v28  ;;  %v893_v39 = vpop.f32.mrb[33].mxu1  ;;  %v1532_v40 = vpop.f32.mrb[34].mxu0 }
 0x139   :  { %v984_v44 = vmul.f32 %v1997_v18, %v870_v26  ;;  %v894_v45 = vadd.f32 %v893_v39, %v1943_v20  ;;  %v873_v46 = vadd.f32 %v1532_v40, %v1933_v43  ;;  %v1540_v47 = vpop.f32.mrb[34].mxu1  ;;  %v864_v48 = vpop.f32.mrb[35].mxu0 }
 0x13a   :  { %v992_v36 = vmul.f32 %v1997_v18, %v902_v35  ;;  %v982_v28 = vmul.f32 %v1997_v18, %v862_v38  ;;  %v905_v50 = vadd.f32 %v1540_v47, %v1947_v37  ;;  %v865_v51 = vadd.f32 %v864_v48, %v1929_v29  ;;  %v896_v54 = vpop.f32.mrb[35].mxu1 }
 0x13b   :  { %v1007_v55 = vadd.f32 %v2015_v34, %v984_v44  ;;  %v990_v58 = vmul.f32 %v1997_v18, %v894_v45  ;;  %v985_v20 = vmul.f32 %v1997_v18, %v873_v46  ;;  %v897_v43 = vadd.f32 %v896_v54, %v1945_v21 }
 0x13c   :  { %v1015_v59 = vadd.f32 %v2015_v34, %v992_v36  ;;  %v1005_v60 = vadd.f32 %v2015_v34, %v982_v28  ;;  %v993_v61 = vmul.f32 %v1997_v18, %v905_v50  ;;  %v983_v62 = vmul.f32 %v1997_v18, %v865_v51 }
 0x13d   :  { %v1055_v37 = vadd.f32 %v1289_v12, %v1007_v55  ;;  %v1013_v29 = vadd.f32 %v2015_v34, %v990_v58  ;;  %v1008_v63 = vadd.f32 %v2015_v34, %v985_v20  ;;  %v991_v0 = vmul.f32 %v1997_v18, %v897_v43 }
 0x13e   :  { %v1063_v1 = vadd.f32 %v1305_v13, %v1015_v59  ;;  %v1053_v2 = vadd.f32 %v1285_v19, %v1005_v60  ;;  %v1016_v3 = vadd.f32 %v2015_v34, %v993_v61  ;;  %v1006_v21 = vadd.f32 %v2015_v34, %v983_v62  ;;  %v1535_v4 = vpop.f32.mrb[36].mxu0 }
 0x13f   :  { %v1071_v5 = vmax.f32 %v1055_v37, 0.0  ;;  %v1061_v8 = vadd.f32 %v1301_v22, %v1013_v29  ;;  %v1056_v9 = vadd.f32 %v1290_v23, %v1008_v63  ;;  %v1014_v17 = vadd.f32 %v2015_v34, %v991_v0  ;;  %v1543_v26 = vpop.f32.mrb[36].mxu1  ;;  %v877_v12 = vpop.f32.mrb[37].mxu0 }
 0x140   :  { %v1079_v27 = vmax.f32 %v1063_v1, 0.0  ;;  %v1069_v30 = vmax.f32 %v1053_v2, 0.0  ;;  %v1064_v35 = vadd.f32 %v1306_v24, %v1016_v3  ;;  %v1054_v38 = vadd.f32 %v1286_v31, %v1006_v21  ;;  %v909_v39 = vpop.f32.mrb[37].mxu1  ;;  %v1536_v40 = vpop.f32.mrb[38].mxu0 }
 0x141   :  { %v1077_v13 = vmax.f32 %v1061_v8, 0.0  ;;  %v1072_v19 = vmax.f32 %v1056_v9, 0.0  ;;  %v1062_v44 = vadd.f32 %v1302_v32, %v1014_v17  ;;  %v886_v45 = vadd.f32 %v1535_v4, %v1939_v6  ;;  %v1544_v46 = vpop.f32.mrb[38].mxu1  ;;  %v880_v47 = vpop.f32.mrb[39].mxu0 }
 0x142   :  { %v1080_v48 = vmax.f32 %v1064_v35, 0.0  ;;  %v1070_v22 = vmax.f32 %v1054_v38, 0.0  ;;  %v918_v23 = vadd.f32 %v1543_v26, %v1973_v10  ;;  %v878_v36 = vadd.f32 %v877_v12, %v1935_v56  ;;  %v912_v28 = vpop.f32.mrb[39].mxu1 }
 0x143   :  { %v1323_v50 = vpack.c.bf16 %v1072_v19, %v1071_v5  ;;  %v1078_v51 = vmax.f32 %v1062_v44, 0.0  ;;  %v988_v24 = vmul.f32 %v1997_v18, %v886_v45  ;;  %v910_v31 = vadd.f32 %v909_v39, %v1949_v52 }
 0x144   :  { %v1343_v54 = vpack.c.bf16 %v1080_v48, %v1079_v27  ;;  %v1318_v55 = vpack.c.bf16 %v1070_v22, %v1069_v30  ;;  %v996_v32 = vmul.f32 %v1997_v18, %v918_v23  ;;  %v986_v6 = vmul.f32 %v1997_v18, %v878_v36 }
 0x145   :  { %1362 = vst [vmem:[%s2107_s5 + $0x8] sm:$0xff] %v1323_v50   ;;  %v1338_v10 = vpack.c.bf16 %v1078_v51, %v1077_v13  ;;  %v1011_v56 = vadd.f32 %v2015_v34, %v988_v24  ;;  %v994_v58 = vmul.f32 %v1997_v18, %v910_v31  ;;  %v889_v20 = vadd.f32 %v1536_v40, %v1941_v7 }
 0x146   :  { %1366 = vst [vmem:[%s2107_s5 + $0x28] sm:$0xff] %v1343_v54   ;;  %1319 = vst [vmem:[%s2107_s5] sm:$0xff] %v1318_v55   ;;  %v1019_v52 = vadd.f32 %v2015_v34, %v996_v32  ;;  %v1009_v43 = vadd.f32 %v2015_v34, %v986_v6  ;;  %v921_v59 = vadd.f32 %v1544_v46, %v1992_v16  ;;  %v1298_v62 = vunpack.c.h.bf16 %v1978_v11 }
 0x147   :  { %v881_v60 = vadd.f32 %v880_v47, %v1937_v57  ;;  %1365 = vst [vmem:[%s2107_s5 + $0x20] sm:$0xff] %v1338_v10   ;;  %v1017_v7 = vadd.f32 %v2015_v34, %v994_v58  ;;  %v989_v61 = vmul.f32 %v1997_v18, %v889_v20  ;;  %v913_v37 = vadd.f32 %v912_v28, %v1951_v53 }
 0x148   :  { %v997_v29 = vmul.f32 %v1997_v18, %v921_v59  ;;  %v1314_v63 = vunpack.c.h.bf16 %v1985_v14  ;;  %v1294_v57 = vunpack.c.h.bf16 %v1990_v15  ;;  %v1059_v0 = vadd.f32 %v1297_v33, %v1011_v56 }
 0x149   :  { %v987_v16 = vmul.f32 %v1997_v18, %v881_v60  ;;  %v1012_v1 = vadd.f32 %v2015_v34, %v989_v61  ;;  %v995_v2 = vmul.f32 %v1997_v18, %v913_v37  ;;  %v1310_v3 = vunpack.c.h.bf16 %v2006_v25 }
 0x14a   :  { %v1067_v53 = vadd.f32 %v1313_v42, %v1019_v52  ;;  %v1057_v21 = vadd.f32 %v1293_v41, %v1009_v43  ;;  %v1020_v4 = vadd.f32 %v2015_v34, %v997_v29  ;;  %v1065_v11 = vadd.f32 %v1309_v49, %v1017_v7 }
 0x14b   :  { %v1010_v5 = vadd.f32 %v2015_v34, %v987_v16  ;;  %v1060_v33 = vadd.f32 %v1298_v62, %v1012_v1  ;;  %v1018_v8 = vadd.f32 %v2015_v34, %v995_v2  ;;  %v1075_v17 = vmax.f32 %v1059_v0, 0.0 }
 0x14c   :  { %v1068_v9 = vadd.f32 %v1314_v63, %v1020_v4  ;;  %v1083_v14 = vmax.f32 %v1067_v53, 0.0  ;;  %v1073_v42 = vmax.f32 %v1057_v21, 0.0  ;;  %v1081_v41 = vmax.f32 %v1065_v11, 0.0 }
 0x14d   :  { %v1058_v18 = vadd.f32 %v1294_v57, %v1010_v5  ;;  %v1076_v26 = vmax.f32 %v1060_v33, 0.0  ;;  %v1066_v12 = vadd.f32 %v1310_v3, %v1018_v8 }
 0x14e   :  { %v1084_v27 = vmax.f32 %v1068_v9, 0.0 }
 0x14f   :  { %v1074_v15 = vmax.f32 %v1058_v18, 0.0  ;;  %v1333_v30 = vpack.c.bf16 %v1076_v26, %v1075_v17  ;;  %v1082_v35 = vmax.f32 %v1066_v12, 0.0 }
 0x150   :  { %v1353_v38 = vpack.c.bf16 %v1084_v27, %v1083_v14 }
 0x151   :  { %v1328_v39 = vpack.c.bf16 %v1074_v15, %v1073_v42  ;;  %1364 = vst [vmem:[%s2107_s5 + $0x18] sm:$0xff] %v1333_v30   ;;  %v1348_v25 = vpack.c.bf16 %v1082_v35, %v1081_v41 }
 0x152   :  { %1368 = vst [vmem:[%s2107_s5 + $0x38] sm:$0xff] %v1353_v38  }
 0x153   :  { %1363 = vst [vmem:[%s2107_s5 + $0x10] sm:$0xff] %v1328_v39   ;;  %1367 = vst [vmem:[%s2107_s5 + $0x30] sm:$0xff] %v1348_v25  }

// kernel: resnet_forward.18
= control target key start
LH: loop header
LB: loop body
LE: loop exit
PB: predicated region body
PF: predicated region fallthrough
CT: control target
= control target key end

     0   :  { %s1024_s1 = inlined_call_operand.vmem [shape: bf16[640,128], index: 1, kind: input, shape index: {}]   ;;  %s1025_s0 = inlined_call_operand.vmem [shape: bf16[32,640], index: 0, kind: input, shape index: {}]   ;;  %s1026_s2 = inlined_call_operand.vmem [shape: f32[1,128], index: 2, kind: input, shape index: {}]   ;;  %s1027_s3 = inlined_call_operand.vmem [shape: f32[1,128], index: 3, kind: input, shape index: {}]   ;;  %s1028_s4 = inlined_call_operand.vmem [shape: bf16[32,128], index: 4, kind: output, shape index: {}]  }
   0x1   :  { %v783_v0 = vld [vmem:[%s1024_s1 + $0x40] sm:$0xff]   ;;  %v787_v4 = vld [vmem:[%s1024_s1 + $0x48] sm:$0xff]   ;;  %v791_v8 = vld [vmem:[%s1024_s1 + $0x50] sm:$0xff]  }
   0x2   :  { %v784_v1 = vld [vmem:[%s1024_s1 + $0xc0] sm:$0xff]   ;;  %697 = vmatprep.subr.bf16.mxu0 %v783_v0  ;;  %v788_v5 = vld [vmem:[%s1024_s1 + $0xc8] sm:$0xff]   ;;  %v792_v9 = vld [vmem:[%s1024_s1 + $0xd0] sm:$0xff]  }
   0x3   :  { %v785_v2 = vld [vmem:[%s1024_s1] sm:$0xff]   ;;  %725 = vmatprep.subr.bf16.mxu1 %v784_v1  ;;  %v789_v6 = vld [vmem:[%s1024_s1 + $0x8] sm:$0xff]   ;;  %v793_v10 = vld [vmem:[%s1024_s1 + $0x10] sm:$0xff]  }
   0x4   :  { %v786_v3 = vld [vmem:[%s1024_s1 + $0x80] sm:$0xff]   ;;  %698 = vmatpush3.bf16.msra.mxu0 %v785_v2  ;;  %v790_v7 = vld [vmem:[%s1024_s1 + $0x88] sm:$0xff]   ;;  %v794_v11 = vld [vmem:[%s1024_s1 + $0x90] sm:$0xff]  }
   0x5   :  { %726 = vmatpush3.bf16.msra.mxu1 %v786_v3  ;;  %699 = vmatprep.subr.bf16.mxu0 %v787_v4  ;;  %v795_v12 = vld [vmem:[%s1024_s1 + $0x58] sm:$0xff]   ;;  %v799_v16 = vld [vmem:[%s1024_s1 + $0x60] sm:$0xff]   ;;  %v803_v20 = vld [vmem:[%s1024_s1 + $0x68] sm:$0xff]  }
   0x6   :  { %727 = vmatprep.subr.bf16.mxu1 %v788_v5  ;;  %v796_v13 = vld [vmem:[%s1024_s1 + $0xd8] sm:$0xff]   ;;  %v800_v17 = vld [vmem:[%s1024_s1 + $0xe0] sm:$0xff]   ;;  %v804_v21 = vld [vmem:[%s1024_s1 + $0xe8] sm:$0xff]  }
   0x7   :  { %v797_v14 = vld [vmem:[%s1024_s1 + $0x18] sm:$0xff]   ;;  %v801_v18 = vld [vmem:[%s1024_s1 + $0x20] sm:$0xff]   ;;  %v805_v22 = vld [vmem:[%s1024_s1 + $0x28] sm:$0xff]  }
   0x8   :  { %700 = vmatpush3.bf16.msra.mxu0 %v789_v6  ;;  %v798_v15 = vld [vmem:[%s1024_s1 + $0x98] sm:$0xff]   ;;  %v802_v19 = vld [vmem:[%s1024_s1 + $0xa0] sm:$0xff]   ;;  %v806_v23 = vld [vmem:[%s1024_s1 + $0xa8] sm:$0xff]  }
   0x9   :  { %728 = vmatpush3.bf16.msra.mxu1 %v790_v7  ;;  %701 = vmatprep.subr.bf16.mxu0 %v791_v8  ;;  %v807_v24 = vld [vmem:[%s1024_s1 + $0x70] sm:$0xff]   ;;  %v811_v28 = vld [vmem:[%s1024_s1 + $0x78] sm:$0xff]   ;;  %v820_v35 = vld [vmem:[%s1025_s0 + $0xc] ss:$20 sps:$4 sm:$0xff]  }
   0xa   :  { %729 = vmatprep.subr.bf16.mxu1 %v792_v9  ;;  %v808_v25 = vld [vmem:[%s1024_s1 + $0xf0] sm:$0xff]   ;;  %v812_v29 = vld [vmem:[%s1024_s1 + $0xf8] sm:$0xff]   ;;  %v821_v36 = vld [vmem:[%s1024_s1 + $0x100] sm:$0xff]   ;;  %495 = vmatprep.mubr.bf16.mxu1 %v820_v35 }
   0xb   :  { %v809_v26 = vld [vmem:[%s1024_s1 + $0x30] sm:$0xff]   ;;  %v813_v30 = vld [vmem:[%s1024_s1 + $0x38] sm:$0xff]   ;;  %v822_v37 = vld [vmem:[%s1024_s1 + $0x108] sm:$0xff]  }
   0xc   :  { %702 = vmatpush3.bf16.msra.mxu0 %v793_v10  ;;  %v810_v27 = vld [vmem:[%s1024_s1 + $0xb0] sm:$0xff]   ;;  %v814_v31 = vld [vmem:[%s1024_s1 + $0xb8] sm:$0xff]   ;;  %v826_v39 = vld [vmem:[%s1025_s0 + $0x2c] ss:$20 sps:$4 sm:$0xff]  }
   0xd   :  { %730 = vmatpush3.bf16.msra.mxu1 %v794_v11  ;;  %703 = vmatprep.subr.bf16.mxu0 %v795_v12  ;;  %v815_v32 = vld [vmem:[%s1025_s0] ss:$20 sps:$4 sm:$0xff]   ;;  %v817_v33 = vld [vmem:[%s1025_s0 + $0x4] ss:$20 sps:$4 sm:$0xff]   ;;  %v818_v34 = vld [vmem:[%s1025_s0 + $0x8] ss:$20 sps:$4 sm:$0xff]  }
   0xe   :  { %731 = vmatprep.subr.bf16.mxu1 %v796_v13  ;;  %446 = vmatprep.mubr.bf16.mxu0 %v817_v33  ;;  %v823_v38 = vld [vmem:[%s1024_s1 + $0x110] sm:$0xff]   ;;  %v824_v41 = vld [vmem:[%s1024_s1 + $0x118] sm:$0xff]   ;;  %v825_v45 = vld [vmem:[%s1024_s1 + $0x120] sm:$0xff]  }
   0xf   :  { %v828_v40 = vld [vmem:[%s1025_s0 + $0x34] ss:$20 sps:$4 sm:$0xff]   ;;  %v832_v43 = vld [vmem:[%s1025_s0 + $0x30] ss:$20 sps:$4 sm:$0xff]   ;;  %v834_v48 = vld [vmem:[%s1024_s1 + $0x138] sm:$0xff]  }
  0x10   :  { %704 = vmatpush3.bf16.msra.mxu0 %v797_v14  ;;  %v831_v42 = vld [vmem:[%s1025_s0 + $0x28] ss:$20 sps:$4 sm:$0xff]   ;;  %v835_v44 = vld [vmem:[%s1025_s0 + $0x10] ss:$20 sps:$4 sm:$0xff]   ;;  %v836_v49 = vld [vmem:[%s1025_s0 + $0x38] ss:$20 sps:$4 sm:$0xff]  }
  0x11   :  { %732 = vmatpush3.bf16.msra.mxu1 %v798_v15  ;;  %705 = vmatprep.subr.bf16.mxu0 %v799_v16  ;;  %v830_v46 = vld [vmem:[%s1024_s1 + $0x128] sm:$0xff]   ;;  %v833_v47 = vld [vmem:[%s1024_s1 + $0x130] sm:$0xff]   ;;  %v676_v15 = vld [vmem:[%s1026_s2] ss:$0 sm:$0xff] }
  0x12   :  { %733 = vmatprep.subr.bf16.mxu1 %v800_v17 }
  0x14   :  { %706 = vmatpush3.bf16.msra.mxu0 %v801_v18  ;;  %v677_v18 = vld [vmem:[%s1027_s3] ss:$0 sm:$0xff] }
  0x15   :  { %734 = vmatpush3.bf16.msra.mxu1 %v802_v19  ;;  %707 = vmatprep.subr.bf16.mxu0 %v803_v20 }
  0x16   :  { %735 = vmatprep.subr.bf16.mxu1 %v804_v21 }
  0x18   :  { %708 = vmatpush3.bf16.msra.mxu0 %v805_v22 }
  0x19   :  { %736 = vmatpush3.bf16.msra.mxu1 %v806_v23  ;;  %709 = vmatprep.subr.bf16.mxu0 %v807_v24 }
  0x1a   :  { %737 = vmatprep.subr.bf16.mxu1 %v808_v25 }
  0x1c   :  { %710 = vmatpush3.bf16.msra.mxu0 %v809_v26 }
  0x1d   :  { %738 = vmatpush3.bf16.msra.mxu1 %v810_v27  ;;  %711 = vmatprep.subr.bf16.mxu0 %v811_v28 }
  0x1e   :  { %739 = vmatprep.subr.bf16.mxu1 %v812_v29 }
  0x20   :  { %712 = vmatpush3.bf16.msra.mxu0 %v813_v30 }
  0x21   :  { %740 = vmatpush3.bf16.msra.mxu1 %v814_v31  ;;  %763 = vmatprep.subr.bf16.mxu0 %v821_v36 }
  0x23   :  { %447 = vmatmul.mubr.bf16.vlgmr.msra.gmra.mrb[0].mxu0 %v815_v32 }
  0x24   :  { %496 = vmatmul.mubr.bf16.vlgmr.msra.gmra.mrb[0].mxu1 %v818_v34  ;;  %764 = vmatpush3.bf16.msra.mxu0 %v821_v36 }
  0x25   :  { %765 = vmatprep.subr.bf16.mxu0 %v822_v37  ;;  %454 = vmatprep.mubr.bf16.mxu0 %v826_v39 }
  0x26   :  { %503 = vmatprep.mubr.bf16.mxu1 %v828_v40 }
  0x28   :  { %766 = vmatpush3.bf16.msra.mxu0 %v822_v37 }
  0x29   :  { %767 = vmatprep.subr.bf16.mxu0 %v823_v38 }
  0x2b   :  { %455 = vmatmul.mubr.bf16.gmra.mrb[4].mxu0 %v831_v42 }
  0x2c   :  { %504 = vmatmul.mubr.bf16.gmra.mrb[4].mxu1 %v832_v43  ;;  %768 = vmatpush3.bf16.msra.mxu0 %v823_v38 }
  0x2d   :  { %769 = vmatprep.subr.bf16.mxu0 %v824_v41  ;;  %779 = vmatprep.mubr.bf16.mxu0 %v835_v44 }
  0x30   :  { %770 = vmatpush3.bf16.msra.mxu0 %v824_v41 }
  0x31   :  { %771 = vmatprep.subr.bf16.mxu0 %v825_v45 }
  0x34   :  { %772 = vmatpush3.bf16.msra.mxu0 %v825_v45 }
  0x35   :  { %773 = vmatprep.subr.bf16.mxu0 %v830_v46 }
  0x38   :  { %774 = vmatpush3.bf16.msra.mxu0 %v830_v46 }
  0x39   :  { %775 = vmatprep.subr.bf16.mxu0 %v833_v47 }
  0x3c   :  { %776 = vmatpush3.bf16.msra.mxu0 %v833_v47 }
  0x3d   :  { %777 = vmatprep.subr.bf16.mxu0 %v834_v48 }
  0x40   :  { %778 = vmatpush3.bf16.msra.mxu0 %v834_v48 }
  0x43   :  { %780 = vmatmul.mubr.bf16.vlgmr.msra.gmra.mrb[8].mxu0 %v836_v49 }
  0xf6   :  { %v713_v50 = vpop.f32.mrb[0].mxu0 }
  0xf7   :  { %v741_v51 = vpop.f32.mrb[0].mxu1  ;;  %v714_v52 = vpop.f32.mrb[1].mxu0 }
  0xf8   :  { %v715_v53 = vadd.f32 %v714_v52, %v713_v50  ;;  %v742_v54 = vpop.f32.mrb[1].mxu1  ;;  %v716_v55 = vpop.f32.mrb[2].mxu0 }
  0xf9   :  { %v743_v56 = vadd.f32 %v742_v54, %v741_v51  ;;  %v744_v57 = vpop.f32.mrb[2].mxu1  ;;  %v717_v58 = vpop.f32.mrb[3].mxu0 }
  0xfa   :  { %v718_v59 = vadd.f32 %v717_v58, %v716_v55  ;;  %v745_v60 = vpop.f32.mrb[3].mxu1 }
  0xfb   :  { %v746_v61 = vadd.f32 %v745_v60, %v744_v57  ;;  %v498_v62 = vadd.f32 %v743_v56, %v715_v53 }
  0xfd   :  { %v501_v63 = vadd.f32 %v746_v61, %v718_v59 }
  0xfe   :  { %v719_v0 = vpop.f32.mrb[4].mxu0 }
  0xff   :  { %v747_v1 = vpop.f32.mrb[4].mxu1  ;;  %v720_v2 = vpop.f32.mrb[5].mxu0 }
 0x100   :  { %v721_v3 = vadd.f32 %v720_v2, %v719_v0  ;;  %v748_v4 = vpop.f32.mrb[5].mxu1  ;;  %v722_v5 = vpop.f32.mrb[6].mxu0 }
 0x101   :  { %v749_v6 = vadd.f32 %v748_v4, %v747_v1  ;;  %v750_v7 = vpop.f32.mrb[6].mxu1  ;;  %v723_v8 = vpop.f32.mrb[7].mxu0 }
 0x102   :  { %v724_v9 = vadd.f32 %v723_v8, %v722_v5  ;;  %v751_v10 = vpop.f32.mrb[7].mxu1 }
 0x103   :  { %v752_v11 = vadd.f32 %v751_v10, %v750_v7  ;;  %v506_v12 = vadd.f32 %v749_v6, %v721_v3 }
 0x105   :  { %v509_v13 = vadd.f32 %v752_v11, %v724_v9 }
 0x116   :  { %v781_v14 = vpop.f32.mrb[8].mxu0 }
 0x117   :  { %v555_v16 = vadd.f32 %v781_v14, %v506_v12  ;;  %v546_v17 = vpop.f32.mrb[9].mxu0 }
 0x118   :  { %v547_v19 = vadd.f32 %v546_v17, %v498_v62  ;;  %v782_v20 = vpop.f32.mrb[10].mxu0 }
 0x119   :  { %v585_v21 = vmul.f32 %v676_v15, %v555_v16  ;;  %v558_v22 = vadd.f32 %v782_v20, %v509_v13  ;;  %v549_v23 = vpop.f32.mrb[11].mxu0 }
 0x11a   :  { %v583_v24 = vmul.f32 %v676_v15, %v547_v19  ;;  %v550_v25 = vadd.f32 %v549_v23, %v501_v63 }
 0x11b   :  { %v596_v26 = vadd.f32 %v677_v18, %v585_v21  ;;  %v586_v27 = vmul.f32 %v676_v15, %v558_v22 }
 0x11c   :  { %v594_v28 = vadd.f32 %v677_v18, %v583_v24  ;;  %v584_v29 = vmul.f32 %v676_v15, %v550_v25 }
 0x11d   :  { %v597_v30 = vadd.f32 %v677_v18, %v586_v27  ;;  %v600_v32 = vmax.f32 %v596_v26, 0.0 }
 0x11e   :  { %v595_v31 = vadd.f32 %v677_v18, %v584_v29  ;;  %v598_v34 = vmax.f32 %v594_v28, 0.0 }
 0x11f   :  { %v601_v33 = vmax.f32 %v597_v30, 0.0 }
 0x120   :  { %v599_v35 = vmax.f32 %v595_v31, 0.0 }
 0x121   :  { %v694_v36 = vpack.c.bf16 %v601_v33, %v600_v32 }
 0x122   :  { %v689_v37 = vpack.c.bf16 %v599_v35, %v598_v34 }
 0x123   :  { %696 = vst [vmem:[%s1028_s4 + $0x8] sm:$0xff] %v694_v36  }
 0x124   :  { %690 = vst [vmem:[%s1028_s4] sm:$0xff] %v689_v37  }

// kernel: resnet_forward.19
= control target key start
LH: loop header
LB: loop body
LE: loop exit
PB: predicated region body
PF: predicated region fallthrough
CT: control target
= control target key end

     0   :  { %s358_s1 = inlined_call_operand.vmem [shape: bf16[128,128], index: 1, kind: input, shape index: {}]   ;;  %s359_s0 = inlined_call_operand.vmem [shape: bf16[32,128], index: 0, kind: input, shape index: {}]   ;;  %s360_s2 = inlined_call_operand.vmem [shape: f32[1,128], index: 2, kind: input, shape index: {}]   ;;  %s361_s3 = inlined_call_operand.vmem [shape: f32[1,128], index: 3, kind: input, shape index: {}]   ;;  %s362_s4 = inlined_call_operand.vmem [shape: bf16[32,128], index: 4, kind: output, shape index: {}]  }
   0x1   :  { %v281_v0 = vld [vmem:[%s358_s1] sm:$0xff]   ;;  %v282_v1 = vld [vmem:[%s358_s1 + $0x8] sm:$0xff]   ;;  %v283_v2 = vld [vmem:[%s358_s1 + $0x10] sm:$0xff]  }
   0x2   :  { %261 = vmatprep.subr.bf16.mxu0 %v281_v0  ;;  %v284_v3 = vld [vmem:[%s358_s1 + $0x18] sm:$0xff]   ;;  %v289_v4 = vld [vmem:[%s359_s0] sm:$0xff]   ;;  %v286_v6 = vld [vmem:[%s358_s1 + $0x28] sm:$0xff]  }
   0x3   :  { %262 = vmatpush3.bf16.msra.mxu0 %v281_v0  ;;  %277 = vmatprep.mubr.bf16.mxu0 %v289_v4  ;;  %v285_v5 = vld [vmem:[%s358_s1 + $0x20] sm:$0xff]   ;;  %v287_v7 = vld [vmem:[%s358_s1 + $0x30] sm:$0xff]   ;;  %v288_v8 = vld [vmem:[%s358_s1 + $0x38] sm:$0xff]  }
   0x4   :  { %263 = vmatprep.subr.bf16.mxu0 %v282_v1  ;;  %v290_v9 = vld [vmem:[%s359_s0 + $0x8] sm:$0xff]   ;;  %v230_v10 = vld [vmem:[%s360_s2] ss:$0 sm:$0xff] }
   0x5   :  { %v231_v14 = vld [vmem:[%s361_s3] ss:$0 sm:$0xff] }
   0x7   :  { %264 = vmatpush3.bf16.msra.mxu0 %v282_v1 }
   0x8   :  { %265 = vmatprep.subr.bf16.mxu0 %v283_v2 }
   0xb   :  { %266 = vmatpush3.bf16.msra.mxu0 %v283_v2 }
   0xc   :  { %267 = vmatprep.subr.bf16.mxu0 %v284_v3 }
   0xf   :  { %268 = vmatpush3.bf16.msra.mxu0 %v284_v3 }
  0x10   :  { %269 = vmatprep.subr.bf16.mxu0 %v285_v5 }
  0x13   :  { %270 = vmatpush3.bf16.msra.mxu0 %v285_v5 }
  0x14   :  { %271 = vmatprep.subr.bf16.mxu0 %v286_v6 }
  0x17   :  { %272 = vmatpush3.bf16.msra.mxu0 %v286_v6 }
  0x18   :  { %273 = vmatprep.subr.bf16.mxu0 %v287_v7 }
  0x1b   :  { %274 = vmatpush3.bf16.msra.mxu0 %v287_v7 }
  0x1c   :  { %275 = vmatprep.subr.bf16.mxu0 %v288_v8 }
  0x1f   :  { %276 = vmatpush3.bf16.msra.mxu0 %v288_v8 }
  0x22   :  { %278 = vmatmul.mubr.bf16.vlgmr.msra.gmra.mrb[0].mxu0 %v290_v9 }
  0xf5   :  { %v279_v11 = vpop.f32.mrb[0].mxu0 }
  0xf6   :  { %v183_v12 = vmul.f32 %v279_v11, %v230_v10  ;;  %v144_v13 = vpop.f32.mrb[1].mxu0 }
  0xf7   :  { %v181_v15 = vmul.f32 %v230_v10, %v144_v13  ;;  %v280_v16 = vpop.f32.mrb[2].mxu0 }
  0xf8   :  { %v184_v17 = vmul.f32 %v280_v16, %v230_v10  ;;  %v147_v18 = vpop.f32.mrb[3].mxu0  ;;  %v194_v20 = vadd.f32 %v231_v14, %v183_v12 }
  0xf9   :  { %v182_v19 = vmul.f32 %v230_v10, %v147_v18  ;;  %v192_v22 = vadd.f32 %v231_v14, %v181_v15 }
  0xfa   :  { %v195_v21 = vadd.f32 %v231_v14, %v184_v17 }
  0xfb   :  { %v193_v23 = vadd.f32 %v231_v14, %v182_v19 }
  0xfc   :  { %v248_v24 = vpack.c.bf16 %v195_v21, %v194_v20 }
  0xfd   :  { %v243_v25 = vpack.c.bf16 %v193_v23, %v192_v22 }
  0xfe   :  { %250 = vst [vmem:[%s362_s4 + $0x8] sm:$0xff] %v248_v24  }
  0xff   :  { %244 = vst [vmem:[%s362_s4] sm:$0xff] %v243_v25  }

// kernel: resnet_forward.20
= control target key start
LH: loop header
LB: loop body
LE: loop exit
PB: predicated region body
PF: predicated region fallthrough
CT: control target
= control target key end

     0   :  { %s1721_s1 = inlined_call_operand.vmem [shape: bf16[1152,128], index: 1, kind: input, shape index: {}]   ;;  %s1722_s0 = inlined_call_operand.vmem [shape: bf16[32,1152], index: 0, kind: input, shape index: {}]   ;;  %s1723_s2 = inlined_call_operand.vmem [shape: f32[1,128], index: 2, kind: input, shape index: {}]   ;;  %s1724_s4 = inlined_call_operand.vmem [shape: bf16[32,128], index: 4, kind: input, shape index: {}]   ;;  %s1725_s3 = inlined_call_operand.vmem [shape: f32[1,128], index: 3, kind: input, shape index: {}]   ;;  %s1726_s5 = inlined_call_operand.vmem [shape: bf16[32,128], index: 5, kind: output, shape index: {}]  }
   0x1   :  { %v1305_v0 = vld [vmem:[%s1721_s1 + $0x40] sm:$0xff]   ;;  %v1309_v4 = vld [vmem:[%s1721_s1 + $0x48] sm:$0xff]   ;;  %v1313_v8 = vld [vmem:[%s1721_s1 + $0x50] sm:$0xff]  }
   0x2   :  { %v1306_v1 = vld [vmem:[%s1721_s1 + $0xc0] sm:$0xff]   ;;  %1163 = vmatprep.subr.bf16.mxu0 %v1305_v0  ;;  %v1310_v5 = vld [vmem:[%s1721_s1 + $0xc8] sm:$0xff]   ;;  %v1314_v9 = vld [vmem:[%s1721_s1 + $0xd0] sm:$0xff]  }
   0x3   :  { %v1307_v2 = vld [vmem:[%s1721_s1] sm:$0xff]   ;;  %1191 = vmatprep.subr.bf16.mxu1 %v1306_v1  ;;  %v1311_v6 = vld [vmem:[%s1721_s1 + $0x8] sm:$0xff]   ;;  %v1315_v10 = vld [vmem:[%s1721_s1 + $0x10] sm:$0xff]  }
   0x4   :  { %v1308_v3 = vld [vmem:[%s1721_s1 + $0x80] sm:$0xff]   ;;  %1164 = vmatpush3.bf16.msra.mxu0 %v1307_v2  ;;  %v1312_v7 = vld [vmem:[%s1721_s1 + $0x88] sm:$0xff]   ;;  %v1316_v11 = vld [vmem:[%s1721_s1 + $0x90] sm:$0xff]  }
   0x5   :  { %1192 = vmatpush3.bf16.msra.mxu1 %v1308_v3  ;;  %1165 = vmatprep.subr.bf16.mxu0 %v1309_v4  ;;  %v1317_v12 = vld [vmem:[%s1721_s1 + $0x58] sm:$0xff]   ;;  %v1321_v16 = vld [vmem:[%s1721_s1 + $0x60] sm:$0xff]   ;;  %v1325_v20 = vld [vmem:[%s1721_s1 + $0x68] sm:$0xff]  }
   0x6   :  { %1193 = vmatprep.subr.bf16.mxu1 %v1310_v5  ;;  %v1318_v13 = vld [vmem:[%s1721_s1 + $0xd8] sm:$0xff]   ;;  %v1322_v17 = vld [vmem:[%s1721_s1 + $0xe0] sm:$0xff]   ;;  %v1326_v21 = vld [vmem:[%s1721_s1 + $0xe8] sm:$0xff]  }
   0x7   :  { %v1319_v14 = vld [vmem:[%s1721_s1 + $0x18] sm:$0xff]   ;;  %v1323_v18 = vld [vmem:[%s1721_s1 + $0x20] sm:$0xff]   ;;  %v1327_v22 = vld [vmem:[%s1721_s1 + $0x28] sm:$0xff]  }
   0x8   :  { %1166 = vmatpush3.bf16.msra.mxu0 %v1311_v6  ;;  %v1320_v15 = vld [vmem:[%s1721_s1 + $0x98] sm:$0xff]   ;;  %v1324_v19 = vld [vmem:[%s1721_s1 + $0xa0] sm:$0xff]   ;;  %v1328_v23 = vld [vmem:[%s1721_s1 + $0xa8] sm:$0xff]  }
   0x9   :  { %1194 = vmatpush3.bf16.msra.mxu1 %v1312_v7  ;;  %1167 = vmatprep.subr.bf16.mxu0 %v1313_v8  ;;  %v1329_v24 = vld [vmem:[%s1721_s1 + $0x70] sm:$0xff]   ;;  %v1333_v28 = vld [vmem:[%s1721_s1 + $0x78] sm:$0xff]   ;;  %v1337_v32 = vld [vmem:[%s1722_s0] ss:$36 sps:$4 sm:$0xff]  }
   0xa   :  { %1195 = vmatprep.subr.bf16.mxu1 %v1314_v9  ;;  %v1330_v25 = vld [vmem:[%s1721_s1 + $0xf0] sm:$0xff]   ;;  %v1334_v29 = vld [vmem:[%s1721_s1 + $0xf8] sm:$0xff]   ;;  %v1339_v33 = vld [vmem:[%s1722_s0 + $0x4] ss:$36 sps:$4 sm:$0xff]  }
   0xb   :  { %v1331_v26 = vld [vmem:[%s1721_s1 + $0x30] sm:$0xff]   ;;  %v1335_v30 = vld [vmem:[%s1721_s1 + $0x38] sm:$0xff]   ;;  %v1340_v34 = vld [vmem:[%s1722_s0 + $0x8] ss:$36 sps:$4 sm:$0xff]   ;;  %753 = vmatprep.mubr.bf16.mxu0 %v1339_v33 }
   0xc   :  { %1168 = vmatpush3.bf16.msra.mxu0 %v1315_v10  ;;  %v1332_v27 = vld [vmem:[%s1721_s1 + $0xb0] sm:$0xff]   ;;  %v1336_v31 = vld [vmem:[%s1721_s1 + $0xb8] sm:$0xff]   ;;  %v1343_v36 = vld [vmem:[%s1721_s1 + $0x140] sm:$0xff]  }
   0xd   :  { %1196 = vmatpush3.bf16.msra.mxu1 %v1316_v11  ;;  %1169 = vmatprep.subr.bf16.mxu0 %v1317_v12  ;;  %v1342_v35 = vld [vmem:[%s1722_s0 + $0xc] ss:$36 sps:$4 sm:$0xff]   ;;  %v1344_v37 = vld [vmem:[%s1721_s1 + $0x100] sm:$0xff]   ;;  %v1355_v48 = vld [vmem:[%s1721_s1 + $0x158] sm:$0xff]  }
   0xe   :  { %1197 = vmatprep.subr.bf16.mxu1 %v1318_v13  ;;  %802 = vmatprep.mubr.bf16.mxu1 %v1342_v35  ;;  %v1345_v38 = vld [vmem:[%s1721_s1 + $0x1c0] sm:$0xff]   ;;  %v1347_v40 = vld [vmem:[%s1721_s1 + $0x148] sm:$0xff]   ;;  %v1351_v44 = vld [vmem:[%s1721_s1 + $0x150] sm:$0xff]  }
   0xf   :  { %v1346_v39 = vld [vmem:[%s1721_s1 + $0x180] sm:$0xff]   ;;  %v1348_v41 = vld [vmem:[%s1721_s1 + $0x108] sm:$0xff]   ;;  %v1352_v45 = vld [vmem:[%s1721_s1 + $0x110] sm:$0xff]  }
  0x10   :  { %1170 = vmatpush3.bf16.msra.mxu0 %v1319_v14  ;;  %v1349_v42 = vld [vmem:[%s1721_s1 + $0x1c8] sm:$0xff]   ;;  %v1353_v46 = vld [vmem:[%s1721_s1 + $0x1d0] sm:$0xff]   ;;  %v1356_v49 = vld [vmem:[%s1721_s1 + $0x118] sm:$0xff]  }
  0x11   :  { %1198 = vmatpush3.bf16.msra.mxu1 %v1320_v15  ;;  %1171 = vmatprep.subr.bf16.mxu0 %v1321_v16  ;;  %v1350_v43 = vld [vmem:[%s1721_s1 + $0x188] sm:$0xff]   ;;  %v1354_v47 = vld [vmem:[%s1721_s1 + $0x190] sm:$0xff]   ;;  %v1357_v50 = vld [vmem:[%s1721_s1 + $0x1d8] sm:$0xff]  }
  0x12   :  { %1199 = vmatprep.subr.bf16.mxu1 %v1322_v17  ;;  %v1358_v51 = vld [vmem:[%s1721_s1 + $0x198] sm:$0xff]   ;;  %v1359_v52 = vld [vmem:[%s1721_s1 + $0x160] sm:$0xff]   ;;  %v1363_v56 = vld [vmem:[%s1721_s1 + $0x168] sm:$0xff]  }
  0x13   :  { %v1360_v53 = vld [vmem:[%s1721_s1 + $0x120] sm:$0xff]   ;;  %v1364_v57 = vld [vmem:[%s1722_s0 + $0x4c] ss:$36 sps:$4 sm:$0xff]   ;;  %v1366_v58 = vld [vmem:[%s1722_s0 + $0x54] ss:$36 sps:$4 sm:$0xff]  }
  0x14   :  { %1172 = vmatpush3.bf16.msra.mxu0 %v1323_v18  ;;  %v1361_v54 = vld [vmem:[%s1721_s1 + $0x1e0] sm:$0xff]   ;;  %v1368_v59 = vld [vmem:[%s1721_s1 + $0x128] sm:$0xff]   ;;  %v1370_v61 = vld [vmem:[%s1722_s0 + $0x50] ss:$36 sps:$4 sm:$0xff]  }
  0x15   :  { %1200 = vmatpush3.bf16.msra.mxu1 %v1324_v19  ;;  %1173 = vmatprep.subr.bf16.mxu0 %v1325_v20  ;;  %v1362_v55 = vld [vmem:[%s1721_s1 + $0x1a0] sm:$0xff]   ;;  %v1369_v60 = vld [vmem:[%s1722_s0 + $0x48] ss:$36 sps:$4 sm:$0xff]   ;;  %v1373_v0 = vld [vmem:[%s1721_s1 + $0x170] sm:$0xff]  }
  0x16   :  { %1201 = vmatprep.subr.bf16.mxu1 %v1326_v21  ;;  %v1371_v62 = vld [vmem:[%s1721_s1 + $0x1e8] sm:$0xff]   ;;  %v1374_v1 = vld [vmem:[%s1721_s1 + $0x130] sm:$0xff]   ;;  %v1377_v4 = vld [vmem:[%s1721_s1 + $0x178] sm:$0xff]  }
  0x17   :  { %v1372_v63 = vld [vmem:[%s1721_s1 + $0x1a8] sm:$0xff]   ;;  %v1375_v2 = vld [vmem:[%s1721_s1 + $0x1f0] sm:$0xff]   ;;  %v1378_v5 = vld [vmem:[%s1721_s1 + $0x138] sm:$0xff]  }
  0x18   :  { %1174 = vmatpush3.bf16.msra.mxu0 %v1327_v22  ;;  %v1376_v3 = vld [vmem:[%s1721_s1 + $0x1b0] sm:$0xff]   ;;  %v1379_v6 = vld [vmem:[%s1721_s1 + $0x1f8] sm:$0xff]   ;;  %v1384_v10 = vld [vmem:[%s1721_s1 + $0x200] sm:$0xff]  }
  0x19   :  { %1202 = vmatpush3.bf16.msra.mxu1 %v1328_v23  ;;  %1175 = vmatprep.subr.bf16.mxu0 %v1329_v24  ;;  %v1380_v7 = vld [vmem:[%s1722_s0 + $0x10] ss:$36 sps:$4 sm:$0xff]   ;;  %v1383_v9 = vld [vmem:[%s1721_s1 + $0x1b8] sm:$0xff]   ;;  %v1388_v13 = vld [vmem:[%s1721_s1 + $0x208] sm:$0xff]  }
  0x1a   :  { %1203 = vmatprep.subr.bf16.mxu1 %v1330_v25  ;;  %v1382_v8 = vld [vmem:[%s1722_s0 + $0x14] ss:$36 sps:$4 sm:$0xff]   ;;  %v1387_v12 = vld [vmem:[%s1722_s0 + $0x1c] ss:$36 sps:$4 sm:$0xff]   ;;  %v1393_v17 = vld [vmem:[%s1722_s0 + $0x64] ss:$36 sps:$4 sm:$0xff]  }
  0x1b   :  { %v1385_v11 = vld [vmem:[%s1722_s0 + $0x18] ss:$36 sps:$4 sm:$0xff]   ;;  %v1392_v16 = vld [vmem:[%s1721_s1 + $0x210] sm:$0xff]   ;;  %v1395_v18 = vld [vmem:[%s1722_s0 + $0x60] ss:$36 sps:$4 sm:$0xff]  }
  0x1c   :  { %1176 = vmatpush3.bf16.msra.mxu0 %v1331_v26  ;;  %v1389_v14 = vld [vmem:[%s1722_s0 + $0x5c] ss:$36 sps:$4 sm:$0xff]   ;;  %v1398_v22 = vld [vmem:[%s1721_s1 + $0x228] sm:$0xff]   ;;  %v1399_v23 = vld [vmem:[%s1721_s1 + $0x230] sm:$0xff]  }
  0x1d   :  { %1204 = vmatpush3.bf16.msra.mxu1 %v1332_v27  ;;  %1177 = vmatprep.subr.bf16.mxu0 %v1333_v28  ;;  %v1391_v15 = vld [vmem:[%s1722_s0 + $0x58] ss:$36 sps:$4 sm:$0xff]   ;;  %v1397_v20 = vld [vmem:[%s1721_s1 + $0x220] sm:$0xff]   ;;  %v1402_v25 = vld [vmem:[%s1722_s0 + $0x68] ss:$36 sps:$4 sm:$0xff]  }
  0x1e   :  { %1205 = vmatprep.subr.bf16.mxu1 %v1334_v29  ;;  %v1396_v19 = vld [vmem:[%s1721_s1 + $0x218] sm:$0xff]   ;;  %v1401_v21 = vld [vmem:[%s1722_s0 + $0x20] ss:$36 sps:$4 sm:$0xff]  }
  0x1f   :  { %v1400_v24 = vld [vmem:[%s1721_s1 + $0x238] sm:$0xff]  }
  0x20   :  { %1178 = vmatpush3.bf16.msra.mxu0 %v1335_v30 }
  0x21   :  { %1206 = vmatpush3.bf16.msra.mxu1 %v1336_v31  ;;  %1219 = vmatprep.subr.bf16.mxu0 %v1343_v36 }
  0x22   :  { %1247 = vmatprep.subr.bf16.mxu1 %v1345_v38 }
  0x23   :  { %754 = vmatmul.mubr.bf16.vlgmr.msra.gmra.mrb[0].mxu0 %v1337_v32 }
  0x24   :  { %803 = vmatmul.mubr.bf16.vlgmr.msra.gmra.mrb[0].mxu1 %v1340_v34  ;;  %1220 = vmatpush3.bf16.msra.mxu0 %v1344_v37 }
  0x25   :  { %1248 = vmatpush3.bf16.msra.mxu1 %v1346_v39  ;;  %1221 = vmatprep.subr.bf16.mxu0 %v1347_v40 }
  0x26   :  { %1249 = vmatprep.subr.bf16.mxu1 %v1349_v42  ;;  %761 = vmatprep.mubr.bf16.mxu0 %v1364_v57 }
  0x27   :  { %810 = vmatprep.mubr.bf16.mxu1 %v1366_v58 }
  0x28   :  { %1222 = vmatpush3.bf16.msra.mxu0 %v1348_v41 }
  0x29   :  { %1250 = vmatpush3.bf16.msra.mxu1 %v1350_v43  ;;  %1223 = vmatprep.subr.bf16.mxu0 %v1351_v44 }
  0x2a   :  { %1251 = vmatprep.subr.bf16.mxu1 %v1353_v46 }
  0x2b   :  { %762 = vmatmul.mubr.bf16.gmra.mrb[4].mxu0 %v1369_v60 }
  0x2c   :  { %1224 = vmatpush3.bf16.msra.mxu0 %v1352_v45  ;;  %811 = vmatmul.mubr.bf16.gmra.mrb[4].mxu1 %v1370_v61 }
  0x2d   :  { %1252 = vmatpush3.bf16.msra.mxu1 %v1354_v47  ;;  %1225 = vmatprep.subr.bf16.mxu0 %v1355_v48 }
  0x2e   :  { %1253 = vmatprep.subr.bf16.mxu1 %v1357_v50  ;;  %851 = vmatprep.mubr.bf16.mxu0 %v1382_v8 }
  0x2f   :  { %900 = vmatprep.mubr.bf16.mxu1 %v1387_v12 }
  0x30   :  { %1226 = vmatpush3.bf16.msra.mxu0 %v1356_v49 }
  0x31   :  { %1254 = vmatpush3.bf16.msra.mxu1 %v1358_v51  ;;  %1227 = vmatprep.subr.bf16.mxu0 %v1359_v52 }
  0x32   :  { %1255 = vmatprep.subr.bf16.mxu1 %v1361_v54 }
  0x34   :  { %1228 = vmatpush3.bf16.msra.mxu0 %v1360_v53 }
  0x35   :  { %1256 = vmatpush3.bf16.msra.mxu1 %v1362_v55  ;;  %1229 = vmatprep.subr.bf16.mxu0 %v1363_v56 }
  0x36   :  { %1257 = vmatprep.subr.bf16.mxu1 %v1371_v62 }
  0x38   :  { %1230 = vmatpush3.bf16.msra.mxu0 %v1368_v59 }
  0x39   :  { %1258 = vmatpush3.bf16.msra.mxu1 %v1372_v63  ;;  %1231 = vmatprep.subr.bf16.mxu0 %v1373_v0 }
  0x3a   :  { %1259 = vmatprep.subr.bf16.mxu1 %v1375_v2 }
  0x3c   :  { %1232 = vmatpush3.bf16.msra.mxu0 %v1374_v1 }
  0x3d   :  { %1260 = vmatpush3.bf16.msra.mxu1 %v1376_v3  ;;  %1233 = vmatprep.subr.bf16.mxu0 %v1377_v4 }
  0x3e   :  { %1261 = vmatprep.subr.bf16.mxu1 %v1379_v6 }
  0x40   :  { %1234 = vmatpush3.bf16.msra.mxu0 %v1378_v5 }
  0x41   :  { %1262 = vmatpush3.bf16.msra.mxu1 %v1383_v9  ;;  %1285 = vmatprep.subr.bf16.mxu0 %v1384_v10 }
  0x43   :  { %852 = vmatmul.mubr.bf16.vlgmr.msra.gmra.mrb[8].mxu0 %v1380_v7 }
  0x44   :  { %1286 = vmatpush3.bf16.msra.mxu0 %v1384_v10  ;;  %901 = vmatmul.mubr.bf16.vlgmr.msra.gmra.mrb[8].mxu1 %v1385_v11 }
  0x45   :  { %1287 = vmatprep.subr.bf16.mxu0 %v1388_v13  ;;  %859 = vmatprep.mubr.bf16.mxu0 %v1389_v14 }
  0x46   :  { %908 = vmatprep.mubr.bf16.mxu1 %v1393_v17 }
  0x48   :  { %1288 = vmatpush3.bf16.msra.mxu0 %v1388_v13 }
  0x49   :  { %1289 = vmatprep.subr.bf16.mxu0 %v1392_v16 }
  0x4b   :  { %860 = vmatmul.mubr.bf16.gmra.mrb[12].mxu0 %v1391_v15 }
  0x4c   :  { %1290 = vmatpush3.bf16.msra.mxu0 %v1392_v16  ;;  %909 = vmatmul.mubr.bf16.gmra.mrb[12].mxu1 %v1395_v18 }
  0x4d   :  { %1291 = vmatprep.subr.bf16.mxu0 %v1396_v19  ;;  %1301 = vmatprep.mubr.bf16.mxu0 %v1401_v21 }
  0x50   :  { %1292 = vmatpush3.bf16.msra.mxu0 %v1396_v19 }
  0x51   :  { %1293 = vmatprep.subr.bf16.mxu0 %v1397_v20 }
  0x54   :  { %1294 = vmatpush3.bf16.msra.mxu0 %v1397_v20 }
  0x55   :  { %1295 = vmatprep.subr.bf16.mxu0 %v1398_v22 }
  0x58   :  { %1296 = vmatpush3.bf16.msra.mxu0 %v1398_v22 }
  0x59   :  { %1297 = vmatprep.subr.bf16.mxu0 %v1399_v23 }
  0x5c   :  { %1298 = vmatpush3.bf16.msra.mxu0 %v1399_v23  ;;  %v1133_v23 = vld [vmem:[%s1723_s2] ss:$0 sm:$0xff] }
  0x5d   :  { %1299 = vmatprep.subr.bf16.mxu0 %v1400_v24 }
  0x60   :  { %1300 = vmatpush3.bf16.msra.mxu0 %v1400_v24  ;;  %v1161_v24 = vld [vmem:[%s1724_s4 + $0x8] sm:$0xff]  }
  0x63   :  { %1302 = vmatmul.mubr.bf16.vlgmr.msra.gmra.mrb[16].mxu0 %v1402_v25 }
  0xf6   :  { %v1179_v26 = vpop.f32.mrb[0].mxu0 }
  0xf7   :  { %v1207_v27 = vpop.f32.mrb[0].mxu1  ;;  %v1180_v28 = vpop.f32.mrb[1].mxu0 }
  0xf8   :  { %v1181_v29 = vadd.f32 %v1180_v28, %v1179_v26  ;;  %v1208_v30 = vpop.f32.mrb[1].mxu1  ;;  %v1182_v31 = vpop.f32.mrb[2].mxu0  ;;  %v1134_v28 = vld [vmem:[%s1725_s3] ss:$0 sm:$0xff] }
  0xf9   :  { %v1209_v32 = vadd.f32 %v1208_v30, %v1207_v27  ;;  %v1210_v33 = vpop.f32.mrb[2].mxu1  ;;  %v1183_v34 = vpop.f32.mrb[3].mxu0  ;;  %v1144_v27 = vld [vmem:[%s1724_s4] sm:$0xff]  }
  0xfa   :  { %v1184_v35 = vadd.f32 %v1183_v34, %v1182_v31  ;;  %v1211_v36 = vpop.f32.mrb[3].mxu1 }
  0xfb   :  { %v805_v37 = vadd.f32 %v1209_v32, %v1181_v29  ;;  %v1212_v38 = vadd.f32 %v1211_v36, %v1210_v33  ;;  %v1149_v32 = vunpack.c.l.bf16 %v1161_v24  ;;  %v1145_v36 = vunpack.c.l.bf16 %v1144_v27 }
  0xfd   :  { %v808_v39 = vadd.f32 %v1212_v38, %v1184_v35 }
  0xfe   :  { %v1185_v40 = vpop.f32.mrb[4].mxu0 }
  0xff   :  { %v1213_v41 = vpop.f32.mrb[4].mxu1  ;;  %v1186_v42 = vpop.f32.mrb[5].mxu0 }
 0x100   :  { %v1214_v43 = vpop.f32.mrb[5].mxu1  ;;  %v1187_v44 = vadd.f32 %v1186_v42, %v1185_v40  ;;  %v1188_v46 = vpop.f32.mrb[6].mxu0  ;;  %v1150_v40 = vunpack.c.h.bf16 %v1161_v24 }
 0x101   :  { %v1215_v45 = vadd.f32 %v1214_v43, %v1213_v41  ;;  %v1216_v47 = vpop.f32.mrb[6].mxu1  ;;  %v1189_v48 = vpop.f32.mrb[7].mxu0  ;;  %v1146_v43 = vunpack.c.h.bf16 %v1144_v27 }
 0x102   :  { %v1217_v49 = vpop.f32.mrb[7].mxu1  ;;  %v1190_v51 = vadd.f32 %v1189_v48, %v1188_v46 }
 0x103   :  { %v813_v50 = vadd.f32 %v1215_v45, %v1187_v44  ;;  %v1218_v52 = vadd.f32 %v1217_v49, %v1216_v47 }
 0x105   :  { %v816_v53 = vadd.f32 %v1218_v52, %v1190_v51 }
 0x116   :  { %v1235_v54 = vpop.f32.mrb[8].mxu0 }
 0x117   :  { %v1236_v55 = vpop.f32.mrb[9].mxu0  ;;  %v1263_v58 = vpop.f32.mrb[8].mxu1 }
 0x118   :  { %v1237_v56 = vadd.f32 %v1236_v55, %v1235_v54  ;;  %v1238_v57 = vpop.f32.mrb[10].mxu0  ;;  %v1264_v62 = vpop.f32.mrb[9].mxu1 }
 0x119   :  { %v1239_v59 = vpop.f32.mrb[11].mxu0  ;;  %v1265_v63 = vadd.f32 %v1264_v62, %v1263_v58  ;;  %v1266_v0 = vpop.f32.mrb[10].mxu1 }
 0x11a   :  { %v854_v60 = vadd.f32 %v1237_v56, %v805_v37  ;;  %v1240_v61 = vadd.f32 %v1239_v59, %v1238_v57  ;;  %v1267_v2 = vpop.f32.mrb[11].mxu1 }
 0x11b   :  { %v1268_v3 = vadd.f32 %v1267_v2, %v1266_v0 }
 0x11c   :  { %v857_v1 = vadd.f32 %v1240_v61, %v808_v39  ;;  %v903_v4 = vadd.f32 %v1265_v63, %v854_v60 }
 0x11e   :  { %v1241_v5 = vpop.f32.mrb[12].mxu0  ;;  %v906_v7 = vadd.f32 %v1268_v3, %v857_v1 }
 0x11f   :  { %v1242_v6 = vpop.f32.mrb[13].mxu0  ;;  %v1269_v10 = vpop.f32.mrb[12].mxu1 }
 0x120   :  { %v1243_v8 = vadd.f32 %v1242_v6, %v1241_v5  ;;  %v1244_v9 = vpop.f32.mrb[14].mxu0  ;;  %v1270_v14 = vpop.f32.mrb[13].mxu1 }
 0x121   :  { %v1245_v11 = vpop.f32.mrb[15].mxu0  ;;  %v1271_v15 = vadd.f32 %v1270_v14, %v1269_v10  ;;  %v1272_v16 = vpop.f32.mrb[14].mxu1 }
 0x122   :  { %v862_v12 = vadd.f32 %v1243_v8, %v813_v50  ;;  %v1246_v13 = vadd.f32 %v1245_v11, %v1244_v9  ;;  %v1273_v18 = vpop.f32.mrb[15].mxu1 }
 0x123   :  { %v1274_v19 = vadd.f32 %v1273_v18, %v1272_v16 }
 0x124   :  { %v865_v17 = vadd.f32 %v1246_v13, %v816_v53  ;;  %v911_v20 = vadd.f32 %v1271_v15, %v862_v12 }
 0x126   :  { %v914_v21 = vadd.f32 %v1274_v19, %v865_v17 }
 0x136   :  { %v1303_v22 = vpop.f32.mrb[16].mxu0 }
 0x137   :  { %v960_v25 = vadd.f32 %v1303_v22, %v911_v20  ;;  %v951_v26 = vpop.f32.mrb[17].mxu0 }
 0x138   :  { %v952_v29 = vadd.f32 %v951_v26, %v903_v4  ;;  %v1304_v30 = vpop.f32.mrb[18].mxu0 }
 0x139   :  { %v990_v31 = vmul.f32 %v1133_v23, %v960_v25  ;;  %v963_v33 = vadd.f32 %v1304_v30, %v914_v21  ;;  %v954_v34 = vpop.f32.mrb[19].mxu0 }
 0x13a   :  { %v988_v35 = vmul.f32 %v1133_v23, %v952_v29  ;;  %v955_v37 = vadd.f32 %v954_v34, %v906_v7 }
 0x13b   :  { %v1001_v38 = vadd.f32 %v1134_v28, %v990_v31  ;;  %v991_v39 = vmul.f32 %v1133_v23, %v963_v33 }
 0x13c   :  { %v999_v41 = vadd.f32 %v1134_v28, %v988_v35  ;;  %v989_v42 = vmul.f32 %v1133_v23, %v955_v37 }
 0x13d   :  { %v1013_v44 = vadd.f32 %v1149_v32, %v1001_v38  ;;  %v1002_v45 = vadd.f32 %v1134_v28, %v991_v39 }
 0x13e   :  { %v1011_v46 = vadd.f32 %v1145_v36, %v999_v41  ;;  %v1000_v47 = vadd.f32 %v1134_v28, %v989_v42 }
 0x13f   :  { %v1014_v48 = vadd.f32 %v1150_v40, %v1002_v45  ;;  %v1017_v50 = vmax.f32 %v1013_v44, 0.0 }
 0x140   :  { %v1012_v49 = vadd.f32 %v1146_v43, %v1000_v47  ;;  %v1015_v52 = vmax.f32 %v1011_v46, 0.0 }
 0x141   :  { %v1018_v51 = vmax.f32 %v1014_v48, 0.0 }
 0x142   :  { %v1016_v53 = vmax.f32 %v1012_v49, 0.0 }
 0x143   :  { %v1159_v54 = vpack.c.bf16 %v1018_v51, %v1017_v50 }
 0x144   :  { %v1154_v55 = vpack.c.bf16 %v1016_v53, %v1015_v52 }
 0x145   :  { %1162 = vst [vmem:[%s1726_s5 + $0x8] sm:$0xff] %v1159_v54  }
 0x146   :  { %1155 = vst [vmem:[%s1726_s5] sm:$0xff] %v1154_v55  }

// kernel: resnet_forward.21
= control target key start
LH: loop header
LB: loop body
LE: loop exit
PB: predicated region body
PF: predicated region fallthrough
CT: control target
= control target key end

     0   :  { %s2134_s1 = inlined_call_operand.vmem [shape: bf16[1152,256], index: 1, kind: input, shape index: {}]   ;;  %s2135_s0 = inlined_call_operand.vmem [shape: bf16[16,1152], index: 0, kind: input, shape index: {}]   ;;  %s2136_s2 = inlined_call_operand.vmem [shape: f32[1,256], index: 2, kind: input, shape index: {}]   ;;  %s2137_s3 = inlined_call_operand.vmem [shape: f32[1,256], index: 3, kind: input, shape index: {}]   ;;  %s2138_s4 = inlined_call_operand.vmem [shape: bf16[16,256], index: 4, kind: output, shape index: {}]  }
   0x1   :  { %v1408_v0 = vld [vmem:[%s2134_s1 + $0x4] ss:$8 sps:$4 sm:$0xff]   ;;  %v1412_v2 = vld [vmem:[%s2134_s1] ss:$8 sps:$4 sm:$0xff]   ;;  %v1414_v4 = vld [vmem:[%s2134_s1 + $0x14] ss:$8 sps:$4 sm:$0xff]  }
   0x2   :  { %v1410_v1 = vld [vmem:[%s2134_s1 + $0x204] ss:$8 sps:$4 sm:$0xff]   ;;  %950 = vmatprep.subr.bf16.mxu1 %v1408_v0  ;;  %v1413_v3 = vld [vmem:[%s2134_s1 + $0x200] ss:$8 sps:$4 sm:$0xff]   ;;  %v1416_v5 = vld [vmem:[%s2134_s1 + $0x214] ss:$8 sps:$4 sm:$0xff]  }
   0x3   :  { %1036 = vmatprep.subr.bf16.mxu0 %v1410_v1  ;;  %951 = vmatpush1.bf16.msra.mxu1 %v1412_v2  ;;  %v1418_v6 = vld [vmem:[%s2134_s1 + $0x10] ss:$8 sps:$4 sm:$0xff]   ;;  %v1420_v8 = vld [vmem:[%s2134_s1 + $0x24] ss:$8 sps:$4 sm:$0xff]   ;;  %v1424_v10 = vld [vmem:[%s2134_s1 + $0x20] ss:$8 sps:$4 sm:$0xff]  }
   0x4   :  { %1037 = vmatpush1.bf16.msra.mxu0 %v1413_v3  ;;  %952 = vmatprep.subr.bf16.mxu1 %v1414_v4  ;;  %v1419_v7 = vld [vmem:[%s2134_s1 + $0x210] ss:$8 sps:$4 sm:$0xff]   ;;  %v1422_v9 = vld [vmem:[%s2134_s1 + $0x224] ss:$8 sps:$4 sm:$0xff]   ;;  %v1425_v11 = vld [vmem:[%s2134_s1 + $0x220] ss:$8 sps:$4 sm:$0xff]  }
   0x5   :  { %1038 = vmatprep.subr.bf16.mxu0 %v1416_v5  ;;  %v1426_v12 = vld [vmem:[%s2134_s1 + $0x34] ss:$8 sps:$4 sm:$0xff]   ;;  %v1430_v14 = vld [vmem:[%s2134_s1 + $0x30] ss:$8 sps:$4 sm:$0xff]   ;;  %v1432_v16 = vld [vmem:[%s2134_s1 + $0x44] ss:$8 sps:$4 sm:$0xff]  }
   0x6   :  { %v1428_v13 = vld [vmem:[%s2134_s1 + $0x234] ss:$8 sps:$4 sm:$0xff]   ;;  %v1431_v15 = vld [vmem:[%s2134_s1 + $0x230] ss:$8 sps:$4 sm:$0xff]   ;;  %v1434_v17 = vld [vmem:[%s2134_s1 + $0x244] ss:$8 sps:$4 sm:$0xff]  }
   0x7   :  { %953 = vmatpush1.bf16.msra.mxu1 %v1418_v6  ;;  %v1436_v18 = vld [vmem:[%s2134_s1 + $0x40] ss:$8 sps:$4 sm:$0xff]   ;;  %v1438_v20 = vld [vmem:[%s2134_s1 + $0x54] ss:$8 sps:$4 sm:$0xff]   ;;  %v1442_v22 = vld [vmem:[%s2134_s1 + $0x50] ss:$8 sps:$4 sm:$0xff]  }
   0x8   :  { %1039 = vmatpush1.bf16.msra.mxu0 %v1419_v7  ;;  %954 = vmatprep.subr.bf16.mxu1 %v1420_v8  ;;  %v1437_v19 = vld [vmem:[%s2134_s1 + $0x240] ss:$8 sps:$4 sm:$0xff]   ;;  %v1440_v21 = vld [vmem:[%s2134_s1 + $0x254] ss:$8 sps:$4 sm:$0xff]   ;;  %v1443_v23 = vld [vmem:[%s2134_s1 + $0x250] ss:$8 sps:$4 sm:$0xff]  }
   0x9   :  { %1040 = vmatprep.subr.bf16.mxu0 %v1422_v9  ;;  %v1444_v24 = vld [vmem:[%s2134_s1 + $0x64] ss:$8 sps:$4 sm:$0xff]   ;;  %v1448_v26 = vld [vmem:[%s2134_s1 + $0x60] ss:$8 sps:$4 sm:$0xff]   ;;  %v1450_v28 = vld [vmem:[%s2134_s1 + $0x74] ss:$8 sps:$4 sm:$0xff]  }
   0xa   :  { %v1446_v25 = vld [vmem:[%s2134_s1 + $0x264] ss:$8 sps:$4 sm:$0xff]   ;;  %v1449_v27 = vld [vmem:[%s2134_s1 + $0x260] ss:$8 sps:$4 sm:$0xff]   ;;  %v1452_v29 = vld [vmem:[%s2134_s1 + $0x274] ss:$8 sps:$4 sm:$0xff]  }
   0xb   :  { %955 = vmatpush1.bf16.msra.mxu1 %v1424_v10  ;;  %v1454_v30 = vld [vmem:[%s2134_s1 + $0x70] ss:$8 sps:$4 sm:$0xff]   ;;  %v1456_v32 = vld [vmem:[%s2134_s1 + $0x84] ss:$8 sps:$4 sm:$0xff]   ;;  %v1460_v34 = vld [vmem:[%s2134_s1 + $0x80] ss:$8 sps:$4 sm:$0xff]  }
   0xc   :  { %1041 = vmatpush1.bf16.msra.mxu0 %v1425_v11  ;;  %956 = vmatprep.subr.bf16.mxu1 %v1426_v12  ;;  %v1455_v31 = vld [vmem:[%s2134_s1 + $0x270] ss:$8 sps:$4 sm:$0xff]   ;;  %v1458_v33 = vld [vmem:[%s2134_s1 + $0x284] ss:$8 sps:$4 sm:$0xff]   ;;  %v1461_v35 = vld [vmem:[%s2134_s1 + $0x280] ss:$8 sps:$4 sm:$0xff]  }
   0xd   :  { %1042 = vmatprep.subr.bf16.mxu0 %v1428_v13  ;;  %v1462_v36 = vld [vmem:[%s2134_s1 + $0x94] ss:$8 sps:$4 sm:$0xff]   ;;  %v1466_v38 = vld [vmem:[%s2134_s1 + $0x90] ss:$8 sps:$4 sm:$0xff]   ;;  %v1468_v40 = vld [vmem:[%s2134_s1 + $0xa4] ss:$8 sps:$4 sm:$0xff]  }
   0xe   :  { %v1464_v37 = vld [vmem:[%s2134_s1 + $0x294] ss:$8 sps:$4 sm:$0xff]   ;;  %v1467_v39 = vld [vmem:[%s2134_s1 + $0x290] ss:$8 sps:$4 sm:$0xff]   ;;  %v1470_v41 = vld [vmem:[%s2134_s1 + $0x2a4] ss:$8 sps:$4 sm:$0xff]  }
   0xf   :  { %957 = vmatpush1.bf16.msra.mxu1 %v1430_v14  ;;  %v1472_v42 = vld [vmem:[%s2134_s1 + $0xa0] ss:$8 sps:$4 sm:$0xff]   ;;  %v1474_v44 = vld [vmem:[%s2134_s1 + $0xb4] ss:$8 sps:$4 sm:$0xff]   ;;  %v1478_v46 = vld [vmem:[%s2134_s1 + $0xb0] ss:$8 sps:$4 sm:$0xff]  }
  0x10   :  { %1043 = vmatpush1.bf16.msra.mxu0 %v1431_v15  ;;  %958 = vmatprep.subr.bf16.mxu1 %v1432_v16  ;;  %v1473_v43 = vld [vmem:[%s2134_s1 + $0x2a0] ss:$8 sps:$4 sm:$0xff]   ;;  %v1476_v45 = vld [vmem:[%s2134_s1 + $0x2b4] ss:$8 sps:$4 sm:$0xff]   ;;  %v1479_v47 = vld [vmem:[%s2134_s1 + $0x2b0] ss:$8 sps:$4 sm:$0xff]  }
  0x11   :  { %1044 = vmatprep.subr.bf16.mxu0 %v1434_v17  ;;  %v1506_v48 = vld [vmem:[%s2135_s0 + $0x4] ss:$36 sps:$4 sm:$0xff]   ;;  %v1512_v51 = vld [vmem:[%s2135_s0 + $0x14] ss:$36 sps:$4 sm:$0xff]  }
  0x12   :  { %v1480_v49 = vld [vmem:[%s2134_s1 + $0xc4] ss:$8 sps:$4 sm:$0xff]   ;;  %982 = vmatprep.mubr.bf16.mxu1 %v1506_v48  ;;  %v1484_v52 = vld [vmem:[%s2134_s1 + $0xc0] ss:$8 sps:$4 sm:$0xff]   ;;  %v1486_v54 = vld [vmem:[%s2134_s1 + $0xd4] ss:$8 sps:$4 sm:$0xff]   ;;  %1068 = vmatprep.mubr.bf16.mxu0 %v1512_v51 }
  0x13   :  { %959 = vmatpush1.bf16.msra.mxu1 %v1436_v18  ;;  %v1482_v50 = vld [vmem:[%s2134_s1 + $0x2c4] ss:$8 sps:$4 sm:$0xff]   ;;  %v1485_v53 = vld [vmem:[%s2134_s1 + $0x2c0] ss:$8 sps:$4 sm:$0xff]   ;;  %v1488_v55 = vld [vmem:[%s2134_s1 + $0x2d4] ss:$8 sps:$4 sm:$0xff]  }
  0x14   :  { %1045 = vmatpush1.bf16.msra.mxu0 %v1437_v19  ;;  %960 = vmatprep.subr.bf16.mxu1 %v1438_v20  ;;  %v1490_v56 = vld [vmem:[%s2134_s1 + $0xd0] ss:$8 sps:$4 sm:$0xff]   ;;  %v1492_v58 = vld [vmem:[%s2134_s1 + $0xe4] ss:$8 sps:$4 sm:$0xff]   ;;  %v1496_v60 = vld [vmem:[%s2134_s1 + $0xe0] ss:$8 sps:$4 sm:$0xff]  }
  0x15   :  { %1046 = vmatprep.subr.bf16.mxu0 %v1440_v21  ;;  %v1491_v57 = vld [vmem:[%s2134_s1 + $0x2d0] ss:$8 sps:$4 sm:$0xff]   ;;  %v1494_v59 = vld [vmem:[%s2134_s1 + $0x2e4] ss:$8 sps:$4 sm:$0xff]   ;;  %v1497_v61 = vld [vmem:[%s2134_s1 + $0x2e0] ss:$8 sps:$4 sm:$0xff]  }
  0x16   :  { %v1498_v62 = vld [vmem:[%s2134_s1 + $0xf4] ss:$8 sps:$4 sm:$0xff]   ;;  %v1502_v0 = vld [vmem:[%s2134_s1 + $0xf0] ss:$8 sps:$4 sm:$0xff]   ;;  %v1509_v2 = vld [vmem:[%s2134_s1 + $0x104] ss:$8 sps:$4 sm:$0xff]  }
  0x17   :  { %961 = vmatpush1.bf16.msra.mxu1 %v1442_v22  ;;  %v1500_v63 = vld [vmem:[%s2134_s1 + $0x2f4] ss:$8 sps:$4 sm:$0xff]   ;;  %v1503_v1 = vld [vmem:[%s2134_s1 + $0x2f0] ss:$8 sps:$4 sm:$0xff]   ;;  %v1515_v3 = vld [vmem:[%s2134_s1 + $0x304] ss:$8 sps:$4 sm:$0xff]  }
  0x18   :  { %1047 = vmatpush1.bf16.msra.mxu0 %v1443_v23  ;;  %962 = vmatprep.subr.bf16.mxu1 %v1444_v24  ;;  %v1504_v4 = vld [vmem:[%s2135_s0] ss:$36 sps:$4 sm:$0xff]   ;;  %v1510_v6 = vld [vmem:[%s2135_s0 + $0x10] ss:$36 sps:$4 sm:$0xff]  }
  0x19   :  { %1048 = vmatprep.subr.bf16.mxu0 %v1446_v25  ;;  %v1507_v5 = vld [vmem:[%s2134_s1 + $0x100] ss:$8 sps:$4 sm:$0xff]   ;;  %v1518_v8 = vld [vmem:[%s2134_s1 + $0x114] ss:$8 sps:$4 sm:$0xff]   ;;  %v1516_v10 = vld [vmem:[%s2134_s1 + $0x110] ss:$8 sps:$4 sm:$0xff]  }
  0x1a   :  { %v1513_v7 = vld [vmem:[%s2134_s1 + $0x300] ss:$8 sps:$4 sm:$0xff]   ;;  %v1521_v9 = vld [vmem:[%s2134_s1 + $0x314] ss:$8 sps:$4 sm:$0xff]   ;;  %v1519_v11 = vld [vmem:[%s2134_s1 + $0x310] ss:$8 sps:$4 sm:$0xff]  }
  0x1b   :  { %963 = vmatpush1.bf16.msra.mxu1 %v1448_v26  ;;  %v1524_v12 = vld [vmem:[%s2134_s1 + $0x124] ss:$8 sps:$4 sm:$0xff]   ;;  %v1522_v14 = vld [vmem:[%s2134_s1 + $0x120] ss:$8 sps:$4 sm:$0xff]   ;;  %v1530_v16 = vld [vmem:[%s2134_s1 + $0x134] ss:$8 sps:$4 sm:$0xff]  }
  0x1c   :  { %1049 = vmatpush1.bf16.msra.mxu0 %v1449_v27  ;;  %964 = vmatprep.subr.bf16.mxu1 %v1450_v28  ;;  %v1527_v13 = vld [vmem:[%s2134_s1 + $0x324] ss:$8 sps:$4 sm:$0xff]   ;;  %v1525_v15 = vld [vmem:[%s2134_s1 + $0x320] ss:$8 sps:$4 sm:$0xff]   ;;  %v1533_v17 = vld [vmem:[%s2134_s1 + $0x334] ss:$8 sps:$4 sm:$0xff]  }
  0x1d   :  { %1050 = vmatprep.subr.bf16.mxu0 %v1452_v29  ;;  %v1528_v18 = vld [vmem:[%s2134_s1 + $0x130] ss:$8 sps:$4 sm:$0xff]   ;;  %v1536_v20 = vld [vmem:[%s2134_s1 + $0x144] ss:$8 sps:$4 sm:$0xff]   ;;  %v1534_v22 = vld [vmem:[%s2134_s1 + $0x140] ss:$8 sps:$4 sm:$0xff]  }
  0x1e   :  { %v1531_v19 = vld [vmem:[%s2134_s1 + $0x330] ss:$8 sps:$4 sm:$0xff]   ;;  %v1539_v21 = vld [vmem:[%s2134_s1 + $0x344] ss:$8 sps:$4 sm:$0xff]   ;;  %v1537_v23 = vld [vmem:[%s2134_s1 + $0x340] ss:$8 sps:$4 sm:$0xff]  }
  0x1f   :  { %965 = vmatpush1.bf16.msra.mxu1 %v1454_v30  ;;  %v1542_v24 = vld [vmem:[%s2134_s1 + $0x154] ss:$8 sps:$4 sm:$0xff]   ;;  %v1540_v26 = vld [vmem:[%s2134_s1 + $0x150] ss:$8 sps:$4 sm:$0xff]   ;;  %v1548_v28 = vld [vmem:[%s2134_s1 + $0x164] ss:$8 sps:$4 sm:$0xff]  }
  0x20   :  { %1051 = vmatpush1.bf16.msra.mxu0 %v1455_v31  ;;  %966 = vmatprep.subr.bf16.mxu1 %v1456_v32  ;;  %v1545_v25 = vld [vmem:[%s2134_s1 + $0x354] ss:$8 sps:$4 sm:$0xff]   ;;  %v1543_v27 = vld [vmem:[%s2134_s1 + $0x350] ss:$8 sps:$4 sm:$0xff]   ;;  %v1551_v29 = vld [vmem:[%s2134_s1 + $0x364] ss:$8 sps:$4 sm:$0xff]  }
  0x21   :  { %1052 = vmatprep.subr.bf16.mxu0 %v1458_v33  ;;  %v1546_v30 = vld [vmem:[%s2134_s1 + $0x160] ss:$8 sps:$4 sm:$0xff]   ;;  %v1554_v32 = vld [vmem:[%s2134_s1 + $0x174] ss:$8 sps:$4 sm:$0xff]  }
  0x22   :  { %v1549_v31 = vld [vmem:[%s2134_s1 + $0x360] ss:$8 sps:$4 sm:$0xff]   ;;  %v1557_v33 = vld [vmem:[%s2134_s1 + $0x374] ss:$8 sps:$4 sm:$0xff]  }
  0x23   :  { %967 = vmatpush1.bf16.msra.mxu1 %v1460_v34  ;;  %v1608_v34 = vld [vmem:[%s2135_s0 + $0xc] ss:$36 sps:$4 sm:$0xff]   ;;  %v1570_v48 = vld [vmem:[%s2134_s1 + $0x1a0] ss:$8 sps:$4 sm:$0xff]   ;;  %v1581_v51 = vld [vmem:[%s2134_s1 + $0x3b4] ss:$8 sps:$4 sm:$0xff]  }
  0x24   :  { %1053 = vmatpush1.bf16.msra.mxu0 %v1461_v35  ;;  %968 = vmatprep.subr.bf16.mxu1 %v1462_v36  ;;  %v1611_v35 = vld [vmem:[%s2135_s0 + $0x1c] ss:$36 sps:$4 sm:$0xff]   ;;  %v1552_v36 = vld [vmem:[%s2134_s1 + $0x170] ss:$8 sps:$4 sm:$0xff]  }
  0x25   :  { %1054 = vmatprep.subr.bf16.mxu0 %v1464_v37  ;;  %v1555_v37 = vld [vmem:[%s2134_s1 + $0x370] ss:$8 sps:$4 sm:$0xff]  }
  0x27   :  { %969 = vmatpush1.bf16.msra.mxu1 %v1466_v38  ;;  %v1560_v38 = vld [vmem:[%s2134_s1 + $0x184] ss:$8 sps:$4 sm:$0xff]  }
  0x28   :  { %1055 = vmatpush1.bf16.msra.mxu0 %v1467_v39  ;;  %970 = vmatprep.subr.bf16.mxu1 %v1468_v40  ;;  %v1563_v39 = vld [vmem:[%s2134_s1 + $0x384] ss:$8 sps:$4 sm:$0xff]   ;;  %v1558_v40 = vld [vmem:[%s2134_s1 + $0x180] ss:$8 sps:$4 sm:$0xff]  }
  0x29   :  { %1056 = vmatprep.subr.bf16.mxu0 %v1470_v41  ;;  %v1561_v41 = vld [vmem:[%s2134_s1 + $0x380] ss:$8 sps:$4 sm:$0xff]  }
  0x2b   :  { %971 = vmatpush1.bf16.msra.mxu1 %v1472_v42  ;;  %v1566_v42 = vld [vmem:[%s2134_s1 + $0x194] ss:$8 sps:$4 sm:$0xff]  }
  0x2c   :  { %1057 = vmatpush1.bf16.msra.mxu0 %v1473_v43  ;;  %972 = vmatprep.subr.bf16.mxu1 %v1474_v44  ;;  %v1569_v43 = vld [vmem:[%s2134_s1 + $0x394] ss:$8 sps:$4 sm:$0xff]   ;;  %v1564_v44 = vld [vmem:[%s2134_s1 + $0x190] ss:$8 sps:$4 sm:$0xff]  }
  0x2d   :  { %1058 = vmatprep.subr.bf16.mxu0 %v1476_v45  ;;  %v1567_v45 = vld [vmem:[%s2134_s1 + $0x390] ss:$8 sps:$4 sm:$0xff]  }
  0x2f   :  { %973 = vmatpush1.bf16.msra.mxu1 %v1478_v46  ;;  %v1572_v46 = vld [vmem:[%s2134_s1 + $0x1a4] ss:$8 sps:$4 sm:$0xff]  }
  0x30   :  { %1059 = vmatpush1.bf16.msra.mxu0 %v1479_v47  ;;  %974 = vmatprep.subr.bf16.mxu1 %v1480_v49  ;;  %v1575_v47 = vld [vmem:[%s2134_s1 + $0x3a4] ss:$8 sps:$4 sm:$0xff]   ;;  %v1573_v49 = vld [vmem:[%s2134_s1 + $0x3a0] ss:$8 sps:$4 sm:$0xff]  }
  0x31   :  { %1060 = vmatprep.subr.bf16.mxu0 %v1482_v50  ;;  %v1578_v50 = vld [vmem:[%s2134_s1 + $0x1b4] ss:$8 sps:$4 sm:$0xff]  }
  0x33   :  { %975 = vmatpush1.bf16.msra.mxu1 %v1484_v52  ;;  %v1576_v52 = vld [vmem:[%s2134_s1 + $0x1b0] ss:$8 sps:$4 sm:$0xff]  }
  0x34   :  { %1061 = vmatpush1.bf16.msra.mxu0 %v1485_v53  ;;  %976 = vmatprep.subr.bf16.mxu1 %v1486_v54  ;;  %v1579_v53 = vld [vmem:[%s2134_s1 + $0x3b0] ss:$8 sps:$4 sm:$0xff]   ;;  %v1584_v54 = vld [vmem:[%s2134_s1 + $0x1c4] ss:$8 sps:$4 sm:$0xff]  }
  0x35   :  { %1062 = vmatprep.subr.bf16.mxu0 %v1488_v55  ;;  %v1587_v55 = vld [vmem:[%s2134_s1 + $0x3c4] ss:$8 sps:$4 sm:$0xff]  }
  0x37   :  { %977 = vmatpush1.bf16.msra.mxu1 %v1490_v56  ;;  %v1582_v56 = vld [vmem:[%s2134_s1 + $0x1c0] ss:$8 sps:$4 sm:$0xff]  }
  0x38   :  { %1063 = vmatpush1.bf16.msra.mxu0 %v1491_v57  ;;  %978 = vmatprep.subr.bf16.mxu1 %v1492_v58  ;;  %v1585_v57 = vld [vmem:[%s2134_s1 + $0x3c0] ss:$8 sps:$4 sm:$0xff]   ;;  %v1590_v58 = vld [vmem:[%s2134_s1 + $0x1d4] ss:$8 sps:$4 sm:$0xff]  }
  0x39   :  { %1064 = vmatprep.subr.bf16.mxu0 %v1494_v59  ;;  %v1593_v59 = vld [vmem:[%s2134_s1 + $0x3d4] ss:$8 sps:$4 sm:$0xff]  }
  0x3b   :  { %979 = vmatpush1.bf16.msra.mxu1 %v1496_v60  ;;  %v1588_v60 = vld [vmem:[%s2134_s1 + $0x1d0] ss:$8 sps:$4 sm:$0xff]  }
  0x3c   :  { %1065 = vmatpush1.bf16.msra.mxu0 %v1497_v61  ;;  %980 = vmatprep.subr.bf16.mxu1 %v1498_v62  ;;  %v1591_v61 = vld [vmem:[%s2134_s1 + $0x3d0] ss:$8 sps:$4 sm:$0xff]   ;;  %v1596_v62 = vld [vmem:[%s2134_s1 + $0x1e4] ss:$8 sps:$4 sm:$0xff]  }
  0x3d   :  { %1066 = vmatprep.subr.bf16.mxu0 %v1500_v63  ;;  %v1599_v63 = vld [vmem:[%s2134_s1 + $0x3e4] ss:$8 sps:$4 sm:$0xff]  }
  0x3f   :  { %981 = vmatpush1.bf16.msra.mxu1 %v1502_v0  ;;  %v1594_v0 = vld [vmem:[%s2134_s1 + $0x1e0] ss:$8 sps:$4 sm:$0xff]  }
  0x40   :  { %1067 = vmatpush1.bf16.msra.mxu0 %v1503_v1  ;;  %993 = vmatprep.subr.bf16.mxu1 %v1509_v2  ;;  %v1597_v1 = vld [vmem:[%s2134_s1 + $0x3e0] ss:$8 sps:$4 sm:$0xff]   ;;  %v1602_v2 = vld [vmem:[%s2134_s1 + $0x1f4] ss:$8 sps:$4 sm:$0xff]  }
  0x41   :  { %1079 = vmatprep.subr.bf16.mxu0 %v1515_v3  ;;  %v1605_v3 = vld [vmem:[%s2134_s1 + $0x3f4] ss:$8 sps:$4 sm:$0xff]  }
  0x42   :  { %983 = vmatmul.mubr.bf16.vlgmr.msra.gmra.mrb[0].mxu1 %v1504_v4  ;;  %v1600_v4 = vld [vmem:[%s2134_s1 + $0x1f0] ss:$8 sps:$4 sm:$0xff]  }
  0x43   :  { %1069 = vmatmul.mubr.bf16.vlgmr.msra.gmra.mrb[0].mxu0 %v1510_v6  ;;  %994 = vmatpush1.bf16.msra.mxu1 %v1507_v5  ;;  %v1603_v5 = vld [vmem:[%s2134_s1 + $0x3f0] ss:$8 sps:$4 sm:$0xff]   ;;  %v1614_v6 = vld [vmem:[%s2134_s1 + $0x404] ss:$8 sps:$4 sm:$0xff]  }
  0x44   :  { %1080 = vmatpush1.bf16.msra.mxu0 %v1513_v7  ;;  %995 = vmatprep.subr.bf16.mxu1 %v1518_v8  ;;  %v1606_v7 = vld [vmem:[%s2135_s0 + $0x8] ss:$36 sps:$4 sm:$0xff]   ;;  %v1609_v8 = vld [vmem:[%s2135_s0 + $0x18] ss:$36 sps:$4 sm:$0xff]  }
  0x45   :  { %1081 = vmatprep.subr.bf16.mxu0 %v1521_v9  ;;  %1025 = vmatprep.mubr.bf16.mxu1 %v1608_v34  ;;  %v1612_v9 = vld [vmem:[%s2134_s1 + $0x400] ss:$8 sps:$4 sm:$0xff]  }
  0x46   :  { %1111 = vmatprep.mubr.bf16.mxu0 %v1611_v35  ;;  %v1196_v35 = vld [vmem:[%s2137_s3] sm:$0x3] }
  0x47   :  { %996 = vmatpush1.bf16.msra.mxu1 %v1516_v10  ;;  %v1617_v10 = vld [vmem:[%s2134_s1 + $0x414] ss:$8 sps:$4 sm:$0xff]  }
  0x48   :  { %1082 = vmatpush1.bf16.msra.mxu0 %v1519_v11  ;;  %997 = vmatprep.subr.bf16.mxu1 %v1524_v12  ;;  %v1615_v11 = vld [vmem:[%s2134_s1 + $0x410] ss:$8 sps:$4 sm:$0xff]   ;;  %v1637_v12 = vmov 0  }
  0x49   :  { %1083 = vmatprep.subr.bf16.mxu0 %v1527_v13  ;;  %v1620_v13 = vld [vmem:[%s2134_s1 + $0x424] ss:$8 sps:$4 sm:$0xff]  }
  0x4b   :  { %998 = vmatpush1.bf16.msra.mxu1 %v1522_v14  ;;  %v1618_v14 = vld [vmem:[%s2134_s1 + $0x420] ss:$8 sps:$4 sm:$0xff]  }
  0x4c   :  { %1084 = vmatpush1.bf16.msra.mxu0 %v1525_v15  ;;  %999 = vmatprep.subr.bf16.mxu1 %v1530_v16  ;;  %v1623_v15 = vld [vmem:[%s2134_s1 + $0x434] ss:$8 sps:$4 sm:$0xff]   ;;  %v1621_v16 = vld [vmem:[%s2134_s1 + $0x430] ss:$8 sps:$4 sm:$0xff]  }
  0x4d   :  { %1085 = vmatprep.subr.bf16.mxu0 %v1533_v17  ;;  %v1626_v17 = vld [vmem:[%s2134_s1 + $0x444] ss:$8 sps:$4 sm:$0xff]  }
  0x4f   :  { %1000 = vmatpush1.bf16.msra.mxu1 %v1528_v18  ;;  %v1624_v18 = vld [vmem:[%s2134_s1 + $0x440] ss:$8 sps:$4 sm:$0xff]  }
  0x50   :  { %1086 = vmatpush1.bf16.msra.mxu0 %v1531_v19  ;;  %1001 = vmatprep.subr.bf16.mxu1 %v1536_v20  ;;  %v1629_v19 = vld [vmem:[%s2134_s1 + $0x454] ss:$8 sps:$4 sm:$0xff]   ;;  %v1627_v20 = vld [vmem:[%s2134_s1 + $0x450] ss:$8 sps:$4 sm:$0xff]  }
  0x51   :  { %1087 = vmatprep.subr.bf16.mxu0 %v1539_v21  ;;  %v1632_v21 = vld [vmem:[%s2134_s1 + $0x464] ss:$8 sps:$4 sm:$0xff]  }
  0x53   :  { %1002 = vmatpush1.bf16.msra.mxu1 %v1534_v22  ;;  %v1630_v22 = vld [vmem:[%s2134_s1 + $0x460] ss:$8 sps:$4 sm:$0xff]  }
  0x54   :  { %1088 = vmatpush1.bf16.msra.mxu0 %v1537_v23  ;;  %1003 = vmatprep.subr.bf16.mxu1 %v1542_v24  ;;  %v1635_v23 = vld [vmem:[%s2134_s1 + $0x474] ss:$8 sps:$4 sm:$0xff]   ;;  %v1633_v24 = vld [vmem:[%s2134_s1 + $0x470] ss:$8 sps:$4 sm:$0xff]  }
  0x55   :  { %1089 = vmatprep.subr.bf16.mxu0 %v1545_v25  ;;  %v1636_v25 = vld [vmem:[%s2135_s0 + $0x20] ss:$36 sps:$4 sm:$0xff]  }
  0x57   :  { %1004 = vmatpush1.bf16.msra.mxu1 %v1540_v26 }
  0x58   :  { %1090 = vmatpush1.bf16.msra.mxu0 %v1543_v27  ;;  %1005 = vmatprep.subr.bf16.mxu1 %v1548_v28 }
  0x59   :  { %1091 = vmatprep.subr.bf16.mxu0 %v1551_v29 }
  0x5b   :  { %1006 = vmatpush1.bf16.msra.mxu1 %v1546_v30  ;;  %v1182_v30 = vlaneseq }
  0x5c   :  { %1092 = vmatpush1.bf16.msra.mxu0 %v1549_v31  ;;  %1007 = vmatprep.subr.bf16.mxu1 %v1554_v32 }
  0x5d   :  { %1093 = vmatprep.subr.bf16.mxu0 %v1557_v33  ;;  %v1183_v31 = vshrl.u32 %v1182_v30, 7  ;;  %v1180_v33 = vld [vmem:[%s2136_s2] sm:$0x3] }
  0x5f   :  { %1008 = vmatpush1.bf16.msra.mxu1 %v1552_v36  ;;  %v1184_v32 = vsub.s32 0, %v1183_v31  ;;  %v1188_v34 = vsub.s32 1, %v1183_v31 }
  0x60   :  { %1094 = vmatpush1.bf16.msra.mxu0 %v1555_v37  ;;  %1009 = vmatprep.subr.bf16.mxu1 %v1560_v38 }
  0x61   :  { %1095 = vmatprep.subr.bf16.mxu0 %v1563_v39  ;;  %v1185_v36 = vrot.slane %v1180_v33, %v1184_v32  ;;  %v1189_v38 = vrot.slane %v1180_v33, %v1188_v34 }
  0x63   :  { %1010 = vmatpush1.bf16.msra.mxu1 %v1558_v40  ;;  %v1201_v40 = vrot.slane %v1196_v35, %v1184_v32 }
  0x64   :  { %1096 = vmatpush1.bf16.msra.mxu0 %v1561_v41  ;;  %1011 = vmatprep.subr.bf16.mxu1 %v1566_v42 }
  0x65   :  { %1097 = vmatprep.subr.bf16.mxu0 %v1569_v43  ;;  %v1205_v43 = vrot.slane %v1196_v35, %v1188_v34 }
  0x67   :  { %1012 = vmatpush1.bf16.msra.mxu1 %v1564_v44 }
  0x68   :  { %1098 = vmatpush1.bf16.msra.mxu0 %v1567_v45  ;;  %1013 = vmatprep.subr.bf16.mxu1 %v1572_v46 }
  0x69   :  { %1099 = vmatprep.subr.bf16.mxu0 %v1575_v47 }
  0x6b   :  { %1014 = vmatpush1.bf16.msra.mxu1 %v1570_v48 }
  0x6c   :  { %1100 = vmatpush1.bf16.msra.mxu0 %v1573_v49  ;;  %1015 = vmatprep.subr.bf16.mxu1 %v1578_v50 }
  0x6d   :  { %1101 = vmatprep.subr.bf16.mxu0 %v1581_v51 }
  0x6f   :  { %1016 = vmatpush1.bf16.msra.mxu1 %v1576_v52 }
  0x70   :  { %1102 = vmatpush1.bf16.msra.mxu0 %v1579_v53  ;;  %1017 = vmatprep.subr.bf16.mxu1 %v1584_v54 }
  0x71   :  { %1103 = vmatprep.subr.bf16.mxu0 %v1587_v55 }
  0x73   :  { %1018 = vmatpush1.bf16.msra.mxu1 %v1582_v56 }
  0x74   :  { %1104 = vmatpush1.bf16.msra.mxu0 %v1585_v57  ;;  %1019 = vmatprep.subr.bf16.mxu1 %v1590_v58 }
  0x75   :  { %1105 = vmatprep.subr.bf16.mxu0 %v1593_v59 }
  0x77   :  { %1020 = vmatpush1.bf16.msra.mxu1 %v1588_v60 }
  0x78   :  { %1106 = vmatpush1.bf16.msra.mxu0 %v1591_v61  ;;  %1021 = vmatprep.subr.bf16.mxu1 %v1596_v62 }
  0x79   :  { %1107 = vmatprep.subr.bf16.mxu0 %v1599_v63 }
  0x7b   :  { %1022 = vmatpush1.bf16.msra.mxu1 %v1594_v0 }
  0x7c   :  { %1108 = vmatpush1.bf16.msra.mxu0 %v1597_v1  ;;  %1023 = vmatprep.subr.bf16.mxu1 %v1602_v2 }
  0x7d   :  { %1109 = vmatprep.subr.bf16.mxu0 %v1605_v3 }
  0x7f   :  { %1024 = vmatpush1.bf16.msra.mxu1 %v1600_v4 }
  0x80   :  { %1110 = vmatpush1.bf16.msra.mxu0 %v1603_v5 }
  0x81   :  { %1122 = vmatprep.subr.bf16.mxu0 %v1614_v6 }
  0x82   :  { %1026 = vmatmul.mubr.bf16.vlgmr.msra.gmra.mrb[0].mxu1 %v1606_v7 }
  0x83   :  { %1112 = vmatmul.mubr.bf16.vlgmr.msra.gmra.mrb[0].mxu0 %v1609_v8 }
  0x84   :  { %1123 = vmatpush1.bf16.msra.mxu0 %v1612_v9  ;;  %1154 = vmatprep.mubr.bf16.mxu0 %v1637_v12 }
  0x85   :  { %1124 = vmatprep.subr.bf16.mxu0 %v1617_v10 }
  0x88   :  { %1125 = vmatpush1.bf16.msra.mxu0 %v1615_v11 }
  0x89   :  { %1126 = vmatprep.subr.bf16.mxu0 %v1620_v13 }
  0x8c   :  { %1127 = vmatpush1.bf16.msra.mxu0 %v1618_v14 }
  0x8d   :  { %1128 = vmatprep.subr.bf16.mxu0 %v1623_v15 }
  0x90   :  { %1129 = vmatpush1.bf16.msra.mxu0 %v1621_v16 }
  0x91   :  { %1130 = vmatprep.subr.bf16.mxu0 %v1626_v17 }
  0x94   :  { %1131 = vmatpush1.bf16.msra.mxu0 %v1624_v18 }
  0x95   :  { %1132 = vmatprep.subr.bf16.mxu0 %v1629_v19 }
  0x98   :  { %1133 = vmatpush1.bf16.msra.mxu0 %v1627_v20 }
  0x99   :  { %1134 = vmatprep.subr.bf16.mxu0 %v1632_v21 }
  0x9c   :  { %1135 = vmatpush1.bf16.msra.mxu0 %v1630_v22 }
  0x9d   :  { %1136 = vmatprep.subr.bf16.mxu0 %v1635_v23 }
  0xa0   :  { %1137 = vmatpush1.bf16.msra.mxu0 %v1633_v24 }
  0xa3   :  { %1155 = vmatmul.mubr.bf16.vlgmr.msra.gmra.mrb[0].mxu0 %v1636_v25 }
 0x155   :  { %v1027_v26 = vpop.f32.mrb[0].mxu1 }
 0x156   :  { %v1029_v27 = vpop.f32.mrb[1].mxu1 }
 0x157   :  { %v1031_v28 = vpop.f32.mrb[2].mxu1 }
 0x158   :  { %v1033_v29 = vpop.f32.mrb[3].mxu1 }
 0x176   :  { %v1156_v37 = vpop.f32.mrb[0].mxu0 }
 0x177   :  { %v1391_v39 = vadd.f32 %v1156_v37, %v1027_v26  ;;  %v1158_v41 = vpop.f32.mrb[1].mxu0 }
 0x178   :  { %v1392_v42 = vadd.f32 %v1158_v41, %v1029_v27  ;;  %v1160_v44 = vpop.f32.mrb[2].mxu0 }
 0x179   :  { %v1192_v45 = vmul.f32 %v1391_v39, %v1185_v36  ;;  %v1393_v46 = vadd.f32 %v1160_v44, %v1031_v28  ;;  %v1162_v47 = vpop.f32.mrb[3].mxu0 }
 0x17a   :  { %v1193_v48 = vmul.f32 %v1392_v42, %v1189_v38  ;;  %v1394_v49 = vadd.f32 %v1162_v47, %v1033_v29 }
 0x17b   :  { %v1208_v50 = vadd.f32 %v1201_v40, %v1192_v45  ;;  %v1194_v51 = vmul.f32 %v1393_v46, %v1185_v36 }
 0x17c   :  { %v1209_v52 = vadd.f32 %v1205_v43, %v1193_v48  ;;  %v1195_v53 = vmul.f32 %v1394_v49, %v1189_v38 }
 0x17d   :  { %v1212_v54 = vmax.f32 %v1208_v50, 0.0  ;;  %v1210_v55 = vadd.f32 %v1201_v40, %v1194_v51 }
 0x17e   :  { %v1213_v56 = vmax.f32 %v1209_v52, 0.0  ;;  %v1211_v57 = vadd.f32 %v1205_v43, %v1195_v53 }
 0x17f   :  { %v1214_v58 = vmax.f32 %v1210_v55, 0.0 }
 0x180   :  { %v1389_v59 = vpack.c.bf16 %v1213_v56, %v1212_v54  ;;  %v1215_v60 = vmax.f32 %v1211_v57, 0.0 }
 0x182   :  { %1228 = vst [vmem:[%s2138_s4] sm:$0xff] %v1389_v59  ;;  %v1390_v61 = vpack.c.bf16 %v1215_v60, %v1214_v58 }
 0x184   :  { %1229 = vst [vmem:[%s2138_s4 + $0x8] sm:$0xff] %v1390_v61 }

// kernel: resnet_forward.22
= control target key start
LH: loop header
LB: loop body
LE: loop exit
PB: predicated region body
PF: predicated region fallthrough
CT: control target
= control target key end

     0   :  { %v289_v1 = vmov 0   ;;  %v194_v18 = vlaneseq  ;;  %s378_s1 = inlined_call_operand.vmem [shape: bf16[128,256], index: 1, kind: input, shape index: {}]   ;;  %s379_s0 = inlined_call_operand.vmem [shape: bf16[16,128], index: 0, kind: input, shape index: {}]   ;;  %s380_s2 = inlined_call_operand.vmem [shape: f32[1,256], index: 2, kind: input, shape index: {}]   ;;  %s381_s3 = inlined_call_operand.vmem [shape: f32[1,256], index: 3, kind: input, shape index: {}]   ;;  %s382_s4 = inlined_call_operand.vmem [shape: bf16[16,256], index: 4, kind: output, shape index: {}]  }
   0x1   :  { %v264_v0 = vld [vmem:[%s378_s1 + $0x4] ss:$8 sps:$4 sm:$0xff]   ;;  %166 = vmatprep.mubr.bf16.mxu0 %v289_v1  ;;  %v266_v2 = vld [vmem:[%s378_s1] ss:$8 sps:$4 sm:$0xff]   ;;  %v267_v3 = vld [vmem:[%s378_s1 + $0x14] ss:$8 sps:$4 sm:$0xff]  }
   0x2   :  { %134 = vmatprep.subr.bf16.mxu0 %v264_v0  ;;  %v269_v4 = vld [vmem:[%s378_s1 + $0x10] ss:$8 sps:$4 sm:$0xff]   ;;  %v270_v5 = vld [vmem:[%s378_s1 + $0x24] ss:$8 sps:$4 sm:$0xff]   ;;  %v272_v6 = vld [vmem:[%s378_s1 + $0x20] ss:$8 sps:$4 sm:$0xff]  }
   0x3   :  { %135 = vmatpush1.bf16.msra.mxu0 %v266_v2  ;;  %v273_v7 = vld [vmem:[%s378_s1 + $0x34] ss:$8 sps:$4 sm:$0xff]   ;;  %v275_v8 = vld [vmem:[%s378_s1 + $0x30] ss:$8 sps:$4 sm:$0xff]   ;;  %v276_v9 = vld [vmem:[%s378_s1 + $0x44] ss:$8 sps:$4 sm:$0xff]  }
   0x4   :  { %136 = vmatprep.subr.bf16.mxu0 %v267_v3  ;;  %v278_v10 = vld [vmem:[%s378_s1 + $0x40] ss:$8 sps:$4 sm:$0xff]   ;;  %v279_v11 = vld [vmem:[%s378_s1 + $0x54] ss:$8 sps:$4 sm:$0xff]   ;;  %v281_v12 = vld [vmem:[%s378_s1 + $0x50] ss:$8 sps:$4 sm:$0xff]  }
   0x5   :  { %v282_v13 = vld [vmem:[%s378_s1 + $0x64] ss:$8 sps:$4 sm:$0xff]   ;;  %v284_v14 = vld [vmem:[%s378_s1 + $0x60] ss:$8 sps:$4 sm:$0xff]   ;;  %v285_v15 = vld [vmem:[%s378_s1 + $0x74] ss:$8 sps:$4 sm:$0xff]  }
   0x6   :  { %v287_v16 = vld [vmem:[%s378_s1 + $0x70] ss:$8 sps:$4 sm:$0xff]   ;;  %v288_v17 = vld [vmem:[%s379_s0] sm:$0xff]   ;;  %v195_v19 = vshrl.u32 %v194_v18, 7 }
   0x7   :  { %137 = vmatpush1.bf16.msra.mxu0 %v269_v4  ;;  %v192_v21 = vld [vmem:[%s380_s2] sm:$0x3] }
   0x8   :  { %138 = vmatprep.subr.bf16.mxu0 %v270_v5  ;;  %v196_v20 = vsub.s32 0, %v195_v19  ;;  %v200_v22 = vsub.s32 1, %v195_v19  ;;  %v208_v23 = vld [vmem:[%s381_s3] sm:$0x3] }
   0xa   :  { %v197_v24 = vrot.slane %v192_v21, %v196_v20  ;;  %v201_v25 = vrot.slane %v192_v21, %v200_v22  ;;  %v213_v26 = vrot.slane %v208_v23, %v196_v20  ;;  %v217_v28 = vrot.slane %v208_v23, %v200_v22 }
   0xb   :  { %139 = vmatpush1.bf16.msra.mxu0 %v272_v6 }
   0xc   :  { %140 = vmatprep.subr.bf16.mxu0 %v273_v7 }
   0xf   :  { %141 = vmatpush1.bf16.msra.mxu0 %v275_v8 }
  0x10   :  { %142 = vmatprep.subr.bf16.mxu0 %v276_v9 }
  0x13   :  { %143 = vmatpush1.bf16.msra.mxu0 %v278_v10 }
  0x14   :  { %144 = vmatprep.subr.bf16.mxu0 %v279_v11 }
  0x17   :  { %145 = vmatpush1.bf16.msra.mxu0 %v281_v12 }
  0x18   :  { %146 = vmatprep.subr.bf16.mxu0 %v282_v13 }
  0x1b   :  { %147 = vmatpush1.bf16.msra.mxu0 %v284_v14 }
  0x1c   :  { %148 = vmatprep.subr.bf16.mxu0 %v285_v15 }
  0x1f   :  { %149 = vmatpush1.bf16.msra.mxu0 %v287_v16 }
  0x22   :  { %167 = vmatmul.mubr.bf16.vlgmr.msra.gmra.mrb[0].mxu0 %v288_v17 }
  0xf5   :  { %v168_v27 = vpop.f32.mrb[0].mxu0 }
  0xf6   :  { %v204_v29 = vmul.f32 %v197_v24, %v168_v27  ;;  %v170_v30 = vpop.f32.mrb[1].mxu0 }
  0xf7   :  { %v205_v31 = vmul.f32 %v201_v25, %v170_v30  ;;  %v172_v32 = vpop.f32.mrb[2].mxu0 }
  0xf8   :  { %v220_v33 = vadd.f32 %v213_v26, %v204_v29  ;;  %v206_v34 = vmul.f32 %v197_v24, %v172_v32  ;;  %v174_v35 = vpop.f32.mrb[3].mxu0 }
  0xf9   :  { %v221_v36 = vadd.f32 %v217_v28, %v205_v31  ;;  %v207_v37 = vmul.f32 %v201_v25, %v174_v35 }
  0xfa   :  { %v222_v38 = vadd.f32 %v213_v26, %v206_v34 }
  0xfb   :  { %v261_v39 = vpack.c.bf16 %v221_v36, %v220_v33  ;;  %v223_v40 = vadd.f32 %v217_v28, %v207_v37 }
  0xfd   :  { %236 = vst [vmem:[%s382_s4] sm:$0xff] %v261_v39  ;;  %v262_v41 = vpack.c.bf16 %v223_v40, %v222_v38 }
  0xff   :  { %237 = vst [vmem:[%s382_s4 + $0x8] sm:$0xff] %v262_v41 }

// kernel: resnet_forward.23
= control target key start
LH: loop header
LB: loop body
LE: loop exit
PB: predicated region body
PF: predicated region fallthrough
CT: control target
= control target key end

     0   :  { %s2356_s18 = smov 0   ;;  %s2358_s19 = smov 0   ;;  %s2598_s0 = inlined_call_operand.vmem [shape: bf16[16,2304], index: 0, kind: input, shape index: {}]   ;;  %s2599_s1 = inlined_call_operand.vmem [shape: bf16[2304,256], index: 1, kind: input, shape index: {}]   ;;  %s2600_s2 = inlined_call_operand.vmem [shape: f32[1,256], index: 2, kind: input, shape index: {}]   ;;  %s2601_s3 = inlined_call_operand.vmem [shape: f32[1,256], index: 3, kind: input, shape index: {}]   ;;  %s2602_s4 = inlined_call_operand.vmem [shape: bf16[16,256], index: 4, kind: input, shape index: {}]   ;;  %s2603_s5 = inlined_call_operand.vmem [shape: bf16[16,256], index: 5, kind: output, shape index: {}]  }
   0x1   :  { %s2360_s20 = smov 0   ;;  %s2362_s21 = smov 0  }
   0x2   :  { %s2364_s22 = smov 0  }
   0x3 LB: > { %s27_s23 = sadd.s32 1, %s2318_s21  ;;  %p50_p1 = scmp.ne.s32.totalorder %s2310_s19, %s2306_s18  ;;  %s2322_s22 = sphi %s2364_s22, %s15_s22   ;;  %s2318_s21 = sphi %s2362_s21, %s2607_s21   ;;  %s2314_s20 = sphi %s2360_s20, %s2606_s20   ;;  %s2310_s19 = sphi %s2358_s19, %s2605_s19   ;;  %s2306_s18 = sphi %s2356_s18, %s2604_s18  }
   0x4   : > { %p28_p0 = scmp.ge.s32.totalorder %s27_s23, 2  ;;  %p51_p2 = scmp.eq.s32.totalorder %s2322_s22, 0 }
   0x5   : > { %s43_s25 = sadd.s32 1, %s2310_s19  ;;  %p1821_p5 = scmp.ge.s32.totalorder %s2322_s22, 2 }
   0x6   : > { %s2609_s23 = smov (%p28_p0, %s27_s23), 0  ;;  %p52_p3 = por %p51_p2, %p50_p1 }
   0x7   : > { %s39_s24 = ssub.s32 %s2318_s21, %s2609_s23  ;;  %243 = sbr.rel (%p1821_p5) target bundleno = 24 (0x18), region = 28 }
   0x8   : > { %p41_p4 = scmp.eq.s32.totalorder %s39_s24, 0 }
   0xa   : > { %s2391_s26 = scalar_select %p41_p4, %s2310_s19, %s43_s25  }
   0xe   : > { %246 = sbr.rel (!%p52_p3) target bundleno = 24 (0x18), region = 32  ;;  %s248_s27 = sand.u32 (%p52_p3), 1, %s2310_s19  }
   0xf   : > { %s1991_s28 = smul.u32 (%p52_p3), 36, %s2318_s21 }
  0x10   : > { %s2011_s29 = smul.u32 (%p52_p3), 72, %s248_s27 }
  0x11   : > { %s256_s7 = scalar_lea.vmem (%p52_p3), %s2598_s0, %s1991_s28 }
  0x12   : > { %v271_v0 = vld [vmem:[%s256_s7] sm:$0xff] (%p52_p3)  ;;  %v273_v1 = vld [vmem:[%s256_s7 + $0x8] sm:$0xff] (%p52_p3)  ;;  %v275_v2 = vld [vmem:[%s256_s7 + $0x10] sm:$0xff] (%p52_p3)  ;;  %s250_s8 = scalar_lea.vmem (%p52_p3), [#allocation3], %s2011_s29 }
  0x13   : > { %272 = vst [vmem:[%s250_s8] sm:$0xff] (%p52_p3), %v271_v0  ;;  %274 = vst [vmem:[%s250_s8 + $0x8] sm:$0xff] (%p52_p3), %v273_v1  ;;  %v277_v3 = vld [vmem:[%s256_s7 + $0x18] sm:$0xff] (%p52_p3)  ;;  %v279_v4 = vld [vmem:[%s256_s7 + $0x48] sm:$0xff] (%p52_p3) }
  0x14   : > { %276 = vst [vmem:[%s250_s8 + $0x10] sm:$0xff] (%p52_p3), %v275_v2  ;;  %v281_v5 = vld [vmem:[%s256_s7 + $0x50] sm:$0xff] (%p52_p3)  ;;  %278 = vst [vmem:[%s250_s8 + $0x18] sm:$0xff] (%p52_p3), %v277_v3  ;;  %v283_v6 = vld [vmem:[%s256_s7 + $0x58] sm:$0xff] (%p52_p3) }
  0x15   : > { %280 = vst [vmem:[%s250_s8 + $0x24] sm:$0xff] %v279_v4  ;;  %282 = vst [vmem:[%s250_s8 + $0x2c] sm:$0xff] %v281_v5  ;;  %v285_v7 = vld [vmem:[%s256_s7 + $0x60] sm:$0xff]  ;;  %v1825_v9 = vld [vmem:[%s256_s7 + $0x68] sm:$0xf] }
  0x16   : > { %v1823_v8 = vld [vmem:[%s256_s7 + $0x20] sm:$0xf]  ;;  %284 = vst [vmem:[%s250_s8 + $0x34] sm:$0xff] %v283_v6  ;;  %286 = vst [vmem:[%s250_s8 + $0x3c] sm:$0xff] %v285_v7 }
  0x17   : > { %1824 = vst [vmem:[%s250_s8 + $0x20] sm:$0xf] %v1823_v8  ;;  %1826 = vst [vmem:[%s250_s8 + $0x44] sm:$0xf] %v1825_v9 }
  0x18 PF: > { %p1827_p6 = scmp.ge.s32.totalorder %s2322_s22, 1  ;;  %p317_p7 = scmp.lt.s32.totalorder %s2322_s22, 3 }
  0x1a   : > { %p318_p8 = pnand %p1827_p6, %p317_p7 }
  0x1b   : > { %s324_s9 = sand.u32 (!%p318_p8), 1, %s2306_s18   ;;  %s386_s10 = smul.u32 (!%p318_p8), 144, %s2314_s20 }
  0x1c   : > { %321 = sbr.rel (%p318_p8) target bundleno = 442 (0x1ba), region = 62  ;;  %p1830_p10 = scmp.ne.s32.totalorder (!%p318_p8), %s2314_s20, 0 }
  0x1d   : > { %s2012_s11 = smul.u32 (!%p318_p8), 72, %s324_s9  ;;  %p388_p9 = scmp.lt.s32.totalorder (!%p318_p8), %s386_s10, 287 }
  0x1f   : > { %s2408_s16 = scalar_lea.vmem (!%p318_p8), [#allocation3], %s2012_s11 }
  0x23   : > { %s2611_s10 = smov (!%p388_p9, %s386_s10), 287  ;;  %436 = sbr.rel (%p1830_p10) target bundleno = 42 (0x2a), region = 70 }
  0x24   : > { %s1992_s12 = sshll.u32 %s2611_s10, 3  ;;  %v2324_v10 = vmov (!%p1830_p10), 0.0  }
  0x25   : > { %s2406_s15 = scalar_lea.vmem %s2599_s1, %s1992_s12  ;;  %437 = vst [vmem:[#allocation2] sm:$0xff] (!%p1830_p10), %v2324_v10  ;;  %438 = vst [vmem:[#allocation2 + $0x8] sm:$0xff] (!%p1830_p10), %v2324_v10 }
  0x26   : > { %439 = vst [vmem:[#allocation2 + $0x10] sm:$0xff] (!%p1830_p10), %v2324_v10  ;;  %440 = vst [vmem:[#allocation2 + $0x18] sm:$0xff] (!%p1830_p10), %v2324_v10 }
  0x2a PF: > { %v2055_v11 = vld [vmem:[%s2406_s15 + $0x4] ss:$8 sps:$4 sm:$0xff]   ;;  %v2059_v13 = vld [vmem:[%s2406_s15] ss:$8 sps:$4 sm:$0xff]   ;;  %v2061_v15 = vld [vmem:[%s2406_s15 + $0x14] ss:$8 sps:$4 sm:$0xff]  }
  0x2b   : > { %v2057_v12 = vld [vmem:[%s2406_s15 + $0x204] ss:$8 sps:$4 sm:$0xff]   ;;  %1365 = vmatprep.subr.bf16.mxu1 %v2055_v11  ;;  %v2060_v14 = vld [vmem:[%s2406_s15 + $0x200] ss:$8 sps:$4 sm:$0xff]   ;;  %v2063_v16 = vld [vmem:[%s2406_s15 + $0x214] ss:$8 sps:$4 sm:$0xff]  }
  0x2c   : > { %1451 = vmatprep.subr.bf16.mxu0 %v2057_v12  ;;  %1366 = vmatpush1.bf16.msra.mxu1 %v2059_v13  ;;  %v2065_v17 = vld [vmem:[%s2406_s15 + $0x10] ss:$8 sps:$4 sm:$0xff]   ;;  %v2067_v19 = vld [vmem:[%s2406_s15 + $0x24] ss:$8 sps:$4 sm:$0xff]   ;;  %v2071_v21 = vld [vmem:[%s2406_s15 + $0x20] ss:$8 sps:$4 sm:$0xff]  }
  0x2d   : > { %1452 = vmatpush1.bf16.msra.mxu0 %v2060_v14  ;;  %1367 = vmatprep.subr.bf16.mxu1 %v2061_v15  ;;  %v2066_v18 = vld [vmem:[%s2406_s15 + $0x210] ss:$8 sps:$4 sm:$0xff]   ;;  %v2069_v20 = vld [vmem:[%s2406_s15 + $0x224] ss:$8 sps:$4 sm:$0xff]   ;;  %v2072_v22 = vld [vmem:[%s2406_s15 + $0x220] ss:$8 sps:$4 sm:$0xff]  }
  0x2e   : > { %1453 = vmatprep.subr.bf16.mxu0 %v2063_v16  ;;  %v2073_v23 = vld [vmem:[%s2406_s15 + $0x34] ss:$8 sps:$4 sm:$0xff]   ;;  %v2077_v25 = vld [vmem:[%s2406_s15 + $0x30] ss:$8 sps:$4 sm:$0xff]   ;;  %v2079_v27 = vld [vmem:[%s2406_s15 + $0x44] ss:$8 sps:$4 sm:$0xff]  }
  0x2f   : > { %v2075_v24 = vld [vmem:[%s2406_s15 + $0x234] ss:$8 sps:$4 sm:$0xff]   ;;  %v2078_v26 = vld [vmem:[%s2406_s15 + $0x230] ss:$8 sps:$4 sm:$0xff]   ;;  %v2081_v28 = vld [vmem:[%s2406_s15 + $0x244] ss:$8 sps:$4 sm:$0xff]  }
  0x30   : > { %1368 = vmatpush1.bf16.msra.mxu1 %v2065_v17  ;;  %v2083_v29 = vld [vmem:[%s2406_s15 + $0x40] ss:$8 sps:$4 sm:$0xff]   ;;  %v2085_v31 = vld [vmem:[%s2406_s15 + $0x54] ss:$8 sps:$4 sm:$0xff]   ;;  %v2089_v33 = vld [vmem:[%s2406_s15 + $0x50] ss:$8 sps:$4 sm:$0xff]  }
  0x31   : > { %1454 = vmatpush1.bf16.msra.mxu0 %v2066_v18  ;;  %1369 = vmatprep.subr.bf16.mxu1 %v2067_v19  ;;  %v2084_v30 = vld [vmem:[%s2406_s15 + $0x240] ss:$8 sps:$4 sm:$0xff]   ;;  %v2087_v32 = vld [vmem:[%s2406_s15 + $0x254] ss:$8 sps:$4 sm:$0xff]   ;;  %v2090_v34 = vld [vmem:[%s2406_s15 + $0x250] ss:$8 sps:$4 sm:$0xff]  }
  0x32   : > { %1455 = vmatprep.subr.bf16.mxu0 %v2069_v20  ;;  %v2091_v35 = vld [vmem:[%s2406_s15 + $0x64] ss:$8 sps:$4 sm:$0xff]   ;;  %v2095_v37 = vld [vmem:[%s2406_s15 + $0x60] ss:$8 sps:$4 sm:$0xff]   ;;  %v2097_v39 = vld [vmem:[%s2406_s15 + $0x74] ss:$8 sps:$4 sm:$0xff]  }
  0x33   : > { %v2093_v36 = vld [vmem:[%s2406_s15 + $0x264] ss:$8 sps:$4 sm:$0xff]   ;;  %v2096_v38 = vld [vmem:[%s2406_s15 + $0x260] ss:$8 sps:$4 sm:$0xff]   ;;  %v2099_v40 = vld [vmem:[%s2406_s15 + $0x274] ss:$8 sps:$4 sm:$0xff]  }
  0x34   : > { %1370 = vmatpush1.bf16.msra.mxu1 %v2071_v21  ;;  %v2101_v41 = vld [vmem:[%s2406_s15 + $0x70] ss:$8 sps:$4 sm:$0xff]   ;;  %v2103_v43 = vld [vmem:[%s2406_s15 + $0x84] ss:$8 sps:$4 sm:$0xff]   ;;  %v2107_v45 = vld [vmem:[%s2406_s15 + $0x80] ss:$8 sps:$4 sm:$0xff]  }
  0x35   : > { %1456 = vmatpush1.bf16.msra.mxu0 %v2072_v22  ;;  %1371 = vmatprep.subr.bf16.mxu1 %v2073_v23  ;;  %v2102_v42 = vld [vmem:[%s2406_s15 + $0x270] ss:$8 sps:$4 sm:$0xff]   ;;  %v2105_v44 = vld [vmem:[%s2406_s15 + $0x284] ss:$8 sps:$4 sm:$0xff]   ;;  %v2108_v46 = vld [vmem:[%s2406_s15 + $0x280] ss:$8 sps:$4 sm:$0xff]  }
  0x36   : > { %1457 = vmatprep.subr.bf16.mxu0 %v2075_v24  ;;  %v2109_v47 = vld [vmem:[%s2406_s15 + $0x94] ss:$8 sps:$4 sm:$0xff]   ;;  %v2113_v49 = vld [vmem:[%s2406_s15 + $0x90] ss:$8 sps:$4 sm:$0xff]   ;;  %v2115_v51 = vld [vmem:[%s2406_s15 + $0xa4] ss:$8 sps:$4 sm:$0xff]  }
  0x37   : > { %v2111_v48 = vld [vmem:[%s2406_s15 + $0x294] ss:$8 sps:$4 sm:$0xff]   ;;  %v2114_v50 = vld [vmem:[%s2406_s15 + $0x290] ss:$8 sps:$4 sm:$0xff]   ;;  %v2117_v52 = vld [vmem:[%s2406_s15 + $0x2a4] ss:$8 sps:$4 sm:$0xff]  }
  0x38   : > { %1372 = vmatpush1.bf16.msra.mxu1 %v2077_v25  ;;  %v2119_v53 = vld [vmem:[%s2406_s15 + $0xa0] ss:$8 sps:$4 sm:$0xff]   ;;  %v2121_v55 = vld [vmem:[%s2406_s15 + $0xb4] ss:$8 sps:$4 sm:$0xff]   ;;  %v2125_v57 = vld [vmem:[%s2406_s15 + $0xb0] ss:$8 sps:$4 sm:$0xff]  }
  0x39   : > { %1458 = vmatpush1.bf16.msra.mxu0 %v2078_v26  ;;  %1373 = vmatprep.subr.bf16.mxu1 %v2079_v27  ;;  %v2120_v54 = vld [vmem:[%s2406_s15 + $0x2a0] ss:$8 sps:$4 sm:$0xff]   ;;  %v2123_v56 = vld [vmem:[%s2406_s15 + $0x2b4] ss:$8 sps:$4 sm:$0xff]   ;;  %v2126_v58 = vld [vmem:[%s2406_s15 + $0x2b0] ss:$8 sps:$4 sm:$0xff]  }
  0x3a   : > { %1459 = vmatprep.subr.bf16.mxu0 %v2081_v28  ;;  %v2153_v59 = vld [vmem:[%s2408_s16 + $0x4] ss:$36 sps:$4 sm:$0xff]   ;;  %v2159_v62 = vld [vmem:[%s2408_s16 + $0x14] ss:$36 sps:$4 sm:$0xff]   ;;  %p1984_p11 = scmp.ne.s32.totalorder %s2314_s20, 1 }
  0x3b   : > { %v2127_v60 = vld [vmem:[%s2406_s15 + $0xc4] ss:$8 sps:$4 sm:$0xff]   ;;  %1397 = vmatprep.mubr.bf16.mxu1 %v2153_v59  ;;  %v2131_v63 = vld [vmem:[%s2406_s15 + $0xc0] ss:$8 sps:$4 sm:$0xff]   ;;  %v2133_v1 = vld [vmem:[%s2406_s15 + $0xd4] ss:$8 sps:$4 sm:$0xff]   ;;  %1483 = vmatprep.mubr.bf16.mxu0 %v2159_v62 }
  0x3c   : > { %1374 = vmatpush1.bf16.msra.mxu1 %v2083_v29  ;;  %v2129_v61 = vld [vmem:[%s2406_s15 + $0x2c4] ss:$8 sps:$4 sm:$0xff]   ;;  %v2132_v0 = vld [vmem:[%s2406_s15 + $0x2c0] ss:$8 sps:$4 sm:$0xff]   ;;  %v2135_v2 = vld [vmem:[%s2406_s15 + $0x2d4] ss:$8 sps:$4 sm:$0xff]  }
  0x3d   : > { %1460 = vmatpush1.bf16.msra.mxu0 %v2084_v30  ;;  %1375 = vmatprep.subr.bf16.mxu1 %v2085_v31  ;;  %v2137_v3 = vld [vmem:[%s2406_s15 + $0xd0] ss:$8 sps:$4 sm:$0xff]   ;;  %v2139_v5 = vld [vmem:[%s2406_s15 + $0xe4] ss:$8 sps:$4 sm:$0xff]   ;;  %v2143_v7 = vld [vmem:[%s2406_s15 + $0xe0] ss:$8 sps:$4 sm:$0xff]  }
  0x3e   : > { %1461 = vmatprep.subr.bf16.mxu0 %v2087_v32  ;;  %v2138_v4 = vld [vmem:[%s2406_s15 + $0x2d0] ss:$8 sps:$4 sm:$0xff]   ;;  %v2141_v6 = vld [vmem:[%s2406_s15 + $0x2e4] ss:$8 sps:$4 sm:$0xff]   ;;  %v2144_v8 = vld [vmem:[%s2406_s15 + $0x2e0] ss:$8 sps:$4 sm:$0xff]  }
  0x3f   : > { %v2145_v9 = vld [vmem:[%s2406_s15 + $0xf4] ss:$8 sps:$4 sm:$0xff]   ;;  %v2149_v11 = vld [vmem:[%s2406_s15 + $0xf0] ss:$8 sps:$4 sm:$0xff]   ;;  %v2156_v13 = vld [vmem:[%s2406_s15 + $0x104] ss:$8 sps:$4 sm:$0xff]  }
  0x40   : > { %1376 = vmatpush1.bf16.msra.mxu1 %v2089_v33  ;;  %v2147_v10 = vld [vmem:[%s2406_s15 + $0x2f4] ss:$8 sps:$4 sm:$0xff]   ;;  %v2150_v12 = vld [vmem:[%s2406_s15 + $0x2f0] ss:$8 sps:$4 sm:$0xff]   ;;  %v2162_v14 = vld [vmem:[%s2406_s15 + $0x304] ss:$8 sps:$4 sm:$0xff]  }
  0x41   : > { %1462 = vmatpush1.bf16.msra.mxu0 %v2090_v34  ;;  %1377 = vmatprep.subr.bf16.mxu1 %v2091_v35  ;;  %v2151_v15 = vld [vmem:[%s2408_s16] ss:$36 sps:$4 sm:$0xff]   ;;  %v2157_v17 = vld [vmem:[%s2408_s16 + $0x10] ss:$36 sps:$4 sm:$0xff]  }
  0x42   : > { %1463 = vmatprep.subr.bf16.mxu0 %v2093_v36  ;;  %v2154_v16 = vld [vmem:[%s2406_s15 + $0x100] ss:$8 sps:$4 sm:$0xff]   ;;  %v2165_v19 = vld [vmem:[%s2406_s15 + $0x114] ss:$8 sps:$4 sm:$0xff]   ;;  %v2163_v21 = vld [vmem:[%s2406_s15 + $0x110] ss:$8 sps:$4 sm:$0xff]  }
  0x43   : > { %v2160_v18 = vld [vmem:[%s2406_s15 + $0x300] ss:$8 sps:$4 sm:$0xff]   ;;  %v2168_v20 = vld [vmem:[%s2406_s15 + $0x314] ss:$8 sps:$4 sm:$0xff]   ;;  %v2166_v22 = vld [vmem:[%s2406_s15 + $0x310] ss:$8 sps:$4 sm:$0xff]  }
  0x44   : > { %1378 = vmatpush1.bf16.msra.mxu1 %v2095_v37  ;;  %v2171_v23 = vld [vmem:[%s2406_s15 + $0x124] ss:$8 sps:$4 sm:$0xff]   ;;  %v2169_v25 = vld [vmem:[%s2406_s15 + $0x120] ss:$8 sps:$4 sm:$0xff]   ;;  %v2177_v27 = vld [vmem:[%s2406_s15 + $0x134] ss:$8 sps:$4 sm:$0xff]  }
  0x45   : > { %1464 = vmatpush1.bf16.msra.mxu0 %v2096_v38  ;;  %1379 = vmatprep.subr.bf16.mxu1 %v2097_v39  ;;  %v2174_v24 = vld [vmem:[%s2406_s15 + $0x324] ss:$8 sps:$4 sm:$0xff]   ;;  %v2172_v26 = vld [vmem:[%s2406_s15 + $0x320] ss:$8 sps:$4 sm:$0xff]   ;;  %v2180_v28 = vld [vmem:[%s2406_s15 + $0x334] ss:$8 sps:$4 sm:$0xff]  }
  0x46   : > { %1465 = vmatprep.subr.bf16.mxu0 %v2099_v40  ;;  %v2175_v29 = vld [vmem:[%s2406_s15 + $0x130] ss:$8 sps:$4 sm:$0xff]   ;;  %v2183_v31 = vld [vmem:[%s2406_s15 + $0x144] ss:$8 sps:$4 sm:$0xff]   ;;  %v2181_v33 = vld [vmem:[%s2406_s15 + $0x140] ss:$8 sps:$4 sm:$0xff]  }
  0x47   : > { %v2178_v30 = vld [vmem:[%s2406_s15 + $0x330] ss:$8 sps:$4 sm:$0xff]   ;;  %v2186_v32 = vld [vmem:[%s2406_s15 + $0x344] ss:$8 sps:$4 sm:$0xff]   ;;  %v2184_v34 = vld [vmem:[%s2406_s15 + $0x340] ss:$8 sps:$4 sm:$0xff]  }
  0x48   : > { %1380 = vmatpush1.bf16.msra.mxu1 %v2101_v41  ;;  %v2189_v35 = vld [vmem:[%s2406_s15 + $0x154] ss:$8 sps:$4 sm:$0xff]   ;;  %v2187_v37 = vld [vmem:[%s2406_s15 + $0x150] ss:$8 sps:$4 sm:$0xff]   ;;  %v2195_v39 = vld [vmem:[%s2406_s15 + $0x164] ss:$8 sps:$4 sm:$0xff]  }
  0x49   : > { %1466 = vmatpush1.bf16.msra.mxu0 %v2102_v42  ;;  %1381 = vmatprep.subr.bf16.mxu1 %v2103_v43  ;;  %v2192_v36 = vld [vmem:[%s2406_s15 + $0x354] ss:$8 sps:$4 sm:$0xff]   ;;  %v2190_v38 = vld [vmem:[%s2406_s15 + $0x350] ss:$8 sps:$4 sm:$0xff]   ;;  %v2198_v40 = vld [vmem:[%s2406_s15 + $0x364] ss:$8 sps:$4 sm:$0xff]  }
  0x4a   : > { %1467 = vmatprep.subr.bf16.mxu0 %v2105_v44  ;;  %v2193_v41 = vld [vmem:[%s2406_s15 + $0x160] ss:$8 sps:$4 sm:$0xff]   ;;  %v2201_v43 = vld [vmem:[%s2406_s15 + $0x174] ss:$8 sps:$4 sm:$0xff]  }
  0x4b   : > { %v2196_v42 = vld [vmem:[%s2406_s15 + $0x360] ss:$8 sps:$4 sm:$0xff]   ;;  %v2204_v44 = vld [vmem:[%s2406_s15 + $0x374] ss:$8 sps:$4 sm:$0xff]  }
  0x4c   : > { %1382 = vmatpush1.bf16.msra.mxu1 %v2107_v45  ;;  %v2255_v45 = vld [vmem:[%s2408_s16 + $0xc] ss:$36 sps:$4 sm:$0xff]   ;;  %v2217_v59 = vld [vmem:[%s2406_s15 + $0x1a0] ss:$8 sps:$4 sm:$0xff]  }
  0x4d   : > { %1468 = vmatpush1.bf16.msra.mxu0 %v2108_v46  ;;  %1383 = vmatprep.subr.bf16.mxu1 %v2109_v47  ;;  %v2258_v46 = vld [vmem:[%s2408_s16 + $0x1c] ss:$36 sps:$4 sm:$0xff]   ;;  %v2199_v47 = vld [vmem:[%s2406_s15 + $0x170] ss:$8 sps:$4 sm:$0xff]  }
  0x4e   : > { %1469 = vmatprep.subr.bf16.mxu0 %v2111_v48  ;;  %v2202_v48 = vld [vmem:[%s2406_s15 + $0x370] ss:$8 sps:$4 sm:$0xff]   ;;  %v2228_v62 = vld [vmem:[%s2406_s15 + $0x3b4] ss:$8 sps:$4 sm:$0xff]  }
  0x50   : > { %1384 = vmatpush1.bf16.msra.mxu1 %v2113_v49  ;;  %v2207_v49 = vld [vmem:[%s2406_s15 + $0x184] ss:$8 sps:$4 sm:$0xff]  }
  0x51   : > { %1470 = vmatpush1.bf16.msra.mxu0 %v2114_v50  ;;  %1385 = vmatprep.subr.bf16.mxu1 %v2115_v51  ;;  %v2210_v50 = vld [vmem:[%s2406_s15 + $0x384] ss:$8 sps:$4 sm:$0xff]   ;;  %v2205_v51 = vld [vmem:[%s2406_s15 + $0x180] ss:$8 sps:$4 sm:$0xff]  }
  0x52   : > { %1471 = vmatprep.subr.bf16.mxu0 %v2117_v52  ;;  %v2208_v52 = vld [vmem:[%s2406_s15 + $0x380] ss:$8 sps:$4 sm:$0xff]  }
  0x54   : > { %1386 = vmatpush1.bf16.msra.mxu1 %v2119_v53  ;;  %v2213_v53 = vld [vmem:[%s2406_s15 + $0x194] ss:$8 sps:$4 sm:$0xff]  }
  0x55   : > { %1472 = vmatpush1.bf16.msra.mxu0 %v2120_v54  ;;  %1387 = vmatprep.subr.bf16.mxu1 %v2121_v55  ;;  %v2216_v54 = vld [vmem:[%s2406_s15 + $0x394] ss:$8 sps:$4 sm:$0xff]   ;;  %v2211_v55 = vld [vmem:[%s2406_s15 + $0x190] ss:$8 sps:$4 sm:$0xff]  }
  0x56   : > { %1473 = vmatprep.subr.bf16.mxu0 %v2123_v56  ;;  %v2214_v56 = vld [vmem:[%s2406_s15 + $0x390] ss:$8 sps:$4 sm:$0xff]  }
  0x58   : > { %1388 = vmatpush1.bf16.msra.mxu1 %v2125_v57  ;;  %v2219_v57 = vld [vmem:[%s2406_s15 + $0x1a4] ss:$8 sps:$4 sm:$0xff]  }
  0x59   : > { %1474 = vmatpush1.bf16.msra.mxu0 %v2126_v58  ;;  %1389 = vmatprep.subr.bf16.mxu1 %v2127_v60  ;;  %v2222_v58 = vld [vmem:[%s2406_s15 + $0x3a4] ss:$8 sps:$4 sm:$0xff]   ;;  %v2220_v60 = vld [vmem:[%s2406_s15 + $0x3a0] ss:$8 sps:$4 sm:$0xff]  }
  0x5a   : > { %1475 = vmatprep.subr.bf16.mxu0 %v2129_v61  ;;  %v2225_v61 = vld [vmem:[%s2406_s15 + $0x1b4] ss:$8 sps:$4 sm:$0xff]  }
  0x5c   : > { %1390 = vmatpush1.bf16.msra.mxu1 %v2131_v63  ;;  %v2223_v63 = vld [vmem:[%s2406_s15 + $0x1b0] ss:$8 sps:$4 sm:$0xff]  }
  0x5d   : > { %1476 = vmatpush1.bf16.msra.mxu0 %v2132_v0  ;;  %1391 = vmatprep.subr.bf16.mxu1 %v2133_v1  ;;  %v2226_v0 = vld [vmem:[%s2406_s15 + $0x3b0] ss:$8 sps:$4 sm:$0xff]   ;;  %v2231_v1 = vld [vmem:[%s2406_s15 + $0x1c4] ss:$8 sps:$4 sm:$0xff]  }
  0x5e   : > { %1477 = vmatprep.subr.bf16.mxu0 %v2135_v2  ;;  %v2234_v2 = vld [vmem:[%s2406_s15 + $0x3c4] ss:$8 sps:$4 sm:$0xff]  }
  0x60   : > { %1392 = vmatpush1.bf16.msra.mxu1 %v2137_v3  ;;  %v2229_v3 = vld [vmem:[%s2406_s15 + $0x1c0] ss:$8 sps:$4 sm:$0xff]  }
  0x61   : > { %1478 = vmatpush1.bf16.msra.mxu0 %v2138_v4  ;;  %1393 = vmatprep.subr.bf16.mxu1 %v2139_v5  ;;  %v2232_v4 = vld [vmem:[%s2406_s15 + $0x3c0] ss:$8 sps:$4 sm:$0xff]   ;;  %v2237_v5 = vld [vmem:[%s2406_s15 + $0x1d4] ss:$8 sps:$4 sm:$0xff]  }
  0x62   : > { %1479 = vmatprep.subr.bf16.mxu0 %v2141_v6  ;;  %v2240_v6 = vld [vmem:[%s2406_s15 + $0x3d4] ss:$8 sps:$4 sm:$0xff]  }
  0x64   : > { %1394 = vmatpush1.bf16.msra.mxu1 %v2143_v7  ;;  %v2235_v7 = vld [vmem:[%s2406_s15 + $0x1d0] ss:$8 sps:$4 sm:$0xff]  }
  0x65   : > { %1480 = vmatpush1.bf16.msra.mxu0 %v2144_v8  ;;  %1395 = vmatprep.subr.bf16.mxu1 %v2145_v9  ;;  %v2238_v8 = vld [vmem:[%s2406_s15 + $0x3d0] ss:$8 sps:$4 sm:$0xff]   ;;  %v2243_v9 = vld [vmem:[%s2406_s15 + $0x1e4] ss:$8 sps:$4 sm:$0xff]  }
  0x66   : > { %1481 = vmatprep.subr.bf16.mxu0 %v2147_v10  ;;  %v2246_v10 = vld [vmem:[%s2406_s15 + $0x3e4] ss:$8 sps:$4 sm:$0xff]  }
  0x68   : > { %1396 = vmatpush1.bf16.msra.mxu1 %v2149_v11  ;;  %v2241_v11 = vld [vmem:[%s2406_s15 + $0x1e0] ss:$8 sps:$4 sm:$0xff]  }
  0x69   : > { %1482 = vmatpush1.bf16.msra.mxu0 %v2150_v12  ;;  %1408 = vmatprep.subr.bf16.mxu1 %v2156_v13  ;;  %v2244_v12 = vld [vmem:[%s2406_s15 + $0x3e0] ss:$8 sps:$4 sm:$0xff]   ;;  %v2249_v13 = vld [vmem:[%s2406_s15 + $0x1f4] ss:$8 sps:$4 sm:$0xff]  }
  0x6a   : > { %1494 = vmatprep.subr.bf16.mxu0 %v2162_v14  ;;  %v2252_v14 = vld [vmem:[%s2406_s15 + $0x3f4] ss:$8 sps:$4 sm:$0xff]  }
  0x6b   : > { %1398 = vmatmul.mubr.bf16.vlgmr.msra.gmra.mrb[0].mxu1 %v2151_v15  ;;  %v2247_v15 = vld [vmem:[%s2406_s15 + $0x1f0] ss:$8 sps:$4 sm:$0xff]  }
  0x6c   : > { %1484 = vmatmul.mubr.bf16.vlgmr.msra.gmra.mrb[0].mxu0 %v2157_v17  ;;  %1409 = vmatpush1.bf16.msra.mxu1 %v2154_v16  ;;  %v2250_v16 = vld [vmem:[%s2406_s15 + $0x3f0] ss:$8 sps:$4 sm:$0xff]   ;;  %v2261_v17 = vld [vmem:[%s2406_s15 + $0x404] ss:$8 sps:$4 sm:$0xff]  }
  0x6d   : > { %1495 = vmatpush1.bf16.msra.mxu0 %v2160_v18  ;;  %1410 = vmatprep.subr.bf16.mxu1 %v2165_v19  ;;  %v2253_v18 = vld [vmem:[%s2408_s16 + $0x8] ss:$36 sps:$4 sm:$0xff]   ;;  %v2256_v19 = vld [vmem:[%s2408_s16 + $0x18] ss:$36 sps:$4 sm:$0xff]  }
  0x6e   : > { %1496 = vmatprep.subr.bf16.mxu0 %v2168_v20  ;;  %1440 = vmatprep.mubr.bf16.mxu1 %v2255_v45  ;;  %v2259_v20 = vld [vmem:[%s2406_s15 + $0x400] ss:$8 sps:$4 sm:$0xff]  }
  0x6f   : > { %1526 = vmatprep.mubr.bf16.mxu0 %v2258_v46 }
  0x70   : > { %1411 = vmatpush1.bf16.msra.mxu1 %v2163_v21  ;;  %v2264_v21 = vld [vmem:[%s2406_s15 + $0x414] ss:$8 sps:$4 sm:$0xff]  }
  0x71   : > { %1497 = vmatpush1.bf16.msra.mxu0 %v2166_v22  ;;  %1412 = vmatprep.subr.bf16.mxu1 %v2171_v23  ;;  %v2262_v22 = vld [vmem:[%s2406_s15 + $0x410] ss:$8 sps:$4 sm:$0xff]   ;;  %v2325_v23 = vmov 0  }
  0x72   : > { %1498 = vmatprep.subr.bf16.mxu0 %v2174_v24  ;;  %v2267_v24 = vld [vmem:[%s2406_s15 + $0x424] ss:$8 sps:$4 sm:$0xff]  }
  0x74   : > { %1413 = vmatpush1.bf16.msra.mxu1 %v2169_v25  ;;  %v2265_v25 = vld [vmem:[%s2406_s15 + $0x420] ss:$8 sps:$4 sm:$0xff]  }
  0x75   : > { %1499 = vmatpush1.bf16.msra.mxu0 %v2172_v26  ;;  %1414 = vmatprep.subr.bf16.mxu1 %v2177_v27  ;;  %v2270_v26 = vld [vmem:[%s2406_s15 + $0x434] ss:$8 sps:$4 sm:$0xff]   ;;  %v2268_v27 = vld [vmem:[%s2406_s15 + $0x430] ss:$8 sps:$4 sm:$0xff]  }
  0x76   : > { %1500 = vmatprep.subr.bf16.mxu0 %v2180_v28  ;;  %v2273_v28 = vld [vmem:[%s2406_s15 + $0x444] ss:$8 sps:$4 sm:$0xff]  }
  0x78   : > { %1415 = vmatpush1.bf16.msra.mxu1 %v2175_v29  ;;  %v2271_v29 = vld [vmem:[%s2406_s15 + $0x440] ss:$8 sps:$4 sm:$0xff]  }
  0x79   : > { %1501 = vmatpush1.bf16.msra.mxu0 %v2178_v30  ;;  %1416 = vmatprep.subr.bf16.mxu1 %v2183_v31  ;;  %v2276_v30 = vld [vmem:[%s2406_s15 + $0x454] ss:$8 sps:$4 sm:$0xff]   ;;  %v2274_v31 = vld [vmem:[%s2406_s15 + $0x450] ss:$8 sps:$4 sm:$0xff]  }
  0x7a   : > { %1502 = vmatprep.subr.bf16.mxu0 %v2186_v32  ;;  %v2279_v32 = vld [vmem:[%s2406_s15 + $0x464] ss:$8 sps:$4 sm:$0xff]  }
  0x7c   : > { %1417 = vmatpush1.bf16.msra.mxu1 %v2181_v33  ;;  %v2277_v33 = vld [vmem:[%s2406_s15 + $0x460] ss:$8 sps:$4 sm:$0xff]  }
  0x7d   : > { %1503 = vmatpush1.bf16.msra.mxu0 %v2184_v34  ;;  %1418 = vmatprep.subr.bf16.mxu1 %v2189_v35  ;;  %v2282_v34 = vld [vmem:[%s2406_s15 + $0x474] ss:$8 sps:$4 sm:$0xff]   ;;  %v2280_v35 = vld [vmem:[%s2406_s15 + $0x470] ss:$8 sps:$4 sm:$0xff]  }
  0x7e   : > { %1504 = vmatprep.subr.bf16.mxu0 %v2192_v36  ;;  %v2283_v36 = vld [vmem:[%s2408_s16 + $0x20] ss:$36 sps:$4 sm:$0xff]  }
  0x80   : > { %1419 = vmatpush1.bf16.msra.mxu1 %v2187_v37 }
  0x81   : > { %1505 = vmatpush1.bf16.msra.mxu0 %v2190_v38  ;;  %1420 = vmatprep.subr.bf16.mxu1 %v2195_v39 }
  0x82   : > { %1506 = vmatprep.subr.bf16.mxu0 %v2198_v40 }
  0x84   : > { %1421 = vmatpush1.bf16.msra.mxu1 %v2193_v41  ;;  %v441_v41 = vld [vmem:[#allocation2] sm:$0xff] }
  0x85   : > { %1507 = vmatpush1.bf16.msra.mxu0 %v2196_v42  ;;  %1422 = vmatprep.subr.bf16.mxu1 %v2201_v43 }
  0x86   : > { %1508 = vmatprep.subr.bf16.mxu0 %v2204_v44  ;;  %v442_v44 = vld [vmem:[#allocation2 + $0x8] sm:$0xff] }
  0x88   : > { %1423 = vmatpush1.bf16.msra.mxu1 %v2199_v47  ;;  %v443_v47 = vld [vmem:[#allocation2 + $0x10] sm:$0xff] }
  0x89   : > { %1509 = vmatpush1.bf16.msra.mxu0 %v2202_v48  ;;  %1424 = vmatprep.subr.bf16.mxu1 %v2207_v49 }
  0x8a   : > { %1510 = vmatprep.subr.bf16.mxu0 %v2210_v50 }
  0x8c   : > { %1425 = vmatpush1.bf16.msra.mxu1 %v2205_v51  ;;  %v444_v51 = vld [vmem:[#allocation2 + $0x18] sm:$0xff] }
  0x8d   : > { %1511 = vmatpush1.bf16.msra.mxu0 %v2208_v52  ;;  %1426 = vmatprep.subr.bf16.mxu1 %v2213_v53 }
  0x8e   : > { %1512 = vmatprep.subr.bf16.mxu0 %v2216_v54 }
  0x90   : > { %1427 = vmatpush1.bf16.msra.mxu1 %v2211_v55 }
  0x91   : > { %1513 = vmatpush1.bf16.msra.mxu0 %v2214_v56  ;;  %1428 = vmatprep.subr.bf16.mxu1 %v2219_v57  ;;  %v1598_v57 = vlaneseq (!%p1984_p11) }
  0x92   : > { %1514 = vmatprep.subr.bf16.mxu0 %v2222_v58 }
  0x93   : > { %v1599_v58 = vshrl.u32 (!%p1984_p11), %v1598_v57, 7 }
  0x94   : > { %1429 = vmatpush1.bf16.msra.mxu1 %v2217_v59  ;;  %v1596_v59 = vld [vmem:[%s2600_s2] sm:$0x3] (!%p1984_p11) }
  0x95   : > { %1515 = vmatpush1.bf16.msra.mxu0 %v2220_v60  ;;  %1430 = vmatprep.subr.bf16.mxu1 %v2225_v61  ;;  %v1612_v60 = vld [vmem:[%s2601_s3] sm:$0x3] (!%p1984_p11) }
  0x96   : > { %1516 = vmatprep.subr.bf16.mxu0 %v2228_v62  ;;  %v1600_v62 = vsub.s32 (!%p1984_p11), 0, %v1599_v58 }
  0x98   : > { %1431 = vmatpush1.bf16.msra.mxu1 %v2223_v63  ;;  %v1604_v63 = vsub.s32 (!%p1984_p11), 1, %v1599_v58 }
  0x99   : > { %1517 = vmatpush1.bf16.msra.mxu0 %v2226_v0  ;;  %1432 = vmatprep.subr.bf16.mxu1 %v2231_v1  ;;  %v1628_v0 = vld [vmem:[%s2602_s4] sm:$0xff] (!%p1984_p11)  ;;  %v1629_v1 = vld [vmem:[%s2602_s4 + $0x8] sm:$0xff] (!%p1984_p11) }
  0x9a   : > { %1518 = vmatprep.subr.bf16.mxu0 %v2234_v2 }
  0x9c   : > { %1433 = vmatpush1.bf16.msra.mxu1 %v2229_v3 }
  0x9d   : > { %1519 = vmatpush1.bf16.msra.mxu0 %v2232_v4  ;;  %1434 = vmatprep.subr.bf16.mxu1 %v2237_v5  ;;  %v1601_v5 = vrot.slane (!%p1984_p11), %v1596_v59, %v1600_v62 }
  0x9e   : > { %1520 = vmatprep.subr.bf16.mxu0 %v2240_v6  ;;  %v1605_v6 = vrot.slane (!%p1984_p11), %v1596_v59, %v1604_v63 }
  0xa0   : > { %1435 = vmatpush1.bf16.msra.mxu1 %v2235_v7  ;;  %v1617_v7 = vrot.slane (!%p1984_p11), %v1612_v60, %v1600_v62 }
  0xa1   : > { %1521 = vmatpush1.bf16.msra.mxu0 %v2238_v8  ;;  %1436 = vmatprep.subr.bf16.mxu1 %v2243_v9  ;;  %v1621_v8 = vrot.slane (!%p1984_p11), %v1612_v60, %v1604_v63  ;;  %v1630_v9 = vunpack.c.l.bf16 (!%p1984_p11), %v1628_v0 }
  0xa2   : > { %1522 = vmatprep.subr.bf16.mxu0 %v2246_v10  ;;  %v1631_v10 = vunpack.c.h.bf16 (!%p1984_p11), %v1628_v0 }
  0xa4   : > { %1437 = vmatpush1.bf16.msra.mxu1 %v2241_v11  ;;  %v1632_v11 = vunpack.c.l.bf16 (!%p1984_p11), %v1629_v1 }
  0xa5   : > { %1523 = vmatpush1.bf16.msra.mxu0 %v2244_v12  ;;  %1438 = vmatprep.subr.bf16.mxu1 %v2249_v13  ;;  %v1633_v12 = vunpack.c.h.bf16 (!%p1984_p11), %v1629_v1 }
  0xa6   : > { %1524 = vmatprep.subr.bf16.mxu0 %v2252_v14 }
  0xa8   : > { %1439 = vmatpush1.bf16.msra.mxu1 %v2247_v15 }
  0xa9   : > { %1525 = vmatpush1.bf16.msra.mxu0 %v2250_v16 }
  0xaa   : > { %1537 = vmatprep.subr.bf16.mxu0 %v2261_v17 }
  0xab   : > { %1441 = vmatmul.mubr.bf16.vlgmr.msra.gmra.mrb[0].mxu1 %v2253_v18 }
  0xac   : > { %1527 = vmatmul.mubr.bf16.vlgmr.msra.gmra.mrb[0].mxu0 %v2256_v19 }
  0xad   : > { %1538 = vmatpush1.bf16.msra.mxu0 %v2259_v20  ;;  %1569 = vmatprep.mubr.bf16.mxu0 %v2325_v23 }
  0xae   : > { %1539 = vmatprep.subr.bf16.mxu0 %v2264_v21 }
  0xb1   : > { %1540 = vmatpush1.bf16.msra.mxu0 %v2262_v22 }
  0xb2   : > { %1541 = vmatprep.subr.bf16.mxu0 %v2267_v24 }
  0xb5   : > { %1542 = vmatpush1.bf16.msra.mxu0 %v2265_v25 }
  0xb6   : > { %1543 = vmatprep.subr.bf16.mxu0 %v2270_v26 }
  0xb9   : > { %1544 = vmatpush1.bf16.msra.mxu0 %v2268_v27 }
  0xba   : > { %1545 = vmatprep.subr.bf16.mxu0 %v2273_v28 }
  0xbd   : > { %1546 = vmatpush1.bf16.msra.mxu0 %v2271_v29 }
  0xbe   : > { %1547 = vmatprep.subr.bf16.mxu0 %v2276_v30 }
  0xc1   : > { %1548 = vmatpush1.bf16.msra.mxu0 %v2274_v31 }
  0xc2   : > { %1549 = vmatprep.subr.bf16.mxu0 %v2279_v32 }
  0xc5   : > { %1550 = vmatpush1.bf16.msra.mxu0 %v2277_v33 }
  0xc6   : > { %1551 = vmatprep.subr.bf16.mxu0 %v2282_v34 }
  0xc9   : > { %1552 = vmatpush1.bf16.msra.mxu0 %v2280_v35 }
  0xcc   : > { %1570 = vmatmul.mubr.bf16.vlgmr.msra.gmra.mrb[0].mxu0 %v2283_v36 }
 0x17e   : > { %v1442_v37 = vpop.f32.mrb[0].mxu1 }
 0x17f   : > { %v1444_v38 = vpop.f32.mrb[1].mxu1 }
 0x180   : > { %v1446_v39 = vpop.f32.mrb[2].mxu1 }
 0x181   : > { %v1448_v40 = vpop.f32.mrb[3].mxu1 }
 0x19f   : > { %v1571_v42 = vpop.f32.mrb[0].mxu0 }
 0x1a0   : > { %v1995_v43 = vadd.f32 %v1571_v42, %v1442_v37  ;;  %v1573_v45 = vpop.f32.mrb[1].mxu0 }
 0x1a1   : > { %v1996_v46 = vadd.f32 %v1573_v45, %v1444_v38  ;;  %v1575_v48 = vpop.f32.mrb[2].mxu0  ;;  %1591 = sbr.rel (%p1984_p11) target bundleno = 442 (0x1ba), region = 74 }
 0x1a2   : > { %v1580_v49 = vadd.f32 %v1995_v43, %v441_v41  ;;  %v1997_v50 = vadd.f32 %v1575_v48, %v1446_v39  ;;  %v1577_v52 = vpop.f32.mrb[3].mxu0 }
 0x1a3   : > { %v1581_v53 = vadd.f32 %v1996_v46, %v442_v44  ;;  %v1998_v54 = vadd.f32 %v1577_v52, %v1448_v40 }
 0x1a4   : > { %1584 = vst [vmem:[#allocation2] sm:$0xff] %v1580_v49  ;;  %v1582_v55 = vadd.f32 %v1997_v50, %v443_v47 }
 0x1a5   : > { %1585 = vst [vmem:[#allocation2 + $0x8] sm:$0xff] %v1581_v53  ;;  %v1583_v56 = vadd.f32 %v1998_v54, %v444_v51 }
 0x1a6   : > { %1586 = vst [vmem:[#allocation2 + $0x10] sm:$0xff] %v1582_v55 }
 0x1a7   : > { %1587 = vst [vmem:[#allocation2 + $0x18] sm:$0xff] %v1583_v56 }
 0x1ab   : > { %v1592_v61 = vld [vmem:[#allocation2] sm:$0xff] }
 0x1ac   : > { %v1593_v2 = vld [vmem:[#allocation2 + $0x8] sm:$0xff]  ;;  %v1608_v13 = vmul.f32 %v1601_v5, %v1592_v61 }
 0x1ad   : > { %v1594_v3 = vld [vmem:[#allocation2 + $0x10] sm:$0xff]  ;;  %v1609_v14 = vmul.f32 %v1605_v6, %v1593_v2 }
 0x1ae   : > { %v1595_v4 = vld [vmem:[#allocation2 + $0x18] sm:$0xff]  ;;  %v1610_v15 = vmul.f32 %v1601_v5, %v1594_v3  ;;  %v1624_v17 = vadd.f32 %v1617_v7, %v1608_v13 }
 0x1af   : > { %v1611_v16 = vmul.f32 %v1605_v6, %v1595_v4  ;;  %v1625_v18 = vadd.f32 %v1621_v8, %v1609_v14 }
 0x1b0   : > { %v1626_v19 = vadd.f32 %v1617_v7, %v1610_v15  ;;  %v1634_v21 = vadd.f32 %v1630_v9, %v1624_v17 }
 0x1b1   : > { %v1627_v20 = vadd.f32 %v1621_v8, %v1611_v16  ;;  %v1635_v22 = vadd.f32 %v1631_v10, %v1625_v18 }
 0x1b2   : > { %v1636_v23 = vadd.f32 %v1632_v11, %v1626_v19  ;;  %v1638_v25 = vmax.f32 %v1634_v21, 0.0 }
 0x1b3   : > { %v1637_v24 = vadd.f32 %v1633_v12, %v1627_v20  ;;  %v1639_v26 = vmax.f32 %v1635_v22, 0.0 }
 0x1b4   : > { %v1640_v27 = vmax.f32 %v1636_v23, 0.0 }
 0x1b5   : > { %v1641_v28 = vmax.f32 %v1637_v24, 0.0  ;;  %v1993_v29 = vpack.c.bf16 %v1639_v26, %v1638_v25 }
 0x1b7   : > { %v1994_v30 = vpack.c.bf16 %v1641_v28, %v1640_v27  ;;  %1654 = vst [vmem:[%s2603_s5] sm:$0xff] %v1993_v29 }
 0x1b9   : > { %1655 = vst [vmem:[%s2603_s5 + $0x8] sm:$0xff] %v1994_v30 }
 0x1ba PF: > { %s15_s22 = sadd.s32 1, %s2322_s22   ;;  %s2604_s18 = smov %s2310_s19 }
 0x1bb   : > { %p12_p12 = scmp.ge.s32.totalorder %s15_s22, 4   ;;  %s2605_s19 = smov %s2391_s26 }
 0x1bc   : > { %s2606_s20 = smov %s2318_s21  ;;  %s2607_s21 = smov %s2609_s23 }
 0x1bd   :  { %14 = sbr.rel (!%p12_p12) target bundleno = 3 (0x3), region = 127 }

// kernel: resnet_forward.25
= control target key start
LH: loop header
LB: loop body
LE: loop exit
PB: predicated region body
PF: predicated region fallthrough
CT: control target
= control target key end

     0   :  { %s1052_s1 = inlined_call_operand.vmem [shape: bf16[256,512], index: 1, kind: input, shape index: {}]   ;;  %s1053_s0 = inlined_call_operand.vmem [shape: bf16[16,256], index: 0, kind: input, shape index: {}]   ;;  %s1054_s2 = inlined_call_operand.vmem [shape: f32[1,512], index: 2, kind: input, shape index: {}]   ;;  %s1055_s3 = inlined_call_operand.vmem [shape: f32[1,512], index: 3, kind: input, shape index: {}]   ;;  %s1056_s4 = inlined_call_operand.vmem [shape: bf16[16,512], index: 4, kind: output, shape index: {}]  }
   0x1   :  { %v712_v0 = vld [vmem:[%s1052_s1 + $0x4] ss:$16 sps:$4 sm:$0xff]   ;;  %v714_v1 = vld [vmem:[%s1052_s1 + $0xc] ss:$16 sps:$4 sm:$0xff]   ;;  %v716_v2 = vld [vmem:[%s1052_s1] ss:$16 sps:$4 sm:$0xff]  }
   0x2   :  { %433 = vmatprep.subr.bf16.mxu0 %v712_v0  ;;  %v717_v3 = vld [vmem:[%s1052_s1 + $0x8] ss:$16 sps:$4 sm:$0xff]   ;;  %476 = vmatprep.subr.bf16.mxu1 %v714_v1  ;;  %v718_v4 = vld [vmem:[%s1052_s1 + $0x24] ss:$16 sps:$4 sm:$0xff]   ;;  %v720_v5 = vld [vmem:[%s1052_s1 + $0x2c] ss:$16 sps:$4 sm:$0xff]  }
   0x3   :  { %434 = vmatpush1.bf16.msra.mxu0 %v716_v2  ;;  %477 = vmatpush1.bf16.msra.mxu1 %v717_v3  ;;  %v722_v6 = vld [vmem:[%s1052_s1 + $0x20] ss:$16 sps:$4 sm:$0xff]   ;;  %v723_v7 = vld [vmem:[%s1052_s1 + $0x28] ss:$16 sps:$4 sm:$0xff]   ;;  %v724_v8 = vld [vmem:[%s1052_s1 + $0x44] ss:$16 sps:$4 sm:$0xff]   ;;  %v548_v2 = vlaneseq }
   0x4   :  { %435 = vmatprep.subr.bf16.mxu0 %v718_v4  ;;  %478 = vmatprep.subr.bf16.mxu1 %v720_v5  ;;  %v726_v9 = vld [vmem:[%s1052_s1 + $0x4c] ss:$16 sps:$4 sm:$0xff]   ;;  %v728_v10 = vld [vmem:[%s1052_s1 + $0x40] ss:$16 sps:$4 sm:$0xff]   ;;  %v729_v11 = vld [vmem:[%s1052_s1 + $0x48] ss:$16 sps:$4 sm:$0xff]  }
   0x5   :  { %v730_v12 = vld [vmem:[%s1052_s1 + $0x64] ss:$16 sps:$4 sm:$0xff]   ;;  %v732_v13 = vld [vmem:[%s1052_s1 + $0x6c] ss:$16 sps:$4 sm:$0xff]   ;;  %v734_v14 = vld [vmem:[%s1052_s1 + $0x60] ss:$16 sps:$4 sm:$0xff]  }
   0x6   :  { %v735_v15 = vld [vmem:[%s1052_s1 + $0x68] ss:$16 sps:$4 sm:$0xff]   ;;  %v736_v16 = vld [vmem:[%s1052_s1 + $0x84] ss:$16 sps:$4 sm:$0xff]   ;;  %v738_v17 = vld [vmem:[%s1052_s1 + $0x8c] ss:$16 sps:$4 sm:$0xff]  }
   0x7   :  { %436 = vmatpush1.bf16.msra.mxu0 %v722_v6  ;;  %479 = vmatpush1.bf16.msra.mxu1 %v723_v7  ;;  %v740_v18 = vld [vmem:[%s1052_s1 + $0x80] ss:$16 sps:$4 sm:$0xff]   ;;  %v741_v19 = vld [vmem:[%s1052_s1 + $0x88] ss:$16 sps:$4 sm:$0xff]   ;;  %v742_v20 = vld [vmem:[%s1052_s1 + $0xa4] ss:$16 sps:$4 sm:$0xff]  }
   0x8   :  { %437 = vmatprep.subr.bf16.mxu0 %v724_v8  ;;  %480 = vmatprep.subr.bf16.mxu1 %v726_v9  ;;  %v744_v21 = vld [vmem:[%s1052_s1 + $0xac] ss:$16 sps:$4 sm:$0xff]   ;;  %v746_v22 = vld [vmem:[%s1052_s1 + $0xa0] ss:$16 sps:$4 sm:$0xff]   ;;  %v747_v23 = vld [vmem:[%s1052_s1 + $0xa8] ss:$16 sps:$4 sm:$0xff]  }
   0x9   :  { %v748_v24 = vld [vmem:[%s1052_s1 + $0xc4] ss:$16 sps:$4 sm:$0xff]   ;;  %v750_v25 = vld [vmem:[%s1052_s1 + $0xcc] ss:$16 sps:$4 sm:$0xff]   ;;  %v752_v26 = vld [vmem:[%s1052_s1 + $0xc0] ss:$16 sps:$4 sm:$0xff]  }
   0xa   :  { %v753_v27 = vld [vmem:[%s1052_s1 + $0xc8] ss:$16 sps:$4 sm:$0xff]   ;;  %v754_v28 = vld [vmem:[%s1052_s1 + $0xe4] ss:$16 sps:$4 sm:$0xff]   ;;  %v756_v29 = vld [vmem:[%s1052_s1 + $0xec] ss:$16 sps:$4 sm:$0xff]  }
   0xb   :  { %438 = vmatpush1.bf16.msra.mxu0 %v728_v10  ;;  %481 = vmatpush1.bf16.msra.mxu1 %v729_v11  ;;  %v758_v30 = vld [vmem:[%s1052_s1 + $0xe0] ss:$16 sps:$4 sm:$0xff]   ;;  %v759_v31 = vld [vmem:[%s1052_s1 + $0xe8] ss:$16 sps:$4 sm:$0xff]   ;;  %v760_v32 = vld [vmem:[%s1052_s1 + $0x104] ss:$16 sps:$4 sm:$0xff]  }
   0xc   :  { %439 = vmatprep.subr.bf16.mxu0 %v730_v12  ;;  %482 = vmatprep.subr.bf16.mxu1 %v732_v13  ;;  %v762_v33 = vld [vmem:[%s1052_s1 + $0x10c] ss:$16 sps:$4 sm:$0xff]   ;;  %v764_v34 = vld [vmem:[%s1052_s1 + $0x100] ss:$16 sps:$4 sm:$0xff]   ;;  %v765_v35 = vld [vmem:[%s1052_s1 + $0x108] ss:$16 sps:$4 sm:$0xff]  }
   0xd   :  { %v766_v36 = vld [vmem:[%s1052_s1 + $0x124] ss:$16 sps:$4 sm:$0xff]   ;;  %v768_v37 = vld [vmem:[%s1052_s1 + $0x12c] ss:$16 sps:$4 sm:$0xff]   ;;  %v770_v38 = vld [vmem:[%s1052_s1 + $0x120] ss:$16 sps:$4 sm:$0xff]  }
   0xe   :  { %v771_v39 = vld [vmem:[%s1052_s1 + $0x128] ss:$16 sps:$4 sm:$0xff]   ;;  %v772_v40 = vld [vmem:[%s1052_s1 + $0x144] ss:$16 sps:$4 sm:$0xff]   ;;  %v774_v41 = vld [vmem:[%s1052_s1 + $0x14c] ss:$16 sps:$4 sm:$0xff]  }
   0xf   :  { %440 = vmatpush1.bf16.msra.mxu0 %v734_v14  ;;  %483 = vmatpush1.bf16.msra.mxu1 %v735_v15  ;;  %v776_v42 = vld [vmem:[%s1052_s1 + $0x140] ss:$16 sps:$4 sm:$0xff]   ;;  %v777_v43 = vld [vmem:[%s1052_s1 + $0x148] ss:$16 sps:$4 sm:$0xff]   ;;  %v778_v44 = vld [vmem:[%s1052_s1 + $0x164] ss:$16 sps:$4 sm:$0xff]  }
  0x10   :  { %441 = vmatprep.subr.bf16.mxu0 %v736_v16  ;;  %484 = vmatprep.subr.bf16.mxu1 %v738_v17  ;;  %v780_v45 = vld [vmem:[%s1052_s1 + $0x16c] ss:$16 sps:$4 sm:$0xff]   ;;  %v782_v47 = vld [vmem:[%s1052_s1 + $0x160] ss:$16 sps:$4 sm:$0xff]   ;;  %v783_v48 = vld [vmem:[%s1052_s1 + $0x168] ss:$16 sps:$4 sm:$0xff]  }
  0x11   :  { %v810_v46 = vld [vmem:[%s1053_s0 + $0x4] ss:$8 sps:$4 sm:$0xff]   ;;  %v788_v51 = vld [vmem:[%s1052_s1 + $0x180] ss:$16 sps:$4 sm:$0xff]   ;;  %v789_v52 = vld [vmem:[%s1052_s1 + $0x188] ss:$16 sps:$4 sm:$0xff]  }
  0x12   :  { %v784_v49 = vld [vmem:[%s1052_s1 + $0x184] ss:$16 sps:$4 sm:$0xff]   ;;  %v786_v50 = vld [vmem:[%s1052_s1 + $0x18c] ss:$16 sps:$4 sm:$0xff]   ;;  %465 = vmatprep.mubr.bf16.mxu0 %v810_v46  ;;  %508 = vmatprep.mubr.bf16.mxu1 %v810_v46  ;;  %v794_v55 = vld [vmem:[%s1052_s1 + $0x1a0] ss:$16 sps:$4 sm:$0xff]  }
  0x13   :  { %442 = vmatpush1.bf16.msra.mxu0 %v740_v18  ;;  %485 = vmatpush1.bf16.msra.mxu1 %v741_v19  ;;  %v790_v53 = vld [vmem:[%s1052_s1 + $0x1a4] ss:$16 sps:$4 sm:$0xff]   ;;  %v792_v54 = vld [vmem:[%s1052_s1 + $0x1ac] ss:$16 sps:$4 sm:$0xff]   ;;  %v795_v56 = vld [vmem:[%s1052_s1 + $0x1a8] ss:$16 sps:$4 sm:$0xff]  }
  0x14   :  { %443 = vmatprep.subr.bf16.mxu0 %v742_v20  ;;  %486 = vmatprep.subr.bf16.mxu1 %v744_v21  ;;  %v796_v57 = vld [vmem:[%s1052_s1 + $0x1c4] ss:$16 sps:$4 sm:$0xff]   ;;  %v798_v58 = vld [vmem:[%s1052_s1 + $0x1cc] ss:$16 sps:$4 sm:$0xff]   ;;  %v800_v59 = vld [vmem:[%s1052_s1 + $0x1c0] ss:$16 sps:$4 sm:$0xff]  }
  0x15   :  { %v801_v60 = vld [vmem:[%s1052_s1 + $0x1c8] ss:$16 sps:$4 sm:$0xff]   ;;  %v802_v61 = vld [vmem:[%s1052_s1 + $0x1e4] ss:$16 sps:$4 sm:$0xff]   ;;  %v804_v62 = vld [vmem:[%s1052_s1 + $0x1ec] ss:$16 sps:$4 sm:$0xff]  }
  0x16   :  { %v806_v63 = vld [vmem:[%s1052_s1 + $0x1e0] ss:$16 sps:$4 sm:$0xff]   ;;  %v807_v0 = vld [vmem:[%s1052_s1 + $0x1e8] ss:$16 sps:$4 sm:$0xff]   ;;  %v549_v3 = vshrl.u32 %v548_v2, 7 }
  0x17   :  { %444 = vmatpush1.bf16.msra.mxu0 %v746_v22  ;;  %487 = vmatpush1.bf16.msra.mxu1 %v747_v23  ;;  %v808_v1 = vld [vmem:[%s1053_s0] ss:$8 sps:$4 sm:$0xff]  }
  0x18   :  { %445 = vmatprep.subr.bf16.mxu0 %v748_v24  ;;  %488 = vmatprep.subr.bf16.mxu1 %v750_v25  ;;  %v550_v4 = vsub.s32 0, %v549_v3  ;;  %v558_v5 = vsub.s32 2, %v549_v3  ;;  %v546_v6 = vld [vmem:[%s1054_s2] sm:$0xf]  ;;  %v554_v7 = vsub.s32 1, %v549_v3  ;;  %v562_v8 = vsub.s32 3, %v549_v3 }
  0x19   :  { %v576_v9 = vld [vmem:[%s1055_s3] sm:$0xf] }
  0x1a   :  { %v551_v10 = vrot.slane %v546_v6, %v550_v4  ;;  %v559_v11 = vrot.slane %v546_v6, %v558_v5  ;;  %v555_v12 = vrot.slane %v546_v6, %v554_v7  ;;  %v563_v13 = vrot.slane %v546_v6, %v562_v8 }
  0x1b   :  { %446 = vmatpush1.bf16.msra.mxu0 %v752_v26  ;;  %489 = vmatpush1.bf16.msra.mxu1 %v753_v27  ;;  %v581_v14 = vrot.slane %v576_v9, %v550_v4  ;;  %v589_v15 = vrot.slane %v576_v9, %v558_v5  ;;  %v585_v18 = vrot.slane %v576_v9, %v554_v7 }
  0x1c   :  { %447 = vmatprep.subr.bf16.mxu0 %v754_v28  ;;  %490 = vmatprep.subr.bf16.mxu1 %v756_v29  ;;  %v593_v19 = vrot.slane %v576_v9, %v562_v8 }
  0x1f   :  { %448 = vmatpush1.bf16.msra.mxu0 %v758_v30  ;;  %491 = vmatpush1.bf16.msra.mxu1 %v759_v31 }
  0x20   :  { %449 = vmatprep.subr.bf16.mxu0 %v760_v32  ;;  %492 = vmatprep.subr.bf16.mxu1 %v762_v33 }
  0x23   :  { %450 = vmatpush1.bf16.msra.mxu0 %v764_v34  ;;  %493 = vmatpush1.bf16.msra.mxu1 %v765_v35 }
  0x24   :  { %451 = vmatprep.subr.bf16.mxu0 %v766_v36  ;;  %494 = vmatprep.subr.bf16.mxu1 %v768_v37 }
  0x27   :  { %452 = vmatpush1.bf16.msra.mxu0 %v770_v38  ;;  %495 = vmatpush1.bf16.msra.mxu1 %v771_v39 }
  0x28   :  { %453 = vmatprep.subr.bf16.mxu0 %v772_v40  ;;  %496 = vmatprep.subr.bf16.mxu1 %v774_v41 }
  0x2b   :  { %454 = vmatpush1.bf16.msra.mxu0 %v776_v42  ;;  %497 = vmatpush1.bf16.msra.mxu1 %v777_v43 }
  0x2c   :  { %455 = vmatprep.subr.bf16.mxu0 %v778_v44  ;;  %498 = vmatprep.subr.bf16.mxu1 %v780_v45 }
  0x2f   :  { %456 = vmatpush1.bf16.msra.mxu0 %v782_v47  ;;  %499 = vmatpush1.bf16.msra.mxu1 %v783_v48 }
  0x30   :  { %457 = vmatprep.subr.bf16.mxu0 %v784_v49  ;;  %500 = vmatprep.subr.bf16.mxu1 %v786_v50 }
  0x33   :  { %458 = vmatpush1.bf16.msra.mxu0 %v788_v51  ;;  %501 = vmatpush1.bf16.msra.mxu1 %v789_v52 }
  0x34   :  { %459 = vmatprep.subr.bf16.mxu0 %v790_v53  ;;  %502 = vmatprep.subr.bf16.mxu1 %v792_v54 }
  0x37   :  { %460 = vmatpush1.bf16.msra.mxu0 %v794_v55  ;;  %503 = vmatpush1.bf16.msra.mxu1 %v795_v56 }
  0x38   :  { %461 = vmatprep.subr.bf16.mxu0 %v796_v57  ;;  %504 = vmatprep.subr.bf16.mxu1 %v798_v58 }
  0x3b   :  { %462 = vmatpush1.bf16.msra.mxu0 %v800_v59  ;;  %505 = vmatpush1.bf16.msra.mxu1 %v801_v60 }
  0x3c   :  { %463 = vmatprep.subr.bf16.mxu0 %v802_v61  ;;  %506 = vmatprep.subr.bf16.mxu1 %v804_v62 }
  0x3f   :  { %464 = vmatpush1.bf16.msra.mxu0 %v806_v63  ;;  %507 = vmatpush1.bf16.msra.mxu1 %v807_v0 }
  0x42   :  { %466 = vmatmul.mubr.bf16.vlgmr.msra.gmra.mrb[0].mxu0 %v808_v1  ;;  %509 = vmatmul.mubr.bf16.vlgmr.msra.gmra.mrb[0].mxu1 %v808_v1 }
 0x115   :  { %v467_v16 = vpop.f32.mrb[0].mxu0  ;;  %v510_v17 = vpop.f32.mrb[0].mxu1 }
 0x116   :  { %v568_v20 = vmul.f32 %v551_v10, %v467_v16  ;;  %v570_v21 = vmul.f32 %v559_v11, %v510_v17  ;;  %v469_v22 = vpop.f32.mrb[1].mxu0  ;;  %v512_v23 = vpop.f32.mrb[1].mxu1 }
 0x117   :  { %v569_v24 = vmul.f32 %v555_v12, %v469_v22  ;;  %v571_v25 = vmul.f32 %v563_v13, %v512_v23  ;;  %v471_v26 = vpop.f32.mrb[2].mxu0  ;;  %v514_v27 = vpop.f32.mrb[2].mxu1 }
 0x118   :  { %v598_v28 = vadd.f32 %v581_v14, %v568_v20  ;;  %v600_v29 = vadd.f32 %v589_v15, %v570_v21  ;;  %v572_v30 = vmul.f32 %v551_v10, %v471_v26  ;;  %v574_v31 = vmul.f32 %v559_v11, %v514_v27  ;;  %v473_v32 = vpop.f32.mrb[3].mxu0  ;;  %v516_v33 = vpop.f32.mrb[3].mxu1 }
 0x119   :  { %v599_v34 = vadd.f32 %v585_v18, %v569_v24  ;;  %v601_v35 = vadd.f32 %v593_v19, %v571_v25  ;;  %v573_v36 = vmul.f32 %v555_v12, %v473_v32  ;;  %v575_v37 = vmul.f32 %v563_v13, %v516_v33 }
 0x11a   :  { %v602_v38 = vadd.f32 %v581_v14, %v572_v30  ;;  %v604_v39 = vadd.f32 %v589_v15, %v574_v31 }
 0x11b   :  { %v708_v40 = vpack.c.bf16 %v599_v34, %v598_v28  ;;  %v709_v41 = vpack.c.bf16 %v601_v35, %v600_v29  ;;  %v603_v42 = vadd.f32 %v585_v18, %v573_v36  ;;  %v605_v43 = vadd.f32 %v593_v19, %v575_v37 }
 0x11d   :  { %630 = vst [vmem:[%s1056_s4] sm:$0xff] %v708_v40  ;;  %631 = vst [vmem:[%s1056_s4 + $0x8] sm:$0xff] %v709_v41  ;;  %v710_v44 = vpack.c.bf16 %v603_v42, %v602_v38  ;;  %v711_v45 = vpack.c.bf16 %v605_v43, %v604_v39 }
 0x11f   :  { %632 = vst [vmem:[%s1056_s4 + $0x10] sm:$0xff] %v710_v44  ;;  %633 = vst [vmem:[%s1056_s4 + $0x18] sm:$0xff] %v711_v45 }

// kernel: resnet_forward.27
= control target key start
LH: loop header
LB: loop body
LE: loop exit
PB: predicated region body
PF: predicated region fallthrough
CT: control target
= control target key end

     0   :  { %s271_s6 = smov 0   ;;  %s292_s0 = inlined_call_operand.vmem [shape: bf16[2,8,512], index: 0, kind: input, shape index: {}]   ;;  %s293_s1 = inlined_call_operand.vmem [shape: f32[2,1,512], index: 1, kind: output, shape index: {}]  }
   0x1 LB: > { %s232_s7 = sadd.s32 4294967295, %s258_s6   ;;  %p236_p0 = scmp.ge.s32.totalorder %s258_s6, 1  ;;  %s258_s6 = sphi %s271_s6, %s11_s6  }
   0x2   : > { %p87_p1 = scmp.lt.s32.totalorder %s258_s6, 3 }
   0x4   : > { %p88_p2 = pnand %p236_p0, %p87_p1 }
   0x5   : > { %p106_p3 = scmp.lt.s32.totalorder (!%p88_p2), %s232_s7, 1  ;;  %v260_v10 = vmov (!%p88_p2), 1966171168   ;;  %v154_v12 = vlaneseq (!%p88_p2) }
   0x6   : > { %91 = sbr.rel (%p88_p2) target bundleno = 40 (0x28), region = 24  ;;  %v152_v11 = vunpack.c.l.s4 (!%p88_p2), %v260_v10 }
   0x7   : > { %v155_v22 = vshrl.u32 (!%p88_p2), %v154_v12, 7  ;;  %vm176_vm0 = vcmp.lt.s32.totalorder (!%p88_p2), %v154_v12, 512 }
   0x8   : > { %v153_v21 = vunpack.c.0.s8 (!%p88_p2), %v152_v11 }
   0xa   : > { %v156_v31 = vsub.s32 (!%p88_p2), %v153_v21, %v155_v22 }
   0xd   : > { %s295_s7 = smov (!%p106_p3, %s232_s7), 1 }
   0xe   : > { %s242_s8 = sshll.u32 %s295_s7, 4  ;;  %s239_s12 = sshll.u32 %s295_s7, 2 }
   0xf   : > { %s110_s11 = scalar_lea.vmem %s292_s0, %s242_s8  ;;  %s114_s15 = scalar_lea.vmem %s293_s1, %s239_s12 }
  0x10   : > { %v115_v0 = vld [vmem:[%s110_s11] sm:$0xff]  ;;  %v116_v1 = vld [vmem:[%s110_s11 + $0x8] sm:$0xff] }
  0x11   : > { %v117_v2 = vunpack.c.l.bf16 %v115_v0  ;;  %v118_v3 = vunpack.c.h.bf16 %v115_v0  ;;  %v119_v4 = vunpack.c.l.bf16 %v116_v1  ;;  %v120_v5 = vunpack.c.h.bf16 %v116_v1 }
  0x13   : > { %v121_v6 = vrot.slane %v117_v2, 4  ;;  %v127_v7 = vrot.slane %v118_v3, 4  ;;  %v133_v8 = vrot.slane %v119_v4, 4  ;;  %v139_v9 = vrot.slane %v120_v5, 4 }
  0x15   : > { %v122_v13 = vadd.f32 %v121_v6, %v117_v2  ;;  %v128_v14 = vadd.f32 %v127_v7, %v118_v3  ;;  %v134_v15 = vadd.f32 %v133_v8, %v119_v4  ;;  %v140_v16 = vadd.f32 %v139_v9, %v120_v5 }
  0x17   : > { %v123_v17 = vrot.slane %v122_v13, 2  ;;  %v129_v18 = vrot.slane %v128_v14, 2  ;;  %v135_v19 = vrot.slane %v134_v15, 2  ;;  %v141_v20 = vrot.slane %v140_v16, 2 }
  0x19   : > { %v124_v23 = vadd.f32 %v123_v17, %v122_v13  ;;  %v130_v24 = vadd.f32 %v129_v18, %v128_v14  ;;  %v136_v25 = vadd.f32 %v135_v19, %v134_v15  ;;  %v142_v26 = vadd.f32 %v141_v20, %v140_v16 }
  0x1b   : > { %v125_v27 = vrot.slane %v124_v23, 1  ;;  %v131_v28 = vrot.slane %v130_v24, 1  ;;  %v137_v29 = vrot.slane %v136_v25, 1  ;;  %v143_v30 = vrot.slane %v142_v26, 1 }
  0x1d   : > { %v126_v32 = vadd.f32 %v125_v27, %v124_v23  ;;  %v132_v33 = vadd.f32 %v131_v28, %v130_v24  ;;  %v138_v34 = vadd.f32 %v137_v29, %v136_v25  ;;  %v144_v35 = vadd.f32 %v143_v30, %v142_v26 }
  0x1f   : > { %v149_v36 = vcombine.low %v126_v32, %v132_v33  ;;  %v150_v37 = vcombine.low %v138_v34, %v144_v35 }
  0x21   : > { %v157_v38 = vrot.slane %v149_v36, %v156_v31  ;;  %v164_v39 = vrot.slane %v150_v37, %v156_v31 }
  0x23   : > { %v165_v40 = vcombine.low %v157_v38, %v164_v39 }
  0x25   : > { %v172_v41 = vrot.slane %v165_v40, %v156_v31 }
  0x27   : > { %178 = vst.msk [vmem:[%s114_s15] sm:$0xf] %vm176_vm0, %v172_v41 }
  0x28 PF: > { %s11_s6 = sadd.s32 1, %s258_s6  }
  0x29   : > { %p8_p4 = scmp.ge.s32.totalorder %s11_s6, 4  }
  0x2b   :  { %10 = sbr.rel (!%p8_p4) target bundleno = 1 (0x1), region = 54 }

// kernel: resnet_forward.24
= control target key start
LH: loop header
LB: loop body
LE: loop exit
PB: predicated region body
PF: predicated region fallthrough
CT: control target
= control target key end

     0   :  { %s3776_s15 = smov 0   ;;  %s3778_s16 = smov 0   ;;  %s4162_s0 = inlined_call_operand.vmem [shape: bf16[16,2304], index: 0, kind: input, shape index: {}]   ;;  %s4163_s1 = inlined_call_operand.vmem [shape: bf16[2304,512], index: 1, kind: input, shape index: {}]   ;;  %s4164_s2 = inlined_call_operand.vmem [shape: f32[1,512], index: 2, kind: input, shape index: {}]   ;;  %s4165_s3 = inlined_call_operand.vmem [shape: f32[1,512], index: 3, kind: input, shape index: {}]   ;;  %s4166_s4 = inlined_call_operand.vmem [shape: bf16[16,512], index: 4, kind: output, shape index: {}]  }
   0x1   :  { %s3780_s17 = smov 0   ;;  %s3782_s18 = smov 0  }
   0x2   :  { %s3784_s19 = smov 0  }
   0x3 LB: > { %s26_s20 = sadd.s32 1, %s3743_s18  ;;  %p49_p1 = scmp.ne.s32.totalorder %s3735_s16, %s3731_s15  ;;  %s3747_s19 = sphi %s3784_s19, %s14_s19   ;;  %s3743_s18 = sphi %s3782_s18, %s4170_s18   ;;  %s3739_s17 = sphi %s3780_s17, %s4169_s17   ;;  %s3735_s16 = sphi %s3778_s16, %s4168_s16   ;;  %s3731_s15 = sphi %s3776_s15, %s4167_s15  }
   0x4   : > { %p27_p0 = scmp.ge.s32.totalorder %s26_s20, 2  ;;  %p50_p2 = scmp.eq.s32.totalorder %s3747_s19, 0 }
   0x5   : > { %s42_s22 = sadd.s32 1, %s3735_s16  ;;  %p2866_p5 = scmp.ge.s32.totalorder %s3747_s19, 2 }
   0x6   : > { %s4172_s20 = smov (%p27_p0, %s26_s20), 0  ;;  %p51_p3 = por %p50_p2, %p49_p1 }
   0x7   : > { %s38_s21 = ssub.s32 %s3743_s18, %s4172_s20  ;;  %199 = sbr.rel (%p2866_p5) target bundleno = 24 (0x18), region = 24 }
   0x8   : > { %p40_p4 = scmp.eq.s32.totalorder %s38_s21, 0 }
   0xa   : > { %s3811_s23 = scalar_select %p40_p4, %s3735_s16, %s42_s22  }
   0xe   : > { %202 = sbr.rel (!%p51_p3) target bundleno = 24 (0x18), region = 28  ;;  %s204_s24 = sand.u32 (%p51_p3), 1, %s3735_s16  }
   0xf   : > { %s3182_s25 = smul.u32 (%p51_p3), 36, %s3743_s18 }
  0x10   : > { %s3220_s26 = smul.u32 (%p51_p3), 72, %s204_s24 }
  0x11   : > { %s212_s29 = scalar_lea.vmem (%p51_p3), %s4162_s0, %s3182_s25 }
  0x12   : > { %v227_v0 = vld [vmem:[%s212_s29] sm:$0xff] (%p51_p3)  ;;  %v229_v1 = vld [vmem:[%s212_s29 + $0x8] sm:$0xff] (%p51_p3)  ;;  %v231_v2 = vld [vmem:[%s212_s29 + $0x10] sm:$0xff] (%p51_p3)  ;;  %s206_s30 = scalar_lea.vmem (%p51_p3), [#allocation3], %s3220_s26 }
  0x13   : > { %228 = vst [vmem:[%s206_s30] sm:$0xff] (%p51_p3), %v227_v0  ;;  %230 = vst [vmem:[%s206_s30 + $0x8] sm:$0xff] (%p51_p3), %v229_v1  ;;  %v233_v3 = vld [vmem:[%s212_s29 + $0x18] sm:$0xff] (%p51_p3)  ;;  %v235_v4 = vld [vmem:[%s212_s29 + $0x48] sm:$0xff] (%p51_p3) }
  0x14   : > { %232 = vst [vmem:[%s206_s30 + $0x10] sm:$0xff] (%p51_p3), %v231_v2  ;;  %v237_v5 = vld [vmem:[%s212_s29 + $0x50] sm:$0xff] (%p51_p3)  ;;  %234 = vst [vmem:[%s206_s30 + $0x18] sm:$0xff] (%p51_p3), %v233_v3  ;;  %v239_v6 = vld [vmem:[%s212_s29 + $0x58] sm:$0xff] (%p51_p3) }
  0x15   : > { %236 = vst [vmem:[%s206_s30 + $0x24] sm:$0xff] %v235_v4  ;;  %238 = vst [vmem:[%s206_s30 + $0x2c] sm:$0xff] %v237_v5  ;;  %v241_v7 = vld [vmem:[%s212_s29 + $0x60] sm:$0xff]  ;;  %v2870_v9 = vld [vmem:[%s212_s29 + $0x68] sm:$0xf] }
  0x16   : > { %v2868_v8 = vld [vmem:[%s212_s29 + $0x20] sm:$0xf]  ;;  %240 = vst [vmem:[%s206_s30 + $0x34] sm:$0xff] %v239_v6  ;;  %242 = vst [vmem:[%s206_s30 + $0x3c] sm:$0xff] %v241_v7 }
  0x17   : > { %2869 = vst [vmem:[%s206_s30 + $0x20] sm:$0xf] %v2868_v8  ;;  %2871 = vst [vmem:[%s206_s30 + $0x44] sm:$0xf] %v2870_v9 }
  0x18 PF: > { %p2872_p6 = scmp.ge.s32.totalorder %s3747_s19, 1  ;;  %p273_p7 = scmp.lt.s32.totalorder %s3747_s19, 3 }
  0x1a   : > { %p274_p8 = pnand %p2872_p6, %p273_p7 }
  0x1b   : > { %s280_s5 = sand.u32 (!%p274_p8), 1, %s3731_s15   ;;  %s330_s6 = smul.u32 (!%p274_p8), 144, %s3739_s17 }
  0x1c   : > { %277 = sbr.rel (%p274_p8) target bundleno = 565 (0x235), region = 58  ;;  %p2875_p10 = scmp.ne.s32.totalorder (!%p274_p8), %s3739_s17, 0 }
  0x1d   : > { %s3221_s7 = smul.u32 (!%p274_p8), 72, %s280_s5  ;;  %p332_p9 = scmp.lt.s32.totalorder (!%p274_p8), %s330_s6, 287 }
  0x1f   : > { %s3828_s12 = scalar_lea.vmem (!%p274_p8), [#allocation3], %s3221_s7 }
  0x23   : > { %s4174_s6 = smov (!%p332_p9, %s330_s6), 287  ;;  %368 = sbr.rel (%p2875_p10) target bundleno = 42 (0x2a), region = 66 }
  0x24   : > { %s3183_s8 = sshll.u32 %s4174_s6, 4  ;;  %v3749_v10 = vmov (!%p2875_p10), 0.0  }
  0x25   : > { %s3826_s11 = scalar_lea.vmem %s4163_s1, %s3183_s8  ;;  %369 = vst [vmem:[#allocation2] sm:$0xff] (!%p2875_p10), %v3749_v10  ;;  %370 = vst [vmem:[#allocation2 + $0x8] sm:$0xff] (!%p2875_p10), %v3749_v10 }
  0x26   : > { %371 = vst [vmem:[#allocation2 + $0x10] sm:$0xff] (!%p2875_p10), %v3749_v10  ;;  %372 = vst [vmem:[#allocation2 + $0x18] sm:$0xff] (!%p2875_p10), %v3749_v10 }
  0x27   : > { %373 = vst [vmem:[#allocation2 + $0x20] sm:$0xff] (!%p2875_p10), %v3749_v10  ;;  %374 = vst [vmem:[#allocation2 + $0x28] sm:$0xff] (!%p2875_p10), %v3749_v10 }
  0x28   : > { %375 = vst [vmem:[#allocation2 + $0x30] sm:$0xff] (!%p2875_p10), %v3749_v10  ;;  %376 = vst [vmem:[#allocation2 + $0x38] sm:$0xff] (!%p2875_p10), %v3749_v10 }
  0x2a PF: > { %v3264_v11 = vld [vmem:[%s3826_s11 + $0x4] ss:$16 sps:$4 sm:$0xff]   ;;  %v3266_v12 = vld [vmem:[%s3826_s11 + $0xc] ss:$16 sps:$4 sm:$0xff]   ;;  %v3268_v13 = vld [vmem:[%s3826_s11] ss:$16 sps:$4 sm:$0xff]  }
  0x2b   : > { %2169 = vmatprep.subr.bf16.mxu0 %v3264_v11  ;;  %v3269_v14 = vld [vmem:[%s3826_s11 + $0x8] ss:$16 sps:$4 sm:$0xff]   ;;  %2384 = vmatprep.subr.bf16.mxu1 %v3266_v12  ;;  %v3270_v15 = vld [vmem:[%s3826_s11 + $0x24] ss:$16 sps:$4 sm:$0xff]   ;;  %v3272_v16 = vld [vmem:[%s3826_s11 + $0x2c] ss:$16 sps:$4 sm:$0xff]  }
  0x2c   : > { %2170 = vmatpush1.bf16.msra.mxu0 %v3268_v13  ;;  %2385 = vmatpush1.bf16.msra.mxu1 %v3269_v14  ;;  %v3274_v17 = vld [vmem:[%s3826_s11 + $0x20] ss:$16 sps:$4 sm:$0xff]   ;;  %v3275_v18 = vld [vmem:[%s3826_s11 + $0x28] ss:$16 sps:$4 sm:$0xff]   ;;  %v3276_v19 = vld [vmem:[%s3826_s11 + $0x44] ss:$16 sps:$4 sm:$0xff]  }
  0x2d   : > { %2171 = vmatprep.subr.bf16.mxu0 %v3270_v15  ;;  %2386 = vmatprep.subr.bf16.mxu1 %v3272_v16  ;;  %v3278_v20 = vld [vmem:[%s3826_s11 + $0x4c] ss:$16 sps:$4 sm:$0xff]   ;;  %v3280_v21 = vld [vmem:[%s3826_s11 + $0x40] ss:$16 sps:$4 sm:$0xff]   ;;  %v3281_v22 = vld [vmem:[%s3826_s11 + $0x48] ss:$16 sps:$4 sm:$0xff]  }
  0x2e   : > { %v3282_v23 = vld [vmem:[%s3826_s11 + $0x64] ss:$16 sps:$4 sm:$0xff]   ;;  %v3284_v24 = vld [vmem:[%s3826_s11 + $0x6c] ss:$16 sps:$4 sm:$0xff]   ;;  %v3286_v25 = vld [vmem:[%s3826_s11 + $0x60] ss:$16 sps:$4 sm:$0xff]  }
  0x2f   : > { %v3287_v26 = vld [vmem:[%s3826_s11 + $0x68] ss:$16 sps:$4 sm:$0xff]   ;;  %v3288_v27 = vld [vmem:[%s3826_s11 + $0x84] ss:$16 sps:$4 sm:$0xff]   ;;  %v3290_v28 = vld [vmem:[%s3826_s11 + $0x8c] ss:$16 sps:$4 sm:$0xff]  }
  0x30   : > { %2172 = vmatpush1.bf16.msra.mxu0 %v3274_v17  ;;  %2387 = vmatpush1.bf16.msra.mxu1 %v3275_v18  ;;  %v3292_v29 = vld [vmem:[%s3826_s11 + $0x80] ss:$16 sps:$4 sm:$0xff]   ;;  %v3293_v30 = vld [vmem:[%s3826_s11 + $0x88] ss:$16 sps:$4 sm:$0xff]   ;;  %v3294_v31 = vld [vmem:[%s3826_s11 + $0xa4] ss:$16 sps:$4 sm:$0xff]  }
  0x31   : > { %2173 = vmatprep.subr.bf16.mxu0 %v3276_v19  ;;  %2388 = vmatprep.subr.bf16.mxu1 %v3278_v20  ;;  %v3296_v32 = vld [vmem:[%s3826_s11 + $0xac] ss:$16 sps:$4 sm:$0xff]   ;;  %v3298_v33 = vld [vmem:[%s3826_s11 + $0xa0] ss:$16 sps:$4 sm:$0xff]   ;;  %v3299_v34 = vld [vmem:[%s3826_s11 + $0xa8] ss:$16 sps:$4 sm:$0xff]  }
  0x32   : > { %v3300_v35 = vld [vmem:[%s3826_s11 + $0xc4] ss:$16 sps:$4 sm:$0xff]   ;;  %v3302_v36 = vld [vmem:[%s3826_s11 + $0xcc] ss:$16 sps:$4 sm:$0xff]   ;;  %v3304_v37 = vld [vmem:[%s3826_s11 + $0xc0] ss:$16 sps:$4 sm:$0xff]  }
  0x33   : > { %v3305_v38 = vld [vmem:[%s3826_s11 + $0xc8] ss:$16 sps:$4 sm:$0xff]   ;;  %v3306_v39 = vld [vmem:[%s3826_s11 + $0xe4] ss:$16 sps:$4 sm:$0xff]   ;;  %v3308_v40 = vld [vmem:[%s3826_s11 + $0xec] ss:$16 sps:$4 sm:$0xff]  }
  0x34   : > { %2174 = vmatpush1.bf16.msra.mxu0 %v3280_v21  ;;  %2389 = vmatpush1.bf16.msra.mxu1 %v3281_v22  ;;  %v3310_v41 = vld [vmem:[%s3826_s11 + $0xe0] ss:$16 sps:$4 sm:$0xff]   ;;  %v3311_v42 = vld [vmem:[%s3826_s11 + $0xe8] ss:$16 sps:$4 sm:$0xff]   ;;  %v3312_v43 = vld [vmem:[%s3826_s11 + $0x104] ss:$16 sps:$4 sm:$0xff]  }
  0x35   : > { %2175 = vmatprep.subr.bf16.mxu0 %v3282_v23  ;;  %2390 = vmatprep.subr.bf16.mxu1 %v3284_v24  ;;  %v3314_v44 = vld [vmem:[%s3826_s11 + $0x10c] ss:$16 sps:$4 sm:$0xff]   ;;  %v3316_v45 = vld [vmem:[%s3826_s11 + $0x100] ss:$16 sps:$4 sm:$0xff]   ;;  %v3317_v46 = vld [vmem:[%s3826_s11 + $0x108] ss:$16 sps:$4 sm:$0xff]  }
  0x36   : > { %v3318_v47 = vld [vmem:[%s3826_s11 + $0x124] ss:$16 sps:$4 sm:$0xff]   ;;  %v3320_v48 = vld [vmem:[%s3826_s11 + $0x12c] ss:$16 sps:$4 sm:$0xff]   ;;  %v3322_v49 = vld [vmem:[%s3826_s11 + $0x120] ss:$16 sps:$4 sm:$0xff]  }
  0x37   : > { %v3323_v50 = vld [vmem:[%s3826_s11 + $0x128] ss:$16 sps:$4 sm:$0xff]   ;;  %v3324_v51 = vld [vmem:[%s3826_s11 + $0x144] ss:$16 sps:$4 sm:$0xff]   ;;  %v3326_v52 = vld [vmem:[%s3826_s11 + $0x14c] ss:$16 sps:$4 sm:$0xff]  }
  0x38   : > { %2176 = vmatpush1.bf16.msra.mxu0 %v3286_v25  ;;  %2391 = vmatpush1.bf16.msra.mxu1 %v3287_v26  ;;  %v3328_v53 = vld [vmem:[%s3826_s11 + $0x140] ss:$16 sps:$4 sm:$0xff]   ;;  %v3329_v54 = vld [vmem:[%s3826_s11 + $0x148] ss:$16 sps:$4 sm:$0xff]   ;;  %v3330_v55 = vld [vmem:[%s3826_s11 + $0x164] ss:$16 sps:$4 sm:$0xff]  }
  0x39   : > { %2177 = vmatprep.subr.bf16.mxu0 %v3288_v27  ;;  %2392 = vmatprep.subr.bf16.mxu1 %v3290_v28  ;;  %v3332_v56 = vld [vmem:[%s3826_s11 + $0x16c] ss:$16 sps:$4 sm:$0xff]   ;;  %v3334_v57 = vld [vmem:[%s3826_s11 + $0x160] ss:$16 sps:$4 sm:$0xff]   ;;  %v3335_v58 = vld [vmem:[%s3826_s11 + $0x168] ss:$16 sps:$4 sm:$0xff]  }
  0x3a   : > { %v3362_v59 = vld [vmem:[%s3828_s12 + $0x4] ss:$36 sps:$4 sm:$0xff]   ;;  %p3173_p11 = scmp.ne.s32.totalorder %s3739_s17, 1 }
  0x3b   : > { %v3336_v60 = vld [vmem:[%s3826_s11 + $0x184] ss:$16 sps:$4 sm:$0xff]   ;;  %v3338_v61 = vld [vmem:[%s3826_s11 + $0x18c] ss:$16 sps:$4 sm:$0xff]   ;;  %2201 = vmatprep.mubr.bf16.mxu0 %v3362_v59  ;;  %2416 = vmatprep.mubr.bf16.mxu1 %v3362_v59  ;;  %v3340_v62 = vld [vmem:[%s3826_s11 + $0x180] ss:$16 sps:$4 sm:$0xff]  }
  0x3c   : > { %2178 = vmatpush1.bf16.msra.mxu0 %v3292_v29  ;;  %2393 = vmatpush1.bf16.msra.mxu1 %v3293_v30  ;;  %v3341_v63 = vld [vmem:[%s3826_s11 + $0x188] ss:$16 sps:$4 sm:$0xff]   ;;  %v3342_v0 = vld [vmem:[%s3826_s11 + $0x1a4] ss:$16 sps:$4 sm:$0xff]   ;;  %v3344_v1 = vld [vmem:[%s3826_s11 + $0x1ac] ss:$16 sps:$4 sm:$0xff]  }
  0x3d   : > { %2179 = vmatprep.subr.bf16.mxu0 %v3294_v31  ;;  %2394 = vmatprep.subr.bf16.mxu1 %v3296_v32  ;;  %v3346_v2 = vld [vmem:[%s3826_s11 + $0x1a0] ss:$16 sps:$4 sm:$0xff]   ;;  %v3347_v3 = vld [vmem:[%s3826_s11 + $0x1a8] ss:$16 sps:$4 sm:$0xff]   ;;  %v3348_v4 = vld [vmem:[%s3826_s11 + $0x1c4] ss:$16 sps:$4 sm:$0xff]  }
  0x3e   : > { %v3350_v5 = vld [vmem:[%s3826_s11 + $0x1cc] ss:$16 sps:$4 sm:$0xff]   ;;  %v3352_v6 = vld [vmem:[%s3826_s11 + $0x1c0] ss:$16 sps:$4 sm:$0xff]   ;;  %v3353_v7 = vld [vmem:[%s3826_s11 + $0x1c8] ss:$16 sps:$4 sm:$0xff]  }
  0x3f   : > { %v3354_v8 = vld [vmem:[%s3826_s11 + $0x1e4] ss:$16 sps:$4 sm:$0xff]   ;;  %v3356_v9 = vld [vmem:[%s3826_s11 + $0x1ec] ss:$16 sps:$4 sm:$0xff]   ;;  %v3358_v10 = vld [vmem:[%s3826_s11 + $0x1e0] ss:$16 sps:$4 sm:$0xff]  }
  0x40   : > { %2180 = vmatpush1.bf16.msra.mxu0 %v3298_v33  ;;  %2395 = vmatpush1.bf16.msra.mxu1 %v3299_v34  ;;  %v3359_v11 = vld [vmem:[%s3826_s11 + $0x1e8] ss:$16 sps:$4 sm:$0xff]   ;;  %v3365_v12 = vld [vmem:[%s3826_s11 + $0x204] ss:$16 sps:$4 sm:$0xff]   ;;  %v3368_v13 = vld [vmem:[%s3826_s11 + $0x20c] ss:$16 sps:$4 sm:$0xff]  }
  0x41   : > { %2181 = vmatprep.subr.bf16.mxu0 %v3300_v35  ;;  %2396 = vmatprep.subr.bf16.mxu1 %v3302_v36  ;;  %v3360_v14 = vld [vmem:[%s3828_s12] ss:$36 sps:$4 sm:$0xff]  }
  0x42   : > { %v3363_v15 = vld [vmem:[%s3826_s11 + $0x200] ss:$16 sps:$4 sm:$0xff]   ;;  %v3366_v16 = vld [vmem:[%s3826_s11 + $0x208] ss:$16 sps:$4 sm:$0xff]   ;;  %v3371_v17 = vld [vmem:[%s3826_s11 + $0x224] ss:$16 sps:$4 sm:$0xff]  }
  0x43   : > { %v3374_v18 = vld [vmem:[%s3826_s11 + $0x22c] ss:$16 sps:$4 sm:$0xff]   ;;  %v3369_v19 = vld [vmem:[%s3826_s11 + $0x220] ss:$16 sps:$4 sm:$0xff]   ;;  %v3372_v20 = vld [vmem:[%s3826_s11 + $0x228] ss:$16 sps:$4 sm:$0xff]  }
  0x44   : > { %2182 = vmatpush1.bf16.msra.mxu0 %v3304_v37  ;;  %2397 = vmatpush1.bf16.msra.mxu1 %v3305_v38  ;;  %v3377_v21 = vld [vmem:[%s3826_s11 + $0x244] ss:$16 sps:$4 sm:$0xff]   ;;  %v3380_v22 = vld [vmem:[%s3826_s11 + $0x24c] ss:$16 sps:$4 sm:$0xff]   ;;  %v3375_v23 = vld [vmem:[%s3826_s11 + $0x240] ss:$16 sps:$4 sm:$0xff]  }
  0x45   : > { %2183 = vmatprep.subr.bf16.mxu0 %v3306_v39  ;;  %2398 = vmatprep.subr.bf16.mxu1 %v3308_v40  ;;  %v3378_v24 = vld [vmem:[%s3826_s11 + $0x248] ss:$16 sps:$4 sm:$0xff]   ;;  %v3383_v25 = vld [vmem:[%s3826_s11 + $0x264] ss:$16 sps:$4 sm:$0xff]   ;;  %v3386_v26 = vld [vmem:[%s3826_s11 + $0x26c] ss:$16 sps:$4 sm:$0xff]  }
  0x46   : > { %v3381_v27 = vld [vmem:[%s3826_s11 + $0x260] ss:$16 sps:$4 sm:$0xff]   ;;  %v3384_v28 = vld [vmem:[%s3826_s11 + $0x268] ss:$16 sps:$4 sm:$0xff]   ;;  %v3389_v29 = vld [vmem:[%s3826_s11 + $0x284] ss:$16 sps:$4 sm:$0xff]  }
  0x47   : > { %v3392_v30 = vld [vmem:[%s3826_s11 + $0x28c] ss:$16 sps:$4 sm:$0xff]   ;;  %v3387_v31 = vld [vmem:[%s3826_s11 + $0x280] ss:$16 sps:$4 sm:$0xff]   ;;  %v3390_v32 = vld [vmem:[%s3826_s11 + $0x288] ss:$16 sps:$4 sm:$0xff]  }
  0x48   : > { %2184 = vmatpush1.bf16.msra.mxu0 %v3310_v41  ;;  %2399 = vmatpush1.bf16.msra.mxu1 %v3311_v42  ;;  %v3395_v33 = vld [vmem:[%s3826_s11 + $0x2a4] ss:$16 sps:$4 sm:$0xff]   ;;  %v3398_v34 = vld [vmem:[%s3826_s11 + $0x2ac] ss:$16 sps:$4 sm:$0xff]   ;;  %v3393_v35 = vld [vmem:[%s3826_s11 + $0x2a0] ss:$16 sps:$4 sm:$0xff]  }
  0x49   : > { %2185 = vmatprep.subr.bf16.mxu0 %v3312_v43  ;;  %2400 = vmatprep.subr.bf16.mxu1 %v3314_v44  ;;  %v3396_v36 = vld [vmem:[%s3826_s11 + $0x2a8] ss:$16 sps:$4 sm:$0xff]   ;;  %v3401_v37 = vld [vmem:[%s3826_s11 + $0x2c4] ss:$16 sps:$4 sm:$0xff]   ;;  %v3404_v38 = vld [vmem:[%s3826_s11 + $0x2cc] ss:$16 sps:$4 sm:$0xff]  }
  0x4a   : > { %v3399_v39 = vld [vmem:[%s3826_s11 + $0x2c0] ss:$16 sps:$4 sm:$0xff]   ;;  %v3402_v40 = vld [vmem:[%s3826_s11 + $0x2c8] ss:$16 sps:$4 sm:$0xff]   ;;  %v3407_v42 = vld [vmem:[%s3826_s11 + $0x2e4] ss:$16 sps:$4 sm:$0xff]  }
  0x4b   : > { %v3461_v41 = vld [vmem:[%s3828_s12 + $0xc] ss:$36 sps:$4 sm:$0xff]  }
  0x4c   : > { %2186 = vmatpush1.bf16.msra.mxu0 %v3316_v45  ;;  %2401 = vmatpush1.bf16.msra.mxu1 %v3317_v46  ;;  %v3410_v43 = vld [vmem:[%s3826_s11 + $0x2ec] ss:$16 sps:$4 sm:$0xff]   ;;  %v3405_v44 = vld [vmem:[%s3826_s11 + $0x2e0] ss:$16 sps:$4 sm:$0xff]   ;;  %v3408_v45 = vld [vmem:[%s3826_s11 + $0x2e8] ss:$16 sps:$4 sm:$0xff]  }
  0x4d   : > { %2187 = vmatprep.subr.bf16.mxu0 %v3318_v47  ;;  %2402 = vmatprep.subr.bf16.mxu1 %v3320_v48  ;;  %v3413_v46 = vld [vmem:[%s3826_s11 + $0x304] ss:$16 sps:$4 sm:$0xff]   ;;  %v3416_v47 = vld [vmem:[%s3826_s11 + $0x30c] ss:$16 sps:$4 sm:$0xff]   ;;  %v3411_v48 = vld [vmem:[%s3826_s11 + $0x300] ss:$16 sps:$4 sm:$0xff]  }
  0x4e   : > { %v3434_v59 = vld [vmem:[%s3826_s11 + $0x36c] ss:$16 sps:$4 sm:$0xff]  }
  0x50   : > { %2188 = vmatpush1.bf16.msra.mxu0 %v3322_v49  ;;  %2403 = vmatpush1.bf16.msra.mxu1 %v3323_v50  ;;  %v3414_v49 = vld [vmem:[%s3826_s11 + $0x308] ss:$16 sps:$4 sm:$0xff]   ;;  %v3419_v50 = vld [vmem:[%s3826_s11 + $0x324] ss:$16 sps:$4 sm:$0xff]  }
  0x51   : > { %2189 = vmatprep.subr.bf16.mxu0 %v3324_v51  ;;  %2404 = vmatprep.subr.bf16.mxu1 %v3326_v52  ;;  %v3422_v51 = vld [vmem:[%s3826_s11 + $0x32c] ss:$16 sps:$4 sm:$0xff]   ;;  %v3417_v52 = vld [vmem:[%s3826_s11 + $0x320] ss:$16 sps:$4 sm:$0xff]  }
  0x54   : > { %2190 = vmatpush1.bf16.msra.mxu0 %v3328_v53  ;;  %2405 = vmatpush1.bf16.msra.mxu1 %v3329_v54  ;;  %v3420_v53 = vld [vmem:[%s3826_s11 + $0x328] ss:$16 sps:$4 sm:$0xff]   ;;  %v3425_v54 = vld [vmem:[%s3826_s11 + $0x344] ss:$16 sps:$4 sm:$0xff]  }
  0x55   : > { %2191 = vmatprep.subr.bf16.mxu0 %v3330_v55  ;;  %2406 = vmatprep.subr.bf16.mxu1 %v3332_v56  ;;  %v3428_v55 = vld [vmem:[%s3826_s11 + $0x34c] ss:$16 sps:$4 sm:$0xff]   ;;  %v3423_v56 = vld [vmem:[%s3826_s11 + $0x340] ss:$16 sps:$4 sm:$0xff]  }
  0x58   : > { %2192 = vmatpush1.bf16.msra.mxu0 %v3334_v57  ;;  %2407 = vmatpush1.bf16.msra.mxu1 %v3335_v58  ;;  %v3426_v57 = vld [vmem:[%s3826_s11 + $0x348] ss:$16 sps:$4 sm:$0xff]   ;;  %v3431_v58 = vld [vmem:[%s3826_s11 + $0x364] ss:$16 sps:$4 sm:$0xff]  }
  0x59   : > { %2193 = vmatprep.subr.bf16.mxu0 %v3336_v60  ;;  %2408 = vmatprep.subr.bf16.mxu1 %v3338_v61  ;;  %v3429_v60 = vld [vmem:[%s3826_s11 + $0x360] ss:$16 sps:$4 sm:$0xff]   ;;  %v3432_v61 = vld [vmem:[%s3826_s11 + $0x368] ss:$16 sps:$4 sm:$0xff]  }
  0x5c   : > { %2194 = vmatpush1.bf16.msra.mxu0 %v3340_v62  ;;  %2409 = vmatpush1.bf16.msra.mxu1 %v3341_v63  ;;  %v3437_v62 = vld [vmem:[%s3826_s11 + $0x384] ss:$16 sps:$4 sm:$0xff]   ;;  %v3440_v63 = vld [vmem:[%s3826_s11 + $0x38c] ss:$16 sps:$4 sm:$0xff]  }
  0x5d   : > { %2195 = vmatprep.subr.bf16.mxu0 %v3342_v0  ;;  %2410 = vmatprep.subr.bf16.mxu1 %v3344_v1  ;;  %v3435_v0 = vld [vmem:[%s3826_s11 + $0x380] ss:$16 sps:$4 sm:$0xff]   ;;  %v3438_v1 = vld [vmem:[%s3826_s11 + $0x388] ss:$16 sps:$4 sm:$0xff]  }
  0x60   : > { %2196 = vmatpush1.bf16.msra.mxu0 %v3346_v2  ;;  %2411 = vmatpush1.bf16.msra.mxu1 %v3347_v3  ;;  %v3443_v2 = vld [vmem:[%s3826_s11 + $0x3a4] ss:$16 sps:$4 sm:$0xff]   ;;  %v3446_v3 = vld [vmem:[%s3826_s11 + $0x3ac] ss:$16 sps:$4 sm:$0xff]  }
  0x61   : > { %2197 = vmatprep.subr.bf16.mxu0 %v3348_v4  ;;  %2412 = vmatprep.subr.bf16.mxu1 %v3350_v5  ;;  %v3441_v4 = vld [vmem:[%s3826_s11 + $0x3a0] ss:$16 sps:$4 sm:$0xff]   ;;  %v3444_v5 = vld [vmem:[%s3826_s11 + $0x3a8] ss:$16 sps:$4 sm:$0xff]  }
  0x64   : > { %2198 = vmatpush1.bf16.msra.mxu0 %v3352_v6  ;;  %2413 = vmatpush1.bf16.msra.mxu1 %v3353_v7  ;;  %v3449_v6 = vld [vmem:[%s3826_s11 + $0x3c4] ss:$16 sps:$4 sm:$0xff]   ;;  %v3452_v7 = vld [vmem:[%s3826_s11 + $0x3cc] ss:$16 sps:$4 sm:$0xff]  }
  0x65   : > { %2199 = vmatprep.subr.bf16.mxu0 %v3354_v8  ;;  %2414 = vmatprep.subr.bf16.mxu1 %v3356_v9  ;;  %v3447_v8 = vld [vmem:[%s3826_s11 + $0x3c0] ss:$16 sps:$4 sm:$0xff]   ;;  %v3450_v9 = vld [vmem:[%s3826_s11 + $0x3c8] ss:$16 sps:$4 sm:$0xff]  }
  0x68   : > { %2200 = vmatpush1.bf16.msra.mxu0 %v3358_v10  ;;  %2415 = vmatpush1.bf16.msra.mxu1 %v3359_v11  ;;  %v3455_v10 = vld [vmem:[%s3826_s11 + $0x3e4] ss:$16 sps:$4 sm:$0xff]   ;;  %v3458_v11 = vld [vmem:[%s3826_s11 + $0x3ec] ss:$16 sps:$4 sm:$0xff]  }
  0x69   : > { %2212 = vmatprep.subr.bf16.mxu0 %v3365_v12  ;;  %2427 = vmatprep.subr.bf16.mxu1 %v3368_v13  ;;  %v3453_v12 = vld [vmem:[%s3826_s11 + $0x3e0] ss:$16 sps:$4 sm:$0xff]   ;;  %v3456_v13 = vld [vmem:[%s3826_s11 + $0x3e8] ss:$16 sps:$4 sm:$0xff]  }
  0x6b   : > { %2202 = vmatmul.mubr.bf16.vlgmr.msra.gmra.mrb[0].mxu0 %v3360_v14  ;;  %2417 = vmatmul.mubr.bf16.vlgmr.msra.gmra.mrb[0].mxu1 %v3360_v14  ;;  %v3464_v14 = vld [vmem:[%s3826_s11 + $0x404] ss:$16 sps:$4 sm:$0xff]  }
  0x6c   : > { %2213 = vmatpush1.bf16.msra.mxu0 %v3363_v15  ;;  %2428 = vmatpush1.bf16.msra.mxu1 %v3366_v16  ;;  %v3467_v15 = vld [vmem:[%s3826_s11 + $0x40c] ss:$16 sps:$4 sm:$0xff]  }
  0x6d   : > { %2214 = vmatprep.subr.bf16.mxu0 %v3371_v17  ;;  %2429 = vmatprep.subr.bf16.mxu1 %v3374_v18  ;;  %v3459_v16 = vld [vmem:[%s3828_s12 + $0x8] ss:$36 sps:$4 sm:$0xff]  }
  0x6e   : > { %2244 = vmatprep.mubr.bf16.mxu0 %v3461_v41  ;;  %2459 = vmatprep.mubr.bf16.mxu1 %v3461_v41  ;;  %v3462_v17 = vld [vmem:[%s3826_s11 + $0x400] ss:$16 sps:$4 sm:$0xff]   ;;  %v3465_v18 = vld [vmem:[%s3826_s11 + $0x408] ss:$16 sps:$4 sm:$0xff]   ;;  %v3503_v41 = vld [vmem:[%s3826_s11 + $0x4cc] ss:$16 sps:$4 sm:$0xff]  }
  0x70   : > { %2215 = vmatpush1.bf16.msra.mxu0 %v3369_v19  ;;  %2430 = vmatpush1.bf16.msra.mxu1 %v3372_v20  ;;  %v3470_v19 = vld [vmem:[%s3826_s11 + $0x424] ss:$16 sps:$4 sm:$0xff]   ;;  %v3473_v20 = vld [vmem:[%s3826_s11 + $0x42c] ss:$16 sps:$4 sm:$0xff]  }
  0x71   : > { %2216 = vmatprep.subr.bf16.mxu0 %v3377_v21  ;;  %2431 = vmatprep.subr.bf16.mxu1 %v3380_v22  ;;  %v3468_v21 = vld [vmem:[%s3826_s11 + $0x420] ss:$16 sps:$4 sm:$0xff]   ;;  %v3471_v22 = vld [vmem:[%s3826_s11 + $0x428] ss:$16 sps:$4 sm:$0xff]  }
  0x74   : > { %2217 = vmatpush1.bf16.msra.mxu0 %v3375_v23  ;;  %2432 = vmatpush1.bf16.msra.mxu1 %v3378_v24  ;;  %v3560_v23 = vld [vmem:[%s3828_s12 + $0x14] ss:$36 sps:$4 sm:$0xff]  }
  0x75   : > { %2218 = vmatprep.subr.bf16.mxu0 %v3383_v25  ;;  %2433 = vmatprep.subr.bf16.mxu1 %v3386_v26  ;;  %v3476_v24 = vld [vmem:[%s3826_s11 + $0x444] ss:$16 sps:$4 sm:$0xff]   ;;  %v3479_v25 = vld [vmem:[%s3826_s11 + $0x44c] ss:$16 sps:$4 sm:$0xff]   ;;  %v3474_v26 = vld [vmem:[%s3826_s11 + $0x440] ss:$16 sps:$4 sm:$0xff]  }
  0x78   : > { %2219 = vmatpush1.bf16.msra.mxu0 %v3381_v27  ;;  %2434 = vmatpush1.bf16.msra.mxu1 %v3384_v28  ;;  %v3477_v27 = vld [vmem:[%s3826_s11 + $0x448] ss:$16 sps:$4 sm:$0xff]   ;;  %v3482_v28 = vld [vmem:[%s3826_s11 + $0x464] ss:$16 sps:$4 sm:$0xff]  }
  0x79   : > { %2220 = vmatprep.subr.bf16.mxu0 %v3389_v29  ;;  %2435 = vmatprep.subr.bf16.mxu1 %v3392_v30  ;;  %v3485_v29 = vld [vmem:[%s3826_s11 + $0x46c] ss:$16 sps:$4 sm:$0xff]   ;;  %v3480_v30 = vld [vmem:[%s3826_s11 + $0x460] ss:$16 sps:$4 sm:$0xff]  }
  0x7c   : > { %2221 = vmatpush1.bf16.msra.mxu0 %v3387_v31  ;;  %2436 = vmatpush1.bf16.msra.mxu1 %v3390_v32  ;;  %v3483_v31 = vld [vmem:[%s3826_s11 + $0x468] ss:$16 sps:$4 sm:$0xff]   ;;  %v3488_v32 = vld [vmem:[%s3826_s11 + $0x484] ss:$16 sps:$4 sm:$0xff]  }
  0x7d   : > { %2222 = vmatprep.subr.bf16.mxu0 %v3395_v33  ;;  %2437 = vmatprep.subr.bf16.mxu1 %v3398_v34  ;;  %v3491_v33 = vld [vmem:[%s3826_s11 + $0x48c] ss:$16 sps:$4 sm:$0xff]   ;;  %v3486_v34 = vld [vmem:[%s3826_s11 + $0x480] ss:$16 sps:$4 sm:$0xff]  }
  0x80   : > { %2223 = vmatpush1.bf16.msra.mxu0 %v3393_v35  ;;  %2438 = vmatpush1.bf16.msra.mxu1 %v3396_v36  ;;  %v3489_v35 = vld [vmem:[%s3826_s11 + $0x488] ss:$16 sps:$4 sm:$0xff]   ;;  %v3494_v36 = vld [vmem:[%s3826_s11 + $0x4a4] ss:$16 sps:$4 sm:$0xff]  }
  0x81   : > { %2224 = vmatprep.subr.bf16.mxu0 %v3401_v37  ;;  %2439 = vmatprep.subr.bf16.mxu1 %v3404_v38  ;;  %v3497_v37 = vld [vmem:[%s3826_s11 + $0x4ac] ss:$16 sps:$4 sm:$0xff]   ;;  %v3492_v38 = vld [vmem:[%s3826_s11 + $0x4a0] ss:$16 sps:$4 sm:$0xff]  }
  0x84   : > { %2225 = vmatpush1.bf16.msra.mxu0 %v3399_v39  ;;  %2440 = vmatpush1.bf16.msra.mxu1 %v3402_v40  ;;  %v3495_v39 = vld [vmem:[%s3826_s11 + $0x4a8] ss:$16 sps:$4 sm:$0xff]   ;;  %v3500_v40 = vld [vmem:[%s3826_s11 + $0x4c4] ss:$16 sps:$4 sm:$0xff]  }
  0x85   : > { %2226 = vmatprep.subr.bf16.mxu0 %v3407_v42  ;;  %2441 = vmatprep.subr.bf16.mxu1 %v3410_v43  ;;  %v3498_v42 = vld [vmem:[%s3826_s11 + $0x4c0] ss:$16 sps:$4 sm:$0xff]   ;;  %v3501_v43 = vld [vmem:[%s3826_s11 + $0x4c8] ss:$16 sps:$4 sm:$0xff]  }
  0x88   : > { %2227 = vmatpush1.bf16.msra.mxu0 %v3405_v44  ;;  %2442 = vmatpush1.bf16.msra.mxu1 %v3408_v45  ;;  %v3506_v44 = vld [vmem:[%s3826_s11 + $0x4e4] ss:$16 sps:$4 sm:$0xff]   ;;  %v3509_v45 = vld [vmem:[%s3826_s11 + $0x4ec] ss:$16 sps:$4 sm:$0xff]  }
  0x89   : > { %2228 = vmatprep.subr.bf16.mxu0 %v3413_v46  ;;  %2443 = vmatprep.subr.bf16.mxu1 %v3416_v47  ;;  %v3504_v46 = vld [vmem:[%s3826_s11 + $0x4e0] ss:$16 sps:$4 sm:$0xff]   ;;  %v3507_v47 = vld [vmem:[%s3826_s11 + $0x4e8] ss:$16 sps:$4 sm:$0xff]  }
  0x8c   : > { %2229 = vmatpush1.bf16.msra.mxu0 %v3411_v48  ;;  %2444 = vmatpush1.bf16.msra.mxu1 %v3414_v49  ;;  %v3512_v48 = vld [vmem:[%s3826_s11 + $0x504] ss:$16 sps:$4 sm:$0xff]   ;;  %v3515_v49 = vld [vmem:[%s3826_s11 + $0x50c] ss:$16 sps:$4 sm:$0xff]  }
  0x8d   : > { %2230 = vmatprep.subr.bf16.mxu0 %v3419_v50  ;;  %2445 = vmatprep.subr.bf16.mxu1 %v3422_v51  ;;  %v3510_v50 = vld [vmem:[%s3826_s11 + $0x500] ss:$16 sps:$4 sm:$0xff]   ;;  %v3513_v51 = vld [vmem:[%s3826_s11 + $0x508] ss:$16 sps:$4 sm:$0xff]  }
  0x90   : > { %2231 = vmatpush1.bf16.msra.mxu0 %v3417_v52  ;;  %2446 = vmatpush1.bf16.msra.mxu1 %v3420_v53  ;;  %v3518_v52 = vld [vmem:[%s3826_s11 + $0x524] ss:$16 sps:$4 sm:$0xff]   ;;  %v3521_v53 = vld [vmem:[%s3826_s11 + $0x52c] ss:$16 sps:$4 sm:$0xff]  }
  0x91   : > { %2232 = vmatprep.subr.bf16.mxu0 %v3425_v54  ;;  %2447 = vmatprep.subr.bf16.mxu1 %v3428_v55  ;;  %v3516_v54 = vld [vmem:[%s3826_s11 + $0x520] ss:$16 sps:$4 sm:$0xff]   ;;  %v3519_v55 = vld [vmem:[%s3826_s11 + $0x528] ss:$16 sps:$4 sm:$0xff]  }
  0x94   : > { %2233 = vmatpush1.bf16.msra.mxu0 %v3423_v56  ;;  %2448 = vmatpush1.bf16.msra.mxu1 %v3426_v57  ;;  %v3524_v56 = vld [vmem:[%s3826_s11 + $0x544] ss:$16 sps:$4 sm:$0xff]   ;;  %v3527_v57 = vld [vmem:[%s3826_s11 + $0x54c] ss:$16 sps:$4 sm:$0xff]  }
  0x95   : > { %2234 = vmatprep.subr.bf16.mxu0 %v3431_v58  ;;  %2449 = vmatprep.subr.bf16.mxu1 %v3434_v59  ;;  %v3522_v58 = vld [vmem:[%s3826_s11 + $0x540] ss:$16 sps:$4 sm:$0xff]   ;;  %v3525_v59 = vld [vmem:[%s3826_s11 + $0x548] ss:$16 sps:$4 sm:$0xff]  }
  0x98   : > { %2235 = vmatpush1.bf16.msra.mxu0 %v3429_v60  ;;  %2450 = vmatpush1.bf16.msra.mxu1 %v3432_v61  ;;  %v3530_v60 = vld [vmem:[%s3826_s11 + $0x564] ss:$16 sps:$4 sm:$0xff]   ;;  %v3533_v61 = vld [vmem:[%s3826_s11 + $0x56c] ss:$16 sps:$4 sm:$0xff]  }
  0x99   : > { %2236 = vmatprep.subr.bf16.mxu0 %v3437_v62  ;;  %2451 = vmatprep.subr.bf16.mxu1 %v3440_v63  ;;  %v3528_v62 = vld [vmem:[%s3826_s11 + $0x560] ss:$16 sps:$4 sm:$0xff]   ;;  %v3531_v63 = vld [vmem:[%s3826_s11 + $0x568] ss:$16 sps:$4 sm:$0xff]  }
  0x9c   : > { %2237 = vmatpush1.bf16.msra.mxu0 %v3435_v0  ;;  %2452 = vmatpush1.bf16.msra.mxu1 %v3438_v1  ;;  %v3536_v0 = vld [vmem:[%s3826_s11 + $0x584] ss:$16 sps:$4 sm:$0xff]   ;;  %v3539_v1 = vld [vmem:[%s3826_s11 + $0x58c] ss:$16 sps:$4 sm:$0xff]  }
  0x9d   : > { %2238 = vmatprep.subr.bf16.mxu0 %v3443_v2  ;;  %2453 = vmatprep.subr.bf16.mxu1 %v3446_v3  ;;  %v3534_v2 = vld [vmem:[%s3826_s11 + $0x580] ss:$16 sps:$4 sm:$0xff]   ;;  %v3537_v3 = vld [vmem:[%s3826_s11 + $0x588] ss:$16 sps:$4 sm:$0xff]  }
  0xa0   : > { %2239 = vmatpush1.bf16.msra.mxu0 %v3441_v4  ;;  %2454 = vmatpush1.bf16.msra.mxu1 %v3444_v5  ;;  %v3542_v4 = vld [vmem:[%s3826_s11 + $0x5a4] ss:$16 sps:$4 sm:$0xff]   ;;  %v3545_v5 = vld [vmem:[%s3826_s11 + $0x5ac] ss:$16 sps:$4 sm:$0xff]  }
  0xa1   : > { %2240 = vmatprep.subr.bf16.mxu0 %v3449_v6  ;;  %2455 = vmatprep.subr.bf16.mxu1 %v3452_v7  ;;  %v3540_v6 = vld [vmem:[%s3826_s11 + $0x5a0] ss:$16 sps:$4 sm:$0xff]   ;;  %v3543_v7 = vld [vmem:[%s3826_s11 + $0x5a8] ss:$16 sps:$4 sm:$0xff]  }
  0xa4   : > { %2241 = vmatpush1.bf16.msra.mxu0 %v3447_v8  ;;  %2456 = vmatpush1.bf16.msra.mxu1 %v3450_v9  ;;  %v3548_v8 = vld [vmem:[%s3826_s11 + $0x5c4] ss:$16 sps:$4 sm:$0xff]   ;;  %v3551_v9 = vld [vmem:[%s3826_s11 + $0x5cc] ss:$16 sps:$4 sm:$0xff]  }
  0xa5   : > { %2242 = vmatprep.subr.bf16.mxu0 %v3455_v10  ;;  %2457 = vmatprep.subr.bf16.mxu1 %v3458_v11  ;;  %v3546_v10 = vld [vmem:[%s3826_s11 + $0x5c0] ss:$16 sps:$4 sm:$0xff]   ;;  %v3549_v11 = vld [vmem:[%s3826_s11 + $0x5c8] ss:$16 sps:$4 sm:$0xff]  }
  0xa8   : > { %2243 = vmatpush1.bf16.msra.mxu0 %v3453_v12  ;;  %2458 = vmatpush1.bf16.msra.mxu1 %v3456_v13  ;;  %v3554_v12 = vld [vmem:[%s3826_s11 + $0x5e4] ss:$16 sps:$4 sm:$0xff]   ;;  %v3557_v13 = vld [vmem:[%s3826_s11 + $0x5ec] ss:$16 sps:$4 sm:$0xff]  }
  0xa9   : > { %2255 = vmatprep.subr.bf16.mxu0 %v3464_v14  ;;  %2470 = vmatprep.subr.bf16.mxu1 %v3467_v15  ;;  %v3552_v14 = vld [vmem:[%s3826_s11 + $0x5e0] ss:$16 sps:$4 sm:$0xff]   ;;  %v3555_v15 = vld [vmem:[%s3826_s11 + $0x5e8] ss:$16 sps:$4 sm:$0xff]  }
  0xab   : > { %2245 = vmatmul.mubr.bf16.vlgmr.msra.gmra.mrb[0].mxu0 %v3459_v16  ;;  %2460 = vmatmul.mubr.bf16.vlgmr.msra.gmra.mrb[0].mxu1 %v3459_v16  ;;  %v3563_v16 = vld [vmem:[%s3826_s11 + $0x604] ss:$16 sps:$4 sm:$0xff]  }
  0xac   : > { %2256 = vmatpush1.bf16.msra.mxu0 %v3462_v17  ;;  %2471 = vmatpush1.bf16.msra.mxu1 %v3465_v18  ;;  %v3566_v17 = vld [vmem:[%s3826_s11 + $0x60c] ss:$16 sps:$4 sm:$0xff]  }
  0xad   : > { %2257 = vmatprep.subr.bf16.mxu0 %v3470_v19  ;;  %2472 = vmatprep.subr.bf16.mxu1 %v3473_v20  ;;  %v3558_v18 = vld [vmem:[%s3828_s12 + $0x10] ss:$36 sps:$4 sm:$0xff]  }
  0xae   : > { %2287 = vmatprep.mubr.bf16.mxu0 %v3560_v23  ;;  %2502 = vmatprep.mubr.bf16.mxu1 %v3560_v23  ;;  %v3561_v19 = vld [vmem:[%s3826_s11 + $0x600] ss:$16 sps:$4 sm:$0xff]   ;;  %v3564_v20 = vld [vmem:[%s3826_s11 + $0x608] ss:$16 sps:$4 sm:$0xff]  }
  0xaf   : > { %v3659_v23 = vld [vmem:[%s3828_s12 + $0x1c] ss:$36 sps:$4 sm:$0xff]  }
  0xb0   : > { %2258 = vmatpush1.bf16.msra.mxu0 %v3468_v21  ;;  %2473 = vmatpush1.bf16.msra.mxu1 %v3471_v22  ;;  %v3569_v21 = vld [vmem:[%s3826_s11 + $0x624] ss:$16 sps:$4 sm:$0xff]   ;;  %v3572_v22 = vld [vmem:[%s3826_s11 + $0x62c] ss:$16 sps:$4 sm:$0xff]  }
  0xb1   : > { %2259 = vmatprep.subr.bf16.mxu0 %v3476_v24  ;;  %2474 = vmatprep.subr.bf16.mxu1 %v3479_v25  ;;  %v3567_v24 = vld [vmem:[%s3826_s11 + $0x620] ss:$16 sps:$4 sm:$0xff]   ;;  %v3570_v25 = vld [vmem:[%s3826_s11 + $0x628] ss:$16 sps:$4 sm:$0xff]  }
  0xb4   : > { %2260 = vmatpush1.bf16.msra.mxu0 %v3474_v26  ;;  %2475 = vmatpush1.bf16.msra.mxu1 %v3477_v27  ;;  %v3575_v26 = vld [vmem:[%s3826_s11 + $0x644] ss:$16 sps:$4 sm:$0xff]   ;;  %v3578_v27 = vld [vmem:[%s3826_s11 + $0x64c] ss:$16 sps:$4 sm:$0xff]  }
  0xb5   : > { %2261 = vmatprep.subr.bf16.mxu0 %v3482_v28  ;;  %2476 = vmatprep.subr.bf16.mxu1 %v3485_v29  ;;  %v3573_v28 = vld [vmem:[%s3826_s11 + $0x640] ss:$16 sps:$4 sm:$0xff]   ;;  %v3576_v29 = vld [vmem:[%s3826_s11 + $0x648] ss:$16 sps:$4 sm:$0xff]  }
  0xb8   : > { %2262 = vmatpush1.bf16.msra.mxu0 %v3480_v30  ;;  %2477 = vmatpush1.bf16.msra.mxu1 %v3483_v31  ;;  %v3581_v30 = vld [vmem:[%s3826_s11 + $0x664] ss:$16 sps:$4 sm:$0xff]   ;;  %v3584_v31 = vld [vmem:[%s3826_s11 + $0x66c] ss:$16 sps:$4 sm:$0xff]  }
  0xb9   : > { %2263 = vmatprep.subr.bf16.mxu0 %v3488_v32  ;;  %2478 = vmatprep.subr.bf16.mxu1 %v3491_v33  ;;  %v3579_v32 = vld [vmem:[%s3826_s11 + $0x660] ss:$16 sps:$4 sm:$0xff]   ;;  %v3582_v33 = vld [vmem:[%s3826_s11 + $0x668] ss:$16 sps:$4 sm:$0xff]  }
  0xbc   : > { %2264 = vmatpush1.bf16.msra.mxu0 %v3486_v34  ;;  %2479 = vmatpush1.bf16.msra.mxu1 %v3489_v35  ;;  %v3587_v34 = vld [vmem:[%s3826_s11 + $0x684] ss:$16 sps:$4 sm:$0xff]   ;;  %v3590_v35 = vld [vmem:[%s3826_s11 + $0x68c] ss:$16 sps:$4 sm:$0xff]  }
  0xbd   : > { %2265 = vmatprep.subr.bf16.mxu0 %v3494_v36  ;;  %2480 = vmatprep.subr.bf16.mxu1 %v3497_v37  ;;  %v3585_v36 = vld [vmem:[%s3826_s11 + $0x680] ss:$16 sps:$4 sm:$0xff]   ;;  %v3588_v37 = vld [vmem:[%s3826_s11 + $0x688] ss:$16 sps:$4 sm:$0xff]  }
  0xc0   : > { %2266 = vmatpush1.bf16.msra.mxu0 %v3492_v38  ;;  %2481 = vmatpush1.bf16.msra.mxu1 %v3495_v39  ;;  %v3593_v38 = vld [vmem:[%s3826_s11 + $0x6a4] ss:$16 sps:$4 sm:$0xff]   ;;  %v3596_v39 = vld [vmem:[%s3826_s11 + $0x6ac] ss:$16 sps:$4 sm:$0xff]  }
  0xc1   : > { %2267 = vmatprep.subr.bf16.mxu0 %v3500_v40  ;;  %2482 = vmatprep.subr.bf16.mxu1 %v3503_v41  ;;  %v3591_v40 = vld [vmem:[%s3826_s11 + $0x6a0] ss:$16 sps:$4 sm:$0xff]   ;;  %v3594_v41 = vld [vmem:[%s3826_s11 + $0x6a8] ss:$16 sps:$4 sm:$0xff]  }
  0xc4   : > { %2268 = vmatpush1.bf16.msra.mxu0 %v3498_v42  ;;  %2483 = vmatpush1.bf16.msra.mxu1 %v3501_v43  ;;  %v3599_v42 = vld [vmem:[%s3826_s11 + $0x6c4] ss:$16 sps:$4 sm:$0xff]   ;;  %v3602_v43 = vld [vmem:[%s3826_s11 + $0x6cc] ss:$16 sps:$4 sm:$0xff]  }
  0xc5   : > { %2269 = vmatprep.subr.bf16.mxu0 %v3506_v44  ;;  %2484 = vmatprep.subr.bf16.mxu1 %v3509_v45  ;;  %v3597_v44 = vld [vmem:[%s3826_s11 + $0x6c0] ss:$16 sps:$4 sm:$0xff]   ;;  %v3600_v45 = vld [vmem:[%s3826_s11 + $0x6c8] ss:$16 sps:$4 sm:$0xff]  }
  0xc8   : > { %2270 = vmatpush1.bf16.msra.mxu0 %v3504_v46  ;;  %2485 = vmatpush1.bf16.msra.mxu1 %v3507_v47  ;;  %v3605_v46 = vld [vmem:[%s3826_s11 + $0x6e4] ss:$16 sps:$4 sm:$0xff]   ;;  %v3608_v47 = vld [vmem:[%s3826_s11 + $0x6ec] ss:$16 sps:$4 sm:$0xff]  }
  0xc9   : > { %2271 = vmatprep.subr.bf16.mxu0 %v3512_v48  ;;  %2486 = vmatprep.subr.bf16.mxu1 %v3515_v49  ;;  %v3603_v48 = vld [vmem:[%s3826_s11 + $0x6e0] ss:$16 sps:$4 sm:$0xff]   ;;  %v3606_v49 = vld [vmem:[%s3826_s11 + $0x6e8] ss:$16 sps:$4 sm:$0xff]  }
  0xcc   : > { %2272 = vmatpush1.bf16.msra.mxu0 %v3510_v50  ;;  %2487 = vmatpush1.bf16.msra.mxu1 %v3513_v51  ;;  %v3611_v50 = vld [vmem:[%s3826_s11 + $0x704] ss:$16 sps:$4 sm:$0xff]   ;;  %v3614_v51 = vld [vmem:[%s3826_s11 + $0x70c] ss:$16 sps:$4 sm:$0xff]  }
  0xcd   : > { %2273 = vmatprep.subr.bf16.mxu0 %v3518_v52  ;;  %2488 = vmatprep.subr.bf16.mxu1 %v3521_v53  ;;  %v3609_v52 = vld [vmem:[%s3826_s11 + $0x700] ss:$16 sps:$4 sm:$0xff]   ;;  %v3612_v53 = vld [vmem:[%s3826_s11 + $0x708] ss:$16 sps:$4 sm:$0xff]  }
  0xd0   : > { %2274 = vmatpush1.bf16.msra.mxu0 %v3516_v54  ;;  %2489 = vmatpush1.bf16.msra.mxu1 %v3519_v55  ;;  %v3617_v54 = vld [vmem:[%s3826_s11 + $0x724] ss:$16 sps:$4 sm:$0xff]   ;;  %v3620_v55 = vld [vmem:[%s3826_s11 + $0x72c] ss:$16 sps:$4 sm:$0xff]  }
  0xd1   : > { %2275 = vmatprep.subr.bf16.mxu0 %v3524_v56  ;;  %2490 = vmatprep.subr.bf16.mxu1 %v3527_v57  ;;  %v3615_v56 = vld [vmem:[%s3826_s11 + $0x720] ss:$16 sps:$4 sm:$0xff]   ;;  %v3618_v57 = vld [vmem:[%s3826_s11 + $0x728] ss:$16 sps:$4 sm:$0xff]  }
  0xd4   : > { %2276 = vmatpush1.bf16.msra.mxu0 %v3522_v58  ;;  %2491 = vmatpush1.bf16.msra.mxu1 %v3525_v59  ;;  %v3623_v58 = vld [vmem:[%s3826_s11 + $0x744] ss:$16 sps:$4 sm:$0xff]   ;;  %v3626_v59 = vld [vmem:[%s3826_s11 + $0x74c] ss:$16 sps:$4 sm:$0xff]  }
  0xd5   : > { %2277 = vmatprep.subr.bf16.mxu0 %v3530_v60  ;;  %2492 = vmatprep.subr.bf16.mxu1 %v3533_v61  ;;  %v3621_v60 = vld [vmem:[%s3826_s11 + $0x740] ss:$16 sps:$4 sm:$0xff]   ;;  %v3624_v61 = vld [vmem:[%s3826_s11 + $0x748] ss:$16 sps:$4 sm:$0xff]  }
  0xd8   : > { %2278 = vmatpush1.bf16.msra.mxu0 %v3528_v62  ;;  %2493 = vmatpush1.bf16.msra.mxu1 %v3531_v63  ;;  %v3629_v62 = vld [vmem:[%s3826_s11 + $0x764] ss:$16 sps:$4 sm:$0xff]   ;;  %v3632_v63 = vld [vmem:[%s3826_s11 + $0x76c] ss:$16 sps:$4 sm:$0xff]  }
  0xd9   : > { %2279 = vmatprep.subr.bf16.mxu0 %v3536_v0  ;;  %2494 = vmatprep.subr.bf16.mxu1 %v3539_v1  ;;  %v3627_v0 = vld [vmem:[%s3826_s11 + $0x760] ss:$16 sps:$4 sm:$0xff]   ;;  %v3630_v1 = vld [vmem:[%s3826_s11 + $0x768] ss:$16 sps:$4 sm:$0xff]  }
  0xdc   : > { %2280 = vmatpush1.bf16.msra.mxu0 %v3534_v2  ;;  %2495 = vmatpush1.bf16.msra.mxu1 %v3537_v3  ;;  %v3635_v2 = vld [vmem:[%s3826_s11 + $0x784] ss:$16 sps:$4 sm:$0xff]   ;;  %v3638_v3 = vld [vmem:[%s3826_s11 + $0x78c] ss:$16 sps:$4 sm:$0xff]  }
  0xdd   : > { %2281 = vmatprep.subr.bf16.mxu0 %v3542_v4  ;;  %2496 = vmatprep.subr.bf16.mxu1 %v3545_v5  ;;  %v3633_v4 = vld [vmem:[%s3826_s11 + $0x780] ss:$16 sps:$4 sm:$0xff]   ;;  %v3636_v5 = vld [vmem:[%s3826_s11 + $0x788] ss:$16 sps:$4 sm:$0xff]  }
  0xe0   : > { %2282 = vmatpush1.bf16.msra.mxu0 %v3540_v6  ;;  %2497 = vmatpush1.bf16.msra.mxu1 %v3543_v7  ;;  %v3641_v6 = vld [vmem:[%s3826_s11 + $0x7a4] ss:$16 sps:$4 sm:$0xff]   ;;  %v3644_v7 = vld [vmem:[%s3826_s11 + $0x7ac] ss:$16 sps:$4 sm:$0xff]  }
  0xe1   : > { %2283 = vmatprep.subr.bf16.mxu0 %v3548_v8  ;;  %2498 = vmatprep.subr.bf16.mxu1 %v3551_v9  ;;  %v3639_v8 = vld [vmem:[%s3826_s11 + $0x7a0] ss:$16 sps:$4 sm:$0xff]   ;;  %v3642_v9 = vld [vmem:[%s3826_s11 + $0x7a8] ss:$16 sps:$4 sm:$0xff]  }
  0xe4   : > { %2284 = vmatpush1.bf16.msra.mxu0 %v3546_v10  ;;  %2499 = vmatpush1.bf16.msra.mxu1 %v3549_v11  ;;  %v3647_v10 = vld [vmem:[%s3826_s11 + $0x7c4] ss:$16 sps:$4 sm:$0xff]   ;;  %v3650_v11 = vld [vmem:[%s3826_s11 + $0x7cc] ss:$16 sps:$4 sm:$0xff]  }
  0xe5   : > { %2285 = vmatprep.subr.bf16.mxu0 %v3554_v12  ;;  %2500 = vmatprep.subr.bf16.mxu1 %v3557_v13  ;;  %v3645_v12 = vld [vmem:[%s3826_s11 + $0x7c0] ss:$16 sps:$4 sm:$0xff]   ;;  %v3648_v13 = vld [vmem:[%s3826_s11 + $0x7c8] ss:$16 sps:$4 sm:$0xff]  }
  0xe8   : > { %2286 = vmatpush1.bf16.msra.mxu0 %v3552_v14  ;;  %2501 = vmatpush1.bf16.msra.mxu1 %v3555_v15  ;;  %v3653_v14 = vld [vmem:[%s3826_s11 + $0x7e4] ss:$16 sps:$4 sm:$0xff]   ;;  %v3656_v15 = vld [vmem:[%s3826_s11 + $0x7ec] ss:$16 sps:$4 sm:$0xff]  }
  0xe9   : > { %2298 = vmatprep.subr.bf16.mxu0 %v3563_v16  ;;  %2513 = vmatprep.subr.bf16.mxu1 %v3566_v17  ;;  %v3651_v16 = vld [vmem:[%s3826_s11 + $0x7e0] ss:$16 sps:$4 sm:$0xff]   ;;  %v3654_v17 = vld [vmem:[%s3826_s11 + $0x7e8] ss:$16 sps:$4 sm:$0xff]  }
  0xeb   : > { %2288 = vmatmul.mubr.bf16.vlgmr.msra.gmra.mrb[0].mxu0 %v3558_v18  ;;  %2503 = vmatmul.mubr.bf16.vlgmr.msra.gmra.mrb[0].mxu1 %v3558_v18  ;;  %v3662_v18 = vld [vmem:[%s3826_s11 + $0x804] ss:$16 sps:$4 sm:$0xff]  }
  0xec   : > { %2299 = vmatpush1.bf16.msra.mxu0 %v3561_v19  ;;  %2514 = vmatpush1.bf16.msra.mxu1 %v3564_v20  ;;  %v3665_v19 = vld [vmem:[%s3826_s11 + $0x80c] ss:$16 sps:$4 sm:$0xff]  }
  0xed   : > { %2300 = vmatprep.subr.bf16.mxu0 %v3569_v21  ;;  %2515 = vmatprep.subr.bf16.mxu1 %v3572_v22  ;;  %v3657_v20 = vld [vmem:[%s3828_s12 + $0x18] ss:$36 sps:$4 sm:$0xff]  }
  0xee   : > { %2330 = vmatprep.mubr.bf16.mxu0 %v3659_v23  ;;  %2545 = vmatprep.mubr.bf16.mxu1 %v3659_v23  ;;  %v3660_v21 = vld [vmem:[%s3826_s11 + $0x800] ss:$16 sps:$4 sm:$0xff]   ;;  %v3663_v22 = vld [vmem:[%s3826_s11 + $0x808] ss:$16 sps:$4 sm:$0xff]   ;;  %v3668_v23 = vld [vmem:[%s3826_s11 + $0x824] ss:$16 sps:$4 sm:$0xff]  }
  0xf0   : > { %2301 = vmatpush1.bf16.msra.mxu0 %v3567_v24  ;;  %2516 = vmatpush1.bf16.msra.mxu1 %v3570_v25  ;;  %v3671_v24 = vld [vmem:[%s3826_s11 + $0x82c] ss:$16 sps:$4 sm:$0xff]   ;;  %v3666_v25 = vld [vmem:[%s3826_s11 + $0x820] ss:$16 sps:$4 sm:$0xff]  }
  0xf1   : > { %2302 = vmatprep.subr.bf16.mxu0 %v3575_v26  ;;  %2517 = vmatprep.subr.bf16.mxu1 %v3578_v27  ;;  %v3669_v26 = vld [vmem:[%s3826_s11 + $0x828] ss:$16 sps:$4 sm:$0xff]   ;;  %v3674_v27 = vld [vmem:[%s3826_s11 + $0x844] ss:$16 sps:$4 sm:$0xff]  }
  0xf4   : > { %2303 = vmatpush1.bf16.msra.mxu0 %v3573_v28  ;;  %2518 = vmatpush1.bf16.msra.mxu1 %v3576_v29  ;;  %v3677_v28 = vld [vmem:[%s3826_s11 + $0x84c] ss:$16 sps:$4 sm:$0xff]   ;;  %v3750_v29 = vmov 0  }
  0xf5   : > { %2304 = vmatprep.subr.bf16.mxu0 %v3581_v30  ;;  %2519 = vmatprep.subr.bf16.mxu1 %v3584_v31  ;;  %v3672_v30 = vld [vmem:[%s3826_s11 + $0x840] ss:$16 sps:$4 sm:$0xff]   ;;  %v3675_v31 = vld [vmem:[%s3826_s11 + $0x848] ss:$16 sps:$4 sm:$0xff]  }
  0xf8   : > { %2305 = vmatpush1.bf16.msra.mxu0 %v3579_v32  ;;  %2520 = vmatpush1.bf16.msra.mxu1 %v3582_v33  ;;  %v3680_v32 = vld [vmem:[%s3826_s11 + $0x864] ss:$16 sps:$4 sm:$0xff]   ;;  %v3683_v33 = vld [vmem:[%s3826_s11 + $0x86c] ss:$16 sps:$4 sm:$0xff]  }
  0xf9   : > { %2306 = vmatprep.subr.bf16.mxu0 %v3587_v34  ;;  %2521 = vmatprep.subr.bf16.mxu1 %v3590_v35  ;;  %v3678_v34 = vld [vmem:[%s3826_s11 + $0x860] ss:$16 sps:$4 sm:$0xff]   ;;  %v3681_v35 = vld [vmem:[%s3826_s11 + $0x868] ss:$16 sps:$4 sm:$0xff]  }
  0xfc   : > { %2307 = vmatpush1.bf16.msra.mxu0 %v3585_v36  ;;  %2522 = vmatpush1.bf16.msra.mxu1 %v3588_v37  ;;  %v3686_v36 = vld [vmem:[%s3826_s11 + $0x884] ss:$16 sps:$4 sm:$0xff]   ;;  %v3689_v37 = vld [vmem:[%s3826_s11 + $0x88c] ss:$16 sps:$4 sm:$0xff]  }
  0xfd   : > { %2308 = vmatprep.subr.bf16.mxu0 %v3593_v38  ;;  %2523 = vmatprep.subr.bf16.mxu1 %v3596_v39  ;;  %v3684_v38 = vld [vmem:[%s3826_s11 + $0x880] ss:$16 sps:$4 sm:$0xff]   ;;  %v3687_v39 = vld [vmem:[%s3826_s11 + $0x888] ss:$16 sps:$4 sm:$0xff]  }
 0x100   : > { %2309 = vmatpush1.bf16.msra.mxu0 %v3591_v40  ;;  %2524 = vmatpush1.bf16.msra.mxu1 %v3594_v41  ;;  %v3692_v40 = vld [vmem:[%s3826_s11 + $0x8a4] ss:$16 sps:$4 sm:$0xff]   ;;  %v3695_v41 = vld [vmem:[%s3826_s11 + $0x8ac] ss:$16 sps:$4 sm:$0xff]  }
 0x101   : > { %2310 = vmatprep.subr.bf16.mxu0 %v3599_v42  ;;  %2525 = vmatprep.subr.bf16.mxu1 %v3602_v43  ;;  %v3690_v42 = vld [vmem:[%s3826_s11 + $0x8a0] ss:$16 sps:$4 sm:$0xff]   ;;  %v3693_v43 = vld [vmem:[%s3826_s11 + $0x8a8] ss:$16 sps:$4 sm:$0xff]  }
 0x104   : > { %2311 = vmatpush1.bf16.msra.mxu0 %v3597_v44  ;;  %2526 = vmatpush1.bf16.msra.mxu1 %v3600_v45  ;;  %v3698_v44 = vld [vmem:[%s3826_s11 + $0x8c4] ss:$16 sps:$4 sm:$0xff]   ;;  %v3701_v45 = vld [vmem:[%s3826_s11 + $0x8cc] ss:$16 sps:$4 sm:$0xff]  }
 0x105   : > { %2312 = vmatprep.subr.bf16.mxu0 %v3605_v46  ;;  %2527 = vmatprep.subr.bf16.mxu1 %v3608_v47  ;;  %v3696_v46 = vld [vmem:[%s3826_s11 + $0x8c0] ss:$16 sps:$4 sm:$0xff]   ;;  %v3699_v47 = vld [vmem:[%s3826_s11 + $0x8c8] ss:$16 sps:$4 sm:$0xff]  }
 0x108   : > { %2313 = vmatpush1.bf16.msra.mxu0 %v3603_v48  ;;  %2528 = vmatpush1.bf16.msra.mxu1 %v3606_v49  ;;  %v3704_v48 = vld [vmem:[%s3826_s11 + $0x8e4] ss:$16 sps:$4 sm:$0xff]   ;;  %v3707_v49 = vld [vmem:[%s3826_s11 + $0x8ec] ss:$16 sps:$4 sm:$0xff]  }
 0x109   : > { %2314 = vmatprep.subr.bf16.mxu0 %v3611_v50  ;;  %2529 = vmatprep.subr.bf16.mxu1 %v3614_v51  ;;  %v3702_v50 = vld [vmem:[%s3826_s11 + $0x8e0] ss:$16 sps:$4 sm:$0xff]   ;;  %v3705_v51 = vld [vmem:[%s3826_s11 + $0x8e8] ss:$16 sps:$4 sm:$0xff]  }
 0x10c   : > { %2315 = vmatpush1.bf16.msra.mxu0 %v3609_v52  ;;  %2530 = vmatpush1.bf16.msra.mxu1 %v3612_v53  ;;  %v3708_v52 = vld [vmem:[%s3828_s12 + $0x20] ss:$36 sps:$4 sm:$0xff]  }
 0x10d   : > { %2316 = vmatprep.subr.bf16.mxu0 %v3617_v54  ;;  %2531 = vmatprep.subr.bf16.mxu1 %v3620_v55  ;;  %v377_v53 = vld [vmem:[#allocation2] sm:$0xff]  ;;  %v379_v54 = vld [vmem:[#allocation2 + $0x10] sm:$0xff]  ;;  %v378_v55 = vld [vmem:[#allocation2 + $0x8] sm:$0xff] }
 0x110   : > { %2317 = vmatpush1.bf16.msra.mxu0 %v3615_v56  ;;  %2532 = vmatpush1.bf16.msra.mxu1 %v3618_v57  ;;  %v380_v56 = vld [vmem:[#allocation2 + $0x18] sm:$0xff] }
 0x111   : > { %2318 = vmatprep.subr.bf16.mxu0 %v3623_v58  ;;  %2533 = vmatprep.subr.bf16.mxu1 %v3626_v59  ;;  %v381_v59 = vld [vmem:[#allocation2 + $0x20] sm:$0xff] }
 0x114   : > { %2319 = vmatpush1.bf16.msra.mxu0 %v3621_v60  ;;  %2534 = vmatpush1.bf16.msra.mxu1 %v3624_v61  ;;  %v383_v60 = vld [vmem:[#allocation2 + $0x30] sm:$0xff] }
 0x115   : > { %2320 = vmatprep.subr.bf16.mxu0 %v3629_v62  ;;  %2535 = vmatprep.subr.bf16.mxu1 %v3632_v63 }
 0x118   : > { %2321 = vmatpush1.bf16.msra.mxu0 %v3627_v0  ;;  %2536 = vmatpush1.bf16.msra.mxu1 %v3630_v1  ;;  %v382_v1 = vld [vmem:[#allocation2 + $0x28] sm:$0xff] }
 0x119   : > { %2322 = vmatprep.subr.bf16.mxu0 %v3635_v2  ;;  %2537 = vmatprep.subr.bf16.mxu1 %v3638_v3  ;;  %v384_v2 = vld [vmem:[#allocation2 + $0x38] sm:$0xff] }
 0x11c   : > { %2323 = vmatpush1.bf16.msra.mxu0 %v3633_v4  ;;  %2538 = vmatpush1.bf16.msra.mxu1 %v3636_v5 }
 0x11d   : > { %2324 = vmatprep.subr.bf16.mxu0 %v3641_v6  ;;  %2539 = vmatprep.subr.bf16.mxu1 %v3644_v7 }
 0x120   : > { %2325 = vmatpush1.bf16.msra.mxu0 %v3639_v8  ;;  %2540 = vmatpush1.bf16.msra.mxu1 %v3642_v9 }
 0x121   : > { %2326 = vmatprep.subr.bf16.mxu0 %v3647_v10  ;;  %2541 = vmatprep.subr.bf16.mxu1 %v3650_v11 }
 0x124   : > { %2327 = vmatpush1.bf16.msra.mxu0 %v3645_v12  ;;  %2542 = vmatpush1.bf16.msra.mxu1 %v3648_v13  ;;  %v2629_v13 = vlaneseq (!%p3173_p11) }
 0x125   : > { %2328 = vmatprep.subr.bf16.mxu0 %v3653_v14  ;;  %2543 = vmatprep.subr.bf16.mxu1 %v3656_v15  ;;  %v2627_v15 = vld [vmem:[%s4164_s2] sm:$0xf] (!%p3173_p11) }
 0x126   : > { %v2630_v14 = vshrl.u32 (!%p3173_p11), %v2629_v13, 7 }
 0x128   : > { %2329 = vmatpush1.bf16.msra.mxu0 %v3651_v16  ;;  %2544 = vmatpush1.bf16.msra.mxu1 %v3654_v17  ;;  %v2657_v16 = vld [vmem:[%s4165_s3] sm:$0xf] (!%p3173_p11) }
 0x129   : > { %2341 = vmatprep.subr.bf16.mxu0 %v3662_v18  ;;  %2556 = vmatprep.subr.bf16.mxu1 %v3665_v19  ;;  %v2631_v19 = vsub.s32 (!%p3173_p11), 0, %v2630_v14 }
 0x12b   : > { %2331 = vmatmul.mubr.bf16.vlgmr.msra.gmra.mrb[0].mxu0 %v3657_v20  ;;  %2546 = vmatmul.mubr.bf16.vlgmr.msra.gmra.mrb[0].mxu1 %v3657_v20  ;;  %v2635_v20 = vsub.s32 (!%p3173_p11), 1, %v2630_v14 }
 0x12c   : > { %2342 = vmatpush1.bf16.msra.mxu0 %v3660_v21  ;;  %2557 = vmatpush1.bf16.msra.mxu1 %v3663_v22  ;;  %v2639_v21 = vsub.s32 (!%p3173_p11), 2, %v2630_v14  ;;  %v2643_v22 = vsub.s32 (!%p3173_p11), 3, %v2630_v14 }
 0x12d   : > { %2343 = vmatprep.subr.bf16.mxu0 %v3668_v23  ;;  %2558 = vmatprep.subr.bf16.mxu1 %v3671_v24 }
 0x12e   : > { %2373 = vmatprep.mubr.bf16.mxu0 %v3750_v29  ;;  %2588 = vmatprep.mubr.bf16.mxu1 %v3750_v29  ;;  %v2666_v29 = vrot.slane (!%p3173_p11), %v2657_v16, %v2635_v20 }
 0x130   : > { %2344 = vmatpush1.bf16.msra.mxu0 %v3666_v25  ;;  %2559 = vmatpush1.bf16.msra.mxu1 %v3669_v26  ;;  %v2632_v26 = vrot.slane (!%p3173_p11), %v2627_v15, %v2631_v19 }
 0x131   : > { %2345 = vmatprep.subr.bf16.mxu0 %v3674_v27  ;;  %2560 = vmatprep.subr.bf16.mxu1 %v3677_v28  ;;  %v2636_v27 = vrot.slane (!%p3173_p11), %v2627_v15, %v2635_v20  ;;  %v2662_v28 = vrot.slane (!%p3173_p11), %v2657_v16, %v2631_v19 }
 0x134   : > { %2346 = vmatpush1.bf16.msra.mxu0 %v3672_v30  ;;  %2561 = vmatpush1.bf16.msra.mxu1 %v3675_v31 }
 0x135   : > { %2347 = vmatprep.subr.bf16.mxu0 %v3680_v32  ;;  %2562 = vmatprep.subr.bf16.mxu1 %v3683_v33  ;;  %v2640_v33 = vrot.slane (!%p3173_p11), %v2627_v15, %v2639_v21 }
 0x138   : > { %2348 = vmatpush1.bf16.msra.mxu0 %v3678_v34  ;;  %2563 = vmatpush1.bf16.msra.mxu1 %v3681_v35  ;;  %v2644_v34 = vrot.slane (!%p3173_p11), %v2627_v15, %v2643_v22  ;;  %v2670_v35 = vrot.slane (!%p3173_p11), %v2657_v16, %v2639_v21 }
 0x139   : > { %2349 = vmatprep.subr.bf16.mxu0 %v3686_v36  ;;  %2564 = vmatprep.subr.bf16.mxu1 %v3689_v37  ;;  %v2674_v36 = vrot.slane (!%p3173_p11), %v2657_v16, %v2643_v22 }
 0x13c   : > { %2350 = vmatpush1.bf16.msra.mxu0 %v3684_v38  ;;  %2565 = vmatpush1.bf16.msra.mxu1 %v3687_v39 }
 0x13d   : > { %2351 = vmatprep.subr.bf16.mxu0 %v3692_v40  ;;  %2566 = vmatprep.subr.bf16.mxu1 %v3695_v41 }
 0x140   : > { %2352 = vmatpush1.bf16.msra.mxu0 %v3690_v42  ;;  %2567 = vmatpush1.bf16.msra.mxu1 %v3693_v43 }
 0x141   : > { %2353 = vmatprep.subr.bf16.mxu0 %v3698_v44  ;;  %2568 = vmatprep.subr.bf16.mxu1 %v3701_v45 }
 0x144   : > { %2354 = vmatpush1.bf16.msra.mxu0 %v3696_v46  ;;  %2569 = vmatpush1.bf16.msra.mxu1 %v3699_v47 }
 0x145   : > { %2355 = vmatprep.subr.bf16.mxu0 %v3704_v48  ;;  %2570 = vmatprep.subr.bf16.mxu1 %v3707_v49 }
 0x148   : > { %2356 = vmatpush1.bf16.msra.mxu0 %v3702_v50  ;;  %2571 = vmatpush1.bf16.msra.mxu1 %v3705_v51 }
 0x14b   : > { %2374 = vmatmul.mubr.bf16.vlgmr.msra.gmra.mrb[0].mxu0 %v3708_v52  ;;  %2589 = vmatmul.mubr.bf16.vlgmr.msra.gmra.mrb[0].mxu1 %v3708_v52 }
 0x21e   : > { %v2375_v57 = vpop.f32.mrb[0].mxu0  ;;  %v2590_v58 = vpop.f32.mrb[0].mxu1  ;;  %2618 = sbr.rel (%p3173_p11) target bundleno = 565 (0x235), region = 70 }
 0x21f   : > { %v2599_v61 = vadd.f32 %v2375_v57, %v377_v53  ;;  %v2601_v62 = vadd.f32 %v2590_v58, %v379_v54  ;;  %v2377_v63 = vpop.f32.mrb[1].mxu0  ;;  %v2592_v0 = vpop.f32.mrb[1].mxu1 }
 0x220   : > { %v2600_v3 = vadd.f32 %v2377_v63, %v378_v55  ;;  %v2602_v4 = vadd.f32 %v2592_v0, %v380_v56  ;;  %v2379_v5 = vpop.f32.mrb[2].mxu0  ;;  %v2594_v6 = vpop.f32.mrb[2].mxu1 }
 0x221   : > { %2607 = vst [vmem:[#allocation2] sm:$0xff] %v2599_v61  ;;  %2609 = vst [vmem:[#allocation2 + $0x10] sm:$0xff] %v2601_v62  ;;  %v2603_v7 = vadd.f32 %v2379_v5, %v381_v59  ;;  %v2605_v8 = vadd.f32 %v2594_v6, %v383_v60  ;;  %v2381_v9 = vpop.f32.mrb[3].mxu0  ;;  %v2596_v10 = vpop.f32.mrb[3].mxu1 }
 0x222   : > { %2608 = vst [vmem:[#allocation2 + $0x8] sm:$0xff] %v2600_v3  ;;  %2610 = vst [vmem:[#allocation2 + $0x18] sm:$0xff] %v2602_v4  ;;  %v2604_v11 = vadd.f32 %v2381_v9, %v382_v1  ;;  %v2606_v12 = vadd.f32 %v2596_v10, %v384_v2 }
 0x223   : > { %2611 = vst [vmem:[#allocation2 + $0x20] sm:$0xff] %v2603_v7  ;;  %2613 = vst [vmem:[#allocation2 + $0x30] sm:$0xff] %v2605_v8 }
 0x224   : > { %2612 = vst [vmem:[#allocation2 + $0x28] sm:$0xff] %v2604_v11  ;;  %2614 = vst [vmem:[#allocation2 + $0x38] sm:$0xff] %v2606_v12 }
 0x228   : > { %v2619_v17 = vld [vmem:[#allocation2] sm:$0xff]  ;;  %v2621_v23 = vld [vmem:[#allocation2 + $0x10] sm:$0xff] }
 0x229   : > { %v2620_v18 = vld [vmem:[#allocation2 + $0x8] sm:$0xff]  ;;  %v2622_v30 = vld [vmem:[#allocation2 + $0x18] sm:$0xff]  ;;  %v2649_v37 = vmul.f32 %v2632_v26, %v2619_v17  ;;  %v2651_v41 = vmul.f32 %v2640_v33, %v2621_v23 }
 0x22a   : > { %v2623_v24 = vld [vmem:[#allocation2 + $0x20] sm:$0xff]  ;;  %v2625_v31 = vld [vmem:[#allocation2 + $0x30] sm:$0xff]  ;;  %v2650_v38 = vmul.f32 %v2636_v27, %v2620_v18  ;;  %v2652_v42 = vmul.f32 %v2644_v34, %v2622_v30 }
 0x22b   : > { %v2624_v25 = vld [vmem:[#allocation2 + $0x28] sm:$0xff]  ;;  %v2626_v32 = vld [vmem:[#allocation2 + $0x38] sm:$0xff]  ;;  %v2653_v39 = vmul.f32 %v2632_v26, %v2623_v24  ;;  %v2655_v43 = vmul.f32 %v2640_v33, %v2625_v31  ;;  %v2679_v45 = vadd.f32 %v2662_v28, %v2649_v37  ;;  %v2681_v49 = vadd.f32 %v2670_v35, %v2651_v41 }
 0x22c   : > { %v2654_v40 = vmul.f32 %v2636_v27, %v2624_v25  ;;  %v2656_v44 = vmul.f32 %v2644_v34, %v2626_v32  ;;  %v2680_v46 = vadd.f32 %v2666_v29, %v2650_v38  ;;  %v2682_v50 = vadd.f32 %v2674_v36, %v2652_v42 }
 0x22d   : > { %v2683_v47 = vadd.f32 %v2662_v28, %v2653_v39  ;;  %v2685_v51 = vadd.f32 %v2670_v35, %v2655_v43  ;;  %v2687_v53 = vmax.f32 %v2679_v45, 0.0  ;;  %v2689_v57 = vmax.f32 %v2681_v49, 0.0 }
 0x22e   : > { %v2684_v48 = vadd.f32 %v2666_v29, %v2654_v40  ;;  %v2686_v52 = vadd.f32 %v2674_v36, %v2656_v44  ;;  %v2688_v54 = vmax.f32 %v2680_v46, 0.0  ;;  %v2690_v58 = vmax.f32 %v2682_v50, 0.0 }
 0x22f   : > { %v2691_v55 = vmax.f32 %v2683_v47, 0.0  ;;  %v2693_v59 = vmax.f32 %v2685_v51, 0.0 }
 0x230   : > { %v2692_v56 = vmax.f32 %v2684_v48, 0.0  ;;  %v2694_v60 = vmax.f32 %v2686_v52, 0.0  ;;  %v3184_v61 = vpack.c.bf16 %v2688_v54, %v2687_v53  ;;  %v3185_v63 = vpack.c.bf16 %v2690_v58, %v2689_v57 }
 0x232   : > { %v3186_v62 = vpack.c.bf16 %v2692_v56, %v2691_v55  ;;  %v3187_v0 = vpack.c.bf16 %v2694_v60, %v2693_v59  ;;  %2719 = vst [vmem:[%s4166_s4] sm:$0xff] %v3184_v61  ;;  %2720 = vst [vmem:[%s4166_s4 + $0x8] sm:$0xff] %v3185_v63 }
 0x234   : > { %2721 = vst [vmem:[%s4166_s4 + $0x10] sm:$0xff] %v3186_v62  ;;  %2722 = vst [vmem:[%s4166_s4 + $0x18] sm:$0xff] %v3187_v0 }
 0x235 PF: > { %s14_s19 = sadd.s32 1, %s3747_s19   ;;  %s4167_s15 = smov %s3735_s16 }
 0x236   : > { %p11_p12 = scmp.ge.s32.totalorder %s14_s19, 4   ;;  %s4168_s16 = smov %s3811_s23 }
 0x237   : > { %s4169_s17 = smov %s3743_s18  ;;  %s4170_s18 = smov %s4172_s20 }
 0x238   :  { %13 = sbr.rel (!%p11_p12) target bundleno = 3 (0x3), region = 120 }

// kernel: resnet_forward.26
= control target key start
LH: loop header
LB: loop body
LE: loop exit
PB: predicated region body
PF: predicated region fallthrough
CT: control target
= control target key end

     0   :  { %s4809_s18 = smov 0   ;;  %s4811_s19 = smov 0   ;;  %s5306_s0 = inlined_call_operand.vmem [shape: bf16[16,4608], index: 0, kind: input, shape index: {}]   ;;  %s5307_s1 = inlined_call_operand.vmem [shape: bf16[4608,512], index: 1, kind: input, shape index: {}]   ;;  %s5308_s2 = inlined_call_operand.vmem [shape: f32[1,512], index: 2, kind: input, shape index: {}]   ;;  %s5309_s3 = inlined_call_operand.vmem [shape: f32[1,512], index: 3, kind: input, shape index: {}]   ;;  %s5310_s4 = inlined_call_operand.vmem [shape: bf16[16,512], index: 4, kind: input, shape index: {}]   ;;  %s5311_s5 = inlined_call_operand.vmem [shape: bf16[16,512], index: 5, kind: output, shape index: {}]  }
   0x1   :  { %s4813_s20 = smov 0   ;;  %s4815_s21 = smov 0  }
   0x2   :  { %s4817_s22 = smov 0  }
   0x3 LB: > { %s27_s23 = sadd.s32 1, %s4772_s21  ;;  %p50_p1 = scmp.ne.s32.totalorder %s4764_s19, %s4760_s18  ;;  %s4776_s22 = sphi %s4817_s22, %s15_s22   ;;  %s4772_s21 = sphi %s4815_s21, %s5315_s21   ;;  %s4768_s20 = sphi %s4813_s20, %s5314_s20   ;;  %s4764_s19 = sphi %s4811_s19, %s5313_s19   ;;  %s4760_s18 = sphi %s4809_s18, %s5312_s18  }
   0x4   : > { %p28_p0 = scmp.ge.s32.totalorder %s27_s23, 3  ;;  %p51_p2 = scmp.eq.s32.totalorder %s4776_s22, 0 }
   0x5   : > { %s43_s25 = sadd.s32 1, %s4764_s19  ;;  %p3644_p5 = scmp.ge.s32.totalorder %s4776_s22, 3 }
   0x6   : > { %s5317_s23 = smov (%p28_p0, %s27_s23), 0  ;;  %p52_p3 = por %p51_p2, %p50_p1 }
   0x7   : > { %s39_s24 = ssub.s32 %s4772_s21, %s5317_s23  ;;  %243 = sbr.rel (%p3644_p5) target bundleno = 25 (0x19), region = 28 }
   0x8   : > { %p41_p4 = scmp.eq.s32.totalorder %s39_s24, 0 }
   0xa   : > { %s4844_s26 = scalar_select %p41_p4, %s4764_s19, %s43_s25  }
   0xe   : > { %246 = sbr.rel (!%p52_p3) target bundleno = 25 (0x19), region = 32  ;;  %s248_s27 = sand.u32 (%p52_p3), 1, %s4764_s19  }
   0xf   : > { %s4055_s28 = smul.u32 (%p52_p3), 48, %s4772_s21 }
  0x10   : > { %s4101_s29 = smul.u32 (%p52_p3), 96, %s248_s27 }
  0x11   : > { %s256_s7 = scalar_lea.vmem (%p52_p3), %s5306_s0, %s4055_s28 }
  0x12   : > { %v269_v0 = vld [vmem:[%s256_s7] sm:$0xff] (%p52_p3)  ;;  %v271_v1 = vld [vmem:[%s256_s7 + $0x8] sm:$0xff] (%p52_p3)  ;;  %v273_v2 = vld [vmem:[%s256_s7 + $0x10] sm:$0xff] (%p52_p3)  ;;  %s250_s8 = scalar_lea.vmem (%p52_p3), [#allocation3], %s4101_s29 }
  0x13   : > { %270 = vst [vmem:[%s250_s8] sm:$0xff] (%p52_p3), %v269_v0  ;;  %272 = vst [vmem:[%s250_s8 + $0x8] sm:$0xff] (%p52_p3), %v271_v1  ;;  %v275_v3 = vld [vmem:[%s256_s7 + $0x18] sm:$0xff] (%p52_p3)  ;;  %v277_v4 = vld [vmem:[%s256_s7 + $0x20] sm:$0xff] (%p52_p3) }
  0x14   : > { %274 = vst [vmem:[%s250_s8 + $0x10] sm:$0xff] (%p52_p3), %v273_v2  ;;  %v279_v5 = vld [vmem:[%s256_s7 + $0x28] sm:$0xff] (%p52_p3)  ;;  %276 = vst [vmem:[%s250_s8 + $0x18] sm:$0xff] (%p52_p3), %v275_v3  ;;  %v281_v6 = vld [vmem:[%s256_s7 + $0x90] sm:$0xff] (%p52_p3) }
  0x15   : > { %278 = vst [vmem:[%s250_s8 + $0x20] sm:$0xff] %v277_v4  ;;  %280 = vst [vmem:[%s250_s8 + $0x28] sm:$0xff] %v279_v5  ;;  %v283_v7 = vld [vmem:[%s256_s7 + $0x98] sm:$0xff]  ;;  %v285_v8 = vld [vmem:[%s256_s7 + $0xa0] sm:$0xff] }
  0x16   : > { %282 = vst [vmem:[%s250_s8 + $0x30] sm:$0xff] %v281_v6  ;;  %284 = vst [vmem:[%s250_s8 + $0x38] sm:$0xff] %v283_v7  ;;  %v287_v9 = vld [vmem:[%s256_s7 + $0xa8] sm:$0xff]  ;;  %v289_v10 = vld [vmem:[%s256_s7 + $0xb0] sm:$0xff] }
  0x17   : > { %286 = vst [vmem:[%s250_s8 + $0x40] sm:$0xff] %v285_v8  ;;  %v291_v11 = vld [vmem:[%s256_s7 + $0xb8] sm:$0xff]  ;;  %288 = vst [vmem:[%s250_s8 + $0x48] sm:$0xff] %v287_v9 }
  0x18   : > { %290 = vst [vmem:[%s250_s8 + $0x50] sm:$0xff] %v289_v10  ;;  %292 = vst [vmem:[%s250_s8 + $0x58] sm:$0xff] %v291_v11 }
  0x19 PF: > { %p3646_p6 = scmp.ge.s32.totalorder %s4776_s22, 1  ;;  %p312_p7 = scmp.lt.s32.totalorder %s4776_s22, 4 }
  0x1b   : > { %p313_p8 = pnand %p3646_p6, %p312_p7 }
  0x1c   : > { %s319_s9 = sand.u32 (!%p313_p8), 1, %s4760_s18   ;;  %s381_s10 = smul.u32 (!%p313_p8), 192, %s4768_s20 }
  0x1d   : > { %316 = sbr.rel (%p313_p8) target bundleno = 664 (0x298), region = 59  ;;  %p3649_p10 = scmp.ne.s32.totalorder (!%p313_p8), %s4768_s20, 0 }
  0x1e   : > { %s4102_s11 = smul.u32 (!%p313_p8), 96, %s319_s9  ;;  %p383_p9 = scmp.lt.s32.totalorder (!%p313_p8), %s381_s10, 575 }
  0x20   : > { %s4861_s16 = scalar_lea.vmem (!%p313_p8), [#allocation3], %s4102_s11 }
  0x24   : > { %s5319_s10 = smov (!%p383_p9, %s381_s10), 575  ;;  %430 = sbr.rel (%p3649_p10) target bundleno = 43 (0x2b), region = 67 }
  0x25   : > { %s4056_s12 = sshll.u32 %s5319_s10, 4  ;;  %v4778_v12 = vmov (!%p3649_p10), 0.0  }
  0x26   : > { %s4859_s15 = scalar_lea.vmem %s5307_s1, %s4056_s12  ;;  %431 = vst [vmem:[#allocation2] sm:$0xff] (!%p3649_p10), %v4778_v12  ;;  %432 = vst [vmem:[#allocation2 + $0x8] sm:$0xff] (!%p3649_p10), %v4778_v12 }
  0x27   : > { %433 = vst [vmem:[#allocation2 + $0x10] sm:$0xff] (!%p3649_p10), %v4778_v12  ;;  %434 = vst [vmem:[#allocation2 + $0x18] sm:$0xff] (!%p3649_p10), %v4778_v12 }
  0x28   : > { %435 = vst [vmem:[#allocation2 + $0x20] sm:$0xff] (!%p3649_p10), %v4778_v12  ;;  %436 = vst [vmem:[#allocation2 + $0x28] sm:$0xff] (!%p3649_p10), %v4778_v12 }
  0x29   : > { %437 = vst [vmem:[#allocation2 + $0x30] sm:$0xff] (!%p3649_p10), %v4778_v12  ;;  %438 = vst [vmem:[#allocation2 + $0x38] sm:$0xff] (!%p3649_p10), %v4778_v12 }
  0x2b PF: > { %v4144_v13 = vld [vmem:[%s4859_s15 + $0x4] ss:$16 sps:$4 sm:$0xff]   ;;  %v4146_v14 = vld [vmem:[%s4859_s15 + $0xc] ss:$16 sps:$4 sm:$0xff]   ;;  %v4148_v15 = vld [vmem:[%s4859_s15] ss:$16 sps:$4 sm:$0xff]  }
  0x2c   : > { %2823 = vmatprep.subr.bf16.mxu0 %v4144_v13  ;;  %v4149_v16 = vld [vmem:[%s4859_s15 + $0x8] ss:$16 sps:$4 sm:$0xff]   ;;  %3081 = vmatprep.subr.bf16.mxu1 %v4146_v14  ;;  %v4150_v17 = vld [vmem:[%s4859_s15 + $0x24] ss:$16 sps:$4 sm:$0xff]   ;;  %v4152_v18 = vld [vmem:[%s4859_s15 + $0x2c] ss:$16 sps:$4 sm:$0xff]  }
  0x2d   : > { %2824 = vmatpush1.bf16.msra.mxu0 %v4148_v15  ;;  %3082 = vmatpush1.bf16.msra.mxu1 %v4149_v16  ;;  %v4154_v19 = vld [vmem:[%s4859_s15 + $0x20] ss:$16 sps:$4 sm:$0xff]   ;;  %v4155_v20 = vld [vmem:[%s4859_s15 + $0x28] ss:$16 sps:$4 sm:$0xff]   ;;  %v4156_v21 = vld [vmem:[%s4859_s15 + $0x44] ss:$16 sps:$4 sm:$0xff]  }
  0x2e   : > { %2825 = vmatprep.subr.bf16.mxu0 %v4150_v17  ;;  %3083 = vmatprep.subr.bf16.mxu1 %v4152_v18  ;;  %v4158_v22 = vld [vmem:[%s4859_s15 + $0x4c] ss:$16 sps:$4 sm:$0xff]   ;;  %v4160_v23 = vld [vmem:[%s4859_s15 + $0x40] ss:$16 sps:$4 sm:$0xff]   ;;  %v4161_v24 = vld [vmem:[%s4859_s15 + $0x48] ss:$16 sps:$4 sm:$0xff]  }
  0x2f   : > { %v4162_v25 = vld [vmem:[%s4859_s15 + $0x64] ss:$16 sps:$4 sm:$0xff]   ;;  %v4164_v26 = vld [vmem:[%s4859_s15 + $0x6c] ss:$16 sps:$4 sm:$0xff]   ;;  %v4166_v27 = vld [vmem:[%s4859_s15 + $0x60] ss:$16 sps:$4 sm:$0xff]  }
  0x30   : > { %v4167_v28 = vld [vmem:[%s4859_s15 + $0x68] ss:$16 sps:$4 sm:$0xff]   ;;  %v4168_v29 = vld [vmem:[%s4859_s15 + $0x84] ss:$16 sps:$4 sm:$0xff]   ;;  %v4170_v30 = vld [vmem:[%s4859_s15 + $0x8c] ss:$16 sps:$4 sm:$0xff]  }
  0x31   : > { %2826 = vmatpush1.bf16.msra.mxu0 %v4154_v19  ;;  %3084 = vmatpush1.bf16.msra.mxu1 %v4155_v20  ;;  %v4172_v31 = vld [vmem:[%s4859_s15 + $0x80] ss:$16 sps:$4 sm:$0xff]   ;;  %v4173_v32 = vld [vmem:[%s4859_s15 + $0x88] ss:$16 sps:$4 sm:$0xff]   ;;  %v4174_v33 = vld [vmem:[%s4859_s15 + $0xa4] ss:$16 sps:$4 sm:$0xff]  }
  0x32   : > { %2827 = vmatprep.subr.bf16.mxu0 %v4156_v21  ;;  %3085 = vmatprep.subr.bf16.mxu1 %v4158_v22  ;;  %v4176_v34 = vld [vmem:[%s4859_s15 + $0xac] ss:$16 sps:$4 sm:$0xff]   ;;  %v4178_v35 = vld [vmem:[%s4859_s15 + $0xa0] ss:$16 sps:$4 sm:$0xff]   ;;  %v4179_v36 = vld [vmem:[%s4859_s15 + $0xa8] ss:$16 sps:$4 sm:$0xff]  }
  0x33   : > { %v4180_v37 = vld [vmem:[%s4859_s15 + $0xc4] ss:$16 sps:$4 sm:$0xff]   ;;  %v4182_v38 = vld [vmem:[%s4859_s15 + $0xcc] ss:$16 sps:$4 sm:$0xff]   ;;  %v4184_v39 = vld [vmem:[%s4859_s15 + $0xc0] ss:$16 sps:$4 sm:$0xff]  }
  0x34   : > { %v4185_v40 = vld [vmem:[%s4859_s15 + $0xc8] ss:$16 sps:$4 sm:$0xff]   ;;  %v4186_v41 = vld [vmem:[%s4859_s15 + $0xe4] ss:$16 sps:$4 sm:$0xff]   ;;  %v4188_v42 = vld [vmem:[%s4859_s15 + $0xec] ss:$16 sps:$4 sm:$0xff]  }
  0x35   : > { %2828 = vmatpush1.bf16.msra.mxu0 %v4160_v23  ;;  %3086 = vmatpush1.bf16.msra.mxu1 %v4161_v24  ;;  %v4190_v43 = vld [vmem:[%s4859_s15 + $0xe0] ss:$16 sps:$4 sm:$0xff]   ;;  %v4191_v44 = vld [vmem:[%s4859_s15 + $0xe8] ss:$16 sps:$4 sm:$0xff]   ;;  %v4192_v45 = vld [vmem:[%s4859_s15 + $0x104] ss:$16 sps:$4 sm:$0xff]  }
  0x36   : > { %2829 = vmatprep.subr.bf16.mxu0 %v4162_v25  ;;  %3087 = vmatprep.subr.bf16.mxu1 %v4164_v26  ;;  %v4194_v46 = vld [vmem:[%s4859_s15 + $0x10c] ss:$16 sps:$4 sm:$0xff]   ;;  %v4196_v47 = vld [vmem:[%s4859_s15 + $0x100] ss:$16 sps:$4 sm:$0xff]   ;;  %v4197_v48 = vld [vmem:[%s4859_s15 + $0x108] ss:$16 sps:$4 sm:$0xff]  }
  0x37   : > { %v4198_v49 = vld [vmem:[%s4859_s15 + $0x124] ss:$16 sps:$4 sm:$0xff]   ;;  %v4200_v50 = vld [vmem:[%s4859_s15 + $0x12c] ss:$16 sps:$4 sm:$0xff]   ;;  %v4202_v51 = vld [vmem:[%s4859_s15 + $0x120] ss:$16 sps:$4 sm:$0xff]  }
  0x38   : > { %v4203_v52 = vld [vmem:[%s4859_s15 + $0x128] ss:$16 sps:$4 sm:$0xff]   ;;  %v4204_v53 = vld [vmem:[%s4859_s15 + $0x144] ss:$16 sps:$4 sm:$0xff]   ;;  %v4206_v54 = vld [vmem:[%s4859_s15 + $0x14c] ss:$16 sps:$4 sm:$0xff]  }
  0x39   : > { %2830 = vmatpush1.bf16.msra.mxu0 %v4166_v27  ;;  %3088 = vmatpush1.bf16.msra.mxu1 %v4167_v28  ;;  %v4208_v55 = vld [vmem:[%s4859_s15 + $0x140] ss:$16 sps:$4 sm:$0xff]   ;;  %v4209_v56 = vld [vmem:[%s4859_s15 + $0x148] ss:$16 sps:$4 sm:$0xff]   ;;  %v4210_v57 = vld [vmem:[%s4859_s15 + $0x164] ss:$16 sps:$4 sm:$0xff]  }
  0x3a   : > { %2831 = vmatprep.subr.bf16.mxu0 %v4168_v29  ;;  %3089 = vmatprep.subr.bf16.mxu1 %v4170_v30  ;;  %v4212_v58 = vld [vmem:[%s4859_s15 + $0x16c] ss:$16 sps:$4 sm:$0xff]   ;;  %v4214_v59 = vld [vmem:[%s4859_s15 + $0x160] ss:$16 sps:$4 sm:$0xff]   ;;  %v4215_v60 = vld [vmem:[%s4859_s15 + $0x168] ss:$16 sps:$4 sm:$0xff]  }
  0x3b   : > { %v4242_v61 = vld [vmem:[%s4861_s16 + $0x4] ss:$48 sps:$4 sm:$0xff]   ;;  %v4218_v63 = vld [vmem:[%s4859_s15 + $0x18c] ss:$16 sps:$4 sm:$0xff]   ;;  %v4220_v0 = vld [vmem:[%s4859_s15 + $0x180] ss:$16 sps:$4 sm:$0xff]  }
  0x3c   : > { %v4216_v62 = vld [vmem:[%s4859_s15 + $0x184] ss:$16 sps:$4 sm:$0xff]   ;;  %2855 = vmatprep.mubr.bf16.mxu0 %v4242_v61  ;;  %3113 = vmatprep.mubr.bf16.mxu1 %v4242_v61  ;;  %v4221_v1 = vld [vmem:[%s4859_s15 + $0x188] ss:$16 sps:$4 sm:$0xff]   ;;  %v4224_v3 = vld [vmem:[%s4859_s15 + $0x1ac] ss:$16 sps:$4 sm:$0xff]  }
  0x3d   : > { %2832 = vmatpush1.bf16.msra.mxu0 %v4172_v31  ;;  %3090 = vmatpush1.bf16.msra.mxu1 %v4173_v32  ;;  %v4222_v2 = vld [vmem:[%s4859_s15 + $0x1a4] ss:$16 sps:$4 sm:$0xff]   ;;  %v4226_v4 = vld [vmem:[%s4859_s15 + $0x1a0] ss:$16 sps:$4 sm:$0xff]   ;;  %v4227_v5 = vld [vmem:[%s4859_s15 + $0x1a8] ss:$16 sps:$4 sm:$0xff]  }
  0x3e   : > { %2833 = vmatprep.subr.bf16.mxu0 %v4174_v33  ;;  %3091 = vmatprep.subr.bf16.mxu1 %v4176_v34  ;;  %v4228_v6 = vld [vmem:[%s4859_s15 + $0x1c4] ss:$16 sps:$4 sm:$0xff]   ;;  %v4230_v7 = vld [vmem:[%s4859_s15 + $0x1cc] ss:$16 sps:$4 sm:$0xff]   ;;  %v4232_v8 = vld [vmem:[%s4859_s15 + $0x1c0] ss:$16 sps:$4 sm:$0xff]  }
  0x3f   : > { %v4233_v9 = vld [vmem:[%s4859_s15 + $0x1c8] ss:$16 sps:$4 sm:$0xff]   ;;  %v4234_v10 = vld [vmem:[%s4859_s15 + $0x1e4] ss:$16 sps:$4 sm:$0xff]   ;;  %v4236_v11 = vld [vmem:[%s4859_s15 + $0x1ec] ss:$16 sps:$4 sm:$0xff]  }
  0x40   : > { %v4238_v12 = vld [vmem:[%s4859_s15 + $0x1e0] ss:$16 sps:$4 sm:$0xff]   ;;  %v4239_v13 = vld [vmem:[%s4859_s15 + $0x1e8] ss:$16 sps:$4 sm:$0xff]   ;;  %v4245_v14 = vld [vmem:[%s4859_s15 + $0x204] ss:$16 sps:$4 sm:$0xff]  }
  0x41   : > { %2834 = vmatpush1.bf16.msra.mxu0 %v4178_v35  ;;  %3092 = vmatpush1.bf16.msra.mxu1 %v4179_v36  ;;  %v4248_v15 = vld [vmem:[%s4859_s15 + $0x20c] ss:$16 sps:$4 sm:$0xff]   ;;  %v4240_v16 = vld [vmem:[%s4861_s16] ss:$48 sps:$4 sm:$0xff]   ;;  %v4246_v18 = vld [vmem:[%s4859_s15 + $0x208] ss:$16 sps:$4 sm:$0xff]  }
  0x42   : > { %2835 = vmatprep.subr.bf16.mxu0 %v4180_v37  ;;  %3093 = vmatprep.subr.bf16.mxu1 %v4182_v38  ;;  %v4243_v17 = vld [vmem:[%s4859_s15 + $0x200] ss:$16 sps:$4 sm:$0xff]   ;;  %v4251_v19 = vld [vmem:[%s4859_s15 + $0x224] ss:$16 sps:$4 sm:$0xff]   ;;  %v4254_v20 = vld [vmem:[%s4859_s15 + $0x22c] ss:$16 sps:$4 sm:$0xff]  }
  0x43   : > { %v4249_v21 = vld [vmem:[%s4859_s15 + $0x220] ss:$16 sps:$4 sm:$0xff]   ;;  %v4252_v22 = vld [vmem:[%s4859_s15 + $0x228] ss:$16 sps:$4 sm:$0xff]   ;;  %v4257_v23 = vld [vmem:[%s4859_s15 + $0x244] ss:$16 sps:$4 sm:$0xff]  }
  0x44   : > { %v4260_v24 = vld [vmem:[%s4859_s15 + $0x24c] ss:$16 sps:$4 sm:$0xff]   ;;  %v4255_v25 = vld [vmem:[%s4859_s15 + $0x240] ss:$16 sps:$4 sm:$0xff]   ;;  %v4258_v26 = vld [vmem:[%s4859_s15 + $0x248] ss:$16 sps:$4 sm:$0xff]  }
  0x45   : > { %2836 = vmatpush1.bf16.msra.mxu0 %v4184_v39  ;;  %3094 = vmatpush1.bf16.msra.mxu1 %v4185_v40  ;;  %v4263_v27 = vld [vmem:[%s4859_s15 + $0x264] ss:$16 sps:$4 sm:$0xff]   ;;  %v4266_v28 = vld [vmem:[%s4859_s15 + $0x26c] ss:$16 sps:$4 sm:$0xff]   ;;  %v4261_v29 = vld [vmem:[%s4859_s15 + $0x260] ss:$16 sps:$4 sm:$0xff]  }
  0x46   : > { %2837 = vmatprep.subr.bf16.mxu0 %v4186_v41  ;;  %3095 = vmatprep.subr.bf16.mxu1 %v4188_v42  ;;  %v4264_v30 = vld [vmem:[%s4859_s15 + $0x268] ss:$16 sps:$4 sm:$0xff]   ;;  %v4269_v31 = vld [vmem:[%s4859_s15 + $0x284] ss:$16 sps:$4 sm:$0xff]   ;;  %v4272_v32 = vld [vmem:[%s4859_s15 + $0x28c] ss:$16 sps:$4 sm:$0xff]  }
  0x47   : > { %v4267_v33 = vld [vmem:[%s4859_s15 + $0x280] ss:$16 sps:$4 sm:$0xff]   ;;  %v4270_v34 = vld [vmem:[%s4859_s15 + $0x288] ss:$16 sps:$4 sm:$0xff]   ;;  %v4275_v35 = vld [vmem:[%s4859_s15 + $0x2a4] ss:$16 sps:$4 sm:$0xff]  }
  0x48   : > { %v4278_v36 = vld [vmem:[%s4859_s15 + $0x2ac] ss:$16 sps:$4 sm:$0xff]   ;;  %v4273_v37 = vld [vmem:[%s4859_s15 + $0x2a0] ss:$16 sps:$4 sm:$0xff]   ;;  %v4276_v38 = vld [vmem:[%s4859_s15 + $0x2a8] ss:$16 sps:$4 sm:$0xff]  }
  0x49   : > { %2838 = vmatpush1.bf16.msra.mxu0 %v4190_v43  ;;  %3096 = vmatpush1.bf16.msra.mxu1 %v4191_v44  ;;  %v4281_v39 = vld [vmem:[%s4859_s15 + $0x2c4] ss:$16 sps:$4 sm:$0xff]   ;;  %v4284_v40 = vld [vmem:[%s4859_s15 + $0x2cc] ss:$16 sps:$4 sm:$0xff]   ;;  %v4279_v41 = vld [vmem:[%s4859_s15 + $0x2c0] ss:$16 sps:$4 sm:$0xff]  }
  0x4a   : > { %2839 = vmatprep.subr.bf16.mxu0 %v4192_v45  ;;  %3097 = vmatprep.subr.bf16.mxu1 %v4194_v46  ;;  %v4282_v42 = vld [vmem:[%s4859_s15 + $0x2c8] ss:$16 sps:$4 sm:$0xff]   ;;  %v4341_v43 = vld [vmem:[%s4861_s16 + $0xc] ss:$48 sps:$4 sm:$0xff]   ;;  %v4287_v44 = vld [vmem:[%s4859_s15 + $0x2e4] ss:$16 sps:$4 sm:$0xff]  }
  0x4b   : > { %v4290_v45 = vld [vmem:[%s4859_s15 + $0x2ec] ss:$16 sps:$4 sm:$0xff]   ;;  %v4285_v46 = vld [vmem:[%s4859_s15 + $0x2e0] ss:$16 sps:$4 sm:$0xff]   ;;  %p4046_p11 = scmp.ne.s32.totalorder %s4768_s20, 2 }
  0x4c   : > { %v4314_v61 = vld [vmem:[%s4859_s15 + $0x36c] ss:$16 sps:$4 sm:$0xff]  }
  0x4d   : > { %2840 = vmatpush1.bf16.msra.mxu0 %v4196_v47  ;;  %3098 = vmatpush1.bf16.msra.mxu1 %v4197_v48  ;;  %v4288_v47 = vld [vmem:[%s4859_s15 + $0x2e8] ss:$16 sps:$4 sm:$0xff]   ;;  %v4293_v48 = vld [vmem:[%s4859_s15 + $0x304] ss:$16 sps:$4 sm:$0xff]  }
  0x4e   : > { %2841 = vmatprep.subr.bf16.mxu0 %v4198_v49  ;;  %3099 = vmatprep.subr.bf16.mxu1 %v4200_v50  ;;  %v4296_v49 = vld [vmem:[%s4859_s15 + $0x30c] ss:$16 sps:$4 sm:$0xff]   ;;  %v4291_v50 = vld [vmem:[%s4859_s15 + $0x300] ss:$16 sps:$4 sm:$0xff]  }
  0x51   : > { %2842 = vmatpush1.bf16.msra.mxu0 %v4202_v51  ;;  %3100 = vmatpush1.bf16.msra.mxu1 %v4203_v52  ;;  %v4294_v51 = vld [vmem:[%s4859_s15 + $0x308] ss:$16 sps:$4 sm:$0xff]   ;;  %v4299_v52 = vld [vmem:[%s4859_s15 + $0x324] ss:$16 sps:$4 sm:$0xff]  }
  0x52   : > { %2843 = vmatprep.subr.bf16.mxu0 %v4204_v53  ;;  %3101 = vmatprep.subr.bf16.mxu1 %v4206_v54  ;;  %v4302_v53 = vld [vmem:[%s4859_s15 + $0x32c] ss:$16 sps:$4 sm:$0xff]   ;;  %v4297_v54 = vld [vmem:[%s4859_s15 + $0x320] ss:$16 sps:$4 sm:$0xff]  }
  0x55   : > { %2844 = vmatpush1.bf16.msra.mxu0 %v4208_v55  ;;  %3102 = vmatpush1.bf16.msra.mxu1 %v4209_v56  ;;  %v4300_v55 = vld [vmem:[%s4859_s15 + $0x328] ss:$16 sps:$4 sm:$0xff]   ;;  %v4305_v56 = vld [vmem:[%s4859_s15 + $0x344] ss:$16 sps:$4 sm:$0xff]  }
  0x56   : > { %2845 = vmatprep.subr.bf16.mxu0 %v4210_v57  ;;  %3103 = vmatprep.subr.bf16.mxu1 %v4212_v58  ;;  %v4308_v57 = vld [vmem:[%s4859_s15 + $0x34c] ss:$16 sps:$4 sm:$0xff]   ;;  %v4303_v58 = vld [vmem:[%s4859_s15 + $0x340] ss:$16 sps:$4 sm:$0xff]  }
  0x59   : > { %2846 = vmatpush1.bf16.msra.mxu0 %v4214_v59  ;;  %3104 = vmatpush1.bf16.msra.mxu1 %v4215_v60  ;;  %v4306_v59 = vld [vmem:[%s4859_s15 + $0x348] ss:$16 sps:$4 sm:$0xff]   ;;  %v4311_v60 = vld [vmem:[%s4859_s15 + $0x364] ss:$16 sps:$4 sm:$0xff]  }
  0x5a   : > { %2847 = vmatprep.subr.bf16.mxu0 %v4216_v62  ;;  %3105 = vmatprep.subr.bf16.mxu1 %v4218_v63  ;;  %v4309_v62 = vld [vmem:[%s4859_s15 + $0x360] ss:$16 sps:$4 sm:$0xff]   ;;  %v4312_v63 = vld [vmem:[%s4859_s15 + $0x368] ss:$16 sps:$4 sm:$0xff]  }
  0x5d   : > { %2848 = vmatpush1.bf16.msra.mxu0 %v4220_v0  ;;  %3106 = vmatpush1.bf16.msra.mxu1 %v4221_v1  ;;  %v4317_v0 = vld [vmem:[%s4859_s15 + $0x384] ss:$16 sps:$4 sm:$0xff]   ;;  %v4320_v1 = vld [vmem:[%s4859_s15 + $0x38c] ss:$16 sps:$4 sm:$0xff]  }
  0x5e   : > { %2849 = vmatprep.subr.bf16.mxu0 %v4222_v2  ;;  %3107 = vmatprep.subr.bf16.mxu1 %v4224_v3  ;;  %v4315_v2 = vld [vmem:[%s4859_s15 + $0x380] ss:$16 sps:$4 sm:$0xff]   ;;  %v4318_v3 = vld [vmem:[%s4859_s15 + $0x388] ss:$16 sps:$4 sm:$0xff]  }
  0x61   : > { %2850 = vmatpush1.bf16.msra.mxu0 %v4226_v4  ;;  %3108 = vmatpush1.bf16.msra.mxu1 %v4227_v5  ;;  %v4323_v4 = vld [vmem:[%s4859_s15 + $0x3a4] ss:$16 sps:$4 sm:$0xff]   ;;  %v4326_v5 = vld [vmem:[%s4859_s15 + $0x3ac] ss:$16 sps:$4 sm:$0xff]  }
  0x62   : > { %2851 = vmatprep.subr.bf16.mxu0 %v4228_v6  ;;  %3109 = vmatprep.subr.bf16.mxu1 %v4230_v7  ;;  %v4321_v6 = vld [vmem:[%s4859_s15 + $0x3a0] ss:$16 sps:$4 sm:$0xff]   ;;  %v4324_v7 = vld [vmem:[%s4859_s15 + $0x3a8] ss:$16 sps:$4 sm:$0xff]  }
  0x65   : > { %2852 = vmatpush1.bf16.msra.mxu0 %v4232_v8  ;;  %3110 = vmatpush1.bf16.msra.mxu1 %v4233_v9  ;;  %v4329_v8 = vld [vmem:[%s4859_s15 + $0x3c4] ss:$16 sps:$4 sm:$0xff]   ;;  %v4332_v9 = vld [vmem:[%s4859_s15 + $0x3cc] ss:$16 sps:$4 sm:$0xff]  }
  0x66   : > { %2853 = vmatprep.subr.bf16.mxu0 %v4234_v10  ;;  %3111 = vmatprep.subr.bf16.mxu1 %v4236_v11  ;;  %v4327_v10 = vld [vmem:[%s4859_s15 + $0x3c0] ss:$16 sps:$4 sm:$0xff]   ;;  %v4330_v11 = vld [vmem:[%s4859_s15 + $0x3c8] ss:$16 sps:$4 sm:$0xff]  }
  0x69   : > { %2854 = vmatpush1.bf16.msra.mxu0 %v4238_v12  ;;  %3112 = vmatpush1.bf16.msra.mxu1 %v4239_v13  ;;  %v4335_v12 = vld [vmem:[%s4859_s15 + $0x3e4] ss:$16 sps:$4 sm:$0xff]   ;;  %v4338_v13 = vld [vmem:[%s4859_s15 + $0x3ec] ss:$16 sps:$4 sm:$0xff]  }
  0x6a   : > { %2866 = vmatprep.subr.bf16.mxu0 %v4245_v14  ;;  %3124 = vmatprep.subr.bf16.mxu1 %v4248_v15  ;;  %v4333_v14 = vld [vmem:[%s4859_s15 + $0x3e0] ss:$16 sps:$4 sm:$0xff]   ;;  %v4336_v15 = vld [vmem:[%s4859_s15 + $0x3e8] ss:$16 sps:$4 sm:$0xff]  }
  0x6c   : > { %2856 = vmatmul.mubr.bf16.vlgmr.msra.gmra.mrb[0].mxu0 %v4240_v16  ;;  %3114 = vmatmul.mubr.bf16.vlgmr.msra.gmra.mrb[0].mxu1 %v4240_v16  ;;  %v4344_v16 = vld [vmem:[%s4859_s15 + $0x404] ss:$16 sps:$4 sm:$0xff]  }
  0x6d   : > { %2867 = vmatpush1.bf16.msra.mxu0 %v4243_v17  ;;  %3125 = vmatpush1.bf16.msra.mxu1 %v4246_v18  ;;  %v4347_v17 = vld [vmem:[%s4859_s15 + $0x40c] ss:$16 sps:$4 sm:$0xff]   ;;  %v4339_v18 = vld [vmem:[%s4861_s16 + $0x8] ss:$48 sps:$4 sm:$0xff]  }
  0x6e   : > { %2868 = vmatprep.subr.bf16.mxu0 %v4251_v19  ;;  %3126 = vmatprep.subr.bf16.mxu1 %v4254_v20  ;;  %v4342_v19 = vld [vmem:[%s4859_s15 + $0x400] ss:$16 sps:$4 sm:$0xff]   ;;  %v4345_v20 = vld [vmem:[%s4859_s15 + $0x408] ss:$16 sps:$4 sm:$0xff]  }
  0x6f   : > { %2898 = vmatprep.mubr.bf16.mxu0 %v4341_v43  ;;  %3156 = vmatprep.mubr.bf16.mxu1 %v4341_v43  ;;  %v4383_v43 = vld [vmem:[%s4859_s15 + $0x4cc] ss:$16 sps:$4 sm:$0xff]  }
  0x71   : > { %2869 = vmatpush1.bf16.msra.mxu0 %v4249_v21  ;;  %3127 = vmatpush1.bf16.msra.mxu1 %v4252_v22  ;;  %v4350_v21 = vld [vmem:[%s4859_s15 + $0x424] ss:$16 sps:$4 sm:$0xff]   ;;  %v4353_v22 = vld [vmem:[%s4859_s15 + $0x42c] ss:$16 sps:$4 sm:$0xff]  }
  0x72   : > { %2870 = vmatprep.subr.bf16.mxu0 %v4257_v23  ;;  %3128 = vmatprep.subr.bf16.mxu1 %v4260_v24  ;;  %v4348_v23 = vld [vmem:[%s4859_s15 + $0x420] ss:$16 sps:$4 sm:$0xff]   ;;  %v4351_v24 = vld [vmem:[%s4859_s15 + $0x428] ss:$16 sps:$4 sm:$0xff]  }
  0x75   : > { %2871 = vmatpush1.bf16.msra.mxu0 %v4255_v25  ;;  %3129 = vmatpush1.bf16.msra.mxu1 %v4258_v26  ;;  %v4440_v25 = vld [vmem:[%s4861_s16 + $0x14] ss:$48 sps:$4 sm:$0xff]  }
  0x76   : > { %2872 = vmatprep.subr.bf16.mxu0 %v4263_v27  ;;  %3130 = vmatprep.subr.bf16.mxu1 %v4266_v28  ;;  %v4356_v26 = vld [vmem:[%s4859_s15 + $0x444] ss:$16 sps:$4 sm:$0xff]   ;;  %v4359_v27 = vld [vmem:[%s4859_s15 + $0x44c] ss:$16 sps:$4 sm:$0xff]   ;;  %v4354_v28 = vld [vmem:[%s4859_s15 + $0x440] ss:$16 sps:$4 sm:$0xff]  }
  0x79   : > { %2873 = vmatpush1.bf16.msra.mxu0 %v4261_v29  ;;  %3131 = vmatpush1.bf16.msra.mxu1 %v4264_v30  ;;  %v4357_v29 = vld [vmem:[%s4859_s15 + $0x448] ss:$16 sps:$4 sm:$0xff]   ;;  %v4362_v30 = vld [vmem:[%s4859_s15 + $0x464] ss:$16 sps:$4 sm:$0xff]  }
  0x7a   : > { %2874 = vmatprep.subr.bf16.mxu0 %v4269_v31  ;;  %3132 = vmatprep.subr.bf16.mxu1 %v4272_v32  ;;  %v4365_v31 = vld [vmem:[%s4859_s15 + $0x46c] ss:$16 sps:$4 sm:$0xff]   ;;  %v4360_v32 = vld [vmem:[%s4859_s15 + $0x460] ss:$16 sps:$4 sm:$0xff]  }
  0x7d   : > { %2875 = vmatpush1.bf16.msra.mxu0 %v4267_v33  ;;  %3133 = vmatpush1.bf16.msra.mxu1 %v4270_v34  ;;  %v4363_v33 = vld [vmem:[%s4859_s15 + $0x468] ss:$16 sps:$4 sm:$0xff]   ;;  %v4368_v34 = vld [vmem:[%s4859_s15 + $0x484] ss:$16 sps:$4 sm:$0xff]  }
  0x7e   : > { %2876 = vmatprep.subr.bf16.mxu0 %v4275_v35  ;;  %3134 = vmatprep.subr.bf16.mxu1 %v4278_v36  ;;  %v4371_v35 = vld [vmem:[%s4859_s15 + $0x48c] ss:$16 sps:$4 sm:$0xff]   ;;  %v4366_v36 = vld [vmem:[%s4859_s15 + $0x480] ss:$16 sps:$4 sm:$0xff]  }
  0x81   : > { %2877 = vmatpush1.bf16.msra.mxu0 %v4273_v37  ;;  %3135 = vmatpush1.bf16.msra.mxu1 %v4276_v38  ;;  %v4369_v37 = vld [vmem:[%s4859_s15 + $0x488] ss:$16 sps:$4 sm:$0xff]   ;;  %v4374_v38 = vld [vmem:[%s4859_s15 + $0x4a4] ss:$16 sps:$4 sm:$0xff]  }
  0x82   : > { %2878 = vmatprep.subr.bf16.mxu0 %v4281_v39  ;;  %3136 = vmatprep.subr.bf16.mxu1 %v4284_v40  ;;  %v4377_v39 = vld [vmem:[%s4859_s15 + $0x4ac] ss:$16 sps:$4 sm:$0xff]   ;;  %v4372_v40 = vld [vmem:[%s4859_s15 + $0x4a0] ss:$16 sps:$4 sm:$0xff]  }
  0x85   : > { %2879 = vmatpush1.bf16.msra.mxu0 %v4279_v41  ;;  %3137 = vmatpush1.bf16.msra.mxu1 %v4282_v42  ;;  %v4375_v41 = vld [vmem:[%s4859_s15 + $0x4a8] ss:$16 sps:$4 sm:$0xff]   ;;  %v4380_v42 = vld [vmem:[%s4859_s15 + $0x4c4] ss:$16 sps:$4 sm:$0xff]  }
  0x86   : > { %2880 = vmatprep.subr.bf16.mxu0 %v4287_v44  ;;  %3138 = vmatprep.subr.bf16.mxu1 %v4290_v45  ;;  %v4378_v44 = vld [vmem:[%s4859_s15 + $0x4c0] ss:$16 sps:$4 sm:$0xff]   ;;  %v4381_v45 = vld [vmem:[%s4859_s15 + $0x4c8] ss:$16 sps:$4 sm:$0xff]  }
  0x89   : > { %2881 = vmatpush1.bf16.msra.mxu0 %v4285_v46  ;;  %3139 = vmatpush1.bf16.msra.mxu1 %v4288_v47  ;;  %v4386_v46 = vld [vmem:[%s4859_s15 + $0x4e4] ss:$16 sps:$4 sm:$0xff]   ;;  %v4389_v47 = vld [vmem:[%s4859_s15 + $0x4ec] ss:$16 sps:$4 sm:$0xff]  }
  0x8a   : > { %2882 = vmatprep.subr.bf16.mxu0 %v4293_v48  ;;  %3140 = vmatprep.subr.bf16.mxu1 %v4296_v49  ;;  %v4384_v48 = vld [vmem:[%s4859_s15 + $0x4e0] ss:$16 sps:$4 sm:$0xff]   ;;  %v4387_v49 = vld [vmem:[%s4859_s15 + $0x4e8] ss:$16 sps:$4 sm:$0xff]  }
  0x8d   : > { %2883 = vmatpush1.bf16.msra.mxu0 %v4291_v50  ;;  %3141 = vmatpush1.bf16.msra.mxu1 %v4294_v51  ;;  %v4392_v50 = vld [vmem:[%s4859_s15 + $0x504] ss:$16 sps:$4 sm:$0xff]   ;;  %v4395_v51 = vld [vmem:[%s4859_s15 + $0x50c] ss:$16 sps:$4 sm:$0xff]  }
  0x8e   : > { %2884 = vmatprep.subr.bf16.mxu0 %v4299_v52  ;;  %3142 = vmatprep.subr.bf16.mxu1 %v4302_v53  ;;  %v4390_v52 = vld [vmem:[%s4859_s15 + $0x500] ss:$16 sps:$4 sm:$0xff]   ;;  %v4393_v53 = vld [vmem:[%s4859_s15 + $0x508] ss:$16 sps:$4 sm:$0xff]  }
  0x91   : > { %2885 = vmatpush1.bf16.msra.mxu0 %v4297_v54  ;;  %3143 = vmatpush1.bf16.msra.mxu1 %v4300_v55  ;;  %v4398_v54 = vld [vmem:[%s4859_s15 + $0x524] ss:$16 sps:$4 sm:$0xff]   ;;  %v4401_v55 = vld [vmem:[%s4859_s15 + $0x52c] ss:$16 sps:$4 sm:$0xff]  }
  0x92   : > { %2886 = vmatprep.subr.bf16.mxu0 %v4305_v56  ;;  %3144 = vmatprep.subr.bf16.mxu1 %v4308_v57  ;;  %v4396_v56 = vld [vmem:[%s4859_s15 + $0x520] ss:$16 sps:$4 sm:$0xff]   ;;  %v4399_v57 = vld [vmem:[%s4859_s15 + $0x528] ss:$16 sps:$4 sm:$0xff]  }
  0x95   : > { %2887 = vmatpush1.bf16.msra.mxu0 %v4303_v58  ;;  %3145 = vmatpush1.bf16.msra.mxu1 %v4306_v59  ;;  %v4404_v58 = vld [vmem:[%s4859_s15 + $0x544] ss:$16 sps:$4 sm:$0xff]   ;;  %v4407_v59 = vld [vmem:[%s4859_s15 + $0x54c] ss:$16 sps:$4 sm:$0xff]  }
  0x96   : > { %2888 = vmatprep.subr.bf16.mxu0 %v4311_v60  ;;  %3146 = vmatprep.subr.bf16.mxu1 %v4314_v61  ;;  %v4402_v60 = vld [vmem:[%s4859_s15 + $0x540] ss:$16 sps:$4 sm:$0xff]   ;;  %v4405_v61 = vld [vmem:[%s4859_s15 + $0x548] ss:$16 sps:$4 sm:$0xff]  }
  0x99   : > { %2889 = vmatpush1.bf16.msra.mxu0 %v4309_v62  ;;  %3147 = vmatpush1.bf16.msra.mxu1 %v4312_v63  ;;  %v4410_v62 = vld [vmem:[%s4859_s15 + $0x564] ss:$16 sps:$4 sm:$0xff]   ;;  %v4413_v63 = vld [vmem:[%s4859_s15 + $0x56c] ss:$16 sps:$4 sm:$0xff]  }
  0x9a   : > { %2890 = vmatprep.subr.bf16.mxu0 %v4317_v0  ;;  %3148 = vmatprep.subr.bf16.mxu1 %v4320_v1  ;;  %v4408_v0 = vld [vmem:[%s4859_s15 + $0x560] ss:$16 sps:$4 sm:$0xff]   ;;  %v4411_v1 = vld [vmem:[%s4859_s15 + $0x568] ss:$16 sps:$4 sm:$0xff]  }
  0x9d   : > { %2891 = vmatpush1.bf16.msra.mxu0 %v4315_v2  ;;  %3149 = vmatpush1.bf16.msra.mxu1 %v4318_v3  ;;  %v4416_v2 = vld [vmem:[%s4859_s15 + $0x584] ss:$16 sps:$4 sm:$0xff]   ;;  %v4419_v3 = vld [vmem:[%s4859_s15 + $0x58c] ss:$16 sps:$4 sm:$0xff]  }
  0x9e   : > { %2892 = vmatprep.subr.bf16.mxu0 %v4323_v4  ;;  %3150 = vmatprep.subr.bf16.mxu1 %v4326_v5  ;;  %v4414_v4 = vld [vmem:[%s4859_s15 + $0x580] ss:$16 sps:$4 sm:$0xff]   ;;  %v4417_v5 = vld [vmem:[%s4859_s15 + $0x588] ss:$16 sps:$4 sm:$0xff]  }
  0xa1   : > { %2893 = vmatpush1.bf16.msra.mxu0 %v4321_v6  ;;  %3151 = vmatpush1.bf16.msra.mxu1 %v4324_v7  ;;  %v4422_v6 = vld [vmem:[%s4859_s15 + $0x5a4] ss:$16 sps:$4 sm:$0xff]   ;;  %v4425_v7 = vld [vmem:[%s4859_s15 + $0x5ac] ss:$16 sps:$4 sm:$0xff]  }
  0xa2   : > { %2894 = vmatprep.subr.bf16.mxu0 %v4329_v8  ;;  %3152 = vmatprep.subr.bf16.mxu1 %v4332_v9  ;;  %v4420_v8 = vld [vmem:[%s4859_s15 + $0x5a0] ss:$16 sps:$4 sm:$0xff]   ;;  %v4423_v9 = vld [vmem:[%s4859_s15 + $0x5a8] ss:$16 sps:$4 sm:$0xff]  }
  0xa5   : > { %2895 = vmatpush1.bf16.msra.mxu0 %v4327_v10  ;;  %3153 = vmatpush1.bf16.msra.mxu1 %v4330_v11  ;;  %v4428_v10 = vld [vmem:[%s4859_s15 + $0x5c4] ss:$16 sps:$4 sm:$0xff]   ;;  %v4431_v11 = vld [vmem:[%s4859_s15 + $0x5cc] ss:$16 sps:$4 sm:$0xff]  }
  0xa6   : > { %2896 = vmatprep.subr.bf16.mxu0 %v4335_v12  ;;  %3154 = vmatprep.subr.bf16.mxu1 %v4338_v13  ;;  %v4426_v12 = vld [vmem:[%s4859_s15 + $0x5c0] ss:$16 sps:$4 sm:$0xff]   ;;  %v4429_v13 = vld [vmem:[%s4859_s15 + $0x5c8] ss:$16 sps:$4 sm:$0xff]  }
  0xa9   : > { %2897 = vmatpush1.bf16.msra.mxu0 %v4333_v14  ;;  %3155 = vmatpush1.bf16.msra.mxu1 %v4336_v15  ;;  %v4434_v14 = vld [vmem:[%s4859_s15 + $0x5e4] ss:$16 sps:$4 sm:$0xff]   ;;  %v4437_v15 = vld [vmem:[%s4859_s15 + $0x5ec] ss:$16 sps:$4 sm:$0xff]  }
  0xaa   : > { %2909 = vmatprep.subr.bf16.mxu0 %v4344_v16  ;;  %3167 = vmatprep.subr.bf16.mxu1 %v4347_v17  ;;  %v4432_v16 = vld [vmem:[%s4859_s15 + $0x5e0] ss:$16 sps:$4 sm:$0xff]   ;;  %v4435_v17 = vld [vmem:[%s4859_s15 + $0x5e8] ss:$16 sps:$4 sm:$0xff]  }
  0xac   : > { %2899 = vmatmul.mubr.bf16.vlgmr.msra.gmra.mrb[0].mxu0 %v4339_v18  ;;  %3157 = vmatmul.mubr.bf16.vlgmr.msra.gmra.mrb[0].mxu1 %v4339_v18  ;;  %v4443_v18 = vld [vmem:[%s4859_s15 + $0x604] ss:$16 sps:$4 sm:$0xff]  }
  0xad   : > { %2910 = vmatpush1.bf16.msra.mxu0 %v4342_v19  ;;  %3168 = vmatpush1.bf16.msra.mxu1 %v4345_v20  ;;  %v4446_v19 = vld [vmem:[%s4859_s15 + $0x60c] ss:$16 sps:$4 sm:$0xff]   ;;  %v4438_v20 = vld [vmem:[%s4861_s16 + $0x10] ss:$48 sps:$4 sm:$0xff]  }
  0xae   : > { %2911 = vmatprep.subr.bf16.mxu0 %v4350_v21  ;;  %3169 = vmatprep.subr.bf16.mxu1 %v4353_v22  ;;  %v4441_v21 = vld [vmem:[%s4859_s15 + $0x600] ss:$16 sps:$4 sm:$0xff]   ;;  %v4444_v22 = vld [vmem:[%s4859_s15 + $0x608] ss:$16 sps:$4 sm:$0xff]  }
  0xaf   : > { %2941 = vmatprep.mubr.bf16.mxu0 %v4440_v25  ;;  %3199 = vmatprep.mubr.bf16.mxu1 %v4440_v25  ;;  %v4539_v25 = vld [vmem:[%s4861_s16 + $0x1c] ss:$48 sps:$4 sm:$0xff]  }
  0xb1   : > { %2912 = vmatpush1.bf16.msra.mxu0 %v4348_v23  ;;  %3170 = vmatpush1.bf16.msra.mxu1 %v4351_v24  ;;  %v4449_v23 = vld [vmem:[%s4859_s15 + $0x624] ss:$16 sps:$4 sm:$0xff]   ;;  %v4452_v24 = vld [vmem:[%s4859_s15 + $0x62c] ss:$16 sps:$4 sm:$0xff]  }
  0xb2   : > { %2913 = vmatprep.subr.bf16.mxu0 %v4356_v26  ;;  %3171 = vmatprep.subr.bf16.mxu1 %v4359_v27  ;;  %v4447_v26 = vld [vmem:[%s4859_s15 + $0x620] ss:$16 sps:$4 sm:$0xff]   ;;  %v4450_v27 = vld [vmem:[%s4859_s15 + $0x628] ss:$16 sps:$4 sm:$0xff]  }
  0xb5   : > { %2914 = vmatpush1.bf16.msra.mxu0 %v4354_v28  ;;  %3172 = vmatpush1.bf16.msra.mxu1 %v4357_v29  ;;  %v4455_v28 = vld [vmem:[%s4859_s15 + $0x644] ss:$16 sps:$4 sm:$0xff]   ;;  %v4458_v29 = vld [vmem:[%s4859_s15 + $0x64c] ss:$16 sps:$4 sm:$0xff]  }
  0xb6   : > { %2915 = vmatprep.subr.bf16.mxu0 %v4362_v30  ;;  %3173 = vmatprep.subr.bf16.mxu1 %v4365_v31  ;;  %v4453_v30 = vld [vmem:[%s4859_s15 + $0x640] ss:$16 sps:$4 sm:$0xff]   ;;  %v4456_v31 = vld [vmem:[%s4859_s15 + $0x648] ss:$16 sps:$4 sm:$0xff]  }
  0xb9   : > { %2916 = vmatpush1.bf16.msra.mxu0 %v4360_v32  ;;  %3174 = vmatpush1.bf16.msra.mxu1 %v4363_v33  ;;  %v4461_v32 = vld [vmem:[%s4859_s15 + $0x664] ss:$16 sps:$4 sm:$0xff]   ;;  %v4464_v33 = vld [vmem:[%s4859_s15 + $0x66c] ss:$16 sps:$4 sm:$0xff]  }
  0xba   : > { %2917 = vmatprep.subr.bf16.mxu0 %v4368_v34  ;;  %3175 = vmatprep.subr.bf16.mxu1 %v4371_v35  ;;  %v4459_v34 = vld [vmem:[%s4859_s15 + $0x660] ss:$16 sps:$4 sm:$0xff]   ;;  %v4462_v35 = vld [vmem:[%s4859_s15 + $0x668] ss:$16 sps:$4 sm:$0xff]  }
  0xbd   : > { %2918 = vmatpush1.bf16.msra.mxu0 %v4366_v36  ;;  %3176 = vmatpush1.bf16.msra.mxu1 %v4369_v37  ;;  %v4467_v36 = vld [vmem:[%s4859_s15 + $0x684] ss:$16 sps:$4 sm:$0xff]   ;;  %v4470_v37 = vld [vmem:[%s4859_s15 + $0x68c] ss:$16 sps:$4 sm:$0xff]  }
  0xbe   : > { %2919 = vmatprep.subr.bf16.mxu0 %v4374_v38  ;;  %3177 = vmatprep.subr.bf16.mxu1 %v4377_v39  ;;  %v4465_v38 = vld [vmem:[%s4859_s15 + $0x680] ss:$16 sps:$4 sm:$0xff]   ;;  %v4468_v39 = vld [vmem:[%s4859_s15 + $0x688] ss:$16 sps:$4 sm:$0xff]  }
  0xc1   : > { %2920 = vmatpush1.bf16.msra.mxu0 %v4372_v40  ;;  %3178 = vmatpush1.bf16.msra.mxu1 %v4375_v41  ;;  %v4473_v40 = vld [vmem:[%s4859_s15 + $0x6a4] ss:$16 sps:$4 sm:$0xff]   ;;  %v4476_v41 = vld [vmem:[%s4859_s15 + $0x6ac] ss:$16 sps:$4 sm:$0xff]  }
  0xc2   : > { %2921 = vmatprep.subr.bf16.mxu0 %v4380_v42  ;;  %3179 = vmatprep.subr.bf16.mxu1 %v4383_v43  ;;  %v4471_v42 = vld [vmem:[%s4859_s15 + $0x6a0] ss:$16 sps:$4 sm:$0xff]   ;;  %v4474_v43 = vld [vmem:[%s4859_s15 + $0x6a8] ss:$16 sps:$4 sm:$0xff]  }
  0xc5   : > { %2922 = vmatpush1.bf16.msra.mxu0 %v4378_v44  ;;  %3180 = vmatpush1.bf16.msra.mxu1 %v4381_v45  ;;  %v4479_v44 = vld [vmem:[%s4859_s15 + $0x6c4] ss:$16 sps:$4 sm:$0xff]   ;;  %v4482_v45 = vld [vmem:[%s4859_s15 + $0x6cc] ss:$16 sps:$4 sm:$0xff]  }
  0xc6   : > { %2923 = vmatprep.subr.bf16.mxu0 %v4386_v46  ;;  %3181 = vmatprep.subr.bf16.mxu1 %v4389_v47  ;;  %v4477_v46 = vld [vmem:[%s4859_s15 + $0x6c0] ss:$16 sps:$4 sm:$0xff]   ;;  %v4480_v47 = vld [vmem:[%s4859_s15 + $0x6c8] ss:$16 sps:$4 sm:$0xff]  }
  0xc9   : > { %2924 = vmatpush1.bf16.msra.mxu0 %v4384_v48  ;;  %3182 = vmatpush1.bf16.msra.mxu1 %v4387_v49  ;;  %v4485_v48 = vld [vmem:[%s4859_s15 + $0x6e4] ss:$16 sps:$4 sm:$0xff]   ;;  %v4488_v49 = vld [vmem:[%s4859_s15 + $0x6ec] ss:$16 sps:$4 sm:$0xff]  }
  0xca   : > { %2925 = vmatprep.subr.bf16.mxu0 %v4392_v50  ;;  %3183 = vmatprep.subr.bf16.mxu1 %v4395_v51  ;;  %v4483_v50 = vld [vmem:[%s4859_s15 + $0x6e0] ss:$16 sps:$4 sm:$0xff]   ;;  %v4486_v51 = vld [vmem:[%s4859_s15 + $0x6e8] ss:$16 sps:$4 sm:$0xff]  }
  0xcd   : > { %2926 = vmatpush1.bf16.msra.mxu0 %v4390_v52  ;;  %3184 = vmatpush1.bf16.msra.mxu1 %v4393_v53  ;;  %v4491_v52 = vld [vmem:[%s4859_s15 + $0x704] ss:$16 sps:$4 sm:$0xff]   ;;  %v4494_v53 = vld [vmem:[%s4859_s15 + $0x70c] ss:$16 sps:$4 sm:$0xff]  }
  0xce   : > { %2927 = vmatprep.subr.bf16.mxu0 %v4398_v54  ;;  %3185 = vmatprep.subr.bf16.mxu1 %v4401_v55  ;;  %v4489_v54 = vld [vmem:[%s4859_s15 + $0x700] ss:$16 sps:$4 sm:$0xff]   ;;  %v4492_v55 = vld [vmem:[%s4859_s15 + $0x708] ss:$16 sps:$4 sm:$0xff]  }
  0xd1   : > { %2928 = vmatpush1.bf16.msra.mxu0 %v4396_v56  ;;  %3186 = vmatpush1.bf16.msra.mxu1 %v4399_v57  ;;  %v4497_v56 = vld [vmem:[%s4859_s15 + $0x724] ss:$16 sps:$4 sm:$0xff]   ;;  %v4500_v57 = vld [vmem:[%s4859_s15 + $0x72c] ss:$16 sps:$4 sm:$0xff]  }
  0xd2   : > { %2929 = vmatprep.subr.bf16.mxu0 %v4404_v58  ;;  %3187 = vmatprep.subr.bf16.mxu1 %v4407_v59  ;;  %v4495_v58 = vld [vmem:[%s4859_s15 + $0x720] ss:$16 sps:$4 sm:$0xff]   ;;  %v4498_v59 = vld [vmem:[%s4859_s15 + $0x728] ss:$16 sps:$4 sm:$0xff]  }
  0xd5   : > { %2930 = vmatpush1.bf16.msra.mxu0 %v4402_v60  ;;  %3188 = vmatpush1.bf16.msra.mxu1 %v4405_v61  ;;  %v4503_v60 = vld [vmem:[%s4859_s15 + $0x744] ss:$16 sps:$4 sm:$0xff]   ;;  %v4506_v61 = vld [vmem:[%s4859_s15 + $0x74c] ss:$16 sps:$4 sm:$0xff]  }
  0xd6   : > { %2931 = vmatprep.subr.bf16.mxu0 %v4410_v62  ;;  %3189 = vmatprep.subr.bf16.mxu1 %v4413_v63  ;;  %v4501_v62 = vld [vmem:[%s4859_s15 + $0x740] ss:$16 sps:$4 sm:$0xff]   ;;  %v4504_v63 = vld [vmem:[%s4859_s15 + $0x748] ss:$16 sps:$4 sm:$0xff]  }
  0xd9   : > { %2932 = vmatpush1.bf16.msra.mxu0 %v4408_v0  ;;  %3190 = vmatpush1.bf16.msra.mxu1 %v4411_v1  ;;  %v4509_v0 = vld [vmem:[%s4859_s15 + $0x764] ss:$16 sps:$4 sm:$0xff]   ;;  %v4512_v1 = vld [vmem:[%s4859_s15 + $0x76c] ss:$16 sps:$4 sm:$0xff]  }
  0xda   : > { %2933 = vmatprep.subr.bf16.mxu0 %v4416_v2  ;;  %3191 = vmatprep.subr.bf16.mxu1 %v4419_v3  ;;  %v4507_v2 = vld [vmem:[%s4859_s15 + $0x760] ss:$16 sps:$4 sm:$0xff]   ;;  %v4510_v3 = vld [vmem:[%s4859_s15 + $0x768] ss:$16 sps:$4 sm:$0xff]  }
  0xdd   : > { %2934 = vmatpush1.bf16.msra.mxu0 %v4414_v4  ;;  %3192 = vmatpush1.bf16.msra.mxu1 %v4417_v5  ;;  %v4515_v4 = vld [vmem:[%s4859_s15 + $0x784] ss:$16 sps:$4 sm:$0xff]   ;;  %v4518_v5 = vld [vmem:[%s4859_s15 + $0x78c] ss:$16 sps:$4 sm:$0xff]  }
  0xde   : > { %2935 = vmatprep.subr.bf16.mxu0 %v4422_v6  ;;  %3193 = vmatprep.subr.bf16.mxu1 %v4425_v7  ;;  %v4513_v6 = vld [vmem:[%s4859_s15 + $0x780] ss:$16 sps:$4 sm:$0xff]   ;;  %v4516_v7 = vld [vmem:[%s4859_s15 + $0x788] ss:$16 sps:$4 sm:$0xff]  }
  0xe1   : > { %2936 = vmatpush1.bf16.msra.mxu0 %v4420_v8  ;;  %3194 = vmatpush1.bf16.msra.mxu1 %v4423_v9  ;;  %v4521_v8 = vld [vmem:[%s4859_s15 + $0x7a4] ss:$16 sps:$4 sm:$0xff]   ;;  %v4524_v9 = vld [vmem:[%s4859_s15 + $0x7ac] ss:$16 sps:$4 sm:$0xff]  }
  0xe2   : > { %2937 = vmatprep.subr.bf16.mxu0 %v4428_v10  ;;  %3195 = vmatprep.subr.bf16.mxu1 %v4431_v11  ;;  %v4519_v10 = vld [vmem:[%s4859_s15 + $0x7a0] ss:$16 sps:$4 sm:$0xff]   ;;  %v4522_v11 = vld [vmem:[%s4859_s15 + $0x7a8] ss:$16 sps:$4 sm:$0xff]  }
  0xe5   : > { %2938 = vmatpush1.bf16.msra.mxu0 %v4426_v12  ;;  %3196 = vmatpush1.bf16.msra.mxu1 %v4429_v13  ;;  %v4527_v12 = vld [vmem:[%s4859_s15 + $0x7c4] ss:$16 sps:$4 sm:$0xff]   ;;  %v4530_v13 = vld [vmem:[%s4859_s15 + $0x7cc] ss:$16 sps:$4 sm:$0xff]  }
  0xe6   : > { %2939 = vmatprep.subr.bf16.mxu0 %v4434_v14  ;;  %3197 = vmatprep.subr.bf16.mxu1 %v4437_v15  ;;  %v4525_v14 = vld [vmem:[%s4859_s15 + $0x7c0] ss:$16 sps:$4 sm:$0xff]   ;;  %v4528_v15 = vld [vmem:[%s4859_s15 + $0x7c8] ss:$16 sps:$4 sm:$0xff]  }
  0xe9   : > { %2940 = vmatpush1.bf16.msra.mxu0 %v4432_v16  ;;  %3198 = vmatpush1.bf16.msra.mxu1 %v4435_v17  ;;  %v4533_v16 = vld [vmem:[%s4859_s15 + $0x7e4] ss:$16 sps:$4 sm:$0xff]   ;;  %v4536_v17 = vld [vmem:[%s4859_s15 + $0x7ec] ss:$16 sps:$4 sm:$0xff]  }
  0xea   : > { %2952 = vmatprep.subr.bf16.mxu0 %v4443_v18  ;;  %3210 = vmatprep.subr.bf16.mxu1 %v4446_v19  ;;  %v4531_v18 = vld [vmem:[%s4859_s15 + $0x7e0] ss:$16 sps:$4 sm:$0xff]   ;;  %v4534_v19 = vld [vmem:[%s4859_s15 + $0x7e8] ss:$16 sps:$4 sm:$0xff]  }
  0xec   : > { %2942 = vmatmul.mubr.bf16.vlgmr.msra.gmra.mrb[0].mxu0 %v4438_v20  ;;  %3200 = vmatmul.mubr.bf16.vlgmr.msra.gmra.mrb[0].mxu1 %v4438_v20  ;;  %v4542_v20 = vld [vmem:[%s4859_s15 + $0x804] ss:$16 sps:$4 sm:$0xff]  }
  0xed   : > { %2953 = vmatpush1.bf16.msra.mxu0 %v4441_v21  ;;  %3211 = vmatpush1.bf16.msra.mxu1 %v4444_v22  ;;  %v4545_v21 = vld [vmem:[%s4859_s15 + $0x80c] ss:$16 sps:$4 sm:$0xff]   ;;  %v4537_v22 = vld [vmem:[%s4861_s16 + $0x18] ss:$48 sps:$4 sm:$0xff]  }
  0xee   : > { %2954 = vmatprep.subr.bf16.mxu0 %v4449_v23  ;;  %3212 = vmatprep.subr.bf16.mxu1 %v4452_v24  ;;  %v4540_v23 = vld [vmem:[%s4859_s15 + $0x800] ss:$16 sps:$4 sm:$0xff]   ;;  %v4543_v24 = vld [vmem:[%s4859_s15 + $0x808] ss:$16 sps:$4 sm:$0xff]  }
  0xef   : > { %2984 = vmatprep.mubr.bf16.mxu0 %v4539_v25  ;;  %3242 = vmatprep.mubr.bf16.mxu1 %v4539_v25  ;;  %v4548_v25 = vld [vmem:[%s4859_s15 + $0x824] ss:$16 sps:$4 sm:$0xff]  }
  0xf1   : > { %2955 = vmatpush1.bf16.msra.mxu0 %v4447_v26  ;;  %3213 = vmatpush1.bf16.msra.mxu1 %v4450_v27  ;;  %v4551_v26 = vld [vmem:[%s4859_s15 + $0x82c] ss:$16 sps:$4 sm:$0xff]   ;;  %v4638_v27 = vld [vmem:[%s4861_s16 + $0x24] ss:$48 sps:$4 sm:$0xff]  }
  0xf2   : > { %2956 = vmatprep.subr.bf16.mxu0 %v4455_v28  ;;  %3214 = vmatprep.subr.bf16.mxu1 %v4458_v29  ;;  %v4546_v28 = vld [vmem:[%s4859_s15 + $0x820] ss:$16 sps:$4 sm:$0xff]   ;;  %v4549_v29 = vld [vmem:[%s4859_s15 + $0x828] ss:$16 sps:$4 sm:$0xff]  }
  0xf5   : > { %2957 = vmatpush1.bf16.msra.mxu0 %v4453_v30  ;;  %3215 = vmatpush1.bf16.msra.mxu1 %v4456_v31  ;;  %v4554_v30 = vld [vmem:[%s4859_s15 + $0x844] ss:$16 sps:$4 sm:$0xff]   ;;  %v4557_v31 = vld [vmem:[%s4859_s15 + $0x84c] ss:$16 sps:$4 sm:$0xff]  }
  0xf6   : > { %2958 = vmatprep.subr.bf16.mxu0 %v4461_v32  ;;  %3216 = vmatprep.subr.bf16.mxu1 %v4464_v33  ;;  %v4552_v32 = vld [vmem:[%s4859_s15 + $0x840] ss:$16 sps:$4 sm:$0xff]   ;;  %v4555_v33 = vld [vmem:[%s4859_s15 + $0x848] ss:$16 sps:$4 sm:$0xff]  }
  0xf9   : > { %2959 = vmatpush1.bf16.msra.mxu0 %v4459_v34  ;;  %3217 = vmatpush1.bf16.msra.mxu1 %v4462_v35  ;;  %v4560_v34 = vld [vmem:[%s4859_s15 + $0x864] ss:$16 sps:$4 sm:$0xff]   ;;  %v4563_v35 = vld [vmem:[%s4859_s15 + $0x86c] ss:$16 sps:$4 sm:$0xff]  }
  0xfa   : > { %2960 = vmatprep.subr.bf16.mxu0 %v4467_v36  ;;  %3218 = vmatprep.subr.bf16.mxu1 %v4470_v37  ;;  %v4558_v36 = vld [vmem:[%s4859_s15 + $0x860] ss:$16 sps:$4 sm:$0xff]   ;;  %v4561_v37 = vld [vmem:[%s4859_s15 + $0x868] ss:$16 sps:$4 sm:$0xff]  }
  0xfd   : > { %2961 = vmatpush1.bf16.msra.mxu0 %v4465_v38  ;;  %3219 = vmatpush1.bf16.msra.mxu1 %v4468_v39  ;;  %v4566_v38 = vld [vmem:[%s4859_s15 + $0x884] ss:$16 sps:$4 sm:$0xff]   ;;  %v4569_v39 = vld [vmem:[%s4859_s15 + $0x88c] ss:$16 sps:$4 sm:$0xff]  }
  0xfe   : > { %2962 = vmatprep.subr.bf16.mxu0 %v4473_v40  ;;  %3220 = vmatprep.subr.bf16.mxu1 %v4476_v41  ;;  %v4564_v40 = vld [vmem:[%s4859_s15 + $0x880] ss:$16 sps:$4 sm:$0xff]   ;;  %v4567_v41 = vld [vmem:[%s4859_s15 + $0x888] ss:$16 sps:$4 sm:$0xff]  }
 0x101   : > { %2963 = vmatpush1.bf16.msra.mxu0 %v4471_v42  ;;  %3221 = vmatpush1.bf16.msra.mxu1 %v4474_v43  ;;  %v4572_v42 = vld [vmem:[%s4859_s15 + $0x8a4] ss:$16 sps:$4 sm:$0xff]   ;;  %v4575_v43 = vld [vmem:[%s4859_s15 + $0x8ac] ss:$16 sps:$4 sm:$0xff]  }
 0x102   : > { %2964 = vmatprep.subr.bf16.mxu0 %v4479_v44  ;;  %3222 = vmatprep.subr.bf16.mxu1 %v4482_v45  ;;  %v4570_v44 = vld [vmem:[%s4859_s15 + $0x8a0] ss:$16 sps:$4 sm:$0xff]   ;;  %v4573_v45 = vld [vmem:[%s4859_s15 + $0x8a8] ss:$16 sps:$4 sm:$0xff]  }
 0x105   : > { %2965 = vmatpush1.bf16.msra.mxu0 %v4477_v46  ;;  %3223 = vmatpush1.bf16.msra.mxu1 %v4480_v47  ;;  %v4578_v46 = vld [vmem:[%s4859_s15 + $0x8c4] ss:$16 sps:$4 sm:$0xff]   ;;  %v4581_v47 = vld [vmem:[%s4859_s15 + $0x8cc] ss:$16 sps:$4 sm:$0xff]  }
 0x106   : > { %2966 = vmatprep.subr.bf16.mxu0 %v4485_v48  ;;  %3224 = vmatprep.subr.bf16.mxu1 %v4488_v49  ;;  %v4576_v48 = vld [vmem:[%s4859_s15 + $0x8c0] ss:$16 sps:$4 sm:$0xff]   ;;  %v4579_v49 = vld [vmem:[%s4859_s15 + $0x8c8] ss:$16 sps:$4 sm:$0xff]  }
 0x109   : > { %2967 = vmatpush1.bf16.msra.mxu0 %v4483_v50  ;;  %3225 = vmatpush1.bf16.msra.mxu1 %v4486_v51  ;;  %v4584_v50 = vld [vmem:[%s4859_s15 + $0x8e4] ss:$16 sps:$4 sm:$0xff]   ;;  %v4587_v51 = vld [vmem:[%s4859_s15 + $0x8ec] ss:$16 sps:$4 sm:$0xff]  }
 0x10a   : > { %2968 = vmatprep.subr.bf16.mxu0 %v4491_v52  ;;  %3226 = vmatprep.subr.bf16.mxu1 %v4494_v53  ;;  %v4582_v52 = vld [vmem:[%s4859_s15 + $0x8e0] ss:$16 sps:$4 sm:$0xff]   ;;  %v4585_v53 = vld [vmem:[%s4859_s15 + $0x8e8] ss:$16 sps:$4 sm:$0xff]  }
 0x10d   : > { %2969 = vmatpush1.bf16.msra.mxu0 %v4489_v54  ;;  %3227 = vmatpush1.bf16.msra.mxu1 %v4492_v55  ;;  %v4590_v54 = vld [vmem:[%s4859_s15 + $0x904] ss:$16 sps:$4 sm:$0xff]   ;;  %v4593_v55 = vld [vmem:[%s4859_s15 + $0x90c] ss:$16 sps:$4 sm:$0xff]  }
 0x10e   : > { %2970 = vmatprep.subr.bf16.mxu0 %v4497_v56  ;;  %3228 = vmatprep.subr.bf16.mxu1 %v4500_v57  ;;  %v4588_v56 = vld [vmem:[%s4859_s15 + $0x900] ss:$16 sps:$4 sm:$0xff]   ;;  %v4591_v57 = vld [vmem:[%s4859_s15 + $0x908] ss:$16 sps:$4 sm:$0xff]  }
 0x111   : > { %2971 = vmatpush1.bf16.msra.mxu0 %v4495_v58  ;;  %3229 = vmatpush1.bf16.msra.mxu1 %v4498_v59  ;;  %v4596_v58 = vld [vmem:[%s4859_s15 + $0x924] ss:$16 sps:$4 sm:$0xff]   ;;  %v4599_v59 = vld [vmem:[%s4859_s15 + $0x92c] ss:$16 sps:$4 sm:$0xff]  }
 0x112   : > { %2972 = vmatprep.subr.bf16.mxu0 %v4503_v60  ;;  %3230 = vmatprep.subr.bf16.mxu1 %v4506_v61  ;;  %v4594_v60 = vld [vmem:[%s4859_s15 + $0x920] ss:$16 sps:$4 sm:$0xff]   ;;  %v4597_v61 = vld [vmem:[%s4859_s15 + $0x928] ss:$16 sps:$4 sm:$0xff]  }
 0x115   : > { %2973 = vmatpush1.bf16.msra.mxu0 %v4501_v62  ;;  %3231 = vmatpush1.bf16.msra.mxu1 %v4504_v63  ;;  %v4602_v62 = vld [vmem:[%s4859_s15 + $0x944] ss:$16 sps:$4 sm:$0xff]   ;;  %v4605_v63 = vld [vmem:[%s4859_s15 + $0x94c] ss:$16 sps:$4 sm:$0xff]  }
 0x116   : > { %2974 = vmatprep.subr.bf16.mxu0 %v4509_v0  ;;  %3232 = vmatprep.subr.bf16.mxu1 %v4512_v1  ;;  %v4600_v0 = vld [vmem:[%s4859_s15 + $0x940] ss:$16 sps:$4 sm:$0xff]   ;;  %v4603_v1 = vld [vmem:[%s4859_s15 + $0x948] ss:$16 sps:$4 sm:$0xff]  }
 0x119   : > { %2975 = vmatpush1.bf16.msra.mxu0 %v4507_v2  ;;  %3233 = vmatpush1.bf16.msra.mxu1 %v4510_v3  ;;  %v4608_v2 = vld [vmem:[%s4859_s15 + $0x964] ss:$16 sps:$4 sm:$0xff]   ;;  %v4611_v3 = vld [vmem:[%s4859_s15 + $0x96c] ss:$16 sps:$4 sm:$0xff]  }
 0x11a   : > { %2976 = vmatprep.subr.bf16.mxu0 %v4515_v4  ;;  %3234 = vmatprep.subr.bf16.mxu1 %v4518_v5  ;;  %v4606_v4 = vld [vmem:[%s4859_s15 + $0x960] ss:$16 sps:$4 sm:$0xff]   ;;  %v4609_v5 = vld [vmem:[%s4859_s15 + $0x968] ss:$16 sps:$4 sm:$0xff]  }
 0x11d   : > { %2977 = vmatpush1.bf16.msra.mxu0 %v4513_v6  ;;  %3235 = vmatpush1.bf16.msra.mxu1 %v4516_v7  ;;  %v4614_v6 = vld [vmem:[%s4859_s15 + $0x984] ss:$16 sps:$4 sm:$0xff]   ;;  %v4617_v7 = vld [vmem:[%s4859_s15 + $0x98c] ss:$16 sps:$4 sm:$0xff]  }
 0x11e   : > { %2978 = vmatprep.subr.bf16.mxu0 %v4521_v8  ;;  %3236 = vmatprep.subr.bf16.mxu1 %v4524_v9  ;;  %v4612_v8 = vld [vmem:[%s4859_s15 + $0x980] ss:$16 sps:$4 sm:$0xff]   ;;  %v4615_v9 = vld [vmem:[%s4859_s15 + $0x988] ss:$16 sps:$4 sm:$0xff]  }
 0x121   : > { %2979 = vmatpush1.bf16.msra.mxu0 %v4519_v10  ;;  %3237 = vmatpush1.bf16.msra.mxu1 %v4522_v11  ;;  %v4620_v10 = vld [vmem:[%s4859_s15 + $0x9a4] ss:$16 sps:$4 sm:$0xff]   ;;  %v4623_v11 = vld [vmem:[%s4859_s15 + $0x9ac] ss:$16 sps:$4 sm:$0xff]  }
 0x122   : > { %2980 = vmatprep.subr.bf16.mxu0 %v4527_v12  ;;  %3238 = vmatprep.subr.bf16.mxu1 %v4530_v13  ;;  %v4618_v12 = vld [vmem:[%s4859_s15 + $0x9a0] ss:$16 sps:$4 sm:$0xff]   ;;  %v4621_v13 = vld [vmem:[%s4859_s15 + $0x9a8] ss:$16 sps:$4 sm:$0xff]  }
 0x125   : > { %2981 = vmatpush1.bf16.msra.mxu0 %v4525_v14  ;;  %3239 = vmatpush1.bf16.msra.mxu1 %v4528_v15  ;;  %v4626_v14 = vld [vmem:[%s4859_s15 + $0x9c4] ss:$16 sps:$4 sm:$0xff]   ;;  %v4629_v15 = vld [vmem:[%s4859_s15 + $0x9cc] ss:$16 sps:$4 sm:$0xff]  }
 0x126   : > { %2982 = vmatprep.subr.bf16.mxu0 %v4533_v16  ;;  %3240 = vmatprep.subr.bf16.mxu1 %v4536_v17  ;;  %v4624_v16 = vld [vmem:[%s4859_s15 + $0x9c0] ss:$16 sps:$4 sm:$0xff]   ;;  %v4627_v17 = vld [vmem:[%s4859_s15 + $0x9c8] ss:$16 sps:$4 sm:$0xff]  }
 0x129   : > { %2983 = vmatpush1.bf16.msra.mxu0 %v4531_v18  ;;  %3241 = vmatpush1.bf16.msra.mxu1 %v4534_v19  ;;  %v4632_v18 = vld [vmem:[%s4859_s15 + $0x9e4] ss:$16 sps:$4 sm:$0xff]   ;;  %v4635_v19 = vld [vmem:[%s4859_s15 + $0x9ec] ss:$16 sps:$4 sm:$0xff]  }
 0x12a   : > { %2995 = vmatprep.subr.bf16.mxu0 %v4542_v20  ;;  %3253 = vmatprep.subr.bf16.mxu1 %v4545_v21  ;;  %v4630_v20 = vld [vmem:[%s4859_s15 + $0x9e0] ss:$16 sps:$4 sm:$0xff]   ;;  %v4633_v21 = vld [vmem:[%s4859_s15 + $0x9e8] ss:$16 sps:$4 sm:$0xff]  }
 0x12c   : > { %2985 = vmatmul.mubr.bf16.vlgmr.msra.gmra.mrb[0].mxu0 %v4537_v22  ;;  %3243 = vmatmul.mubr.bf16.vlgmr.msra.gmra.mrb[0].mxu1 %v4537_v22  ;;  %v4641_v22 = vld [vmem:[%s4859_s15 + $0xa04] ss:$16 sps:$4 sm:$0xff]  }
 0x12d   : > { %2996 = vmatpush1.bf16.msra.mxu0 %v4540_v23  ;;  %3254 = vmatpush1.bf16.msra.mxu1 %v4543_v24  ;;  %v4644_v23 = vld [vmem:[%s4859_s15 + $0xa0c] ss:$16 sps:$4 sm:$0xff]   ;;  %v4636_v24 = vld [vmem:[%s4861_s16 + $0x20] ss:$48 sps:$4 sm:$0xff]  }
 0x12e   : > { %2997 = vmatprep.subr.bf16.mxu0 %v4548_v25  ;;  %3255 = vmatprep.subr.bf16.mxu1 %v4551_v26  ;;  %v4639_v25 = vld [vmem:[%s4859_s15 + $0xa00] ss:$16 sps:$4 sm:$0xff]   ;;  %v4642_v26 = vld [vmem:[%s4859_s15 + $0xa08] ss:$16 sps:$4 sm:$0xff]  }
 0x12f   : > { %3027 = vmatprep.mubr.bf16.mxu0 %v4638_v27  ;;  %3285 = vmatprep.mubr.bf16.mxu1 %v4638_v27  ;;  %v4647_v27 = vld [vmem:[%s4859_s15 + $0xa24] ss:$16 sps:$4 sm:$0xff]  }
 0x131   : > { %2998 = vmatpush1.bf16.msra.mxu0 %v4546_v28  ;;  %3256 = vmatpush1.bf16.msra.mxu1 %v4549_v29  ;;  %v4650_v28 = vld [vmem:[%s4859_s15 + $0xa2c] ss:$16 sps:$4 sm:$0xff]  }
 0x132   : > { %2999 = vmatprep.subr.bf16.mxu0 %v4554_v30  ;;  %3257 = vmatprep.subr.bf16.mxu1 %v4557_v31  ;;  %v4737_v29 = vld [vmem:[%s4861_s16 + $0x2c] ss:$48 sps:$4 sm:$0xff]   ;;  %v4645_v30 = vld [vmem:[%s4859_s15 + $0xa20] ss:$16 sps:$4 sm:$0xff]   ;;  %v4648_v31 = vld [vmem:[%s4859_s15 + $0xa28] ss:$16 sps:$4 sm:$0xff]  }
 0x135   : > { %3000 = vmatpush1.bf16.msra.mxu0 %v4552_v32  ;;  %3258 = vmatpush1.bf16.msra.mxu1 %v4555_v33  ;;  %v4653_v32 = vld [vmem:[%s4859_s15 + $0xa44] ss:$16 sps:$4 sm:$0xff]   ;;  %v4656_v33 = vld [vmem:[%s4859_s15 + $0xa4c] ss:$16 sps:$4 sm:$0xff]  }
 0x136   : > { %3001 = vmatprep.subr.bf16.mxu0 %v4560_v34  ;;  %3259 = vmatprep.subr.bf16.mxu1 %v4563_v35  ;;  %v4651_v34 = vld [vmem:[%s4859_s15 + $0xa40] ss:$16 sps:$4 sm:$0xff]   ;;  %v4654_v35 = vld [vmem:[%s4859_s15 + $0xa48] ss:$16 sps:$4 sm:$0xff]  }
 0x139   : > { %3002 = vmatpush1.bf16.msra.mxu0 %v4558_v36  ;;  %3260 = vmatpush1.bf16.msra.mxu1 %v4561_v37  ;;  %v4659_v36 = vld [vmem:[%s4859_s15 + $0xa64] ss:$16 sps:$4 sm:$0xff]   ;;  %v4662_v37 = vld [vmem:[%s4859_s15 + $0xa6c] ss:$16 sps:$4 sm:$0xff]  }
 0x13a   : > { %3003 = vmatprep.subr.bf16.mxu0 %v4566_v38  ;;  %3261 = vmatprep.subr.bf16.mxu1 %v4569_v39  ;;  %v4657_v38 = vld [vmem:[%s4859_s15 + $0xa60] ss:$16 sps:$4 sm:$0xff]   ;;  %v4660_v39 = vld [vmem:[%s4859_s15 + $0xa68] ss:$16 sps:$4 sm:$0xff]  }
 0x13d   : > { %3004 = vmatpush1.bf16.msra.mxu0 %v4564_v40  ;;  %3262 = vmatpush1.bf16.msra.mxu1 %v4567_v41  ;;  %v4665_v40 = vld [vmem:[%s4859_s15 + $0xa84] ss:$16 sps:$4 sm:$0xff]   ;;  %v4668_v41 = vld [vmem:[%s4859_s15 + $0xa8c] ss:$16 sps:$4 sm:$0xff]  }
 0x13e   : > { %3005 = vmatprep.subr.bf16.mxu0 %v4572_v42  ;;  %3263 = vmatprep.subr.bf16.mxu1 %v4575_v43  ;;  %v4663_v42 = vld [vmem:[%s4859_s15 + $0xa80] ss:$16 sps:$4 sm:$0xff]   ;;  %v4666_v43 = vld [vmem:[%s4859_s15 + $0xa88] ss:$16 sps:$4 sm:$0xff]  }
 0x141   : > { %3006 = vmatpush1.bf16.msra.mxu0 %v4570_v44  ;;  %3264 = vmatpush1.bf16.msra.mxu1 %v4573_v45  ;;  %v4671_v44 = vld [vmem:[%s4859_s15 + $0xaa4] ss:$16 sps:$4 sm:$0xff]   ;;  %v4674_v45 = vld [vmem:[%s4859_s15 + $0xaac] ss:$16 sps:$4 sm:$0xff]  }
 0x142   : > { %3007 = vmatprep.subr.bf16.mxu0 %v4578_v46  ;;  %3265 = vmatprep.subr.bf16.mxu1 %v4581_v47  ;;  %v4669_v46 = vld [vmem:[%s4859_s15 + $0xaa0] ss:$16 sps:$4 sm:$0xff]   ;;  %v4672_v47 = vld [vmem:[%s4859_s15 + $0xaa8] ss:$16 sps:$4 sm:$0xff]  }
 0x145   : > { %3008 = vmatpush1.bf16.msra.mxu0 %v4576_v48  ;;  %3266 = vmatpush1.bf16.msra.mxu1 %v4579_v49  ;;  %v4677_v48 = vld [vmem:[%s4859_s15 + $0xac4] ss:$16 sps:$4 sm:$0xff]   ;;  %v4680_v49 = vld [vmem:[%s4859_s15 + $0xacc] ss:$16 sps:$4 sm:$0xff]  }
 0x146   : > { %3009 = vmatprep.subr.bf16.mxu0 %v4584_v50  ;;  %3267 = vmatprep.subr.bf16.mxu1 %v4587_v51  ;;  %v4675_v50 = vld [vmem:[%s4859_s15 + $0xac0] ss:$16 sps:$4 sm:$0xff]   ;;  %v4678_v51 = vld [vmem:[%s4859_s15 + $0xac8] ss:$16 sps:$4 sm:$0xff]  }
 0x149   : > { %3010 = vmatpush1.bf16.msra.mxu0 %v4582_v52  ;;  %3268 = vmatpush1.bf16.msra.mxu1 %v4585_v53  ;;  %v4683_v52 = vld [vmem:[%s4859_s15 + $0xae4] ss:$16 sps:$4 sm:$0xff]   ;;  %v4686_v53 = vld [vmem:[%s4859_s15 + $0xaec] ss:$16 sps:$4 sm:$0xff]  }
 0x14a   : > { %3011 = vmatprep.subr.bf16.mxu0 %v4590_v54  ;;  %3269 = vmatprep.subr.bf16.mxu1 %v4593_v55  ;;  %v4681_v54 = vld [vmem:[%s4859_s15 + $0xae0] ss:$16 sps:$4 sm:$0xff]   ;;  %v4684_v55 = vld [vmem:[%s4859_s15 + $0xae8] ss:$16 sps:$4 sm:$0xff]  }
 0x14d   : > { %3012 = vmatpush1.bf16.msra.mxu0 %v4588_v56  ;;  %3270 = vmatpush1.bf16.msra.mxu1 %v4591_v57  ;;  %v4689_v56 = vld [vmem:[%s4859_s15 + $0xb04] ss:$16 sps:$4 sm:$0xff]   ;;  %v4692_v57 = vld [vmem:[%s4859_s15 + $0xb0c] ss:$16 sps:$4 sm:$0xff]  }
 0x14e   : > { %3013 = vmatprep.subr.bf16.mxu0 %v4596_v58  ;;  %3271 = vmatprep.subr.bf16.mxu1 %v4599_v59  ;;  %v4687_v58 = vld [vmem:[%s4859_s15 + $0xb00] ss:$16 sps:$4 sm:$0xff]   ;;  %v4690_v59 = vld [vmem:[%s4859_s15 + $0xb08] ss:$16 sps:$4 sm:$0xff]  }
 0x151   : > { %3014 = vmatpush1.bf16.msra.mxu0 %v4594_v60  ;;  %3272 = vmatpush1.bf16.msra.mxu1 %v4597_v61  ;;  %v4695_v60 = vld [vmem:[%s4859_s15 + $0xb24] ss:$16 sps:$4 sm:$0xff]   ;;  %v4698_v61 = vld [vmem:[%s4859_s15 + $0xb2c] ss:$16 sps:$4 sm:$0xff]  }
 0x152   : > { %3015 = vmatprep.subr.bf16.mxu0 %v4602_v62  ;;  %3273 = vmatprep.subr.bf16.mxu1 %v4605_v63  ;;  %v4693_v62 = vld [vmem:[%s4859_s15 + $0xb20] ss:$16 sps:$4 sm:$0xff]   ;;  %v4696_v63 = vld [vmem:[%s4859_s15 + $0xb28] ss:$16 sps:$4 sm:$0xff]  }
 0x155   : > { %3016 = vmatpush1.bf16.msra.mxu0 %v4600_v0  ;;  %3274 = vmatpush1.bf16.msra.mxu1 %v4603_v1  ;;  %v4701_v0 = vld [vmem:[%s4859_s15 + $0xb44] ss:$16 sps:$4 sm:$0xff]   ;;  %v4704_v1 = vld [vmem:[%s4859_s15 + $0xb4c] ss:$16 sps:$4 sm:$0xff]  }
 0x156   : > { %3017 = vmatprep.subr.bf16.mxu0 %v4608_v2  ;;  %3275 = vmatprep.subr.bf16.mxu1 %v4611_v3  ;;  %v4699_v2 = vld [vmem:[%s4859_s15 + $0xb40] ss:$16 sps:$4 sm:$0xff]   ;;  %v4702_v3 = vld [vmem:[%s4859_s15 + $0xb48] ss:$16 sps:$4 sm:$0xff]  }
 0x159   : > { %3018 = vmatpush1.bf16.msra.mxu0 %v4606_v4  ;;  %3276 = vmatpush1.bf16.msra.mxu1 %v4609_v5  ;;  %v4707_v4 = vld [vmem:[%s4859_s15 + $0xb64] ss:$16 sps:$4 sm:$0xff]   ;;  %v4710_v5 = vld [vmem:[%s4859_s15 + $0xb6c] ss:$16 sps:$4 sm:$0xff]  }
 0x15a   : > { %3019 = vmatprep.subr.bf16.mxu0 %v4614_v6  ;;  %3277 = vmatprep.subr.bf16.mxu1 %v4617_v7  ;;  %v4705_v6 = vld [vmem:[%s4859_s15 + $0xb60] ss:$16 sps:$4 sm:$0xff]   ;;  %v4708_v7 = vld [vmem:[%s4859_s15 + $0xb68] ss:$16 sps:$4 sm:$0xff]  }
 0x15d   : > { %3020 = vmatpush1.bf16.msra.mxu0 %v4612_v8  ;;  %3278 = vmatpush1.bf16.msra.mxu1 %v4615_v9  ;;  %v4713_v8 = vld [vmem:[%s4859_s15 + $0xb84] ss:$16 sps:$4 sm:$0xff]   ;;  %v4716_v9 = vld [vmem:[%s4859_s15 + $0xb8c] ss:$16 sps:$4 sm:$0xff]  }
 0x15e   : > { %3021 = vmatprep.subr.bf16.mxu0 %v4620_v10  ;;  %3279 = vmatprep.subr.bf16.mxu1 %v4623_v11  ;;  %v4711_v10 = vld [vmem:[%s4859_s15 + $0xb80] ss:$16 sps:$4 sm:$0xff]   ;;  %v4714_v11 = vld [vmem:[%s4859_s15 + $0xb88] ss:$16 sps:$4 sm:$0xff]  }
 0x161   : > { %3022 = vmatpush1.bf16.msra.mxu0 %v4618_v12  ;;  %3280 = vmatpush1.bf16.msra.mxu1 %v4621_v13  ;;  %v4719_v12 = vld [vmem:[%s4859_s15 + $0xba4] ss:$16 sps:$4 sm:$0xff]   ;;  %v4722_v13 = vld [vmem:[%s4859_s15 + $0xbac] ss:$16 sps:$4 sm:$0xff]  }
 0x162   : > { %3023 = vmatprep.subr.bf16.mxu0 %v4626_v14  ;;  %3281 = vmatprep.subr.bf16.mxu1 %v4629_v15  ;;  %v4717_v14 = vld [vmem:[%s4859_s15 + $0xba0] ss:$16 sps:$4 sm:$0xff]   ;;  %v4720_v15 = vld [vmem:[%s4859_s15 + $0xba8] ss:$16 sps:$4 sm:$0xff]  }
 0x165   : > { %3024 = vmatpush1.bf16.msra.mxu0 %v4624_v16  ;;  %3282 = vmatpush1.bf16.msra.mxu1 %v4627_v17  ;;  %v4725_v16 = vld [vmem:[%s4859_s15 + $0xbc4] ss:$16 sps:$4 sm:$0xff]   ;;  %v4728_v17 = vld [vmem:[%s4859_s15 + $0xbcc] ss:$16 sps:$4 sm:$0xff]  }
 0x166   : > { %3025 = vmatprep.subr.bf16.mxu0 %v4632_v18  ;;  %3283 = vmatprep.subr.bf16.mxu1 %v4635_v19  ;;  %v4723_v18 = vld [vmem:[%s4859_s15 + $0xbc0] ss:$16 sps:$4 sm:$0xff]   ;;  %v4726_v19 = vld [vmem:[%s4859_s15 + $0xbc8] ss:$16 sps:$4 sm:$0xff]  }
 0x169   : > { %3026 = vmatpush1.bf16.msra.mxu0 %v4630_v20  ;;  %3284 = vmatpush1.bf16.msra.mxu1 %v4633_v21  ;;  %v4731_v20 = vld [vmem:[%s4859_s15 + $0xbe4] ss:$16 sps:$4 sm:$0xff]   ;;  %v4734_v21 = vld [vmem:[%s4859_s15 + $0xbec] ss:$16 sps:$4 sm:$0xff]  }
 0x16a   : > { %3038 = vmatprep.subr.bf16.mxu0 %v4641_v22  ;;  %3296 = vmatprep.subr.bf16.mxu1 %v4644_v23  ;;  %v4729_v22 = vld [vmem:[%s4859_s15 + $0xbe0] ss:$16 sps:$4 sm:$0xff]   ;;  %v4732_v23 = vld [vmem:[%s4859_s15 + $0xbe8] ss:$16 sps:$4 sm:$0xff]  }
 0x16c   : > { %3028 = vmatmul.mubr.bf16.vlgmr.msra.gmra.mrb[0].mxu0 %v4636_v24  ;;  %3286 = vmatmul.mubr.bf16.vlgmr.msra.gmra.mrb[0].mxu1 %v4636_v24  ;;  %v4735_v24 = vld [vmem:[%s4861_s16 + $0x28] ss:$48 sps:$4 sm:$0xff]  }
 0x16d   : > { %3039 = vmatpush1.bf16.msra.mxu0 %v4639_v25  ;;  %3297 = vmatpush1.bf16.msra.mxu1 %v4642_v26  ;;  %v439_v25 = vld [vmem:[#allocation2] sm:$0xff]  ;;  %v441_v26 = vld [vmem:[#allocation2 + $0x10] sm:$0xff] }
 0x16e   : > { %3040 = vmatprep.subr.bf16.mxu0 %v4647_v27  ;;  %3298 = vmatprep.subr.bf16.mxu1 %v4650_v28  ;;  %v440_v27 = vld [vmem:[#allocation2 + $0x8] sm:$0xff]  ;;  %v442_v28 = vld [vmem:[#allocation2 + $0x18] sm:$0xff] }
 0x16f   : > { %3070 = vmatprep.mubr.bf16.mxu0 %v4737_v29  ;;  %3328 = vmatprep.mubr.bf16.mxu1 %v4737_v29 }
 0x171   : > { %3041 = vmatpush1.bf16.msra.mxu0 %v4645_v30  ;;  %3299 = vmatpush1.bf16.msra.mxu1 %v4648_v31  ;;  %v443_v31 = vld [vmem:[#allocation2 + $0x20] sm:$0xff] }
 0x172   : > { %3042 = vmatprep.subr.bf16.mxu0 %v4653_v32  ;;  %3300 = vmatprep.subr.bf16.mxu1 %v4656_v33  ;;  %v445_v32 = vld [vmem:[#allocation2 + $0x30] sm:$0xff] }
 0x175   : > { %3043 = vmatpush1.bf16.msra.mxu0 %v4651_v34  ;;  %3301 = vmatpush1.bf16.msra.mxu1 %v4654_v35 }
 0x176   : > { %3044 = vmatprep.subr.bf16.mxu0 %v4659_v36  ;;  %3302 = vmatprep.subr.bf16.mxu1 %v4662_v37  ;;  %v444_v37 = vld [vmem:[#allocation2 + $0x28] sm:$0xff] }
 0x179   : > { %3045 = vmatpush1.bf16.msra.mxu0 %v4657_v38  ;;  %3303 = vmatpush1.bf16.msra.mxu1 %v4660_v39  ;;  %v446_v38 = vld [vmem:[#allocation2 + $0x38] sm:$0xff] }
 0x17a   : > { %3046 = vmatprep.subr.bf16.mxu0 %v4665_v40  ;;  %3304 = vmatprep.subr.bf16.mxu1 %v4668_v41 }
 0x17d   : > { %3047 = vmatpush1.bf16.msra.mxu0 %v4663_v42  ;;  %3305 = vmatpush1.bf16.msra.mxu1 %v4666_v43 }
 0x17e   : > { %3048 = vmatprep.subr.bf16.mxu0 %v4671_v44  ;;  %3306 = vmatprep.subr.bf16.mxu1 %v4674_v45 }
 0x181   : > { %3049 = vmatpush1.bf16.msra.mxu0 %v4669_v46  ;;  %3307 = vmatpush1.bf16.msra.mxu1 %v4672_v47 }
 0x182   : > { %3050 = vmatprep.subr.bf16.mxu0 %v4677_v48  ;;  %3308 = vmatprep.subr.bf16.mxu1 %v4680_v49  ;;  %v3369_v49 = vlaneseq (!%p4046_p11) }
 0x185   : > { %3051 = vmatpush1.bf16.msra.mxu0 %v4675_v50  ;;  %3309 = vmatpush1.bf16.msra.mxu1 %v4678_v51  ;;  %v3427_v50 = vld [vmem:[%s5310_s4] sm:$0xff] (!%p4046_p11)  ;;  %v3370_v51 = vshrl.u32 (!%p4046_p11), %v3369_v49, 7 }
 0x186   : > { %3052 = vmatprep.subr.bf16.mxu0 %v4683_v52  ;;  %3310 = vmatprep.subr.bf16.mxu1 %v4686_v53  ;;  %v3428_v52 = vld [vmem:[%s5310_s4 + $0x8] sm:$0xff] (!%p4046_p11) }
 0x189   : > { %3053 = vmatpush1.bf16.msra.mxu0 %v4681_v54  ;;  %3311 = vmatpush1.bf16.msra.mxu1 %v4684_v55  ;;  %v3367_v54 = vld [vmem:[%s5308_s2] sm:$0xf] (!%p4046_p11) }
 0x18a   : > { %3054 = vmatprep.subr.bf16.mxu0 %v4689_v56  ;;  %3312 = vmatprep.subr.bf16.mxu1 %v4692_v57  ;;  %v3397_v55 = vld [vmem:[%s5309_s3] sm:$0xf] (!%p4046_p11)  ;;  %v3431_v56 = vunpack.c.l.bf16 (!%p4046_p11), %v3427_v50  ;;  %v3432_v57 = vunpack.c.h.bf16 (!%p4046_p11), %v3427_v50 }
 0x18d   : > { %3055 = vmatpush1.bf16.msra.mxu0 %v4687_v58  ;;  %3313 = vmatpush1.bf16.msra.mxu1 %v4690_v59  ;;  %v3433_v58 = vunpack.c.l.bf16 (!%p4046_p11), %v3428_v52  ;;  %v3434_v59 = vunpack.c.h.bf16 (!%p4046_p11), %v3428_v52 }
 0x18e   : > { %3056 = vmatprep.subr.bf16.mxu0 %v4695_v60  ;;  %3314 = vmatprep.subr.bf16.mxu1 %v4698_v61  ;;  %v3429_v60 = vld [vmem:[%s5310_s4 + $0x10] sm:$0xff] (!%p4046_p11) }
 0x191   : > { %3057 = vmatpush1.bf16.msra.mxu0 %v4693_v62  ;;  %3315 = vmatpush1.bf16.msra.mxu1 %v4696_v63  ;;  %v3371_v62 = vsub.s32 (!%p4046_p11), 0, %v3370_v51  ;;  %v3375_v63 = vsub.s32 (!%p4046_p11), 1, %v3370_v51 }
 0x192   : > { %3058 = vmatprep.subr.bf16.mxu0 %v4701_v0  ;;  %3316 = vmatprep.subr.bf16.mxu1 %v4704_v1  ;;  %v3379_v0 = vsub.s32 (!%p4046_p11), 2, %v3370_v51  ;;  %v3383_v1 = vsub.s32 (!%p4046_p11), 3, %v3370_v51 }
 0x195   : > { %3059 = vmatpush1.bf16.msra.mxu0 %v4699_v2  ;;  %3317 = vmatpush1.bf16.msra.mxu1 %v4702_v3  ;;  %v3430_v2 = vld [vmem:[%s5310_s4 + $0x18] sm:$0xff] (!%p4046_p11) }
 0x196   : > { %3060 = vmatprep.subr.bf16.mxu0 %v4707_v4  ;;  %3318 = vmatprep.subr.bf16.mxu1 %v4710_v5 }
 0x199   : > { %3061 = vmatpush1.bf16.msra.mxu0 %v4705_v6  ;;  %3319 = vmatpush1.bf16.msra.mxu1 %v4708_v7  ;;  %v3435_v6 = vunpack.c.l.bf16 (!%p4046_p11), %v3429_v60  ;;  %v3436_v7 = vunpack.c.h.bf16 (!%p4046_p11), %v3429_v60 }
 0x19a   : > { %3062 = vmatprep.subr.bf16.mxu0 %v4713_v8  ;;  %3320 = vmatprep.subr.bf16.mxu1 %v4716_v9  ;;  %v3437_v8 = vunpack.c.l.bf16 (!%p4046_p11), %v3430_v2  ;;  %v3438_v9 = vunpack.c.h.bf16 (!%p4046_p11), %v3430_v2 }
 0x19d   : > { %3063 = vmatpush1.bf16.msra.mxu0 %v4711_v10  ;;  %3321 = vmatpush1.bf16.msra.mxu1 %v4714_v11  ;;  %v3372_v10 = vrot.slane (!%p4046_p11), %v3367_v54, %v3371_v62  ;;  %v3376_v11 = vrot.slane (!%p4046_p11), %v3367_v54, %v3375_v63 }
 0x19e   : > { %3064 = vmatprep.subr.bf16.mxu0 %v4719_v12  ;;  %3322 = vmatprep.subr.bf16.mxu1 %v4722_v13  ;;  %v3402_v12 = vrot.slane (!%p4046_p11), %v3397_v55, %v3371_v62  ;;  %v3406_v13 = vrot.slane (!%p4046_p11), %v3397_v55, %v3375_v63 }
 0x1a1   : > { %3065 = vmatpush1.bf16.msra.mxu0 %v4717_v14  ;;  %3323 = vmatpush1.bf16.msra.mxu1 %v4720_v15 }
 0x1a2   : > { %3066 = vmatprep.subr.bf16.mxu0 %v4725_v16  ;;  %3324 = vmatprep.subr.bf16.mxu1 %v4728_v17  ;;  %v3380_v17 = vrot.slane (!%p4046_p11), %v3367_v54, %v3379_v0 }
 0x1a5   : > { %3067 = vmatpush1.bf16.msra.mxu0 %v4723_v18  ;;  %3325 = vmatpush1.bf16.msra.mxu1 %v4726_v19  ;;  %v3384_v18 = vrot.slane (!%p4046_p11), %v3367_v54, %v3383_v1  ;;  %v3410_v19 = vrot.slane (!%p4046_p11), %v3397_v55, %v3379_v0 }
 0x1a6   : > { %3068 = vmatprep.subr.bf16.mxu0 %v4731_v20  ;;  %3326 = vmatprep.subr.bf16.mxu1 %v4734_v21  ;;  %v3414_v20 = vrot.slane (!%p4046_p11), %v3397_v55, %v3383_v1 }
 0x1a9   : > { %3069 = vmatpush1.bf16.msra.mxu0 %v4729_v22  ;;  %3327 = vmatpush1.bf16.msra.mxu1 %v4732_v23 }
 0x1ac   : > { %3071 = vmatmul.mubr.bf16.vlgmr.msra.gmra.mrb[0].mxu0 %v4735_v24  ;;  %3329 = vmatmul.mubr.bf16.vlgmr.msra.gmra.mrb[0].mxu1 %v4735_v24 }
 0x27f   : > { %v3072_v29 = vpop.f32.mrb[0].mxu0  ;;  %v3330_v30 = vpop.f32.mrb[0].mxu1  ;;  %3358 = sbr.rel (%p4046_p11) target bundleno = 664 (0x298), region = 71 }
 0x280   : > { %v3339_v33 = vadd.f32 %v3072_v29, %v439_v25  ;;  %v3341_v34 = vadd.f32 %v3330_v30, %v441_v26  ;;  %v3074_v35 = vpop.f32.mrb[1].mxu0  ;;  %v3332_v36 = vpop.f32.mrb[1].mxu1 }
 0x281   : > { %v3340_v39 = vadd.f32 %v3074_v35, %v440_v27  ;;  %v3342_v40 = vadd.f32 %v3332_v36, %v442_v28  ;;  %v3076_v41 = vpop.f32.mrb[2].mxu0  ;;  %v3334_v42 = vpop.f32.mrb[2].mxu1 }
 0x282   : > { %3347 = vst [vmem:[#allocation2] sm:$0xff] %v3339_v33  ;;  %3349 = vst [vmem:[#allocation2 + $0x10] sm:$0xff] %v3341_v34  ;;  %v3343_v43 = vadd.f32 %v3076_v41, %v443_v31  ;;  %v3345_v44 = vadd.f32 %v3334_v42, %v445_v32  ;;  %v3078_v45 = vpop.f32.mrb[3].mxu0  ;;  %v3336_v46 = vpop.f32.mrb[3].mxu1 }
 0x283   : > { %3348 = vst [vmem:[#allocation2 + $0x8] sm:$0xff] %v3340_v39  ;;  %3350 = vst [vmem:[#allocation2 + $0x18] sm:$0xff] %v3342_v40  ;;  %v3344_v47 = vadd.f32 %v3078_v45, %v444_v37  ;;  %v3346_v48 = vadd.f32 %v3336_v46, %v446_v38 }
 0x284   : > { %3351 = vst [vmem:[#allocation2 + $0x20] sm:$0xff] %v3343_v43  ;;  %3353 = vst [vmem:[#allocation2 + $0x30] sm:$0xff] %v3345_v44 }
 0x285   : > { %3352 = vst [vmem:[#allocation2 + $0x28] sm:$0xff] %v3344_v47  ;;  %3354 = vst [vmem:[#allocation2 + $0x38] sm:$0xff] %v3346_v48 }
 0x289   : > { %v3359_v53 = vld [vmem:[#allocation2] sm:$0xff]  ;;  %v3361_v3 = vld [vmem:[#allocation2 + $0x10] sm:$0xff] }
 0x28a   : > { %v3360_v61 = vld [vmem:[#allocation2 + $0x8] sm:$0xff]  ;;  %v3362_v14 = vld [vmem:[#allocation2 + $0x18] sm:$0xff]  ;;  %v3389_v21 = vmul.f32 %v3372_v10, %v3359_v53  ;;  %v3391_v25 = vmul.f32 %v3380_v17, %v3361_v3 }
 0x28b   : > { %v3363_v4 = vld [vmem:[#allocation2 + $0x20] sm:$0xff]  ;;  %v3365_v15 = vld [vmem:[#allocation2 + $0x30] sm:$0xff]  ;;  %v3390_v22 = vmul.f32 %v3376_v11, %v3360_v61  ;;  %v3392_v26 = vmul.f32 %v3384_v18, %v3362_v14 }
 0x28c   : > { %v3364_v5 = vld [vmem:[#allocation2 + $0x28] sm:$0xff]  ;;  %v3366_v16 = vld [vmem:[#allocation2 + $0x38] sm:$0xff]  ;;  %v3393_v23 = vmul.f32 %v3372_v10, %v3363_v4  ;;  %v3395_v27 = vmul.f32 %v3380_v17, %v3365_v15  ;;  %v3419_v29 = vadd.f32 %v3402_v12, %v3389_v21  ;;  %v3421_v33 = vadd.f32 %v3410_v19, %v3391_v25 }
 0x28d   : > { %v3394_v24 = vmul.f32 %v3376_v11, %v3364_v5  ;;  %v3396_v28 = vmul.f32 %v3384_v18, %v3366_v16  ;;  %v3420_v30 = vadd.f32 %v3406_v13, %v3390_v22  ;;  %v3422_v34 = vadd.f32 %v3414_v20, %v3392_v26 }
 0x28e   : > { %v3423_v31 = vadd.f32 %v3402_v12, %v3393_v23  ;;  %v3425_v35 = vadd.f32 %v3410_v19, %v3395_v27  ;;  %v3439_v37 = vadd.f32 %v3431_v56, %v3419_v29  ;;  %v3441_v41 = vadd.f32 %v3433_v58, %v3421_v33 }
 0x28f   : > { %v3424_v32 = vadd.f32 %v3406_v13, %v3394_v24  ;;  %v3426_v36 = vadd.f32 %v3414_v20, %v3396_v28  ;;  %v3440_v38 = vadd.f32 %v3432_v57, %v3420_v30  ;;  %v3442_v42 = vadd.f32 %v3434_v59, %v3422_v34 }
 0x290   : > { %v3443_v39 = vadd.f32 %v3435_v6, %v3423_v31  ;;  %v3445_v43 = vadd.f32 %v3437_v8, %v3425_v35  ;;  %v3447_v45 = vmax.f32 %v3439_v37, 0.0  ;;  %v3449_v49 = vmax.f32 %v3441_v41, 0.0 }
 0x291   : > { %v3444_v40 = vadd.f32 %v3436_v7, %v3424_v32  ;;  %v3446_v44 = vadd.f32 %v3438_v9, %v3426_v36  ;;  %v3448_v46 = vmax.f32 %v3440_v38, 0.0  ;;  %v3450_v50 = vmax.f32 %v3442_v42, 0.0 }
 0x292   : > { %v3451_v47 = vmax.f32 %v3443_v39, 0.0  ;;  %v3453_v51 = vmax.f32 %v3445_v43, 0.0 }
 0x293   : > { %v3452_v48 = vmax.f32 %v3444_v40, 0.0  ;;  %v3454_v52 = vmax.f32 %v3446_v44, 0.0  ;;  %v4057_v53 = vpack.c.bf16 %v3448_v46, %v3447_v45  ;;  %v4058_v55 = vpack.c.bf16 %v3450_v50, %v3449_v49 }
 0x295   : > { %v4059_v54 = vpack.c.bf16 %v3452_v48, %v3451_v47  ;;  %v4060_v60 = vpack.c.bf16 %v3454_v52, %v3453_v51  ;;  %3479 = vst [vmem:[%s5311_s5] sm:$0xff] %v4057_v53  ;;  %3480 = vst [vmem:[%s5311_s5 + $0x8] sm:$0xff] %v4058_v55 }
 0x297   : > { %3481 = vst [vmem:[%s5311_s5 + $0x10] sm:$0xff] %v4059_v54  ;;  %3482 = vst [vmem:[%s5311_s5 + $0x18] sm:$0xff] %v4060_v60 }
 0x298 PF: > { %s15_s22 = sadd.s32 1, %s4776_s22   ;;  %s5312_s18 = smov %s4764_s19 }
 0x299   : > { %p12_p12 = scmp.ge.s32.totalorder %s15_s22, 5   ;;  %s5313_s19 = smov %s4844_s26 }
 0x29a   : > { %s5314_s20 = smov %s4772_s21  ;;  %s5315_s21 = smov %s5317_s23 }
 0x29b   :  { %14 = sbr.rel (!%p12_p12) target bundleno = 3 (0x3), region = 118 }

</bundles_post_ra>
